<compile_context>
chip_gen: v7x
topology: tpu7x:2x2x1
jax: 0.10.0
libtpu: 0.0.40
codegen_flags: <defaults>
</compile_context>

<pallas_src>
import functools
from math import sqrt

import jax
import jax.numpy as jnp
from jax.experimental import pallas as pl
from jax.experimental.pallas import tpu as pltpu

LN_EPS = 1e-5
_VMEM_LIMIT = 32 * 1024 * 1024


def _layer_norm(v, g, b):
    """LayerNorm over the last dim (f32 math)."""
    mu = jnp.mean(v, axis=-1, keepdims=True)
    var = jnp.mean(jnp.square(v - mu), axis=-1, keepdims=True)
    return (v - mu) * jax.lax.rsqrt(var + LN_EPS) * g + b


# --------------------------------------------------------------------------- #
# Kernel 1: block LayerNorm + fused Q/K/V projection (all heads in one matmul) #
# --------------------------------------------------------------------------- #
def _qkv_kernel(x_ref, gn_ref, bn_ref,
                wq_ref, bq_ref, wk_ref, bk_ref, wv_ref, bv_ref,
                q_ref, k_ref, v_ref, *, q_scale):
    # x tile: (TS, D) f32; weights: bf16.  LN in f32, MXU matmuls in bf16 with
    # f32 accumulation; q/k/v are written back in bf16 (halves HBM traffic).
    # The 1/sqrt(dh) attention scale is folded into q here (one (TS, D) mul)
    # so the attention inner loop does no per-score-tile scaling.
    xn = _layer_norm(x_ref[...], gn_ref[...], bn_ref[...]).astype(jnp.bfloat16)
    q = jnp.dot(xn, wq_ref[...], preferred_element_type=jnp.float32) + bq_ref[...]
    k = jnp.dot(xn, wk_ref[...], preferred_element_type=jnp.float32) + bk_ref[...]
    v = jnp.dot(xn, wv_ref[...], preferred_element_type=jnp.float32) + bv_ref[...]
    q_ref[...] = (q * q_scale).astype(q_ref.dtype)
    k_ref[...] = k.astype(k_ref.dtype)
    v_ref[...] = v.astype(v_ref.dtype)


# --------------------------------------------------------------------------- #
# Kernel 2: flash attention (online softmax over K/V tiles)                    #
#   Heads are addressed as dh-wide blocks of the last dim of (B, S, D) q/k/v;  #
#   the per-head output lands directly in the concat-head (B, S, D) layout.    #
# --------------------------------------------------------------------------- #
def _flash_attn_kernel(q_ref, k_ref, v_ref, o_ref, m_sc, l_sc, acc_sc):
    ki = pl.program_id(3)

    @pl.when(ki == 0)
    def _():
        m_sc[...] = jnp.full_like(m_sc, -jnp.inf)
        l_sc[...] = jnp.zeros_like(l_sc)
        acc_sc[...] = jnp.zeros_like(acc_sc)

    # Scores: contract head_dim directly (no explicit K transpose), f32 accum.
    # q is already pre-scaled by 1/sqrt(dh) in kernel 1.
    s = jax.lax.dot_general(
        q_ref[...], k_ref[...],
        dimension_numbers=(((1,), (1,)), ((), ())),
        preferred_element_type=jnp.float32)                       # (TQ, TK) f32

    m_prev = m_sc[...]
    m_new = jnp.maximum(m_prev, jnp.max(s, axis=-1, keepdims=True))
    alpha = jnp.exp(m_prev - m_new)
    p = jnp.exp(s - m_new)
    l_sc[...] = alpha * l_sc[...] + jnp.sum(p, axis=-1, keepdims=True)
    acc_sc[...] = alpha * acc_sc[...] + jnp.dot(
        p.astype(v_ref.dtype), v_ref[...], preferred_element_type=jnp.float32)
    m_sc[...] = m_new

    @pl.when(ki == pl.num_programs(3) - 1)
    def _():
        inv_l = pl.reciprocal(l_sc[...], approx=True)             # EUP slot, ~free
        o_ref[...] = (acc_sc[...] * inv_l).astype(o_ref.dtype)


# --------------------------------------------------------------------------- #
# Kernel 3: Wo projection + attn-LN + residual + block-LN + FFN (hidden tiled) #
# --------------------------------------------------------------------------- #
def _proj_ffn_kernel(o_ref, x_ref,
                     wo_ref, bo_ref, ga_ref, ba_ref, gn_ref, bn_ref,
                     w1_ref, b1_ref, w2_ref, b2_ref,
                     out_ref, res_sc, xn2_sc, acc_sc):
    hi = pl.program_id(2)

    @pl.when(hi == 0)
    def _():
        attn = jnp.dot(o_ref[...], wo_ref[...],
                       preferred_element_type=jnp.float32) + bo_ref[...]
        attn = _layer_norm(attn, ga_ref[...], ba_ref[...])
        res = attn + x_ref[...]
        res_sc[...] = res
        xn2_sc[...] = _layer_norm(res, gn_ref[...], bn_ref[...]).astype(xn2_sc.dtype)
        acc_sc[...] = jnp.zeros_like(acc_sc)

    h1 = jnp.dot(xn2_sc[...], w1_ref[...],
                 preferred_element_type=jnp.float32) + b1_ref[...]
    h1 = jnp.maximum(h1, 0.0).astype(jnp.bfloat16)
    acc_sc[...] += jnp.dot(h1, w2_ref[...], preferred_element_type=jnp.float32)

    @pl.when(hi == pl.num_programs(2) - 1)
    def _():
        out_ref[...] = (acc_sc[...] + b2_ref[...] + res_sc[...]).astype(out_ref.dtype)


# --------------------------------------------------------------------------- #
# Wrapper                                                                      #
# --------------------------------------------------------------------------- #
def transformer_block(x, params, *, heads, ts=256, tq=256, tk=256, th=512):
    B, S, D = x.shape
    assert D % heads == 0
    dh = D // heads
    HF = params["w1"].shape[1]

    ts, tq, tk, th = min(ts, S), min(tq, S), min(tk, S), min(th, HF)
    assert S % ts == 0 and S % tq == 0 and S % tk == 0 and HF % th == 0
    # lane-density requirements (last dims multiples of 128, seq tiles of 8)
    assert D % 128 == 0 and dh % 128 == 0 and th % 128 == 0
    assert ts % 8 == 0 and tq % 8 == 0 and tk % 8 == 0

    bf16 = jnp.bfloat16
    wq, wk, wv = (params[n].astype(bf16) for n in ("wq", "wk", "wv"))
    wo, w1, w2 = (params[n].astype(bf16) for n in ("wo", "w1", "w2"))
    bq, bk, bv, bo = params["bq"], params["bk"], params["bv"], params["bo"]
    ga, ba, gn, bn = params["ga"], params["ba"], params["gn"], params["bn"]
    b1, b2 = params["b1"], params["b2"]

    def cparams(sems):
        return pltpu.CompilerParams(dimension_semantics=sems,
                                    vmem_limit_bytes=_VMEM_LIMIT)

    def full(shape):
        # grid-invariant block (weights / biases / LN params)
        return pl.BlockSpec(shape, lambda *_: (0,) * len(shape))

    # ---- Kernel 1: LN + QKV projection (q pre-scaled by 1/sqrt(dh)) ---------
    scale = 1.0 / sqrt(max(dh, 1))
    seq_in = pl.BlockSpec((pl.Squeezed(), ts, D), lambda b, s: (b, s, 0))
    seq_out = pl.BlockSpec((pl.Squeezed(), ts, D), lambda b, s: (b, s, 0))
    q, k, v = pl.pallas_call(
        functools.partial(_qkv_kernel, q_scale=scale),
        out_shape=tuple(jax.ShapeDtypeStruct((B, S, D), bf16) for _ in range(3)),
        grid=(B, S // ts),
        in_specs=[
            seq_in,                          # x
            full((1, D)), full((1, D)),      # block-LN gamma / beta
            full((D, D)), full((1, D)),      # wq, bq
            full((D, D)), full((1, D)),      # wk, bk
            full((D, D)), full((1, D)),      # wv, bv
        ],
        out_specs=(seq_out, seq_out, seq_out),
        compiler_params=cparams(("parallel", "parallel")),
    )(x, gn, bn, wq, bq, wk, bk, wv, bv)

    # ---- Kernel 2: flash attention (heads sliced out of the last dim) -------
    # No wrapper-side head split/merge: the index_map picks head h as block h
    # of the last dim (block size dh), and outputs land directly in the
    # concat-head (B, S, D) layout that W_o consumes.
    q_spec = pl.BlockSpec((pl.Squeezed(), tq, dh), lambda b, h, qi, ki: (b, qi, h))
    kv_spec = pl.BlockSpec((pl.Squeezed(), tk, dh), lambda b, h, qi, ki: (b, ki, h))
    o_spec = pl.BlockSpec((pl.Squeezed(), tq, dh), lambda b, h, qi, ki: (b, qi, h))
    o = pl.pallas_call(
        _flash_attn_kernel,
        out_shape=jax.ShapeDtypeStruct((B, S, D), bf16),
        grid=(B, heads, S // tq, S // tk),
        in_specs=[q_spec, kv_spec, kv_spec],
        out_specs=o_spec,
        scratch_shapes=[
            pltpu.VMEM((tq, 1), jnp.float32),    # running max
            pltpu.VMEM((tq, 1), jnp.float32),    # running denom
            pltpu.VMEM((tq, dh), jnp.float32),   # output accumulator
        ],
        compiler_params=cparams(("parallel", "parallel", "parallel", "arbitrary")),
    )(q, k, v)

    # ---- Kernel 3: Wo proj + LN + residual + FFN (hidden tiled) --------------
    out = pl.pallas_call(
        _proj_ffn_kernel,
        out_shape=jax.ShapeDtypeStruct((B, S, D), jnp.float32),
        grid=(B, S // ts, HF // th),
        in_specs=[
            pl.BlockSpec((pl.Squeezed(), ts, D), lambda b, s, hi: (b, s, 0)),  # o
            pl.BlockSpec((pl.Squeezed(), ts, D), lambda b, s, hi: (b, s, 0)),  # x
            full((D, D)), full((1, D)),                                        # wo, bo
            full((1, D)), full((1, D)),                                        # attn-LN
            full((1, D)), full((1, D)),                                        # block-LN
            pl.BlockSpec((D, th), lambda b, s, hi: (0, hi)),                   # w1 slice
            pl.BlockSpec((1, th), lambda b, s, hi: (0, hi)),                   # b1 slice
            pl.BlockSpec((th, D), lambda b, s, hi: (hi, 0)),                   # w2 slice
            full((1, D)),                                                      # b2
        ],
        out_specs=pl.BlockSpec((pl.Squeezed(), ts, D), lambda b, s, hi: (b, s, 0)),
        scratch_shapes=[
            pltpu.VMEM((ts, D), jnp.float32),    # res = attn + x
            pltpu.VMEM((ts, D), jnp.bfloat16),   # LN(res) (FFN input)
            pltpu.VMEM((ts, D), jnp.float32),    # FFN accumulator
        ],
        compiler_params=cparams(("parallel", "parallel", "arbitrary")),
    )(o, x, wo, bo, ga, ba, gn, bn, w1, b1, w2, b2)

    return out


# --------------------------------------------------------------------------- #
# Pure-JAX f32 reference mirroring the PyTorch forward                          #
# --------------------------------------------------------------------------- #
def reference(x, params, *, heads):
    D = x.shape[-1]
    dh = D // heads
    gn, bn = params["gn"], params["bn"]

    xn = _layer_norm(x, gn, bn)
    q = xn @ params["wq"] + params["bq"]
    k = xn @ params["wk"] + params["bk"]
    v = xn @ params["wv"] + params["bv"]
    scale = 1.0 / sqrt(max(dh, 1))
    outs = []
    for h in range(heads):
        sl = slice(h * dh, (h + 1) * dh)
        a = jnp.einsum("bsd,btd->bst", q[..., sl], k[..., sl]) * scale
        a = a - jnp.max(a, axis=-1, keepdims=True)
        a = jax.nn.softmax(a, axis=-1)
        outs.append(jnp.einsum("bst,btd->bsd", a, v[..., sl]))
    o = jnp.concatenate(outs, axis=-1)
    attn = _layer_norm(o @ params["wo"] + params["bo"], params["ga"], params["ba"])
    res = attn + x
    xn2 = _layer_norm(res, gn, bn)
    h1 = jnp.maximum(xn2 @ params["w1"] + params["b1"], 0.0)
    return h1 @ params["w2"] + params["b2"] + res


def init_params(key, d_model, heads):
    hidden = 4 * d_model
    ks = jax.random.split(key, 16)
    n = lambda i, shape, s: s * jax.random.normal(ks[i], shape, jnp.float32)
    return {
        "wq": n(0, (d_model, d_model), 0.05), "bq": n(1, (1, d_model), 0.01),
        "wk": n(2, (d_model, d_model), 0.05), "bk": n(3, (1, d_model), 0.01),
        "wv": n(4, (d_model, d_model), 0.05), "bv": n(5, (1, d_model), 0.01),
        "wo": n(6, (d_model, d_model), 0.05), "bo": n(7, (1, d_model), 0.01),
        "ga": 1.0 + n(8, (1, d_model), 0.1), "ba": n(9, (1, d_model), 0.1),
        "gn": 1.0 + n(10, (1, d_model), 0.1), "bn": n(11, (1, d_model), 0.1),
        "w1": n(12, (d_model, hidden), 0.05), "b1": n(13, (1, hidden), 0.01),
        "w2": n(14, (hidden, d_model), 0.05), "b2": n(15, (1, d_model), 0.01),
    }


if __name__ == "__main__":
    # Small but lane-dense shapes: d_model=256, heads=2 -> head_dim=128, hidden=1024.
    B, S, D, HEADS = 2, 256, 256, 2
    key = jax.random.PRNGKey(0)
    kx, kp = jax.random.split(key)
    x = jax.random.normal(kx, (B, S, D), jnp.float32)
    params = init_params(kp, D, HEADS)

    fn = jax.jit(functools.partial(transformer_block, heads=HEADS,
                                   ts=128, tq=128, tk=128, th=512))
    out = jax.block_until_ready(fn(x, params))

    ref = jax.block_until_ready(reference(x, params, heads=HEADS))
    assert out.shape == (B, S, D)
    err = float(jnp.max(jnp.abs(out - ref)))
    # bf16 MXU inputs with f32 accumulation -> relaxed tolerance vs f32 reference.
    assert jnp.allclose(out, ref, atol=1e-1, rtol=1e-1), f"max abs err = {err}"
    print("KERNEL_OK")
</pallas_src>

<mosaic_0001>
module attributes {stable_mosaic.version = 11 : i64} {
  func.func @_flash_attn_kernel(%arg0: i32, %arg1: i32, %arg2: i32, %arg3: i32, %arg4: memref<1x128x128xbf16, #tpu.memory_space<vmem>>, %arg5: memref<1x128x128xbf16, #tpu.memory_space<vmem>>, %arg6: memref<1x128x128xbf16, #tpu.memory_space<vmem>>, %arg7: memref<1x128x128xbf16, #tpu.memory_space<vmem>>, %arg8: memref<128x1xf32, #tpu.memory_space<vmem>>, %arg9: memref<128x1xf32, #tpu.memory_space<vmem>>, %arg10: memref<128x128xf32, #tpu.memory_space<vmem>>) attributes {dimension_semantics = [#tpu.dimension_semantics<parallel>, #tpu.dimension_semantics<parallel>, #tpu.dimension_semantics<parallel>, #tpu.dimension_semantics<arbitrary>], iteration_bounds = array<i64: 2, 2, 2, 2>, scalar_prefetch = 0 : i64, scratch_operands = 3 : i64, tpu.core_type = #tpu.core_type<tc>, window_params = [{transform_indices = @transform_0, window_bounds = array<i64: 1, 128, 128>}, {transform_indices = @transform_1, window_bounds = array<i64: 1, 128, 128>}, {transform_indices = @transform_2, window_bounds = array<i64: 1, 128, 128>}, {transform_indices = @transform_3, window_bounds = array<i64: 1, 128, 128>}]} {
    %c0_i32 = arith.constant 0 : i32
    %0 = arith.cmpi eq, %arg3, %c0_i32 : i32
    %1 = arith.extui %0 : i1 to i32
    %c0_i32_0 = arith.constant 0 : i32
    %2 = arith.cmpi ne, %1, %c0_i32_0 : i32
    scf.if %2 {
      %cst_25 = arith.constant 0xFF800000 : f32
      %36 = vector.broadcast %cst_25 : f32 to vector<128x1xf32>
      %c0_26 = arith.constant 0 : index
      %c0_27 = arith.constant 0 : index
      %37 = vector.load %arg8[%c0_26, %c0_27] : memref<128x1xf32, #tpu.memory_space<vmem>>, vector<128x1xf32>
      tpu.vector_store %arg8[%c0_26, %c0_27], %36 {strides = array<i32>} : memref<128x1xf32, #tpu.memory_space<vmem>>, vector<128x1xf32>,
      %cst_28 = arith.constant 0.000000e+00 : f32
      %38 = vector.broadcast %cst_28 : f32 to vector<128x1xf32>
      %c0_29 = arith.constant 0 : index
      %c0_30 = arith.constant 0 : index
      %39 = vector.load %arg9[%c0_29, %c0_30] : memref<128x1xf32, #tpu.memory_space<vmem>>, vector<128x1xf32>
      tpu.vector_store %arg9[%c0_29, %c0_30], %38 {strides = array<i32>} : memref<128x1xf32, #tpu.memory_space<vmem>>, vector<128x1xf32>,
      %cst_31 = arith.constant 0.000000e+00 : f32
      %40 = vector.broadcast %cst_31 : f32 to vector<128x128xf32>
      %c0_32 = arith.constant 0 : index
      %c0_33 = arith.constant 0 : index
      %41 = vector.load %arg10[%c0_32, %c0_33] : memref<128x128xf32, #tpu.memory_space<vmem>>, vector<128x128xf32>
      tpu.vector_store %arg10[%c0_32, %c0_33], %40 {strides = array<i32>} : memref<128x128xf32, #tpu.memory_space<vmem>>, vector<128x128xf32>,
    } else {
    }
    %c0 = arith.constant 0 : index
    %c0_1 = arith.constant 0 : index
    %c0_2 = arith.constant 0 : index
    %3 = vector.load %arg4[%c0, %c0_1, %c0_2] : memref<1x128x128xbf16, #tpu.memory_space<vmem>>, vector<1x128x128xbf16>
    %4 = vector.shape_cast %3 : vector<1x128x128xbf16> to vector<128x128xbf16>
    %c0_3 = arith.constant 0 : index
    %c0_4 = arith.constant 0 : index
    %c0_5 = arith.constant 0 : index
    %5 = vector.load %arg5[%c0_3, %c0_4, %c0_5] : memref<1x128x128xbf16, #tpu.memory_space<vmem>>, vector<1x128x128xbf16>
    %6 = vector.shape_cast %5 : vector<1x128x128xbf16> to vector<128x128xbf16>
    %cst = arith.constant dense<0.000000e+00> : vector<128x128xf32>
    %7 = tpu.matmul %4, %6, %cst {dimension_numbers = #tpu.dot_dimension_numbers<[1], [1], [0], [0], [0, 0, 1, 0], [], []>} : vector<128x128xbf16>, vector<128x128xbf16>, vector<128x128xf32> -> vector<128x128xf32>
    %c0_6 = arith.constant 0 : index
    %c0_7 = arith.constant 0 : index
    %8 = vector.load %arg8[%c0_6, %c0_7] : memref<128x1xf32, #tpu.memory_space<vmem>>, vector<128x1xf32>
    %cst_8 = arith.constant dense<0xFF800000> : vector<128xf32>
    %9 = vector.multi_reduction <maximumf>, %7, %cst_8 [1] : vector<128x128xf32> to vector<128xf32>
    %10 = vector.shape_cast %9 : vector<128xf32> to vector<128x1xf32>
    %11 = arith.maximumf %8, %10 : vector<128x1xf32>
    %12 = arith.subf %8, %11 : vector<128x1xf32>
    %13 = math.exp %12 : vector<128x1xf32>
    %14 = vector.broadcast %11 : vector<128x1xf32> to vector<128x128xf32>
    %15 = arith.subf %7, %14 : vector<128x128xf32>
    %16 = math.exp %15 : vector<128x128xf32>
    %c0_9 = arith.constant 0 : index
    %c0_10 = arith.constant 0 : index
    %17 = vector.load %arg9[%c0_9, %c0_10] : memref<128x1xf32, #tpu.memory_space<vmem>>, vector<128x1xf32>
    %18 = arith.mulf %13, %17 : vector<128x1xf32>
    %cst_11 = arith.constant dense<0.000000e+00> : vector<128xf32>
    %19 = vector.multi_reduction <add>, %16, %cst_11 [1] : vector<128x128xf32> to vector<128xf32>
    %20 = vector.shape_cast %19 : vector<128xf32> to vector<128x1xf32>
    %21 = arith.addf %18, %20 : vector<128x1xf32>
    %c0_12 = arith.constant 0 : index
    %c0_13 = arith.constant 0 : index
    %22 = vector.load %arg9[%c0_12, %c0_13] : memref<128x1xf32, #tpu.memory_space<vmem>>, vector<128x1xf32>
    tpu.vector_store %arg9[%c0_12, %c0_13], %21 {strides = array<i32>} : memref<128x1xf32, #tpu.memory_space<vmem>>, vector<128x1xf32>,
    %c0_14 = arith.constant 0 : index
    %c0_15 = arith.constant 0 : index
    %23 = vector.load %arg10[%c0_14, %c0_15] : memref<128x128xf32, #tpu.memory_space<vmem>>, vector<128x128xf32>
    %24 = vector.broadcast %13 : vector<128x1xf32> to vector<128x128xf32>
    %25 = arith.mulf %24, %23 : vector<128x128xf32>
    %26 = arith.truncf %16 : vector<128x128xf32> to vector<128x128xbf16>
    %c0_16 = arith.constant 0 : index
    %c0_17 = arith.constant 0 : index
    %c0_18 = arith.constant 0 : index
    %27 = vector.load %arg6[%c0_16, %c0_17, %c0_18] : memref<1x128x128xbf16, #tpu.memory_space<vmem>>, vector<1x128x128xbf16>
    %28 = vector.shape_cast %27 : vector<1x128x128xbf16> to vector<128x128xbf16>
    %cst_19 = arith.constant dense<0.000000e+00> : vector<128x128xf32>
    %29 = tpu.matmul %26, %28, %cst_19 {dimension_numbers = #tpu.dot_dimension_numbers<[1], [0], [0], [1], [0, 0, 1, 1], [], []>} : vector<128x128xbf16>, vector<128x128xbf16>, vector<128x128xf32> -> vector<128x128xf32>
    %30 = arith.addf %25, %29 : vector<128x128xf32>
    %c0_20 = arith.constant 0 : index
    %c0_21 = arith.constant 0 : index
    %31 = vector.load %arg10[%c0_20, %c0_21] : memref<128x128xf32, #tpu.memory_space<vmem>>, vector<128x128xf32>
    tpu.vector_store %arg10[%c0_20, %c0_21], %30 {strides = array<i32>} : memref<128x128xf32, #tpu.memory_space<vmem>>, vector<128x128xf32>,
    %c0_22 = arith.constant 0 : index
    %c0_23 = arith.constant 0 : index
    %32 = vector.load %arg8[%c0_22, %c0_23] : memref<128x1xf32, #tpu.memory_space<vmem>>, vector<128x1xf32>
    tpu.vector_store %arg8[%c0_22, %c0_23], %11 {strides = array<i32>} : memref<128x1xf32, #tpu.memory_space<vmem>>, vector<128x1xf32>,
    %c1_i32 = arith.constant 1 : i32
    %33 = arith.cmpi eq, %arg3, %c1_i32 : i32
    %34 = arith.extui %33 : i1 to i32
    %c0_i32_24 = arith.constant 0 : i32
    %35 = arith.cmpi ne, %34, %c0_i32_24 : i32
    scf.if %35 {
      %c0_25 = arith.constant 0 : index
      %c0_26 = arith.constant 0 : index
      %36 = vector.load %arg9[%c0_25, %c0_26] : memref<128x1xf32, #tpu.memory_space<vmem>>, vector<128x1xf32>
      %37 = tpu.reciprocal %36 {approx = true} : vector<128x1xf32> -> vector<128x1xf32>
      %c0_27 = arith.constant 0 : index
      %c0_28 = arith.constant 0 : index
      %38 = vector.load %arg10[%c0_27, %c0_28] : memref<128x128xf32, #tpu.memory_space<vmem>>, vector<128x128xf32>
      %39 = vector.broadcast %37 : vector<128x1xf32> to vector<128x128xf32>
      %40 = arith.mulf %38, %39 : vector<128x128xf32>
      %41 = arith.truncf %40 : vector<128x128xf32> to vector<128x128xbf16>
      %c0_29 = arith.constant 0 : index
      %c0_30 = arith.constant 0 : index
      %c0_31 = arith.constant 0 : index
      %42 = vector.load %arg7[%c0_29, %c0_30, %c0_31] : memref<1x128x128xbf16, #tpu.memory_space<vmem>>, vector<1x128x128xbf16>
      %43 = vector.shape_cast %42 : vector<1x128x128xbf16> to vector<128x128xbf16>
      %44 = vector.shape_cast %41 : vector<128x128xbf16> to vector<1x128x128xbf16>
      tpu.vector_store %arg7[%c0_29, %c0_30, %c0_31], %44 {strides = array<i32>} : memref<1x128x128xbf16, #tpu.memory_space<vmem>>, vector<1x128x128xbf16>,
    } else {
    }
    return
  }
  func.func @transform_0(%arg0: i32, %arg1: i32, %arg2: i32, %arg3: i32) -> (i32, i32, i32) {
    %c0_i32 = arith.constant 0 : i32
    return %arg0, %arg2, %arg1 : i32, i32, i32
  }
  func.func @transform_1(%arg0: i32, %arg1: i32, %arg2: i32, %arg3: i32) -> (i32, i32, i32) {
    %c0_i32 = arith.constant 0 : i32
    return %arg0, %arg3, %arg1 : i32, i32, i32
  }
  func.func @transform_2(%arg0: i32, %arg1: i32, %arg2: i32, %arg3: i32) -> (i32, i32, i32) {
    %c0_i32 = arith.constant 0 : i32
    return %arg0, %arg3, %arg1 : i32, i32, i32
  }
  func.func @transform_3(%arg0: i32, %arg1: i32, %arg2: i32, %arg3: i32) -> (i32, i32, i32) {
    %c0_i32 = arith.constant 0 : i32
    return %arg0, %arg2, %arg1 : i32, i32, i32
  }
}

module attributes {stable_mosaic.version = 11 : i64} {
  func.func @_qkv_kernel(%arg0: i32, %arg1: i32, %arg2: memref<1x128x256xf32, #tpu.memory_space<vmem>>, %arg3: memref<1x256xf32, #tpu.memory_space<vmem>>, %arg4: memref<1x256xf32, #tpu.memory_space<vmem>>, %arg5: memref<256x256xbf16, #tpu.memory_space<vmem>>, %arg6: memref<1x256xf32, #tpu.memory_space<vmem>>, %arg7: memref<256x256xbf16, #tpu.memory_space<vmem>>, %arg8: memref<1x256xf32, #tpu.memory_space<vmem>>, %arg9: memref<256x256xbf16, #tpu.memory_space<vmem>>, %arg10: memref<1x256xf32, #tpu.memory_space<vmem>>, %arg11: memref<1x128x256xbf16, #tpu.memory_space<vmem>>, %arg12: memref<1x128x256xbf16, #tpu.memory_space<vmem>>, %arg13: memref<1x128x256xbf16, #tpu.memory_space<vmem>>) attributes {dimension_semantics = [#tpu.dimension_semantics<parallel>, #tpu.dimension_semantics<parallel>], iteration_bounds = array<i64: 2, 2>, scalar_prefetch = 0 : i64, scratch_operands = 0 : i64, tpu.core_type = #tpu.core_type<tc>, window_params = [{transform_indices = @transform_0, window_bounds = array<i64: 1, 128, 256>}, {pipeline_mode = #tpu.pipeline_mode<synchronous>, transform_indices = @transform_1, window_bounds = array<i64: 1, 256>}, {pipeline_mode = #tpu.pipeline_mode<synchronous>, transform_indices = @transform_2, window_bounds = array<i64: 1, 256>}, {pipeline_mode = #tpu.pipeline_mode<synchronous>, transform_indices = @transform_3, window_bounds = array<i64: 256, 256>}, {pipeline_mode = #tpu.pipeline_mode<synchronous>, transform_indices = @transform_4, window_bounds = array<i64: 1, 256>}, {pipeline_mode = #tpu.pipeline_mode<synchronous>, transform_indices = @transform_5, window_bounds = array<i64: 256, 256>}, {pipeline_mode = #tpu.pipeline_mode<synchronous>, transform_indices = @transform_6, window_bounds = array<i64: 1, 256>}, {pipeline_mode = #tpu.pipeline_mode<synchronous>, transform_indices = @transform_7, window_bounds = array<i64: 256, 256>}, {pipeline_mode = #tpu.pipeline_mode<synchronous>, transform_indices = @transform_8, window_bounds = array<i64: 1, 256>}, {transform_indices = @transform_9, window_bounds = array<i64: 1, 128, 256>}, {transform_indices = @transform_10, window_bounds = array<i64: 1, 128, 256>}, {transform_indices = @transform_11, window_bounds = array<i64: 1, 128, 256>}]} {
    %c0 = arith.constant 0 : index
    %c0_0 = arith.constant 0 : index
    %c0_1 = arith.constant 0 : index
    %0 = vector.load %arg2[%c0, %c0_0, %c0_1] : memref<1x128x256xf32, #tpu.memory_space<vmem>>, vector<1x128x256xf32>
    %1 = vector.shape_cast %0 : vector<1x128x256xf32> to vector<128x256xf32>
    %c0_2 = arith.constant 0 : index
    %c0_3 = arith.constant 0 : index
    %2 = vector.load %arg3[%c0_2, %c0_3] : memref<1x256xf32, #tpu.memory_space<vmem>>, vector<1x256xf32>
    %c0_4 = arith.constant 0 : index
    %c0_5 = arith.constant 0 : index
    %3 = vector.load %arg4[%c0_4, %c0_5] : memref<1x256xf32, #tpu.memory_space<vmem>>, vector<1x256xf32>
    %cst = arith.constant dense<0.000000e+00> : vector<128xf32>
    %4 = vector.multi_reduction <add>, %1, %cst [1] : vector<128x256xf32> to vector<128xf32>
    %5 = vector.shape_cast %4 : vector<128xf32> to vector<128x1xf32>
    %cst_6 = arith.constant 2.560000e+02 : f32
    %6 = vector.broadcast %cst_6 : f32 to vector<128x1xf32>
    %7 = arith.divf %5, %6 : vector<128x1xf32>
    %8 = vector.broadcast %7 : vector<128x1xf32> to vector<128x256xf32>
    %9 = arith.subf %1, %8 : vector<128x256xf32>
    %10 = arith.mulf %9, %9 : vector<128x256xf32>
    %cst_7 = arith.constant dense<0.000000e+00> : vector<128xf32>
    %11 = vector.multi_reduction <add>, %10, %cst_7 [1] : vector<128x256xf32> to vector<128xf32>
    %12 = vector.shape_cast %11 : vector<128xf32> to vector<128x1xf32>
    %cst_8 = arith.constant 2.560000e+02 : f32
    %13 = vector.broadcast %cst_8 : f32 to vector<128x1xf32>
    %14 = arith.divf %12, %13 : vector<128x1xf32>
    %15 = vector.broadcast %7 : vector<128x1xf32> to vector<128x256xf32>
    %16 = arith.subf %1, %15 : vector<128x256xf32>
    %cst_9 = arith.constant 9.99999974E-6 : f32
    %17 = vector.broadcast %cst_9 : f32 to vector<128x1xf32>
    %18 = arith.addf %14, %17 : vector<128x1xf32>
    %19 = math.rsqrt %18 : vector<128x1xf32>
    %20 = vector.broadcast %19 : vector<128x1xf32> to vector<128x256xf32>
    %21 = arith.mulf %16, %20 : vector<128x256xf32>
    %22 = vector.broadcast %2 : vector<1x256xf32> to vector<128x256xf32>
    %23 = arith.mulf %21, %22 : vector<128x256xf32>
    %24 = vector.broadcast %3 : vector<1x256xf32> to vector<128x256xf32>
    %25 = arith.addf %23, %24 : vector<128x256xf32>
    %26 = arith.truncf %25 : vector<128x256xf32> to vector<128x256xbf16>
    %c0_10 = arith.constant 0 : index
    %c0_11 = arith.constant 0 : index
    %27 = vector.load %arg5[%c0_10, %c0_11] : memref<256x256xbf16, #tpu.memory_space<vmem>>, vector<256x256xbf16>
    %cst_12 = arith.constant dense<0.000000e+00> : vector<128x256xf32>
    %28 = tpu.matmul %26, %27, %cst_12 {dimension_numbers = #tpu.dot_dimension_numbers<[1], [0], [0], [1], [0, 0, 1, 1], [], []>} : vector<128x256xbf16>, vector<256x256xbf16>, vector<128x256xf32> -> vector<128x256xf32>
    %c0_13 = arith.constant 0 : index
    %c0_14 = arith.constant 0 : index
    %29 = vector.load %arg6[%c0_13, %c0_14] : memref<1x256xf32, #tpu.memory_space<vmem>>, vector<1x256xf32>
    %30 = vector.broadcast %29 : vector<1x256xf32> to vector<128x256xf32>
    %31 = arith.addf %28, %30 : vector<128x256xf32>
    %c0_15 = arith.constant 0 : index
    %c0_16 = arith.constant 0 : index
    %32 = vector.load %arg7[%c0_15, %c0_16] : memref<256x256xbf16, #tpu.memory_space<vmem>>, vector<256x256xbf16>
    %cst_17 = arith.constant dense<0.000000e+00> : vector<128x256xf32>
    %33 = tpu.matmul %26, %32, %cst_17 {dimension_numbers = #tpu.dot_dimension_numbers<[1], [0], [0], [1], [0, 0, 1, 1], [], []>} : vector<128x256xbf16>, vector<256x256xbf16>, vector<128x256xf32> -> vector<128x256xf32>
    %c0_18 = arith.constant 0 : index
    %c0_19 = arith.constant 0 : index
    %34 = vector.load %arg8[%c0_18, %c0_19] : memref<1x256xf32, #tpu.memory_space<vmem>>, vector<1x256xf32>
    %35 = vector.broadcast %34 : vector<1x256xf32> to vector<128x256xf32>
    %36 = arith.addf %33, %35 : vector<128x256xf32>
    %c0_20 = arith.constant 0 : index
    %c0_21 = arith.constant 0 : index
    %37 = vector.load %arg9[%c0_20, %c0_21] : memref<256x256xbf16, #tpu.memory_space<vmem>>, vector<256x256xbf16>
    %cst_22 = arith.constant dense<0.000000e+00> : vector<128x256xf32>
    %38 = tpu.matmul %26, %37, %cst_22 {dimension_numbers = #tpu.dot_dimension_numbers<[1], [0], [0], [1], [0, 0, 1, 1], [], []>} : vector<128x256xbf16>, vector<256x256xbf16>, vector<128x256xf32> -> vector<128x256xf32>
    %c0_23 = arith.constant 0 : index
    %c0_24 = arith.constant 0 : index
    %39 = vector.load %arg10[%c0_23, %c0_24] : memref<1x256xf32, #tpu.memory_space<vmem>>, vector<1x256xf32>
    %40 = vector.broadcast %39 : vector<1x256xf32> to vector<128x256xf32>
    %41 = arith.addf %38, %40 : vector<128x256xf32>
    %cst_25 = arith.constant 0.0883883461 : f32
    %42 = vector.broadcast %cst_25 : f32 to vector<128x256xf32>
    %43 = arith.mulf %31, %42 : vector<128x256xf32>
    %44 = arith.truncf %43 : vector<128x256xf32> to vector<128x256xbf16>
    %c0_26 = arith.constant 0 : index
    %c0_27 = arith.constant 0 : index
    %c0_28 = arith.constant 0 : index
    %45 = vector.load %arg11[%c0_26, %c0_27, %c0_28] : memref<1x128x256xbf16, #tpu.memory_space<vmem>>, vector<1x128x256xbf16>
    %46 = vector.shape_cast %45 : vector<1x128x256xbf16> to vector<128x256xbf16>
    %47 = vector.shape_cast %44 : vector<128x256xbf16> to vector<1x128x256xbf16>
    tpu.vector_store %arg11[%c0_26, %c0_27, %c0_28], %47 {strides = array<i32>} : memref<1x128x256xbf16, #tpu.memory_space<vmem>>, vector<1x128x256xbf16>,
    %48 = arith.truncf %36 : vector<128x256xf32> to vector<128x256xbf16>
    %c0_29 = arith.constant 0 : index
    %c0_30 = arith.constant 0 : index
    %c0_31 = arith.constant 0 : index
    %49 = vector.load %arg12[%c0_29, %c0_30, %c0_31] : memref<1x128x256xbf16, #tpu.memory_space<vmem>>, vector<1x128x256xbf16>
    %50 = vector.shape_cast %49 : vector<1x128x256xbf16> to vector<128x256xbf16>
    %51 = vector.shape_cast %48 : vector<128x256xbf16> to vector<1x128x256xbf16>
    tpu.vector_store %arg12[%c0_29, %c0_30, %c0_31], %51 {strides = array<i32>} : memref<1x128x256xbf16, #tpu.memory_space<vmem>>, vector<1x128x256xbf16>,
    %52 = arith.truncf %41 : vector<128x256xf32> to vector<128x256xbf16>
    %c0_32 = arith.constant 0 : index
    %c0_33 = arith.constant 0 : index
    %c0_34 = arith.constant 0 : index
    %53 = vector.load %arg13[%c0_32, %c0_33, %c0_34] : memref<1x128x256xbf16, #tpu.memory_space<vmem>>, vector<1x128x256xbf16>
    %54 = vector.shape_cast %53 : vector<1x128x256xbf16> to vector<128x256xbf16>
    %55 = vector.shape_cast %52 : vector<128x256xbf16> to vector<1x128x256xbf16>
    tpu.vector_store %arg13[%c0_32, %c0_33, %c0_34], %55 {strides = array<i32>} : memref<1x128x256xbf16, #tpu.memory_space<vmem>>, vector<1x128x256xbf16>,
    return
  }
  func.func @transform_0(%arg0: i32, %arg1: i32) -> (i32, i32, i32) {
    %c0_i32 = arith.constant 0 : i32
    %c0_i32_0 = arith.constant 0 : i32
    return %arg0, %arg1, %c0_i32 : i32, i32, i32
  }
  func.func @transform_1(%arg0: i32, %arg1: i32) -> (i32, i32) {
    %c0_i32 = arith.constant 0 : i32
    %c0_i32_0 = arith.constant 0 : i32
    %c0_i32_1 = arith.constant 0 : i32
    return %c0_i32, %c0_i32_0 : i32, i32
  }
  func.func @transform_2(%arg0: i32, %arg1: i32) -> (i32, i32) {
    %c0_i32 = arith.constant 0 : i32
    %c0_i32_0 = arith.constant 0 : i32
    %c0_i32_1 = arith.constant 0 : i32
    return %c0_i32, %c0_i32_0 : i32, i32
  }
  func.func @transform_3(%arg0: i32, %arg1: i32) -> (i32, i32) {
    %c0_i32 = arith.constant 0 : i32
    %c0_i32_0 = arith.constant 0 : i32
    %c0_i32_1 = arith.constant 0 : i32
    return %c0_i32, %c0_i32_0 : i32, i32
  }
  func.func @transform_4(%arg0: i32, %arg1: i32) -> (i32, i32) {
    %c0_i32 = arith.constant 0 : i32
    %c0_i32_0 = arith.constant 0 : i32
    %c0_i32_1 = arith.constant 0 : i32
    return %c0_i32, %c0_i32_0 : i32, i32
  }
  func.func @transform_5(%arg0: i32, %arg1: i32) -> (i32, i32) {
    %c0_i32 = arith.constant 0 : i32
    %c0_i32_0 = arith.constant 0 : i32
    %c0_i32_1 = arith.constant 0 : i32
    return %c0_i32, %c0_i32_0 : i32, i32
  }
  func.func @transform_6(%arg0: i32, %arg1: i32) -> (i32, i32) {
    %c0_i32 = arith.constant 0 : i32
    %c0_i32_0 = arith.constant 0 : i32
    %c0_i32_1 = arith.constant 0 : i32
    return %c0_i32, %c0_i32_0 : i32, i32
  }
  func.func @transform_7(%arg0: i32, %arg1: i32) -> (i32, i32) {
    %c0_i32 = arith.constant 0 : i32
    %c0_i32_0 = arith.constant 0 : i32
    %c0_i32_1 = arith.constant 0 : i32
    return %c0_i32, %c0_i32_0 : i32, i32
  }
  func.func @transform_8(%arg0: i32, %arg1: i32) -> (i32, i32) {
    %c0_i32 = arith.constant 0 : i32
    %c0_i32_0 = arith.constant 0 : i32
    %c0_i32_1 = arith.constant 0 : i32
    return %c0_i32, %c0_i32_0 : i32, i32
  }
  func.func @transform_9(%arg0: i32, %arg1: i32) -> (i32, i32, i32) {
    %c0_i32 = arith.constant 0 : i32
    %c0_i32_0 = arith.constant 0 : i32
    return %arg0, %arg1, %c0_i32 : i32, i32, i32
  }
  func.func @transform_10(%arg0: i32, %arg1: i32) -> (i32, i32, i32) {
    %c0_i32 = arith.constant 0 : i32
    %c0_i32_0 = arith.constant 0 : i32
    return %arg0, %arg1, %c0_i32 : i32, i32, i32
  }
  func.func @transform_11(%arg0: i32, %arg1: i32) -> (i32, i32, i32) {
    %c0_i32 = arith.constant 0 : i32
    %c0_i32_0 = arith.constant 0 : i32
    return %arg0, %arg1, %c0_i32 : i32, i32, i32
  }
}

module attributes {stable_mosaic.version = 11 : i64} {
  func.func @_proj_ffn_kernel(%arg0: i32, %arg1: i32, %arg2: i32, %arg3: memref<1x128x256xbf16, #tpu.memory_space<vmem>>, %arg4: memref<1x128x256xf32, #tpu.memory_space<vmem>>, %arg5: memref<256x256xbf16, #tpu.memory_space<vmem>>, %arg6: memref<1x256xf32, #tpu.memory_space<vmem>>, %arg7: memref<1x256xf32, #tpu.memory_space<vmem>>, %arg8: memref<1x256xf32, #tpu.memory_space<vmem>>, %arg9: memref<1x256xf32, #tpu.memory_space<vmem>>, %arg10: memref<1x256xf32, #tpu.memory_space<vmem>>, %arg11: memref<256x512xbf16, #tpu.memory_space<vmem>>, %arg12: memref<1x512xf32, #tpu.memory_space<vmem>>, %arg13: memref<512x256xbf16, #tpu.memory_space<vmem>>, %arg14: memref<1x256xf32, #tpu.memory_space<vmem>>, %arg15: memref<1x128x256xf32, #tpu.memory_space<vmem>>, %arg16: memref<128x256xf32, #tpu.memory_space<vmem>>, %arg17: memref<128x256xbf16, #tpu.memory_space<vmem>>, %arg18: memref<128x256xf32, #tpu.memory_space<vmem>>) attributes {dimension_semantics = [#tpu.dimension_semantics<parallel>, #tpu.dimension_semantics<parallel>, #tpu.dimension_semantics<arbitrary>], iteration_bounds = array<i64: 2, 2, 2>, scalar_prefetch = 0 : i64, scratch_operands = 3 : i64, tpu.core_type = #tpu.core_type<tc>, window_params = [{transform_indices = @transform_0, window_bounds = array<i64: 1, 128, 256>}, {transform_indices = @transform_1, window_bounds = array<i64: 1, 128, 256>}, {pipeline_mode = #tpu.pipeline_mode<synchronous>, transform_indices = @transform_2, window_bounds = array<i64: 256, 256>}, {pipeline_mode = #tpu.pipeline_mode<synchronous>, transform_indices = @transform_3, window_bounds = array<i64: 1, 256>}, {pipeline_mode = #tpu.pipeline_mode<synchronous>, transform_indices = @transform_4, window_bounds = array<i64: 1, 256>}, {pipeline_mode = #tpu.pipeline_mode<synchronous>, transform_indices = @transform_5, window_bounds = array<i64: 1, 256>}, {pipeline_mode = #tpu.pipeline_mode<synchronous>, transform_indices = @transform_6, window_bounds = array<i64: 1, 256>}, {pipeline_mode = #tpu.pipeline_mode<synchronous>, transform_indices = @transform_7, window_bounds = array<i64: 1, 256>}, {transform_indices = @transform_8, window_bounds = array<i64: 256, 512>}, {transform_indices = @transform_9, window_bounds = array<i64: 1, 512>}, {transform_indices = @transform_10, window_bounds = array<i64: 512, 256>}, {pipeline_mode = #tpu.pipeline_mode<synchronous>, transform_indices = @transform_11, window_bounds = array<i64: 1, 256>}, {transform_indices = @transform_12, window_bounds = array<i64: 1, 128, 256>}]} {
    %c0_i32 = arith.constant 0 : i32
    %0 = arith.cmpi eq, %arg2, %c0_i32 : i32
    %1 = arith.extui %0 : i1 to i32
    %c0_i32_0 = arith.constant 0 : i32
    %2 = arith.cmpi ne, %1, %c0_i32_0 : i32
    scf.if %2 {
      %c0_15 = arith.constant 0 : index
      %c0_16 = arith.constant 0 : index
      %c0_17 = arith.constant 0 : index
      %20 = vector.load %arg3[%c0_15, %c0_16, %c0_17] : memref<1x128x256xbf16, #tpu.memory_space<vmem>>, vector<1x128x256xbf16>
      %21 = vector.shape_cast %20 : vector<1x128x256xbf16> to vector<128x256xbf16>
      %c0_18 = arith.constant 0 : index
      %c0_19 = arith.constant 0 : index
      %22 = vector.load %arg5[%c0_18, %c0_19] : memref<256x256xbf16, #tpu.memory_space<vmem>>, vector<256x256xbf16>
      %cst_20 = arith.constant dense<0.000000e+00> : vector<128x256xf32>
      %23 = tpu.matmul %21, %22, %cst_20 {dimension_numbers = #tpu.dot_dimension_numbers<[1], [0], [0], [1], [0, 0, 1, 1], [], []>} : vector<128x256xbf16>, vector<256x256xbf16>, vector<128x256xf32> -> vector<128x256xf32>
      %c0_21 = arith.constant 0 : index
      %c0_22 = arith.constant 0 : index
      %24 = vector.load %arg6[%c0_21, %c0_22] : memref<1x256xf32, #tpu.memory_space<vmem>>, vector<1x256xf32>
      %25 = vector.broadcast %24 : vector<1x256xf32> to vector<128x256xf32>
      %26 = arith.addf %23, %25 : vector<128x256xf32>
      %c0_23 = arith.constant 0 : index
      %c0_24 = arith.constant 0 : index
      %27 = vector.load %arg7[%c0_23, %c0_24] : memref<1x256xf32, #tpu.memory_space<vmem>>, vector<1x256xf32>
      %c0_25 = arith.constant 0 : index
      %c0_26 = arith.constant 0 : index
      %28 = vector.load %arg8[%c0_25, %c0_26] : memref<1x256xf32, #tpu.memory_space<vmem>>, vector<1x256xf32>
      %cst_27 = arith.constant dense<0.000000e+00> : vector<128xf32>
      %29 = vector.multi_reduction <add>, %26, %cst_27 [1] : vector<128x256xf32> to vector<128xf32>
      %30 = vector.shape_cast %29 : vector<128xf32> to vector<128x1xf32>
      %cst_28 = arith.constant 2.560000e+02 : f32
      %31 = vector.broadcast %cst_28 : f32 to vector<128x1xf32>
      %32 = arith.divf %30, %31 : vector<128x1xf32>
      %33 = vector.broadcast %32 : vector<128x1xf32> to vector<128x256xf32>
      %34 = arith.subf %26, %33 : vector<128x256xf32>
      %35 = arith.mulf %34, %34 : vector<128x256xf32>
      %cst_29 = arith.constant dense<0.000000e+00> : vector<128xf32>
      %36 = vector.multi_reduction <add>, %35, %cst_29 [1] : vector<128x256xf32> to vector<128xf32>
      %37 = vector.shape_cast %36 : vector<128xf32> to vector<128x1xf32>
      %cst_30 = arith.constant 2.560000e+02 : f32
      %38 = vector.broadcast %cst_30 : f32 to vector<128x1xf32>
      %39 = arith.divf %37, %38 : vector<128x1xf32>
      %40 = vector.broadcast %32 : vector<128x1xf32> to vector<128x256xf32>
      %41 = arith.subf %26, %40 : vector<128x256xf32>
      %cst_31 = arith.constant 9.99999974E-6 : f32
      %42 = vector.broadcast %cst_31 : f32 to vector<128x1xf32>
      %43 = arith.addf %39, %42 : vector<128x1xf32>
      %44 = math.rsqrt %43 : vector<128x1xf32>
      %45 = vector.broadcast %44 : vector<128x1xf32> to vector<128x256xf32>
      %46 = arith.mulf %41, %45 : vector<128x256xf32>
      %47 = vector.broadcast %27 : vector<1x256xf32> to vector<128x256xf32>
      %48 = arith.mulf %46, %47 : vector<128x256xf32>
      %49 = vector.broadcast %28 : vector<1x256xf32> to vector<128x256xf32>
      %50 = arith.addf %48, %49 : vector<128x256xf32>
      %c0_32 = arith.constant 0 : index
      %c0_33 = arith.constant 0 : index
      %c0_34 = arith.constant 0 : index
      %51 = vector.load %arg4[%c0_32, %c0_33, %c0_34] : memref<1x128x256xf32, #tpu.memory_space<vmem>>, vector<1x128x256xf32>
      %52 = vector.shape_cast %51 : vector<1x128x256xf32> to vector<128x256xf32>
      %53 = arith.addf %50, %52 : vector<128x256xf32>
      %c0_35 = arith.constant 0 : index
      %c0_36 = arith.constant 0 : index
      %54 = vector.load %arg16[%c0_35, %c0_36] : memref<128x256xf32, #tpu.memory_space<vmem>>, vector<128x256xf32>
      tpu.vector_store %arg16[%c0_35, %c0_36], %53 {strides = array<i32>} : memref<128x256xf32, #tpu.memory_space<vmem>>, vector<128x256xf32>,
      %c0_37 = arith.constant 0 : index
      %c0_38 = arith.constant 0 : index
      %55 = vector.load %arg9[%c0_37, %c0_38] : memref<1x256xf32, #tpu.memory_space<vmem>>, vector<1x256xf32>
      %c0_39 = arith.constant 0 : index
      %c0_40 = arith.constant 0 : index
      %56 = vector.load %arg10[%c0_39, %c0_40] : memref<1x256xf32, #tpu.memory_space<vmem>>, vector<1x256xf32>
      %cst_41 = arith.constant dense<0.000000e+00> : vector<128xf32>
      %57 = vector.multi_reduction <add>, %53, %cst_41 [1] : vector<128x256xf32> to vector<128xf32>
      %58 = vector.shape_cast %57 : vector<128xf32> to vector<128x1xf32>
      %cst_42 = arith.constant 2.560000e+02 : f32
      %59 = vector.broadcast %cst_42 : f32 to vector<128x1xf32>
      %60 = arith.divf %58, %59 : vector<128x1xf32>
      %61 = vector.broadcast %60 : vector<128x1xf32> to vector<128x256xf32>
      %62 = arith.subf %53, %61 : vector<128x256xf32>
      %63 = arith.mulf %62, %62 : vector<128x256xf32>
      %cst_43 = arith.constant dense<0.000000e+00> : vector<128xf32>
      %64 = vector.multi_reduction <add>, %63, %cst_43 [1] : vector<128x256xf32> to vector<128xf32>
      %65 = vector.shape_cast %64 : vector<128xf32> to vector<128x1xf32>
      %cst_44 = arith.constant 2.560000e+02 : f32
      %66 = vector.broadcast %cst_44 : f32 to vector<128x1xf32>
      %67 = arith.divf %65, %66 : vector<128x1xf32>
      %68 = vector.broadcast %60 : vector<128x1xf32> to vector<128x256xf32>
      %69 = arith.subf %53, %68 : vector<128x256xf32>
      %cst_45 = arith.constant 9.99999974E-6 : f32
      %70 = vector.broadcast %cst_45 : f32 to vector<128x1xf32>
      %71 = arith.addf %67, %70 : vector<128x1xf32>
      %72 = math.rsqrt %71 : vector<128x1xf32>
      %73 = vector.broadcast %72 : vector<128x1xf32> to vector<128x256xf32>
      %74 = arith.mulf %69, %73 : vector<128x256xf32>
      %75 = vector.broadcast %55 : vector<1x256xf32> to vector<128x256xf32>
      %76 = arith.mulf %74, %75 : vector<128x256xf32>
      %77 = vector.broadcast %56 : vector<1x256xf32> to vector<128x256xf32>
      %78 = arith.addf %76, %77 : vector<128x256xf32>
      %79 = arith.truncf %78 : vector<128x256xf32> to vector<128x256xbf16>
      %c0_46 = arith.constant 0 : index
      %c0_47 = arith.constant 0 : index
      %80 = vector.load %arg17[%c0_46, %c0_47] : memref<128x256xbf16, #tpu.memory_space<vmem>>, vector<128x256xbf16>
      tpu.vector_store %arg17[%c0_46, %c0_47], %79 {strides = array<i32>} : memref<128x256xbf16, #tpu.memory_space<vmem>>, vector<128x256xbf16>,
      %cst_48 = arith.constant 0.000000e+00 : f32
      %81 = vector.broadcast %cst_48 : f32 to vector<128x256xf32>
      %c0_49 = arith.constant 0 : index
      %c0_50 = arith.constant 0 : index
      %82 = vector.load %arg18[%c0_49, %c0_50] : memref<128x256xf32, #tpu.memory_space<vmem>>, vector<128x256xf32>
      tpu.vector_store %arg18[%c0_49, %c0_50], %81 {strides = array<i32>} : memref<128x256xf32, #tpu.memory_space<vmem>>, vector<128x256xf32>,
    } else {
    }
    %c0 = arith.constant 0 : index
    %c0_1 = arith.constant 0 : index
    %3 = vector.load %arg17[%c0, %c0_1] : memref<128x256xbf16, #tpu.memory_space<vmem>>, vector<128x256xbf16>
    %c0_2 = arith.constant 0 : index
    %c0_3 = arith.constant 0 : index
    %4 = vector.load %arg11[%c0_2, %c0_3] : memref<256x512xbf16, #tpu.memory_space<vmem>>, vector<256x512xbf16>
    %cst = arith.constant dense<0.000000e+00> : vector<128x512xf32>
    %5 = tpu.matmul %3, %4, %cst {dimension_numbers = #tpu.dot_dimension_numbers<[1], [0], [0], [1], [0, 0, 1, 1], [], []>} : vector<128x256xbf16>, vector<256x512xbf16>, vector<128x512xf32> -> vector<128x512xf32>
    %c0_4 = arith.constant 0 : index
    %c0_5 = arith.constant 0 : index
    %6 = vector.load %arg12[%c0_4, %c0_5] : memref<1x512xf32, #tpu.memory_space<vmem>>, vector<1x512xf32>
    %7 = vector.broadcast %6 : vector<1x512xf32> to vector<128x512xf32>
    %8 = arith.addf %5, %7 : vector<128x512xf32>
    %cst_6 = arith.constant 0.000000e+00 : f32
    %9 = vector.broadcast %cst_6 : f32 to vector<128x512xf32>
    %10 = arith.maximumf %8, %9 : vector<128x512xf32>
    %11 = arith.truncf %10 : vector<128x512xf32> to vector<128x512xbf16>
    %c0_7 = arith.constant 0 : index
    %c0_8 = arith.constant 0 : index
    %12 = vector.load %arg18[%c0_7, %c0_8] : memref<128x256xf32, #tpu.memory_space<vmem>>, vector<128x256xf32>
    %c0_9 = arith.constant 0 : index
    %c0_10 = arith.constant 0 : index
    %13 = vector.load %arg13[%c0_9, %c0_10] : memref<512x256xbf16, #tpu.memory_space<vmem>>, vector<512x256xbf16>
    %cst_11 = arith.constant dense<0.000000e+00> : vector<128x256xf32>
    %14 = tpu.matmul %11, %13, %cst_11 {dimension_numbers = #tpu.dot_dimension_numbers<[1], [0], [0], [1], [0, 0, 1, 1], [], []>} : vector<128x512xbf16>, vector<512x256xbf16>, vector<128x256xf32> -> vector<128x256xf32>
    %15 = arith.addf %12, %14 : vector<128x256xf32>
    %c0_12 = arith.constant 0 : index
    %c0_13 = arith.constant 0 : index
    %16 = vector.load %arg18[%c0_12, %c0_13] : memref<128x256xf32, #tpu.memory_space<vmem>>, vector<128x256xf32>
    tpu.vector_store %arg18[%c0_12, %c0_13], %15 {strides = array<i32>} : memref<128x256xf32, #tpu.memory_space<vmem>>, vector<128x256xf32>,
    %c1_i32 = arith.constant 1 : i32
    %17 = arith.cmpi eq, %arg2, %c1_i32 : i32
    %18 = arith.extui %17 : i1 to i32
    %c0_i32_14 = arith.constant 0 : i32
    %19 = arith.cmpi ne, %18, %c0_i32_14 : i32
    scf.if %19 {
      %c0_15 = arith.constant 0 : index
      %c0_16 = arith.constant 0 : index
      %20 = vector.load %arg18[%c0_15, %c0_16] : memref<128x256xf32, #tpu.memory_space<vmem>>, vector<128x256xf32>
      %c0_17 = arith.constant 0 : index
      %c0_18 = arith.constant 0 : index
      %21 = vector.load %arg14[%c0_17, %c0_18] : memref<1x256xf32, #tpu.memory_space<vmem>>, vector<1x256xf32>
      %22 = vector.broadcast %21 : vector<1x256xf32> to vector<128x256xf32>
      %23 = arith.addf %20, %22 : vector<128x256xf32>
      %c0_19 = arith.constant 0 : index
      %c0_20 = arith.constant 0 : index
      %24 = vector.load %arg16[%c0_19, %c0_20] : memref<128x256xf32, #tpu.memory_space<vmem>>, vector<128x256xf32>
      %25 = arith.addf %23, %24 : vector<128x256xf32>
      %c0_21 = arith.constant 0 : index
      %c0_22 = arith.constant 0 : index
      %c0_23 = arith.constant 0 : index
      %26 = vector.load %arg15[%c0_21, %c0_22, %c0_23] : memref<1x128x256xf32, #tpu.memory_space<vmem>>, vector<1x128x256xf32>
      %27 = vector.shape_cast %26 : vector<1x128x256xf32> to vector<128x256xf32>
      %28 = vector.shape_cast %25 : vector<128x256xf32> to vector<1x128x256xf32>
      tpu.vector_store %arg15[%c0_21, %c0_22, %c0_23], %28 {strides = array<i32>} : memref<1x128x256xf32, #tpu.memory_space<vmem>>, vector<1x128x256xf32>,
    } else {
    }
    return
  }
  func.func @transform_0(%arg0: i32, %arg1: i32, %arg2: i32) -> (i32, i32, i32) {
    %c0_i32 = arith.constant 0 : i32
    %c0_i32_0 = arith.constant 0 : i32
    return %arg0, %arg1, %c0_i32 : i32, i32, i32
  }
  func.func @transform_1(%arg0: i32, %arg1: i32, %arg2: i32) -> (i32, i32, i32) {
    %c0_i32 = arith.constant 0 : i32
    %c0_i32_0 = arith.constant 0 : i32
    return %arg0, %arg1, %c0_i32 : i32, i32, i32
  }
  func.func @transform_2(%arg0: i32, %arg1: i32, %arg2: i32) -> (i32, i32) {
    %c0_i32 = arith.constant 0 : i32
    %c0_i32_0 = arith.constant 0 : i32
    %c0_i32_1 = arith.constant 0 : i32
    return %c0_i32, %c0_i32_0 : i32, i32
  }
  func.func @transform_3(%arg0: i32, %arg1: i32, %arg2: i32) -> (i32, i32) {
    %c0_i32 = arith.constant 0 : i32
    %c0_i32_0 = arith.constant 0 : i32
    %c0_i32_1 = arith.constant 0 : i32
    return %c0_i32, %c0_i32_0 : i32, i32
  }
  func.func @transform_4(%arg0: i32, %arg1: i32, %arg2: i32) -> (i32, i32) {
    %c0_i32 = arith.constant 0 : i32
    %c0_i32_0 = arith.constant 0 : i32
    %c0_i32_1 = arith.constant 0 : i32
    return %c0_i32, %c0_i32_0 : i32, i32
  }
  func.func @transform_5(%arg0: i32, %arg1: i32, %arg2: i32) -> (i32, i32) {
    %c0_i32 = arith.constant 0 : i32
    %c0_i32_0 = arith.constant 0 : i32
    %c0_i32_1 = arith.constant 0 : i32
    return %c0_i32, %c0_i32_0 : i32, i32
  }
  func.func @transform_6(%arg0: i32, %arg1: i32, %arg2: i32) -> (i32, i32) {
    %c0_i32 = arith.constant 0 : i32
    %c0_i32_0 = arith.constant 0 : i32
    %c0_i32_1 = arith.constant 0 : i32
    return %c0_i32, %c0_i32_0 : i32, i32
  }
  func.func @transform_7(%arg0: i32, %arg1: i32, %arg2: i32) -> (i32, i32) {
    %c0_i32 = arith.constant 0 : i32
    %c0_i32_0 = arith.constant 0 : i32
    %c0_i32_1 = arith.constant 0 : i32
    return %c0_i32, %c0_i32_0 : i32, i32
  }
  func.func @transform_8(%arg0: i32, %arg1: i32, %arg2: i32) -> (i32, i32) {
    %c0_i32 = arith.constant 0 : i32
    %c0_i32_0 = arith.constant 0 : i32
    return %c0_i32, %arg2 : i32, i32
  }
  func.func @transform_9(%arg0: i32, %arg1: i32, %arg2: i32) -> (i32, i32) {
    %c0_i32 = arith.constant 0 : i32
    %c0_i32_0 = arith.constant 0 : i32
    return %c0_i32, %arg2 : i32, i32
  }
  func.func @transform_10(%arg0: i32, %arg1: i32, %arg2: i32) -> (i32, i32) {
    %c0_i32 = arith.constant 0 : i32
    %c0_i32_0 = arith.constant 0 : i32
    return %arg2, %c0_i32 : i32, i32
  }
  func.func @transform_11(%arg0: i32, %arg1: i32, %arg2: i32) -> (i32, i32) {
    %c0_i32 = arith.constant 0 : i32
    %c0_i32_0 = arith.constant 0 : i32
    %c0_i32_1 = arith.constant 0 : i32
    return %c0_i32, %c0_i32_0 : i32, i32
  }
  func.func @transform_12(%arg0: i32, %arg1: i32, %arg2: i32) -> (i32, i32, i32) {
    %c0_i32 = arith.constant 0 : i32
    %c0_i32_0 = arith.constant 0 : i32
    return %arg0, %arg1, %c0_i32 : i32, i32, i32
  }
}

</mosaic_0001>

<bundles_post_ra>
// kernel: transformer_block.4
= control target key start
LH: loop header
LB: loop body
LE: loop exit
PB: predicated region body
PF: predicated region fallthrough
CT: control target
= control target key end

     0   :  { %s3275_s0 = inlined_call_operand.vmem [shape: bf16[2,256,256], index: 0, kind: input, shape index: {}]   ;;  %s3276_s1 = inlined_call_operand.vmem [shape: bf16[2,256,256], index: 1, kind: input, shape index: {}]   ;;  %s3277_s2 = inlined_call_operand.vmem [shape: bf16[2,256,256], index: 2, kind: input, shape index: {}]   ;;  %s3278_s3 = inlined_call_operand.vmem [shape: bf16[2,256,256], index: 3, kind: output, shape index: {}]  }
   0x1   :  { %3279 = sst [smem:[#allocation13_spill]] %s3278_s3 }
   0x2   :  { %s2583_s12 = smov 0   ;;  %s2585_s13 = smov 0  }
   0x3   :  { %s2587_s14 = smov 0   ;;  %s2589_s15 = smov 0  }
   0x4   :  { %s2591_s16 = smov 0   ;;  %s2593_s17 = smov 0  }
   0x5   :  { %s2595_s18 = smov 0   ;;  %s2597_s19 = smov 0  }
   0x6   :  { %s2599_s20 = smov 0   ;;  %s2601_s21 = smov 0  }
   0x7   :  { %s2603_s22 = smov 0   ;;  %s2605_s23 = smov 0  }
   0x8   :  { %s2607_s24 = smov 0  }
   0x9 LB: > { %3280 = sst [smem:[#allocation9_spill]] %s2525_s16  ;;  %s28_s25 = sadd.s32 1, %s2541_s20  ;;  %s2557_s24 = sphi %s2607_s24, %s13_s24   ;;  %s2553_s23 = sphi %s2605_s23, %s3305_s23   ;;  %s2549_s22 = sphi %s2603_s22, %s3304_s22   ;;  %s2545_s21 = sphi %s2601_s21, %s3303_s21   ;;  %s2541_s20 = sphi %s2599_s20, %s3302_s20   ;;  %s2537_s19 = sphi %s2597_s19, %s3301_s19   ;;  %s2533_s18 = sphi %s2595_s18, %s3300_s18   ;;  %s2529_s17 = sphi %s2593_s17, %s3299_s17   ;;  %s2525_s16 = sphi %s2591_s16, %s3298_s16   ;;  %s2521_s15 = sphi %s2589_s15, %s3297_s15   ;;  %s2517_s14 = sphi %s2587_s14, %s3296_s14   ;;  %s2513_s13 = sphi %s2585_s13, %s3295_s13   ;;  %s2509_s12 = sphi %s2583_s12, %s3294_s12  }
   0xa   : > { %3281 = sst [smem:[#allocation10_spill]] %s2529_s17  ;;  %p29_p0 = scmp.ge.s32.totalorder %s28_s25, 2 }
   0xb   : > { %3282 = sst [smem:[#allocation11_spill]] %s2533_s18  ;;  %s31_s26 = sadd.s32 1, %s2545_s21 }
   0xc   : > { %3283 = sst [smem:[#allocation12_spill]] %s2537_s19  ;;  %s1987_s27 = sadd.s32 4294967295, %s2557_s24  }
   0xd   : > { %s3307_s26 = smov (!%p29_p0, %s31_s26), %s2545_s21  ;;  %s35_s28 = sadd.s32 1, %s2549_s22 }
   0xe   : > { %p57_p1 = scmp.ne.s32.totalorder %s2521_s15, %s2517_s14  ;;  %p33_p2 = scmp.ge.s32.totalorder %s3307_s26, 2 }
   0xf   : > { %p58_p3 = scmp.eq.s32.totalorder %s2557_s24, 0  ;;  %s3309_s25 = smov (%p29_p0, %s28_s25), 0 }
  0x10   : > { %s3311_s26 = smov (%p33_p2, %s3307_s26), 0  ;;  %s3313_s28 = smov (!%p33_p2, %s35_s28), %s2549_s22 }
  0x11   : > { %s39_s29 = sadd.s32 1, %s2553_s23  ;;  %p2665_p4 = por %p58_p3, %p57_p1 }
  0x12   : > { %p37_p5 = scmp.ge.s32.totalorder %s3313_s28, 2  ;;  %p87_p6 = scmp.ne.s32.totalorder %s2513_s13, %s2509_s12 }
  0x13   : > { %p151_p7 = scmp.eq.s32.totalorder %s1987_s27, 15  ;;  %s44_s6 = ssub.s32 %s2545_s21, %s3311_s26 }
  0x14   : > { %s3315_s28 = smov (%p37_p5, %s3313_s28), 0  ;;  %s3317_s29 = smov (!%p37_p5, %s39_s29), %s2553_s23 }
  0x15   : > { %p2674_p8 = por %p87_p6, %p58_p3  ;;  %p41_p9 = scmp.ge.s32.totalorder %s3317_s29, 2 }
  0x16   : > { %p2681_p10 = por %p151_p7, %p57_p1  ;;  %s74_s7 = ssub.s32 %s2541_s20, %s3309_s25 }
  0x17   : > { %s3319_s29 = smov (%p41_p9, %s3317_s29), 0  ;;  %s46_s8 = ssub.s32 %s2549_s22, %s3315_s28 }
  0x18   : > { %s50_s9 = sadd.s32 1, %s2521_s15  ;;  %s43_s10 = ssub.s32 %s2553_s23, %s3319_s29 }
  0x19   : > { %s80_s11 = sadd.s32 1, %s2513_s13  ;;  %s45_s27 = sor.u32 %s44_s6, %s43_s10 }
  0x1a   : > { %s75_s3 = sor.u32 %s74_s7, %s43_s10  ;;  %s47_s18 = sor.u32 %s46_s8, %s45_s27 }
  0x1b   : > { %s77_s19 = sor.u32 %s75_s3, %s46_s8  ;;  %p48_p11 = scmp.eq.s32.totalorder %s47_s18, 0 }
  0x1c   : > { %p78_p12 = scmp.eq.s32.totalorder %s77_s19, 0  ;;  %p1990_p13 = scmp.ge.s32.totalorder %s2557_s24, 16 }
  0x1d   : > { %s2698_s17 = scalar_select %p48_p11, %s2521_s15, %s50_s9  }
  0x1e   : > { %s2701_s16 = scalar_select %p78_p12, %s2513_s13, %s80_s11  }
  0x1f   : > { %173 = sbr.rel (%p1990_p13) target bundleno = 89 (0x59), region = 16 }
  0x26   : > { %176 = sbr.rel (!%p2665_p4) target bundleno = 55 (0x37), region = 20  ;;  %s178_s6 = sand.u32 (%p2665_p4), 1, %s2521_s15  }
  0x27   : > { %s2060_s7 = sshll.u32 (%p2665_p4), %s2545_s21, 5  ;;  %s1991_s10 = sshll.u32 (%p2665_p4), %s178_s6, 6 }
  0x28   : > { %s183_s3 = sadd.s32 (%p2665_p4), %s2549_s22, %s2060_s7  ;;  %s1994_s18 = sshll.u32 (%p2665_p4), %s2553_s23, 6 }
  0x29   : > { %s185_s19 = sadd.s32 (%p2665_p4), %s1994_s18, %s183_s3  ;;  %s180_s30 = scalar_lea.vmem (%p2665_p4), [#allocation5], %s1991_s10 }
  0x2a   : > { %s1995_s8 = sshll.u32 (%p2665_p4), %s185_s19, 2 }
  0x2b   : > { %s2713_s27 = scalar_lea.vmem (%p2665_p4), %s3275_s0, %s1995_s8 }
  0x2c   : > { %v203_v0 = vld [vmem:[%s2713_s27] sm:$0xf] (%p2665_p4)  ;;  %v205_v1 = vld [vmem:[%s2713_s27 + $0x8] sm:$0xf] (%p2665_p4)  ;;  %v207_v2 = vld [vmem:[%s2713_s27 + $0x10] sm:$0xf] (%p2665_p4) }
  0x2d   : > { %204 = vst [vmem:[%s180_s30] sm:$0xf] %v203_v0  ;;  %206 = vst [vmem:[%s180_s30 + $0x4] sm:$0xf] %v205_v1  ;;  %v209_v3 = vld [vmem:[%s2713_s27 + $0x18] sm:$0xf] }
  0x2e   : > { %208 = vst [vmem:[%s180_s30 + $0x8] sm:$0xf] %v207_v2  ;;  %v211_v4 = vld [vmem:[%s2713_s27 + $0x20] sm:$0xf]  ;;  %v213_v5 = vld [vmem:[%s2713_s27 + $0x28] sm:$0xf] }
  0x2f   : > { %210 = vst [vmem:[%s180_s30 + $0xc] sm:$0xf] %v209_v3  ;;  %212 = vst [vmem:[%s180_s30 + $0x10] sm:$0xf] %v211_v4  ;;  %v215_v6 = vld [vmem:[%s2713_s27 + $0x30] sm:$0xf] }
  0x30   : > { %214 = vst [vmem:[%s180_s30 + $0x14] sm:$0xf] %v213_v5  ;;  %v217_v7 = vld [vmem:[%s2713_s27 + $0x38] sm:$0xf]  ;;  %v219_v8 = vld [vmem:[%s2713_s27 + $0x40] sm:$0xf] }
  0x31   : > { %216 = vst [vmem:[%s180_s30 + $0x18] sm:$0xf] %v215_v6  ;;  %218 = vst [vmem:[%s180_s30 + $0x1c] sm:$0xf] %v217_v7  ;;  %v221_v9 = vld [vmem:[%s2713_s27 + $0x48] sm:$0xf] }
  0x32   : > { %220 = vst [vmem:[%s180_s30 + $0x20] sm:$0xf] %v219_v8  ;;  %v223_v10 = vld [vmem:[%s2713_s27 + $0x50] sm:$0xf]  ;;  %v225_v11 = vld [vmem:[%s2713_s27 + $0x58] sm:$0xf] }
  0x33   : > { %222 = vst [vmem:[%s180_s30 + $0x24] sm:$0xf] %v221_v9  ;;  %224 = vst [vmem:[%s180_s30 + $0x28] sm:$0xf] %v223_v10  ;;  %v227_v12 = vld [vmem:[%s2713_s27 + $0x60] sm:$0xf] }
  0x34   : > { %226 = vst [vmem:[%s180_s30 + $0x2c] sm:$0xf] %v225_v11  ;;  %v229_v13 = vld [vmem:[%s2713_s27 + $0x68] sm:$0xf]  ;;  %v231_v14 = vld [vmem:[%s2713_s27 + $0x70] sm:$0xf] }
  0x35   : > { %228 = vst [vmem:[%s180_s30 + $0x30] sm:$0xf] %v227_v12  ;;  %230 = vst [vmem:[%s180_s30 + $0x34] sm:$0xf] %v229_v13  ;;  %v233_v15 = vld [vmem:[%s2713_s27 + $0x78] sm:$0xf] }
  0x36   : > { %232 = vst [vmem:[%s180_s30 + $0x38] sm:$0xf] %v231_v14  ;;  %234 = vst [vmem:[%s180_s30 + $0x3c] sm:$0xf] %v233_v15 }
  0x37 PF: > { %289 = sbr.rel (!%p2674_p8) target bundleno = 72 (0x48), region = 61  ;;  %s291_s6 = sand.u32 (%p2674_p8), 1, %s2513_s13  }
  0x38   : > { %s2061_s7 = sshll.u32 (%p2674_p8), %s2541_s20, 5  ;;  %s1996_s10 = sshll.u32 (%p2674_p8), %s291_s6, 6 }
  0x39   : > { %s296_s3 = sadd.s32 (%p2674_p8), %s2549_s22, %s2061_s7  ;;  %s1999_s18 = sshll.u32 (%p2674_p8), %s2553_s23, 6 }
  0x3a   : > { %s298_s19 = sadd.s32 (%p2674_p8), %s1999_s18, %s296_s3  ;;  %s293_s30 = scalar_lea.vmem (%p2674_p8), [#allocation6], %s1996_s10 }
  0x3b   : > { %s2000_s8 = sshll.u32 (%p2674_p8), %s298_s19, 2 }
  0x3c   : > { %s2740_s27 = scalar_lea.vmem (%p2674_p8), %s3276_s1, %s2000_s8 }
  0x3d   : > { %v316_v16 = vld [vmem:[%s2740_s27] sm:$0xf] (%p2674_p8)  ;;  %v318_v17 = vld [vmem:[%s2740_s27 + $0x8] sm:$0xf] (%p2674_p8)  ;;  %v320_v18 = vld [vmem:[%s2740_s27 + $0x10] sm:$0xf] (%p2674_p8) }
  0x3e   : > { %317 = vst [vmem:[%s293_s30] sm:$0xf] %v316_v16  ;;  %319 = vst [vmem:[%s293_s30 + $0x4] sm:$0xf] %v318_v17  ;;  %v322_v19 = vld [vmem:[%s2740_s27 + $0x18] sm:$0xf] }
  0x3f   : > { %321 = vst [vmem:[%s293_s30 + $0x8] sm:$0xf] %v320_v18  ;;  %v324_v20 = vld [vmem:[%s2740_s27 + $0x20] sm:$0xf]  ;;  %v326_v21 = vld [vmem:[%s2740_s27 + $0x28] sm:$0xf] }
  0x40   : > { %323 = vst [vmem:[%s293_s30 + $0xc] sm:$0xf] %v322_v19  ;;  %325 = vst [vmem:[%s293_s30 + $0x10] sm:$0xf] %v324_v20  ;;  %v328_v22 = vld [vmem:[%s2740_s27 + $0x30] sm:$0xf] }
  0x41   : > { %327 = vst [vmem:[%s293_s30 + $0x14] sm:$0xf] %v326_v21  ;;  %v330_v23 = vld [vmem:[%s2740_s27 + $0x38] sm:$0xf]  ;;  %v332_v24 = vld [vmem:[%s2740_s27 + $0x40] sm:$0xf] }
  0x42   : > { %329 = vst [vmem:[%s293_s30 + $0x18] sm:$0xf] %v328_v22  ;;  %331 = vst [vmem:[%s293_s30 + $0x1c] sm:$0xf] %v330_v23  ;;  %v334_v25 = vld [vmem:[%s2740_s27 + $0x48] sm:$0xf] }
  0x43   : > { %333 = vst [vmem:[%s293_s30 + $0x20] sm:$0xf] %v332_v24  ;;  %v336_v26 = vld [vmem:[%s2740_s27 + $0x50] sm:$0xf]  ;;  %v338_v27 = vld [vmem:[%s2740_s27 + $0x58] sm:$0xf] }
  0x44   : > { %335 = vst [vmem:[%s293_s30 + $0x24] sm:$0xf] %v334_v25  ;;  %337 = vst [vmem:[%s293_s30 + $0x28] sm:$0xf] %v336_v26  ;;  %v340_v28 = vld [vmem:[%s2740_s27 + $0x60] sm:$0xf] }
  0x45   : > { %339 = vst [vmem:[%s293_s30 + $0x2c] sm:$0xf] %v338_v27  ;;  %v342_v29 = vld [vmem:[%s2740_s27 + $0x68] sm:$0xf]  ;;  %v344_v30 = vld [vmem:[%s2740_s27 + $0x70] sm:$0xf] }
  0x46   : > { %341 = vst [vmem:[%s293_s30 + $0x30] sm:$0xf] %v340_v28  ;;  %343 = vst [vmem:[%s293_s30 + $0x34] sm:$0xf] %v342_v29  ;;  %v346_v31 = vld [vmem:[%s2740_s27 + $0x78] sm:$0xf] }
  0x47   : > { %345 = vst [vmem:[%s293_s30 + $0x38] sm:$0xf] %v344_v30  ;;  %347 = vst [vmem:[%s293_s30 + $0x3c] sm:$0xf] %v346_v31 }
  0x48 PF: > { %402 = sbr.rel (!%p2674_p8) target bundleno = 89 (0x59), region = 102  ;;  %s404_s6 = sand.u32 (%p2674_p8), 1, %s2513_s13  }
  0x49   : > { %s2062_s7 = sshll.u32 (%p2674_p8), %s2541_s20, 5  ;;  %s2001_s10 = sshll.u32 (%p2674_p8), %s404_s6, 6 }
  0x4a   : > { %s409_s3 = sadd.s32 (%p2674_p8), %s2549_s22, %s2062_s7  ;;  %s2004_s18 = sshll.u32 (%p2674_p8), %s2553_s23, 6 }
  0x4b   : > { %s411_s19 = sadd.s32 (%p2674_p8), %s2004_s18, %s409_s3  ;;  %s406_s4 = scalar_lea.vmem (%p2674_p8), [#allocation7], %s2001_s10 }
  0x4c   : > { %s2005_s8 = sshll.u32 (%p2674_p8), %s411_s19, 2 }
  0x4d   : > { %s2767_s27 = scalar_lea.vmem (%p2674_p8), %s3277_s2, %s2005_s8 }
  0x4e   : > { %v429_v32 = vld [vmem:[%s2767_s27] sm:$0xf] (%p2674_p8)  ;;  %v431_v33 = vld [vmem:[%s2767_s27 + $0x8] sm:$0xf] (%p2674_p8)  ;;  %v433_v34 = vld [vmem:[%s2767_s27 + $0x10] sm:$0xf] (%p2674_p8) }
  0x4f   : > { %430 = vst [vmem:[%s406_s4] sm:$0xf] %v429_v32  ;;  %432 = vst [vmem:[%s406_s4 + $0x4] sm:$0xf] %v431_v33  ;;  %v435_v35 = vld [vmem:[%s2767_s27 + $0x18] sm:$0xf] }
  0x50   : > { %434 = vst [vmem:[%s406_s4 + $0x8] sm:$0xf] %v433_v34  ;;  %v437_v36 = vld [vmem:[%s2767_s27 + $0x20] sm:$0xf]  ;;  %v439_v37 = vld [vmem:[%s2767_s27 + $0x28] sm:$0xf] }
  0x51   : > { %436 = vst [vmem:[%s406_s4 + $0xc] sm:$0xf] %v435_v35  ;;  %438 = vst [vmem:[%s406_s4 + $0x10] sm:$0xf] %v437_v36  ;;  %v441_v38 = vld [vmem:[%s2767_s27 + $0x30] sm:$0xf] }
  0x52   : > { %440 = vst [vmem:[%s406_s4 + $0x14] sm:$0xf] %v439_v37  ;;  %v443_v39 = vld [vmem:[%s2767_s27 + $0x38] sm:$0xf]  ;;  %v445_v40 = vld [vmem:[%s2767_s27 + $0x40] sm:$0xf] }
  0x53   : > { %442 = vst [vmem:[%s406_s4 + $0x18] sm:$0xf] %v441_v38  ;;  %444 = vst [vmem:[%s406_s4 + $0x1c] sm:$0xf] %v443_v39  ;;  %v447_v41 = vld [vmem:[%s2767_s27 + $0x48] sm:$0xf] }
  0x54   : > { %446 = vst [vmem:[%s406_s4 + $0x20] sm:$0xf] %v445_v40  ;;  %v449_v42 = vld [vmem:[%s2767_s27 + $0x50] sm:$0xf]  ;;  %v451_v43 = vld [vmem:[%s2767_s27 + $0x58] sm:$0xf] }
  0x55   : > { %448 = vst [vmem:[%s406_s4 + $0x24] sm:$0xf] %v447_v41  ;;  %450 = vst [vmem:[%s406_s4 + $0x28] sm:$0xf] %v449_v42  ;;  %v453_v44 = vld [vmem:[%s2767_s27 + $0x60] sm:$0xf] }
  0x56   : > { %452 = vst [vmem:[%s406_s4 + $0x2c] sm:$0xf] %v451_v43  ;;  %v455_v45 = vld [vmem:[%s2767_s27 + $0x68] sm:$0xf]  ;;  %v457_v46 = vld [vmem:[%s2767_s27 + $0x70] sm:$0xf] }
  0x57   : > { %454 = vst [vmem:[%s406_s4 + $0x30] sm:$0xf] %v453_v44  ;;  %456 = vst [vmem:[%s406_s4 + $0x34] sm:$0xf] %v455_v45  ;;  %v459_v47 = vld [vmem:[%s2767_s27 + $0x78] sm:$0xf] }
  0x58   : > { %458 = vst [vmem:[%s406_s4 + $0x38] sm:$0xf] %v457_v46  ;;  %460 = vst [vmem:[%s406_s4 + $0x3c] sm:$0xf] %v459_v47 }
  0x59 PF: > { %p2006_p0 = scmp.ge.s32.totalorder %s2557_s24, 1  ;;  %p514_p1 = scmp.lt.s32.totalorder %s2557_s24, 17 }
  0x5b   : > { %p515_p2 = pnand %p2006_p0, %p514_p1 }
  0x5c   : > { %s521_s30 = sand.u32 (!%p515_p2), 1, %s2517_s14   ;;  %s528_s6 = sand.u32 (!%p515_p2), 1, %s2509_s12  }
  0x5d   : > { %518 = sbr.rel (%p515_p2) target bundleno = 1108 (0x454), region = 143  ;;  %s2007_s7 = sshll.u32 (!%p515_p2), %s521_s30, 6 }
  0x5e   : > { %s2008_s10 = sshll.u32 (!%p515_p2), %s528_s6, 6  ;;  %s2789_s3 = scalar_lea.vmem (!%p515_p2), [#allocation5], %s2007_s7 }
  0x5f   : > { %s2791_s18 = scalar_lea.vmem (!%p515_p2), [#allocation6], %s2008_s10  ;;  %s2793_s19 = scalar_lea.vmem (!%p515_p2), [#allocation7], %s2008_s10 }
  0x60   : > { %s2795_s8 = scalar_lea.vmem (!%p515_p2), [#allocation8], %s2007_s7  ;;  %s3287_s9 = sld [smem:[#allocation9_spill]] (!%p515_p2) }
  0x66   : > { %p2011_p3 = scmp.ne.s32.totalorder %s3287_s9, 0 }
  0x67   : > { %vm574_vm0 = vcmask (!%p2011_p3), 7168   ;;  %v2559_v48 = vmov (!%p2011_p3), -inf   ;;  %v2560_v49 = vmov (!%p2011_p3), 0.0  }
  0x68   : > { %573 = sbr.rel (%p2011_p3) target bundleno = 128 (0x80), region = 159  ;;  %575 = vst.msk [vmem:[#allocation2] sm:$0xff] (!%p2011_p3), %vm574_vm0, %v2559_v48  ;;  %576 = vst.msk [vmem:[#allocation2 + $0x8] sm:$0xff] (!%p2011_p3), %vm574_vm0, %v2559_v48 }
  0x69   : > { %577 = vst.msk [vmem:[#allocation2 + $0x10] sm:$0xff] (!%p2011_p3), %vm574_vm0, %v2559_v48  ;;  %578 = vst.msk [vmem:[#allocation2 + $0x18] sm:$0xff] (!%p2011_p3), %vm574_vm0, %v2559_v48 }
  0x6a   : > { %579 = vst.msk [vmem:[#allocation2 + $0x20] sm:$0xff] (!%p2011_p3), %vm574_vm0, %v2559_v48  ;;  %580 = vst.msk [vmem:[#allocation2 + $0x28] sm:$0xff] (!%p2011_p3), %vm574_vm0, %v2559_v48 }
  0x6b   : > { %581 = vst.msk [vmem:[#allocation2 + $0x30] sm:$0xff] (!%p2011_p3), %vm574_vm0, %v2559_v48  ;;  %582 = vst.msk [vmem:[#allocation2 + $0x38] sm:$0xff] (!%p2011_p3), %vm574_vm0, %v2559_v48 }
  0x6c   : > { %583 = vst.msk [vmem:[#allocation2 + $0x40] sm:$0xff] (!%p2011_p3), %vm574_vm0, %v2559_v48  ;;  %584 = vst.msk [vmem:[#allocation2 + $0x48] sm:$0xff] (!%p2011_p3), %vm574_vm0, %v2559_v48 }
  0x6d   : > { %585 = vst.msk [vmem:[#allocation2 + $0x50] sm:$0xff] (!%p2011_p3), %vm574_vm0, %v2559_v48  ;;  %586 = vst.msk [vmem:[#allocation2 + $0x58] sm:$0xff] (!%p2011_p3), %vm574_vm0, %v2559_v48 }
  0x6e   : > { %587 = vst.msk [vmem:[#allocation2 + $0x60] sm:$0xff] (!%p2011_p3), %vm574_vm0, %v2559_v48  ;;  %588 = vst.msk [vmem:[#allocation2 + $0x68] sm:$0xff] (!%p2011_p3), %vm574_vm0, %v2559_v48 }
  0x6f   : > { %589 = vst.msk [vmem:[#allocation2 + $0x70] sm:$0xff] %vm574_vm0, %v2559_v48  ;;  %590 = vst.msk [vmem:[#allocation2 + $0x78] sm:$0xff] %vm574_vm0, %v2559_v48 }
  0x70   : > { %591 = vst.msk [vmem:[#allocation3] sm:$0xff] %vm574_vm0, %v2560_v49  ;;  %592 = vst.msk [vmem:[#allocation3 + $0x8] sm:$0xff] %vm574_vm0, %v2560_v49 }
  0x71   : > { %593 = vst.msk [vmem:[#allocation3 + $0x10] sm:$0xff] %vm574_vm0, %v2560_v49  ;;  %594 = vst.msk [vmem:[#allocation3 + $0x18] sm:$0xff] %vm574_vm0, %v2560_v49 }
  0x72   : > { %595 = vst.msk [vmem:[#allocation3 + $0x20] sm:$0xff] %vm574_vm0, %v2560_v49  ;;  %596 = vst.msk [vmem:[#allocation3 + $0x28] sm:$0xff] %vm574_vm0, %v2560_v49 }
  0x73   : > { %597 = vst.msk [vmem:[#allocation3 + $0x30] sm:$0xff] %vm574_vm0, %v2560_v49  ;;  %598 = vst.msk [vmem:[#allocation3 + $0x38] sm:$0xff] %vm574_vm0, %v2560_v49 }
  0x74   : > { %599 = vst.msk [vmem:[#allocation3 + $0x40] sm:$0xff] %vm574_vm0, %v2560_v49  ;;  %600 = vst.msk [vmem:[#allocation3 + $0x48] sm:$0xff] %vm574_vm0, %v2560_v49 }
  0x75   : > { %601 = vst.msk [vmem:[#allocation3 + $0x50] sm:$0xff] %vm574_vm0, %v2560_v49  ;;  %602 = vst.msk [vmem:[#allocation3 + $0x58] sm:$0xff] %vm574_vm0, %v2560_v49 }
  0x76   : > { %603 = vst.msk [vmem:[#allocation3 + $0x60] sm:$0xff] %vm574_vm0, %v2560_v49  ;;  %604 = vst.msk [vmem:[#allocation3 + $0x68] sm:$0xff] %vm574_vm0, %v2560_v49 }
  0x77   : > { %605 = vst.msk [vmem:[#allocation3 + $0x70] sm:$0xff] %vm574_vm0, %v2560_v49  ;;  %606 = vst.msk [vmem:[#allocation3 + $0x78] sm:$0xff] %vm574_vm0, %v2560_v49 }
  0x78   : > { %607 = vst [vmem:[#allocation4] sm:$0xff] %v2560_v49  ;;  %608 = vst [vmem:[#allocation4 + $0x8] sm:$0xff] %v2560_v49 }
  0x79   : > { %609 = vst [vmem:[#allocation4 + $0x10] sm:$0xff] %v2560_v49  ;;  %610 = vst [vmem:[#allocation4 + $0x18] sm:$0xff] %v2560_v49 }
  0x7a   : > { %611 = vst [vmem:[#allocation4 + $0x20] sm:$0xff] %v2560_v49  ;;  %612 = vst [vmem:[#allocation4 + $0x28] sm:$0xff] %v2560_v49 }
  0x7b   : > { %613 = vst [vmem:[#allocation4 + $0x30] sm:$0xff] %v2560_v49  ;;  %614 = vst [vmem:[#allocation4 + $0x38] sm:$0xff] %v2560_v49 }
  0x7c   : > { %615 = vst [vmem:[#allocation4 + $0x40] sm:$0xff] %v2560_v49  ;;  %616 = vst [vmem:[#allocation4 + $0x48] sm:$0xff] %v2560_v49 }
  0x7d   : > { %617 = vst [vmem:[#allocation4 + $0x50] sm:$0xff] %v2560_v49  ;;  %618 = vst [vmem:[#allocation4 + $0x58] sm:$0xff] %v2560_v49 }
  0x7e   : > { %619 = vst [vmem:[#allocation4 + $0x60] sm:$0xff] %v2560_v49  ;;  %620 = vst [vmem:[#allocation4 + $0x68] sm:$0xff] %v2560_v49 }
  0x7f   : > { %621 = vst [vmem:[#allocation4 + $0x70] sm:$0xff] %v2560_v49  ;;  %622 = vst [vmem:[#allocation4 + $0x78] sm:$0xff] %v2560_v49 }
  0x80 PF: > { %v2333_v50 = vld [vmem:[%s2791_s18] sm:$0xff]   ;;  %v2334_v51 = vld [vmem:[%s2791_s18 + $0x8] sm:$0xff]   ;;  %v2335_v52 = vld [vmem:[%s2791_s18 + $0x10] sm:$0xff]   ;;  %v2561_v11 = vmov 0   ;;  %vm1168_vm1 = vcmask 7168   ;;  %s3288_s12 = sld [smem:[#allocation9_spill]] }
  0x81   : > { %2159 = vmatprep.subr.bf16.mxu0 %v2333_v50  ;;  %v2341_v53 = vld [vmem:[%s2789_s3] sm:$0xff]   ;;  %v2336_v54 = vld [vmem:[%s2791_s18 + $0x18] sm:$0xff]   ;;  %v2338_v56 = vld [vmem:[%s2791_s18 + $0x28] sm:$0xff]   ;;  %2332 = vset.pattern.permute.xlu1 %v2561_v11 }
  0x82   : > { %2160 = vmatpush3.bf16.xpose.msra.mxu0 %v2333_v50  ;;  %2175 = vmatprep.mubr.bf16.mxu0 %v2341_v53  ;;  %v2337_v55 = vld [vmem:[%s2791_s18 + $0x20] sm:$0xff]   ;;  %v2339_v57 = vld [vmem:[%s2791_s18 + $0x30] sm:$0xff]   ;;  %v2340_v58 = vld [vmem:[%s2791_s18 + $0x38] sm:$0xff]  }
  0x83   : > { %2161 = vmatprep.subr.bf16.mxu0 %v2334_v51  ;;  %v2342_v59 = vld [vmem:[%s2789_s3 + $0x8] sm:$0xff]   ;;  %v2343_v60 = vld [vmem:[%s2789_s3 + $0x10] sm:$0xff]   ;;  %v2344_v61 = vld [vmem:[%s2789_s3 + $0x18] sm:$0xff]   ;;  %2331 = vset.pattern.permute.xlu0 %v2561_v11 }
  0x84   : > { %v2345_v62 = vld [vmem:[%s2789_s3 + $0x20] sm:$0xff]   ;;  %v2346_v63 = vld [vmem:[%s2789_s3 + $0x28] sm:$0xff]   ;;  %v2347_v0 = vld [vmem:[%s2789_s3 + $0x30] sm:$0xff]  }
  0x85   : > { %v2348_v1 = vld [vmem:[%s2789_s3 + $0x38] sm:$0xff]   ;;  %v2349_v19 = vld [vmem:[%s2793_s19] sm:$0xff]   ;;  %v2350_v20 = vld [vmem:[%s2793_s19 + $0x8] sm:$0xff]  }
  0x86   : > { %2191 = vmatprep.subr.bf16.mxu1 %v2349_v19  ;;  %v2896_v21 = vld [vmem:[#allocation2 + $0x10] sm:$0xff]  ;;  %v2898_v22 = vld [vmem:[#allocation2] sm:$0xff]  ;;  %v2906_v27 = vld [vmem:[#allocation2 + $0x18] sm:$0xff]  ;;  %p2036_p4 = scmp.ne.s32.totalorder %s3288_s12, 1 }
  0x87   : > { %2192 = vmatpush3.bf16.msra.mxu1 %v2349_v19  ;;  %v2911_v28 = vld [vmem:[#allocation2 + $0x8] sm:$0xff]  ;;  %v2351_v29 = vld [vmem:[%s2793_s19 + $0x10] sm:$0xff]   ;;  %v2926_v34 = vld [vmem:[#allocation2 + $0x20] sm:$0xff] }
  0x88   : > { %2193 = vmatprep.subr.bf16.mxu1 %v2350_v20  ;;  %v2352_v35 = vld [vmem:[%s2793_s19 + $0x18] sm:$0xff]   ;;  %v2940_v41 = vld [vmem:[#allocation2 + $0x30] sm:$0xff]  ;;  %v2353_v42 = vld [vmem:[%s2793_s19 + $0x20] sm:$0xff]  }
  0x89   : > { %v2931_v36 = vld [vmem:[#allocation2 + $0x38] sm:$0xff]  ;;  %v2945_v43 = vld [vmem:[#allocation2 + $0x28] sm:$0xff]  ;;  %v2955_v48 = vld [vmem:[#allocation2 + $0x40] sm:$0xff] }
  0x8a   : > { %2162 = vmatpush3.bf16.xpose.msra.mxu0 %v2334_v51  ;;  %v2354_v49 = vld [vmem:[%s2793_s19 + $0x28] sm:$0xff]   ;;  %v2961_v50 = vld [vmem:[#allocation2 + $0x58] sm:$0xff] }
  0x8b   : > { %2163 = vmatprep.subr.bf16.mxu0 %v2335_v52  ;;  %2194 = vmatpush3.bf16.msra.mxu1 %v2350_v20 }
  0x8c   : > { %2195 = vmatprep.subr.bf16.mxu1 %v2351_v29 }
  0x8f   : > { %2196 = vmatpush3.bf16.msra.mxu1 %v2351_v29  ;;  %v861_v29 = vld [vmem:[#allocation2 + $0x68] sm:$0xff] }
  0x90   : > { %2197 = vmatprep.subr.bf16.mxu1 %v2352_v35 }
  0x92   : > { %2164 = vmatpush3.bf16.xpose.msra.mxu0 %v2335_v52 }
  0x93   : > { %2165 = vmatprep.subr.bf16.mxu0 %v2336_v54  ;;  %2198 = vmatpush3.bf16.msra.mxu1 %v2352_v35 }
  0x94   : > { %2199 = vmatprep.subr.bf16.mxu1 %v2353_v42 }
  0x97   : > { %2200 = vmatpush3.bf16.msra.mxu1 %v2353_v42 }
  0x98   : > { %2201 = vmatprep.subr.bf16.mxu1 %v2354_v49 }
  0x9a   : > { %2166 = vmatpush3.bf16.xpose.msra.mxu0 %v2336_v54 }
  0x9b   : > { %2167 = vmatprep.subr.bf16.mxu0 %v2337_v55  ;;  %2202 = vmatpush3.bf16.msra.mxu1 %v2354_v49 }
  0xa2   : > { %2168 = vmatpush3.bf16.xpose.msra.mxu0 %v2337_v55  ;;  %v2971_v55 = vld [vmem:[#allocation2 + $0x50] sm:$0xff] }
  0xa3   : > { %2169 = vmatprep.subr.bf16.mxu0 %v2338_v56 }
  0xaa   : > { %2170 = vmatpush3.bf16.xpose.msra.mxu0 %v2338_v56  ;;  %v2355_v56 = vld [vmem:[%s2793_s19 + $0x30] sm:$0xff]  }
  0xab   : > { %2171 = vmatprep.subr.bf16.mxu0 %v2339_v57  ;;  %2203 = vmatprep.subr.bf16.mxu1 %v2355_v56 }
  0xac   : > { %2204 = vmatpush3.bf16.msra.mxu1 %v2355_v56 }
  0xb2   : > { %2172 = vmatpush3.bf16.xpose.msra.mxu0 %v2339_v57  ;;  %v2977_v57 = vld [vmem:[#allocation2 + $0x48] sm:$0xff] }
  0xb3   : > { %2173 = vmatprep.subr.bf16.mxu0 %v2340_v58 }
  0xba   : > { %2174 = vmatpush3.bf16.xpose.msra.mxu0 %v2340_v58 }
  0xc1   : > { %2176 = vmatmul.mubr.bf16.vlgmr.msra.gmra.mrb[0].mxu0 %v2342_v59 }
  0xc2   : > { %2179 = vmatprep.mubr.bf16.mxu0 %v2343_v60 }
  0xc9   : > { %2180 = vmatmul.mubr.bf16.gmra.mrb[4].mxu0 %v2344_v61 }
  0xca   : > { %2183 = vmatprep.mubr.bf16.mxu0 %v2345_v62 }
  0xd1   : > { %2184 = vmatmul.mubr.bf16.gmra.mrb[8].mxu0 %v2346_v63  ;;  %v2989_v63 = vld [vmem:[#allocation2 + $0x60] sm:$0xff] }
  0xd2   : > { %2187 = vmatprep.mubr.bf16.mxu0 %v2347_v0  ;;  %v2356_v0 = vld [vmem:[%s2793_s19 + $0x38] sm:$0xff]  }
  0xd3   : > { %2205 = vmatprep.subr.bf16.mxu1 %v2356_v0 }
  0xd4   : > { %2206 = vmatpush3.bf16.msra.mxu1 %v2356_v0 }
  0xd9   : > { %2188 = vmatmul.mubr.bf16.gmra.mrb[12].mxu0 %v2348_v1  ;;  %v2995_v1 = vld [vmem:[#allocation2 + $0x78] sm:$0xff] }
 0x194   : > { %v2846_v2 = vpop.f32.mrb[0].mxu0 }
 0x195   : > { %868 = vmax.xlane.f32.xlu1 %v2846_v2  ;;  %v2849_v3 = vpop.f32.mrb[1].mxu0 }
 0x196   : > { %864 = vmax.xlane.f32.xlu0 %v2849_v3  ;;  %v2852_v4 = vpop.f32.mrb[2].mxu0 }
 0x197   : > { %v2854_v5 = vpop.f32.mrb[3].mxu0 }
 0x199   : > { %870 = vmax.xlane.f32.xlu1 %v2852_v4 }
 0x19a   : > { %866 = vmax.xlane.f32.xlu0 %v2854_v5 }
 0x19c   : > { %v2858_v6 = vpop.f32.mrb[4].mxu0 }
 0x19d   : > { %v2860_v7 = vpop.f32.mrb[5].mxu0 }
 0x19e   : > { %872 = vmax.xlane.f32.xlu0 %v2860_v7  ;;  %v2863_v8 = vpop.f32.mrb[6].mxu0 }
 0x19f   : > { %878 = vmax.xlane.f32.xlu1 %v2863_v8  ;;  %v2866_v9 = vpop.f32.mrb[7].mxu0 }
 0x1a2   : > { %876 = vmax.xlane.f32.xlu0 %v2858_v6 }
 0x1a3   : > { %874 = vmax.xlane.f32.xlu1 %v2866_v9 }
 0x1a4   : > { %v2870_v10 = vpop.f32.mrb[8].mxu0 }
 0x1a5   : > { %v2872_v12 = vpop.f32.mrb[9].mxu0 }
 0x1a6   : > { %v2874_v13 = vpop.f32.mrb[10].mxu0  ;;  %880 = vmax.xlane.f32.xlu0 %v2872_v12 }
 0x1a7   : > { %886 = vmax.xlane.f32.xlu1 %v2874_v13  ;;  %v2878_v14 = vpop.f32.mrb[11].mxu0 }
 0x1aa   : > { %884 = vmax.xlane.f32.xlu0 %v2870_v10 }
 0x1ab   : > { %882 = vmax.xlane.f32.xlu1 %v2878_v14 }
 0x1ac   : > { %v2882_v15 = vpop.f32.mrb[12].mxu0 }
 0x1ad   : > { %v2884_v16 = vpop.f32.mrb[13].mxu0 }
 0x1ae   : > { %v2886_v17 = vpop.f32.mrb[14].mxu0  ;;  %888 = vmax.xlane.f32.xlu0 %v2884_v16 }
 0x1af   : > { %894 = vmax.xlane.f32.xlu1 %v2886_v17  ;;  %v2890_v18 = vpop.f32.mrb[15].mxu0 }
 0x1b2   : > { %892 = vmax.xlane.f32.xlu0 %v2882_v15 }
 0x1b3   : > { %890 = vmax.xlane.f32.xlu1 %v2890_v18 }
 0x222   : > { %v869_v23 = vpop.xlane.xlu1 %868 }
 0x223   : > { %v2901_v24 = vmax.f32 %v2896_v21, %v869_v23  ;;  %v865_v25 = vpop.xlane.xlu0 %864 }
 0x224   : > { %v2904_v26 = vmax.f32 %v2898_v22, %v865_v25 }
 0x225   : > { %1500 = vst.msk [vmem:[#allocation2 + $0x10] sm:$0xff] %vm1168_vm1, %v2901_v24  ;;  %972 = vperm.xlu1 %2332, %v2901_v24  }
 0x226   : > { %1498 = vst.msk [vmem:[#allocation2] sm:$0xff] %vm1168_vm1, %v2904_v26  ;;  %v871_v30 = vpop.xlane.xlu1 %870  ;;  %962 = vperm.xlu0 %2331, %v2904_v26   ;;  %v912_v59 = vsub.f32 %v2898_v22, %v2904_v26  ;;  %v3008_v26 = vld [vmem:[#allocation2 + $0x70] sm:$0xff] }
 0x227   : > { %v2918_v31 = vmax.f32 %v2906_v27, %v871_v30  ;;  %v867_v32 = vpop.xlane.xlu0 %866 }
 0x228   : > { %v2921_v33 = vmax.f32 %v2911_v28, %v867_v32  ;;  %v928_v19 = vmul.f32 1.442695, %v912_v59 }
 0x229   : > { %1501 = vst.msk [vmem:[#allocation2 + $0x18] sm:$0xff] %vm1168_vm1, %v2918_v31  ;;  %977 = vperm.xlu1 %2332, %v2918_v31   ;;  %v915_v20 = vsub.f32 %v2906_v27, %v2918_v31 }
 0x22a   : > { %1499 = vst.msk [vmem:[#allocation2 + $0x8] sm:$0xff] %vm1168_vm1, %v2921_v33  ;;  %v913_v30 = vsub.f32 %v2911_v28, %v2921_v33  ;;  %2357 = vpow2.f32 %v928_v19 }
 0x22b   : > { %v873_v37 = vpop.xlane.xlu0 %872  ;;  %v934_v32 = vmul.f32 1.442695, %v915_v20 }
 0x22c   : > { %v2934_v38 = vmax.f32 %v2926_v34, %v873_v37  ;;  %v879_v39 = vpop.xlane.xlu1 %878 }
 0x22d   : > { %v2937_v40 = vmax.f32 %v2931_v36, %v879_v39  ;;  %967 = vperm.xlu1 %2332, %v2921_v33   ;;  %v914_v33 = vsub.f32 %v2896_v21, %v2901_v24  ;;  %2359 = vpow2.f32 %v934_v32 }
 0x22e   : > { %1502 = vst.msk [vmem:[#allocation2 + $0x20] sm:$0xff] %vm1168_vm1, %v2934_v38  ;;  %v916_v49 = vsub.f32 %v2926_v34, %v2934_v38 }
 0x22f   : > { %1505 = vst.msk [vmem:[#allocation2 + $0x38] sm:$0xff] %vm1168_vm1, %v2937_v40  ;;  %v877_v44 = vpop.xlane.xlu0 %876 }
 0x230   : > { %v2950_v45 = vmax.f32 %v2940_v41, %v877_v44  ;;  %v875_v46 = vpop.xlane.xlu1 %874  ;;  %v930_v44 = vmul.f32 1.442695, %v913_v30 }
 0x231   : > { %v2953_v47 = vmax.f32 %v2945_v43, %v875_v46 }
 0x232   : > { %1504 = vst.msk [vmem:[#allocation2 + $0x30] sm:$0xff] %vm1168_vm1, %v2950_v45  ;;  %992 = vperm.xlu1 %2332, %v2950_v45   ;;  %2361 = vpow2.f32 %v930_v44 }
 0x233   : > { %1503 = vst.msk [vmem:[#allocation2 + $0x28] sm:$0xff] %vm1168_vm1, %v2953_v47  ;;  %v881_v51 = vpop.xlane.xlu0 %880  ;;  %v917_v35 = vsub.f32 %v2945_v43, %v2953_v47  ;;  %v919_v43 = vsub.f32 %v2931_v36, %v2937_v40  ;;  %v936_v36 = vmul.f32 1.442695, %v916_v49 }
 0x234   : > { %v887_v52 = vpop.xlane.xlu1 %886  ;;  %v2966_v53 = vmax.f32 %v2955_v48, %v881_v51  ;;  %v3041_v24 = vpop.eup %2357 }
 0x235   : > { %v2969_v54 = vmax.f32 %v2961_v50, %v887_v52  ;;  %v938_v46 = vmul.f32 1.442695, %v917_v35  ;;  %v942_v51 = vmul.f32 1.442695, %v919_v43 }
 0x236   : > { %1506 = vst.msk [vmem:[#allocation2 + $0x40] sm:$0xff] %vm1168_vm1, %v2966_v53  ;;  %982 = vperm.xlu1 %2332, %v2934_v38  }
 0x237   : > { %1509 = vst.msk [vmem:[#allocation2 + $0x58] sm:$0xff] %vm1168_vm1, %v2969_v54  ;;  %v885_v58 = vpop.xlane.xlu0 %884  ;;  %2363 = vpow2.f32 %v938_v46  ;;  %v923_v21 = vsub.f32 %v2961_v50, %v2969_v54  ;;  %v3049_v52 = vpop.eup %2359 }
 0x238   : > { %v883_v60 = vpop.xlane.xlu1 %882  ;;  %v2984_v61 = vmax.f32 %v2971_v55, %v885_v58 }
 0x239   : > { %v2987_v62 = vmax.f32 %v2977_v57, %v883_v60  ;;  %v950_v34 = vmul.f32 1.442695, %v923_v21 }
 0x23a   : > { %1508 = vst.msk [vmem:[#allocation2 + $0x50] sm:$0xff] %vm1168_vm1, %v2984_v61  ;;  %987 = vperm.xlu1 %2332, %v2953_v47   ;;  %v932_v47 = vmul.f32 1.442695, %v914_v33 }
 0x23b   : > { %1507 = vst.msk [vmem:[#allocation2 + $0x48] sm:$0xff] %vm1168_vm1, %v2987_v62  ;;  %1007 = vperm.xlu0 %2331, %v2987_v62   ;;  %v889_v11 = vpop.xlane.xlu0 %888  ;;  %v921_v38 = vsub.f32 %v2977_v57, %v2987_v62  ;;  %v920_v57 = vsub.f32 %v2955_v48, %v2966_v53 }
 0x23c   : > { %v895_v22 = vpop.xlane.xlu1 %894  ;;  %v3003_v23 = vmax.f32 %v2989_v63, %v889_v11  ;;  %2365 = vpow2.f32 %v932_v47  ;;  %v3055_v56 = vpop.eup %2361 }
 0x23d   : > { %v3006_v25 = vmax.f32 %v2995_v1, %v895_v22  ;;  %2367 = vpow2.f32 %v942_v51  ;;  %v944_v62 = vmul.f32 1.442695, %v920_v57 }
 0x23e   : > { %1510 = vst.msk [vmem:[#allocation2 + $0x60] sm:$0xff] %vm1168_vm1, %v3003_v23  ;;  %997 = vperm.xlu1 %2332, %v2937_v40   ;;  %v918_v40 = vsub.f32 %v2940_v41, %v2950_v45  ;;  %2369 = vpow2.f32 %v936_v36  ;;  %v946_v41 = vmul.f32 1.442695, %v921_v38  ;;  %v924_v0 = vsub.f32 %v2989_v63, %v3003_v23 }
 0x23f   : > { %v927_v27 = vsub.f32 %v2995_v1, %v3006_v25  ;;  %1513 = vst.msk [vmem:[#allocation2 + $0x78] sm:$0xff] %vm1168_vm1, %v3006_v25  ;;  %1017 = vperm.xlu0 %2331, %v2969_v54   ;;  %v893_v31 = vpop.xlane.xlu0 %892  ;;  %v922_v54 = vsub.f32 %v2971_v55, %v2984_v61  ;;  %2371 = vpow2.f32 %v950_v34 }
 0x240   : > { %v891_v37 = vpop.xlane.xlu1 %890  ;;  %v3023_v39 = vmax.f32 %v3008_v26, %v893_v31  ;;  %v940_v50 = vmul.f32 1.442695, %v918_v40  ;;  %v952_v11 = vmul.f32 1.442695, %v924_v0 }
 0x241   : > { %v909_v42 = vmax.f32 %v861_v29, %v891_v37  ;;  %v3057_v58 = vpop.eup %2363  ;;  %v948_v59 = vmul.f32 1.442695, %v922_v54 }
 0x242   : > { %v926_v28 = vsub.f32 %v3008_v26, %v3023_v39  ;;  %1512 = vst.msk [vmem:[#allocation2 + $0x70] sm:$0xff] %vm1168_vm1, %v3023_v39  ;;  %1002 = vperm.xlu1 %2332, %v2966_v53   ;;  %2373 = vpow2.f32 %v940_v50 }
 0x243   : > { %1511 = vst.msk [vmem:[#allocation2 + $0x68] sm:$0xff] %vm1168_vm1, %v909_v42  ;;  %1027 = vperm.xlu0 %2331, %v909_v42   ;;  %v925_v45 = vsub.f32 %v861_v29, %v909_v42  ;;  %2375 = vpow2.f32 %v946_v41 }
 0x244   : > { %2377 = vpow2.f32 %v948_v59 }
 0x245   : > { %v954_v55 = vmul.f32 1.442695, %v925_v45 }
 0x246   : > { %1012 = vperm.xlu1 %2332, %v2984_v61   ;;  %v3063_v60 = vpop.eup %2365 }
 0x247   : > { %1037 = vperm.xlu0 %2331, %v3006_v25   ;;  %v3065_v61 = vpop.eup %2367  ;;  %2379 = vpow2.f32 %v954_v55 }
 0x248   : > { %v3071_v48 = vpop.eup %2369  ;;  %2381 = vpow2.f32 %v944_v62 }
 0x249   : > { %v3073_v53 = vpop.eup %2371  ;;  %2383 = vpow2.f32 %v952_v11 }
 0x24a   : > { %1022 = vperm.xlu1 %2332, %v3003_v23  }
 0x24b   : > { %1203 = vperm.xlu0 %2331, %v3041_v24  }
 0x24c   : > { %v3077_v19 = vpop.eup %2373 }
 0x24d   : > { %v3079_v20 = vpop.eup %2375 }
 0x24e   : > { %1032 = vperm.xlu1 %2332, %v3023_v39   ;;  %v3083_v63 = vpop.eup %2377 }
 0x24f   : > { %1218 = vperm.xlu0 %2331, %v3049_v52  }
 0x251   : > { %v3085_v22 = vpop.eup %2379 }
 0x252   : > { %1208 = vperm.xlu1 %2332, %v3055_v56   ;;  %v3089_v23 = vpop.eup %2381 }
 0x253   : > { %1228 = vperm.xlu0 %2331, %v3057_v58   ;;  %v3092_v29 = vpop.eup %2383 }
 0x256   : > { %1213 = vperm.xlu1 %2332, %v3063_v60  }
 0x257   : > { %1238 = vperm.xlu0 %2331, %v3065_v61  }
 0x25a   : > { %1223 = vperm.xlu1 %2332, %v3071_v48  }
 0x25b   : > { %1258 = vperm.xlu0 %2331, %v3073_v53  }
 0x25e   : > { %1233 = vperm.xlu1 %2332, %v3077_v19  }
 0x25f   : > { %1248 = vperm.xlu0 %2331, %v3079_v20  }
 0x262   : > { %1253 = vperm.xlu1 %2332, %v3083_v63  }
 0x263   : > { %1268 = vperm.xlu0 %2331, %v3085_v22  }
 0x266   : > { %1243 = vperm.xlu1 %2332, %v3089_v23  }
 0x26a   : > { %1263 = vperm.xlu1 %2332, %v3092_v29  }
 0x2a4   : > { %v973_v30 = vpop.permute.xlu1 %972 }
 0x2a5   : > { %v1042_v31 = vsub.f32 %v2846_v2, %v973_v30  ;;  %v963_v32 = vpop.permute.xlu0 %962 }
 0x2a6   : > { %v1040_v35 = vsub.f32 %v2849_v3, %v963_v32 }
 0x2a7   : > { %v1060_v37 = vmul.f32 1.442695, %v1042_v31 }
 0x2a8   : > { %v1056_v42 = vmul.f32 1.442695, %v1040_v35  ;;  %v978_v33 = vpop.permute.xlu1 %977 }
 0x2a9   : > { %2385 = vpow2.f32 %v1060_v37  ;;  %v1043_v44 = vsub.f32 %v2852_v4, %v978_v33 }
 0x2aa   : > { %2387 = vpow2.f32 %v1056_v42 }
 0x2ab   : > { %v1062_v43 = vmul.f32 1.442695, %v1043_v44 }
 0x2ac   : > { %v968_v46 = vpop.permute.xlu1 %967 }
 0x2ad   : > { %2389 = vpow2.f32 %v1062_v43  ;;  %v1041_v47 = vsub.f32 %v2854_v5, %v968_v46 }
 0x2af   : > { %v1058_v49 = vmul.f32 1.442695, %v1041_v47 }
 0x2b1   : > { %2391 = vpow2.f32 %v1058_v49  ;;  %v993_v51 = vpop.permute.xlu1 %992 }
 0x2b2   : > { %v1046_v2 = vsub.f32 %v2858_v6, %v993_v51 }
 0x2b3   : > { %v2386_v21 = vpop.eup %2385 }
 0x2b4   : > { %v2388_v36 = vpop.eup %2387  ;;  %v1068_v3 = vmul.f32 1.442695, %v1046_v2  ;;  %1124 = vadd.xlane.f32.xlu0 %v2386_v21 }
 0x2b5   : > { %1120 = vadd.xlane.f32.xlu1 %v2388_v36  ;;  %v983_v40 = vpop.permute.xlu1 %982 }
 0x2b6   : > { %2393 = vpow2.f32 %v1068_v3  ;;  %v1044_v4 = vsub.f32 %v2860_v7, %v983_v40 }
 0x2b7   : > { %v2390_v34 = vpop.eup %2389 }
 0x2b8   : > { %v1064_v38 = vmul.f32 1.442695, %v1044_v4  ;;  %v1298_v50 = vpack.c.bf16 %v2390_v34, %v2386_v21 }
 0x2b9   : > { %1126 = vadd.xlane.f32.xlu1 %v2390_v34  ;;  %v988_v54 = vpop.permute.xlu1 %987 }
 0x2ba   : > { %2395 = vpow2.f32 %v1064_v38  ;;  %v1045_v5 = vsub.f32 %v2866_v9, %v988_v54  ;;  %v1008_v41 = vpop.permute.xlu0 %1007 }
 0x2bb   : > { %v2392_v45 = vpop.eup %2391  ;;  %v1049_v59 = vsub.f32 %v2878_v14, %v1008_v41 }
 0x2bc   : > { %v1066_v6 = vmul.f32 1.442695, %v1045_v5  ;;  %1122 = vadd.xlane.f32.xlu0 %v2392_v45  ;;  %v1297_v57 = vpack.c.bf16 %v2392_v45, %v2388_v36 }
 0x2bd   : > { %v998_v55 = vpop.permute.xlu1 %997  ;;  %v1074_v30 = vmul.f32 1.442695, %v1049_v59  ;;  %v956_v59 = vmul.f32 1.442695, %v926_v28 }
 0x2be   : > { %2397 = vpow2.f32 %v1066_v6  ;;  %v1047_v62 = vsub.f32 %v2863_v8, %v998_v55  ;;  %v1018_v7 = vpop.permute.xlu0 %1017  ;;  %2207 = vmatprep.mubr.bf16.mxu1 %v1297_v57  ;;  %v958_v55 = vmul.f32 1.442695, %v927_v27 }
 0x2bf   : > { %2208 = vmatmul.mubr.bf16.vlgmr.msra.gmra.mrb[0].mxu1 %v1298_v50  ;;  %v1051_v31 = vsub.f32 %v2874_v13, %v1018_v7 }
 0x2c0   : > { %v2394_v0 = vpop.eup %2393  ;;  %v1070_v11 = vmul.f32 1.442695, %v1047_v62 }
 0x2c1   : > { %1132 = vadd.xlane.f32.xlu0 %v2394_v0  ;;  %v1003_v9 = vpop.permute.xlu1 %1002  ;;  %v1078_v42 = vmul.f32 1.442695, %v1051_v31 }
 0x2c2   : > { %2399 = vpow2.f32 %v1070_v11  ;;  %v1048_v32 = vsub.f32 %v2872_v12, %v1003_v9  ;;  %v1028_v35 = vpop.permute.xlu0 %1027 }
 0x2c3   : > { %2401 = vpow2.f32 %v1074_v30  ;;  %v1053_v8 = vsub.f32 %v2890_v18, %v1028_v35 }
 0x2c4   : > { %v2396_v37 = vpop.eup %2395  ;;  %v1072_v14 = vmul.f32 1.442695, %v1048_v32 }
 0x2c5   : > { %1128 = vadd.xlane.f32.xlu0 %v2396_v37  ;;  %v1013_v33 = vpop.permute.xlu1 %1012  ;;  %v1082_v47 = vmul.f32 1.442695, %v1053_v8 }
 0x2c6   : > { %2403 = vpow2.f32 %v1072_v14  ;;  %v1050_v44 = vsub.f32 %v2870_v10, %v1013_v33  ;;  %v1038_v43 = vpop.permute.xlu0 %1037 }
 0x2c7   : > { %2405 = vpow2.f32 %v1078_v42  ;;  %v1055_v49 = vsub.f32 %v2886_v17, %v1038_v43  ;;  %v1088_v42 = vld [vmem:[#allocation3] sm:$0xff] }
 0x2c8   : > { %v2398_v46 = vpop.eup %2397  ;;  %v1076_v13 = vmul.f32 1.442695, %v1050_v44  ;;  %v1104_v44 = vmul.f32 %v3041_v24, %v1088_v42  ;;  %v1094_v24 = vld [vmem:[#allocation3 + $0x30] sm:$0xff] }
 0x2c9   : > { %v1023_v12 = vpop.permute.xlu1 %1022  ;;  %v1299_v51 = vpack.c.bf16 %v2398_v46, %v2396_v37  ;;  %v1086_v36 = vmul.f32 1.442695, %v1055_v49  ;;  %v1090_v37 = vld [vmem:[#allocation3 + $0x10] sm:$0xff] }
 0x2ca   : > { %2407 = vpow2.f32 %v1076_v13  ;;  %v1052_v2 = vsub.f32 %v2884_v16, %v1023_v12  ;;  %v1106_v8 = vmul.f32 %v3063_v60, %v1090_v37  ;;  %v1091_v13 = vld [vmem:[#allocation3 + $0x18] sm:$0xff]  ;;  %v1089_v12 = vld [vmem:[#allocation3 + $0x8] sm:$0xff] }
 0x2cb   : > { %2211 = vmatprep.mubr.bf16.mxu1 %v1299_v51  ;;  %2409 = vpow2.f32 %v1082_v47  ;;  %v1107_v49 = vmul.f32 %v3049_v52, %v1091_v13 }
 0x2cc   : > { %v2400_v21 = vpop.eup %2399  ;;  %v1080_v18 = vmul.f32 1.442695, %v1052_v2 }
 0x2cd   : > { %1134 = vadd.xlane.f32.xlu1 %v2400_v21  ;;  %v1033_v3 = vpop.permute.xlu1 %1032  ;;  %v1300_v10 = vpack.c.bf16 %v2400_v21, %v2394_v0  ;;  %v2402_v4 = vpop.eup %2401  ;;  %v1105_v21 = vmul.f32 %v3055_v56, %v1089_v12  ;;  %v1095_v56 = vld [vmem:[#allocation3 + $0x38] sm:$0xff]  ;;  %v1100_v12 = vld [vmem:[#allocation3 + $0x60] sm:$0xff] }
 0x2ce   : > { %2411 = vpow2.f32 %v1080_v18  ;;  %v1054_v40 = vsub.f32 %v2882_v15, %v1033_v3  ;;  %v3123_v0 = vpop.permute.xlu0 %1203 }
 0x2cf   : > { %2212 = vmatmul.mubr.bf16.gmra.mrb[4].mxu1 %v1300_v10  ;;  %2413 = vpow2.f32 %v1086_v36  ;;  %v1110_v36 = vmul.f32 %v3077_v19, %v1094_v24  ;;  %v1092_v10 = vld [vmem:[#allocation3 + $0x20] sm:$0xff] }
 0x2d0   : > { %v2404_v34 = vpop.eup %2403  ;;  %v1084_v17 = vmul.f32 1.442695, %v1054_v40  ;;  %v1108_v52 = vmul.f32 %v3071_v48, %v1092_v10  ;;  %v1186_v10 = vld [vmem:[#allocation4 + $0x8] sm:$0xff] }
 0x2d1   : > { %1130 = vadd.xlane.f32.xlu1 %v2398_v46  ;;  %v1301_v38 = vpack.c.bf16 %v2402_v4, %v2404_v34  ;;  %v2406_v16 = vpop.eup %2405  ;;  %v3125_v11 = vpop.permute.xlu1 %1208 }
 0x2d2   : > { %2415 = vpow2.f32 %v1084_v17  ;;  %v3127_v26 = vpop.permute.xlu0 %1218  ;;  %v1111_v17 = vmul.f32 %v3065_v61, %v1095_v56  ;;  %v1096_v61 = vld [vmem:[#allocation3 + $0x40] sm:$0xff]  ;;  %v1282_v56 = vmul.f32 %v3125_v11, %v1186_v10 }
 0x2d3   : > { %2215 = vmatprep.mubr.bf16.mxu1 %v1301_v38  ;;  %2417 = vpow2.f32 %v956_v59  ;;  %v1097_v59 = vld [vmem:[#allocation3 + $0x48] sm:$0xff] }
 0x2d4   : > { %v2408_v50 = vpop.eup %2407  ;;  %2419 = vpow2.f32 %v958_v55  ;;  %v1113_v42 = vmul.f32 %v3079_v20, %v1097_v59 }
 0x2d5   : > { %1142 = vadd.xlane.f32.xlu1 %v2406_v16  ;;  %1140 = vadd.xlane.f32.xlu0 %v2408_v50  ;;  %v1302_v54 = vpack.c.bf16 %v2406_v16, %v2408_v50  ;;  %v2410_v5 = vpop.eup %2409  ;;  %v3129_v39 = vpop.permute.xlu1 %1213  ;;  %v1093_v16 = vld [vmem:[#allocation3 + $0x28] sm:$0xff] }
 0x2d6   : > { %v3131_v28 = vpop.permute.xlu0 %1228  ;;  %v1109_v19 = vmul.f32 %v3057_v58, %v1093_v16  ;;  %v1112_v58 = vmul.f32 %v3089_v23, %v1096_v61  ;;  %v1101_v23 = vld [vmem:[#allocation3 + $0x68] sm:$0xff] }
 0x2d7   : > { %2216 = vmatmul.mubr.bf16.gmra.mrb[8].mxu1 %v1302_v54 }
 0x2d8   : > { %v2412_v41 = vpop.eup %2411 }
 0x2d9   : > { %1138 = vadd.xlane.f32.xlu1 %v2402_v4  ;;  %1136 = vadd.xlane.f32.xlu0 %v2404_v34  ;;  %v1303_v15 = vpack.c.bf16 %v2410_v5, %v2412_v41  ;;  %v2414_v45 = vpop.eup %2413  ;;  %v3133_v1 = vpop.permute.xlu1 %1223 }
 0x2da   : > { %v3135_v25 = vpop.permute.xlu0 %1238 }
 0x2db   : > { %2219 = vmatprep.mubr.bf16.mxu1 %v1303_v15 }
 0x2dc   : > { %v2416_v6 = vpop.eup %2415 }
 0x2dd   : > { %1150 = vadd.xlane.f32.xlu1 %v2414_v45  ;;  %1148 = vadd.xlane.f32.xlu0 %v2416_v6  ;;  %v1304_v57 = vpack.c.bf16 %v2414_v45, %v2416_v6  ;;  %v3117_v62 = vpop.eup %2417  ;;  %v3137_v27 = vpop.permute.xlu1 %1233 }
 0x2de   : > { %v3120_v7 = vpop.eup %2419  ;;  %v3139_v30 = vpop.permute.xlu0 %1258 }
 0x2df   : > { %2220 = vmatmul.mubr.bf16.gmra.mrb[12].mxu1 %v1304_v57 }
 0x2e1   : > { %1146 = vadd.xlane.f32.xlu1 %v2410_v5  ;;  %1144 = vadd.xlane.f32.xlu0 %v2412_v41  ;;  %v3141_v31 = vpop.permute.xlu1 %1253  ;;  %v1098_v5 = vld [vmem:[#allocation3 + $0x50] sm:$0xff]  ;;  %v1099_v41 = vld [vmem:[#allocation3 + $0x58] sm:$0xff] }
 0x2e2   : > { %v3143_v9 = vpop.permute.xlu0 %1248  ;;  %v1114_v48 = vmul.f32 %v3083_v63, %v1098_v5  ;;  %v1115_v45 = vmul.f32 %v3073_v53, %v1099_v41  ;;  %v1103_v63 = vld [vmem:[#allocation3 + $0x78] sm:$0xff] }
 0x2e3   : > { %v1119_v13 = vmul.f32 %v3120_v7, %v1103_v63  ;;  %v1192_v5 = vld [vmem:[#allocation4 + $0x38] sm:$0xff] }
 0x2e4   : > { %v1288_v11 = vmul.f32 %v3135_v25, %v1192_v5 }
 0x2e5   : > { %v3145_v32 = vpop.permute.xlu1 %1243 }
 0x2e6   : > { %v3147_v35 = vpop.permute.xlu0 %1268 }
 0x2e9   : > { %v3149_v14 = vpop.permute.xlu1 %1263 }
 0x2f2   : > { %1273 = vperm.xlu1 %2332, %v3117_v62  }
 0x2f7   : > { %1278 = vperm.xlu0 %2331, %v3120_v7   ;;  %v1187_v7 = vld [vmem:[#allocation4 + $0x10] sm:$0xff] }
 0x341   : > { %v1125_v33 = vpop.xlane.xlu0 %1124 }
 0x342   : > { %v1154_v43 = vadd.f32 %v1125_v33, %v1106_v8  ;;  %v1121_v46 = vpop.xlane.xlu1 %1120 }
 0x343   : > { %v1152_v47 = vadd.f32 %v1121_v46, %v1104_v44  ;;  %v1102_v44 = vld [vmem:[#allocation3 + $0x70] sm:$0xff] }
 0x344   : > { %1171 = vst.msk [vmem:[#allocation3 + $0x10] sm:$0xff] %vm1168_vm1, %v1154_v43  ;;  %v1118_v46 = vmul.f32 %v3117_v62, %v1102_v44 }
 0x345   : > { %1169 = vst.msk [vmem:[#allocation3] sm:$0xff] %vm1168_vm1, %v1152_v47 }
 0x346   : > { %v1127_v51 = vpop.xlane.xlu1 %1126 }
 0x347   : > { %v1155_v2 = vadd.f32 %v1127_v51, %v1107_v49 }
 0x349   : > { %1172 = vst.msk [vmem:[#allocation3 + $0x18] sm:$0xff] %vm1168_vm1, %v1155_v2  ;;  %v1123_v60 = vpop.xlane.xlu0 %1122  ;;  %v1116_v2 = vmul.f32 %v3092_v29, %v1100_v12 }
 0x34a   : > { %v1153_v18 = vadd.f32 %v1123_v60, %v1105_v21  ;;  %v1117_v21 = vmul.f32 %v3085_v22, %v1101_v23 }
 0x34c   : > { %1170 = vst.msk [vmem:[#allocation3 + $0x8] sm:$0xff] %vm1168_vm1, %v1153_v18 }
 0x34e   : > { %v1133_v3 = vpop.xlane.xlu0 %1132 }
 0x34f   : > { %v1158_v40 = vadd.f32 %v1133_v3, %v1110_v36  ;;  %v1185_v36 = vld [vmem:[#allocation4] sm:$0xff]  ;;  %v1188_v3 = vld [vmem:[#allocation4 + $0x18] sm:$0xff] }
 0x350   : > { %v1284_v29 = vmul.f32 %v3127_v26, %v1188_v3 }
 0x351   : > { %1175 = vst.msk [vmem:[#allocation3 + $0x30] sm:$0xff] %vm1168_vm1, %v1158_v40  ;;  %v1283_v40 = vmul.f32 %v3129_v39, %v1187_v7  ;;  %v1189_v39 = vld [vmem:[#allocation4 + $0x20] sm:$0xff] }
 0x352   : > { %v1129_v4 = vpop.xlane.xlu0 %1128  ;;  %v1285_v26 = vmul.f32 %v3133_v1, %v1189_v39  ;;  %v1194_v1 = vld [vmem:[#allocation4 + $0x48] sm:$0xff] }
 0x353   : > { %v1156_v34 = vadd.f32 %v1129_v4, %v1108_v52  ;;  %v1281_v52 = vmul.f32 %v3123_v0, %v1185_v36  ;;  %v1190_v0 = vld [vmem:[#allocation4 + $0x28] sm:$0xff] }
 0x355   : > { %1173 = vst.msk [vmem:[#allocation3 + $0x20] sm:$0xff] %vm1168_vm1, %v1156_v34 }
 0x35a   : > { %v1135_v38 = vpop.xlane.xlu1 %1134 }
 0x35b   : > { %v1159_v50 = vadd.f32 %v1135_v38, %v1111_v17 }
 0x35d   : > { %1176 = vst.msk [vmem:[#allocation3 + $0x38] sm:$0xff] %vm1168_vm1, %v1159_v50 }
 0x35e   : > { %v1131_v54 = vpop.xlane.xlu1 %1130 }
 0x35f   : > { %v1157_v15 = vadd.f32 %v1131_v54, %v1109_v19  ;;  %v1191_v54 = vld [vmem:[#allocation4 + $0x30] sm:$0xff] }
 0x360   : > { %v1287_v41 = vmul.f32 %v3137_v27, %v1191_v54  ;;  %v1196_v27 = vld [vmem:[#allocation4 + $0x58] sm:$0xff] }
 0x361   : > { %1174 = vst.msk [vmem:[#allocation3 + $0x28] sm:$0xff] %vm1168_vm1, %v1157_v15 }
 0x362   : > { %v1141_v6 = vpop.xlane.xlu0 %1140  ;;  %v1143_v57 = vpop.xlane.xlu1 %1142 }
 0x363   : > { %v1162_v55 = vadd.f32 %v1141_v6, %v1114_v48  ;;  %v1163_v37 = vadd.f32 %v1143_v57, %v1115_v45  ;;  %v1286_v6 = vmul.f32 %v3131_v28, %v1190_v0  ;;  %v1292_v28 = vmul.f32 %v3139_v30, %v1196_v27 }
 0x365   : > { %1179 = vst.msk [vmem:[#allocation3 + $0x50] sm:$0xff] %vm1168_vm1, %v1162_v55  ;;  %1180 = vst.msk [vmem:[#allocation3 + $0x58] sm:$0xff] %vm1168_vm1, %v1163_v37  ;;  %v1195_v37 = vld [vmem:[#allocation4 + $0x50] sm:$0xff] }
 0x366   : > { %v1137_v8 = vpop.xlane.xlu0 %1136  ;;  %v1139_v33 = vpop.xlane.xlu1 %1138 }
 0x367   : > { %v1160_v43 = vadd.f32 %v1137_v8, %v1112_v58  ;;  %v1161_v53 = vadd.f32 %v1139_v33, %v1113_v42  ;;  %v1193_v42 = vld [vmem:[#allocation4 + $0x40] sm:$0xff]  ;;  %v1291_v8 = vmul.f32 %v3141_v31, %v1195_v37  ;;  %v1200_v31 = vld [vmem:[#allocation4 + $0x78] sm:$0xff] }
 0x368   : > { %v1289_v25 = vmul.f32 %v3145_v32, %v1193_v42 }
 0x369   : > { %1177 = vst.msk [vmem:[#allocation3 + $0x40] sm:$0xff] %vm1168_vm1, %v1160_v43  ;;  %1178 = vst.msk [vmem:[#allocation3 + $0x48] sm:$0xff] %vm1168_vm1, %v1161_v53  ;;  %v1290_v43 = vmul.f32 %v3143_v9, %v1194_v1 }
 0x36a   : > { %v1149_v47 = vpop.xlane.xlu0 %1148  ;;  %v1151_v49 = vpop.xlane.xlu1 %1150 }
 0x36b   : > { %v1166_v51 = vadd.f32 %v1149_v47, %v1118_v46  ;;  %v1167_v20 = vadd.f32 %v1151_v49, %v1119_v13  ;;  %v1199_v49 = vld [vmem:[#allocation4 + $0x70] sm:$0xff] }
 0x36c   : > { %v1529_v39 = vld [vmem:[#allocation3 + $0x58] sm:$0xff] (!%p2036_p4)  ;;  %v1528_v0 = vld [vmem:[#allocation3 + $0x50] sm:$0xff] (!%p2036_p4) }
 0x36d   : > { %1183 = vst.msk [vmem:[#allocation3 + $0x70] sm:$0xff] %vm1168_vm1, %v1166_v51  ;;  %1184 = vst.msk [vmem:[#allocation3 + $0x78] sm:$0xff] %vm1168_vm1, %v1167_v20  ;;  %v1197_v51 = vld [vmem:[#allocation4 + $0x60] sm:$0xff]  ;;  %v1198_v20 = vld [vmem:[#allocation4 + $0x68] sm:$0xff] }
 0x36e   : > { %v1145_v60 = vpop.xlane.xlu0 %1144  ;;  %v1147_v18 = vpop.xlane.xlu1 %1146 }
 0x36f   : > { %v1164_v24 = vadd.f32 %v1145_v60, %v1116_v2  ;;  %v1165_v62 = vadd.f32 %v1147_v18, %v1117_v21  ;;  %v1293_v2 = vmul.f32 %v3149_v14, %v1197_v51  ;;  %v1518_v14 = vld [vmem:[#allocation3] sm:$0xff] (!%p2036_p4) }
 0x371   : > { %1181 = vst.msk [vmem:[#allocation3 + $0x60] sm:$0xff] %vm1168_vm1, %v1164_v24  ;;  %1182 = vst.msk [vmem:[#allocation3 + $0x68] sm:$0xff] %vm1168_vm1, %v1165_v62  ;;  %v1294_v24 = vmul.f32 %v3147_v35, %v1198_v20  ;;  %v1519_v35 = vld [vmem:[#allocation3 + $0x8] sm:$0xff] (!%p2036_p4) }
 0x372   : > { %v1274_v12 = vpop.permute.xlu1 %1273 }
 0x373   : > { %v1295_v30 = vmul.f32 %v1274_v12, %v1199_v49 }
 0x376   : > { %v1279_v32 = vpop.permute.xlu0 %1278 }
 0x377   : > { %v1296_v9 = vmul.f32 %v1279_v32, %v1200_v31 }
 0x392   : > { %v2209_v4 = vpop.f32.mrb[0].mxu1 }
 0x393   : > { %v1468_v22 = vadd.f32 %v2209_v4, %v1283_v40  ;;  %v1403_v34 = vpop.f32.mrb[1].mxu1  ;;  %v1520_v40 = vld [vmem:[#allocation3 + $0x10] sm:$0xff] (!%p2036_p4)  ;;  %v2562_v4 = vmov (!%p2036_p4), 0  }
 0x394   : > { %v1466_v17 = vadd.f32 %v1403_v34, %v1281_v52  ;;  %v2210_v38 = vpop.f32.mrb[2].mxu1  ;;  %v1521_v52 = vld [vmem:[#allocation3 + $0x18] sm:$0xff] (!%p2036_p4)  ;;  %2422 = vset.pattern.permute.xlu1 (!%p2036_p4), %v2562_v4  ;;  %2421 = vset.pattern.permute.xlu0 (!%p2036_p4), %v2562_v4  ;;  %2423 = vrcp.f32 (!%p2036_p4), %v1520_v40 }
 0x395   : > { %1484 = vst [vmem:[#allocation4 + $0x10] sm:$0xff] %v1468_v22  ;;  %v1469_v16 = vadd.f32 %v2210_v38, %v1284_v29  ;;  %v1406_v50 = vpop.f32.mrb[3].mxu1  ;;  %2425 = vrcp.f32 (!%p2036_p4), %v1518_v14  ;;  %v1523_v29 = vld [vmem:[#allocation3 + $0x28] sm:$0xff] (!%p2036_p4)  ;;  %v1522_v22 = vld [vmem:[#allocation3 + $0x20] sm:$0xff] (!%p2036_p4)  ;;  %v1525_v34 = vld [vmem:[#allocation3 + $0x38] sm:$0xff] (!%p2036_p4) }
 0x396   : > { %1482 = vst [vmem:[#allocation4] sm:$0xff] %v1466_v17  ;;  %v1467_v19 = vadd.f32 %v1406_v50, %v1282_v56  ;;  %2427 = vrcp.f32 (!%p2036_p4), %v1521_v52  ;;  %v1524_v56 = vld [vmem:[#allocation3 + $0x30] sm:$0xff] (!%p2036_p4) }
 0x397   : > { %1485 = vst [vmem:[#allocation4 + $0x18] sm:$0xff] %v1469_v16  ;;  %2429 = vrcp.f32 (!%p2036_p4), %v1519_v35  ;;  %v1527_v16 = vld [vmem:[#allocation3 + $0x48] sm:$0xff] (!%p2036_p4) }
 0x398   : > { %1483 = vst [vmem:[#allocation4 + $0x8] sm:$0xff] %v1467_v19  ;;  %2431 = vrcp.f32 (!%p2036_p4), %v1523_v29  ;;  %v1526_v19 = vld [vmem:[#allocation3 + $0x40] sm:$0xff] (!%p2036_p4) }
 0x399   : > { %2433 = vrcp.f32 (!%p2036_p4), %v1522_v22 }
 0x39a   : > { %2435 = vrcp.f32 (!%p2036_p4), %v1525_v34 }
 0x39b   : > { %2437 = vrcp.f32 (!%p2036_p4), %v1524_v56 }
 0x39c   : > { %2439 = vrcp.f32 (!%p2036_p4), %v1527_v16 }
 0x39d   : > { %2441 = vrcp.f32 (!%p2036_p4), %v1526_v19 }
 0x39e   : > { %v2424_v17 = vpop.eup (!%p2036_p4), %2423  ;;  %2443 = vrcp.f32 (!%p2036_p4), %v1529_v39 }
 0x39f   : > { %v2426_v38 = vpop.eup (!%p2036_p4), %2425  ;;  %1578 = vperm.xlu1 (!%p2036_p4), %2422, %v2424_v17   ;;  %2445 = vrcp.f32 (!%p2036_p4), %v1528_v0 }
 0x3a0   : > { %v2428_v50 = vpop.eup (!%p2036_p4), %2427  ;;  %1568 = vperm.xlu0 (!%p2036_p4), %2421, %v2426_v38  }
 0x3a1   : > { %v2430_v54 = vpop.eup (!%p2036_p4), %2429 }
 0x3a2   : > { %v2213_v15 = vpop.f32.mrb[4].mxu1  ;;  %v2432_v5 = vpop.eup (!%p2036_p4), %2431 }
 0x3a3   : > { %v1472_v48 = vadd.f32 %v2213_v15, %v1287_v41  ;;  %v1419_v45 = vpop.f32.mrb[5].mxu1  ;;  %1583 = vperm.xlu1 (!%p2036_p4), %2422, %v2428_v50   ;;  %v2434_v41 = vpop.eup (!%p2036_p4), %2433 }
 0x3a4   : > { %v1470_v57 = vadd.f32 %v1419_v45, %v1285_v26  ;;  %v2214_v61 = vpop.f32.mrb[6].mxu1  ;;  %1573 = vperm.xlu0 (!%p2036_p4), %2421, %v2430_v54   ;;  %v1531_v26 = vld [vmem:[#allocation3 + $0x68] sm:$0xff] (!%p2036_p4)  ;;  %v2436_v15 = vpop.eup (!%p2036_p4), %2435  ;;  %v1533_v45 = vld [vmem:[#allocation3 + $0x78] sm:$0xff] (!%p2036_p4) }
 0x3a5   : > { %1488 = vst [vmem:[#allocation4 + $0x30] sm:$0xff] %v1472_v48  ;;  %v1473_v59 = vadd.f32 %v2214_v61, %v1288_v11  ;;  %v1422_v55 = vpop.f32.mrb[7].mxu1  ;;  %v1530_v11 = vld [vmem:[#allocation3 + $0x60] sm:$0xff] (!%p2036_p4)  ;;  %v2438_v48 = vpop.eup (!%p2036_p4), %2437  ;;  %2447 = vrcp.f32 (!%p2036_p4), %v1531_v26 }
 0x3a6   : > { %1486 = vst [vmem:[#allocation4 + $0x20] sm:$0xff] %v1470_v57  ;;  %v1471_v58 = vadd.f32 %v1422_v55, %v1286_v6  ;;  %2449 = vrcp.f32 (!%p2036_p4), %v1530_v11  ;;  %v2440_v6 = vpop.eup (!%p2036_p4), %2439  ;;  %v1532_v57 = vld [vmem:[#allocation3 + $0x70] sm:$0xff] (!%p2036_p4) }
 0x3a7   : > { %1489 = vst [vmem:[#allocation4 + $0x38] sm:$0xff] %v1473_v59  ;;  %1593 = vperm.xlu1 (!%p2036_p4), %2422, %v2432_v5   ;;  %v2442_v61 = vpop.eup (!%p2036_p4), %2441  ;;  %2451 = vrcp.f32 (!%p2036_p4), %v1533_v45 }
 0x3a8   : > { %1487 = vst [vmem:[#allocation4 + $0x28] sm:$0xff] %v1471_v58  ;;  %1588 = vperm.xlu0 (!%p2036_p4), %2421, %v2434_v41   ;;  %2453 = vrcp.f32 (!%p2036_p4), %v1532_v57  ;;  %v2444_v59 = vpop.eup (!%p2036_p4), %2443 }
 0x3a9   : > { %v2446_v55 = vpop.eup (!%p2036_p4), %2445 }
 0x3aa   : > { %v2217_v33 = vpop.f32.mrb[8].mxu1 }
 0x3ab   : > { %v1476_v44 = vadd.f32 %v2217_v33, %v1291_v8  ;;  %v1435_v63 = vpop.f32.mrb[9].mxu1  ;;  %1603 = vperm.xlu1 (!%p2036_p4), %2422, %v2436_v15   ;;  %v1553_v33 = vld [vmem:[#allocation4 + $0x18] sm:$0xff] (!%p2036_p4) }
 0x3ac   : > { %v1474_v53 = vadd.f32 %v1435_v63, %v1289_v25  ;;  %v2218_v46 = vpop.f32.mrb[10].mxu1  ;;  %1598 = vperm.xlu0 (!%p2036_p4), %2421, %v2438_v48   ;;  %v1552_v25 = vld [vmem:[#allocation4 + $0x10] sm:$0xff] (!%p2036_p4) }
 0x3ad   : > { %1492 = vst [vmem:[#allocation4 + $0x50] sm:$0xff] %v1476_v44  ;;  %v1477_v13 = vadd.f32 %v2218_v46, %v1292_v28  ;;  %v1438_v47 = vpop.f32.mrb[11].mxu1  ;;  %v1550_v28 = vld [vmem:[#allocation4] sm:$0xff] (!%p2036_p4)  ;;  %v1551_v44 = vld [vmem:[#allocation4 + $0x8] sm:$0xff] (!%p2036_p4) }
 0x3ae   : > { %1490 = vst [vmem:[#allocation4 + $0x40] sm:$0xff] %v1474_v53  ;;  %v1475_v23 = vadd.f32 %v1438_v47, %v1290_v43 }
 0x3af   : > { %1493 = vst [vmem:[#allocation4 + $0x58] sm:$0xff] %v1477_v13  ;;  %1613 = vperm.xlu1 (!%p2036_p4), %2422, %v2440_v6   ;;  %v2448_v37 = vpop.eup (!%p2036_p4), %2447  ;;  %v1555_v49 = vld [vmem:[#allocation4 + $0x28] sm:$0xff] (!%p2036_p4) }
 0x3b0   : > { %1491 = vst [vmem:[#allocation4 + $0x48] sm:$0xff] %v1475_v23  ;;  %1608 = vperm.xlu0 (!%p2036_p4), %2421, %v2442_v61   ;;  %v2450_v58 = vpop.eup (!%p2036_p4), %2449  ;;  %v1554_v23 = vld [vmem:[#allocation4 + $0x20] sm:$0xff] (!%p2036_p4) }
 0x3b1   : > { %v2452_v42 = vpop.eup (!%p2036_p4), %2451 }
 0x3b2   : > { %v2221_v21 = vpop.f32.mrb[12].mxu1  ;;  %1517 = sbr.rel (%p2036_p4) target bundleno = 1089 (0x441), region = 163  ;;  %v2454_v27 = vpop.eup (!%p2036_p4), %2453 }
 0x3b3   : > { %v1480_v60 = vadd.f32 %v2221_v21, %v1295_v30  ;;  %v1451_v18 = vpop.f32.mrb[13].mxu1  ;;  %1623 = vperm.xlu1 (!%p2036_p4), %2422, %v2444_v59   ;;  %v1556_v21 = vld [vmem:[#allocation4 + $0x30] sm:$0xff] (!%p2036_p4) }
 0x3b4   : > { %v1478_v62 = vadd.f32 %v1451_v18, %v1293_v2  ;;  %v2222_v7 = vpop.f32.mrb[14].mxu1  ;;  %1618 = vperm.xlu0 (!%p2036_p4), %2421, %v2446_v55   ;;  %v1557_v2 = vld [vmem:[#allocation4 + $0x38] sm:$0xff] (!%p2036_p4)  ;;  %v1560_v35 = vld [vmem:[#allocation4 + $0x50] sm:$0xff] (!%p2036_p4) }
 0x3b5   : > { %1496 = vst [vmem:[#allocation4 + $0x70] sm:$0xff] %v1480_v60  ;;  %v1481_v36 = vadd.f32 %v2222_v7, %v1296_v9  ;;  %v1454_v3 = vpop.f32.mrb[15].mxu1 }
 0x3b6   : > { %1494 = vst [vmem:[#allocation4 + $0x60] sm:$0xff] %v1478_v62  ;;  %v1479_v10 = vadd.f32 %v1454_v3, %v1294_v24  ;;  %v1561_v4 = vld [vmem:[#allocation4 + $0x58] sm:$0xff] (!%p2036_p4) }
 0x3b7   : > { %1497 = vst [vmem:[#allocation4 + $0x78] sm:$0xff] %v1481_v36  ;;  %1633 = vperm.xlu1 (!%p2036_p4), %2422, %v2448_v37   ;;  %v1559_v7 = vld [vmem:[#allocation4 + $0x48] sm:$0xff] (!%p2036_p4)  ;;  %v1558_v36 = vld [vmem:[#allocation4 + $0x40] sm:$0xff] (!%p2036_p4) }
 0x3b8   : > { %1495 = vst [vmem:[#allocation4 + $0x68] sm:$0xff] %v1479_v10  ;;  %1628 = vperm.xlu0 (!%p2036_p4), %2421, %v2450_v58  }
 0x3bb   : > { %1643 = vperm.xlu1 %2422, %v2452_v42  }
 0x3bc   : > { %1638 = vperm.xlu0 %2421, %v2454_v27   ;;  %v1564_v41 = vld [vmem:[#allocation4 + $0x70] sm:$0xff] }
 0x3bd   : > { %v1562_v16 = vld [vmem:[#allocation4 + $0x60] sm:$0xff] }
 0x3be   : > { %v1565_v0 = vld [vmem:[#allocation4 + $0x78] sm:$0xff] }
 0x3bf   : > { %v1563_v38 = vld [vmem:[#allocation4 + $0x68] sm:$0xff] }
 0x41e   : > { %v1579_v1 = vpop.permute.xlu1 %1578 }
 0x41f   : > { %v1569_v8 = vpop.permute.xlu0 %1568  ;;  %v1648_v43 = vmul.f32 %v1579_v1, %v1552_v25 }
 0x420   : > { %v1646_v13 = vmul.f32 %v1569_v8, %v1550_v28 }
 0x422   : > { %v1584_v63 = vpop.permute.xlu1 %1583 }
 0x423   : > { %v1649_v53 = vmul.f32 %v1584_v63, %v1553_v33  ;;  %v1574_v46 = vpop.permute.xlu0 %1573 }
 0x424   : > { %v1647_v47 = vmul.f32 %v1574_v46, %v1551_v44 }
 0x425   : > { %v2088_v12 = vpack.c.bf16 %v1649_v53, %v1648_v43 }
 0x426   : > { %v2083_v51 = vpack.c.bf16 %v1647_v47, %v1646_v13  ;;  %v1594_v31 = vpop.permute.xlu1 %1593 }
 0x427   : > { %2120 = vst [vmem:[%s2795_s8 + $0x8] sm:$0xff] %v2088_v12   ;;  %v1651_v32 = vmul.f32 %v1594_v31, %v1555_v49  ;;  %v1589_v20 = vpop.permute.xlu0 %1588 }
 0x428   : > { %2084 = vst [vmem:[%s2795_s8] sm:$0xff] %v2083_v51   ;;  %v1650_v30 = vmul.f32 %v1589_v20, %v1554_v23 }
 0x42a   : > { %v2093_v9 = vpack.c.bf16 %v1651_v32, %v1650_v30  ;;  %v1604_v60 = vpop.permute.xlu1 %1603 }
 0x42b   : > { %v1653_v18 = vmul.f32 %v1604_v60, %v1557_v2  ;;  %v1599_v24 = vpop.permute.xlu0 %1598 }
 0x42c   : > { %2121 = vst [vmem:[%s2795_s8 + $0x10] sm:$0xff] %v2093_v9   ;;  %v1652_v62 = vmul.f32 %v1599_v24, %v1556_v21 }
 0x42e   : > { %v2098_v3 = vpack.c.bf16 %v1653_v18, %v1652_v62  ;;  %v1614_v10 = vpop.permute.xlu1 %1613 }
 0x42f   : > { %v1655_v40 = vmul.f32 %v1614_v10, %v1559_v7  ;;  %v1609_v14 = vpop.permute.xlu0 %1608 }
 0x430   : > { %2122 = vst [vmem:[%s2795_s8 + $0x18] sm:$0xff] %v2098_v3   ;;  %v1654_v52 = vmul.f32 %v1609_v14, %v1558_v36 }
 0x432   : > { %v2103_v29 = vpack.c.bf16 %v1655_v40, %v1654_v52  ;;  %v1624_v22 = vpop.permute.xlu1 %1623 }
 0x433   : > { %v1657_v34 = vmul.f32 %v1624_v22, %v1561_v4  ;;  %v1619_v56 = vpop.permute.xlu0 %1618 }
 0x434   : > { %2123 = vst [vmem:[%s2795_s8 + $0x20] sm:$0xff] %v2103_v29   ;;  %v1656_v17 = vmul.f32 %v1619_v56, %v1560_v35 }
 0x436   : > { %v2108_v50 = vpack.c.bf16 %v1657_v34, %v1656_v17  ;;  %v1634_v19 = vpop.permute.xlu1 %1633 }
 0x437   : > { %v1659_v54 = vmul.f32 %v1634_v19, %v1563_v38  ;;  %v1629_v39 = vpop.permute.xlu0 %1628 }
 0x438   : > { %2124 = vst [vmem:[%s2795_s8 + $0x28] sm:$0xff] %v2108_v50   ;;  %v1658_v5 = vmul.f32 %v1629_v39, %v1562_v16 }
 0x43a   : > { %v2113_v26 = vpack.c.bf16 %v1659_v54, %v1658_v5  ;;  %v1644_v15 = vpop.permute.xlu1 %1643 }
 0x43b   : > { %v1661_v11 = vmul.f32 %v1644_v15, %v1565_v0  ;;  %v1639_v48 = vpop.permute.xlu0 %1638 }
 0x43c   : > { %2125 = vst [vmem:[%s2795_s8 + $0x30] sm:$0xff] %v2113_v26   ;;  %v1660_v45 = vmul.f32 %v1639_v48, %v1564_v41 }
 0x43e   : > { %v2118_v6 = vpack.c.bf16 %v1661_v11, %v1660_v45 }
 0x440   : > { %2126 = vst [vmem:[%s2795_s8 + $0x38] sm:$0xff] %v2118_v6  }
 0x441 PF: > { %1748 = sbr.rel (!%p2681_p10) target bundleno = 1108 (0x454), region = 167  ;;  %s3289_s14 = sld [smem:[#allocation10_spill]] (%p2681_p10)  ;;  %v1771_v57 = vld [vmem:[%s2795_s8] sm:$0xf] (%p2681_p10)  ;;  %v1773_v61 = vld [vmem:[%s2795_s8 + $0x4] sm:$0xf] (%p2681_p10) }
 0x442   : > { %s3290_s11 = sld [smem:[#allocation12_spill]] (%p2681_p10)  ;;  %s3291_s27 = sld [smem:[#allocation11_spill]] (%p2681_p10)  ;;  %v1775_v59 = vld [vmem:[%s2795_s8 + $0x8] sm:$0xf] (%p2681_p10)  ;;  %v1777_v55 = vld [vmem:[%s2795_s8 + $0xc] sm:$0xf] (%p2681_p10) }
 0x443   : > { %v1779_v37 = vld [vmem:[%s2795_s8 + $0x10] sm:$0xf] (%p2681_p10)  ;;  %v1781_v58 = vld [vmem:[%s2795_s8 + $0x14] sm:$0xf] (%p2681_p10)  ;;  %v1783_v42 = vld [vmem:[%s2795_s8 + $0x18] sm:$0xf] (%p2681_p10) }
 0x444   : > { %v1785_v27 = vld [vmem:[%s2795_s8 + $0x1c] sm:$0xf] (%p2681_p10)  ;;  %v1787_v1 = vld [vmem:[%s2795_s8 + $0x20] sm:$0xf] (%p2681_p10)  ;;  %v1789_v8 = vld [vmem:[%s2795_s8 + $0x24] sm:$0xf] (%p2681_p10) }
 0x445   : > { %s3292_s18 = sld [smem:[#allocation13_spill]] (%p2681_p10)  ;;  %v1791_v25 = vld [vmem:[%s2795_s8 + $0x28] sm:$0xf] (%p2681_p10)  ;;  %v1793_v33 = vld [vmem:[%s2795_s8 + $0x2c] sm:$0xf] (%p2681_p10) }
 0x446   : > { %v1795_v28 = vld [vmem:[%s2795_s8 + $0x30] sm:$0xf] (%p2681_p10)  ;;  %v1797_v44 = vld [vmem:[%s2795_s8 + $0x34] sm:$0xf] (%p2681_p10) }
 0x447   : > { %s2079_s4 = sshll.u32 (%p2681_p10), %s3289_s14, 5  ;;  %v1799_v63 = vld [vmem:[%s2795_s8 + $0x38] sm:$0xf] (%p2681_p10)  ;;  %v1801_v43 = vld [vmem:[%s2795_s8 + $0x3c] sm:$0xf] (%p2681_p10) }
 0x448   : > { %s2056_s30 = sshll.u32 %s3290_s11, 6  ;;  %s1751_s5 = sadd.s32 %s3291_s27, %s2079_s4 }
 0x449   : > { %s1753_s6 = sadd.s32 %s2056_s30, %s1751_s5 }
 0x44a   : > { %s2057_s7 = sshll.u32 %s1753_s6, 2 }
 0x44b   : > { %s1755_s19 = scalar_lea.vmem %s3292_s18, %s2057_s7 }
 0x44c   : > { %1772 = vst [vmem:[%s1755_s19] sm:$0xf] %v1771_v57  ;;  %1774 = vst [vmem:[%s1755_s19 + $0x8] sm:$0xf] %v1773_v61 }
 0x44d   : > { %1776 = vst [vmem:[%s1755_s19 + $0x10] sm:$0xf] %v1775_v59  ;;  %1778 = vst [vmem:[%s1755_s19 + $0x18] sm:$0xf] %v1777_v55 }
 0x44e   : > { %1780 = vst [vmem:[%s1755_s19 + $0x20] sm:$0xf] %v1779_v37  ;;  %1782 = vst [vmem:[%s1755_s19 + $0x28] sm:$0xf] %v1781_v58 }
 0x44f   : > { %1784 = vst [vmem:[%s1755_s19 + $0x30] sm:$0xf] %v1783_v42  ;;  %1786 = vst [vmem:[%s1755_s19 + $0x38] sm:$0xf] %v1785_v27 }
 0x450   : > { %1788 = vst [vmem:[%s1755_s19 + $0x40] sm:$0xf] %v1787_v1  ;;  %1790 = vst [vmem:[%s1755_s19 + $0x48] sm:$0xf] %v1789_v8 }
 0x451   : > { %1792 = vst [vmem:[%s1755_s19 + $0x50] sm:$0xf] %v1791_v25  ;;  %1794 = vst [vmem:[%s1755_s19 + $0x58] sm:$0xf] %v1793_v33 }
 0x452   : > { %1796 = vst [vmem:[%s1755_s19 + $0x60] sm:$0xf] %v1795_v28  ;;  %1798 = vst [vmem:[%s1755_s19 + $0x68] sm:$0xf] %v1797_v44 }
 0x453   : > { %1800 = vst [vmem:[%s1755_s19 + $0x70] sm:$0xf] %v1799_v63  ;;  %1802 = vst [vmem:[%s1755_s19 + $0x78] sm:$0xf] %v1801_v43 }
 0x454 PF: > { %s13_s24 = sadd.s32 1, %s2557_s24   ;;  %s3294_s12 = smov %s2513_s13 }
 0x455   : > { %p3231_p5 = scmp.ge.s32.totalorder %s13_s24, 18   ;;  %s3295_s13 = smov %s2701_s16 }
 0x456   : > { %s3296_s14 = smov %s2521_s15  ;;  %s3297_s15 = smov %s2698_s17 }
 0x457   : > { %s3298_s16 = smov %s2541_s20  ;;  %s3299_s17 = smov %s2545_s21 }
 0x458   : > { %s3300_s18 = smov %s2549_s22  ;;  %s3301_s19 = smov %s2553_s23 }
 0x459   : > { %s3302_s20 = smov %s3309_s25  ;;  %s3303_s21 = smov %s3311_s26 }
 0x45a   : > { %s3304_s22 = smov %s3315_s28  ;;  %s3305_s23 = smov %s3319_s29 }
 0x45b   :  { %12 = sbr.rel (!%p3231_p5) target bundleno = 9 (0x9), region = 255 }

// kernel: transformer_block.3
= control target key start
LH: loop header
LB: loop body
LE: loop exit
PB: predicated region body
PF: predicated region fallthrough
CT: control target
= control target key end

     0   :  { %s2968_s17 = smov 0   ;;  %s2970_s18 = smov 0   ;;  %s3972_s0 = inlined_call_operand.vmem [shape: f32[2,256,256], index: 0, kind: input, shape index: {}]   ;;  %s3973_s1 = inlined_call_operand.vmem [shape: f32[1,256], index: 1, kind: input, shape index: {}]   ;;  %s3974_s2 = inlined_call_operand.vmem [shape: f32[1,256], index: 2, kind: input, shape index: {}]   ;;  %s3975_s3 = inlined_call_operand.vmem [shape: bf16[256,256], index: 3, kind: input, shape index: {}]   ;;  %s3976_s4 = inlined_call_operand.vmem [shape: f32[1,256], index: 4, kind: input, shape index: {}]   ;;  %s3977_s5 = inlined_call_operand.vmem [shape: bf16[256,256], index: 5, kind: input, shape index: {}]   ;;  %s3978_s6 = inlined_call_operand.vmem [shape: f32[1,256], index: 6, kind: input, shape index: {}]   ;;  %s3979_s7 = inlined_call_operand.vmem [shape: bf16[256,256], index: 7, kind: input, shape index: {}]   ;;  %s3980_s8 = inlined_call_operand.vmem [shape: f32[1,256], index: 8, kind: input, shape index: {}]   ;;  %s3981_s9 = inlined_call_operand.vmem [shape: bf16[2,256,256], index: 9, kind: output, shape index: {0}]   ;;  %s3982_s10 = inlined_call_operand.vmem [shape: bf16[2,256,256], index: 10, kind: output, shape index: {1}]   ;;  %s3983_s11 = inlined_call_operand.vmem [shape: bf16[2,256,256], index: 11, kind: output, shape index: {2}]  }
   0x1   :  { %s2972_s19 = smov 0   ;;  %s2974_s20 = smov 0  }
   0x2   :  { %s2976_s21 = smov 0  }
   0x3 LB: > { %s31_s22 = sadd.s32 1, %s2898_s19  ;;  %s34_s23 = sadd.s32 1, %s2902_s20  ;;  %s2906_s21 = sphi %s2976_s21, %s22_s21   ;;  %s2902_s20 = sphi %s2974_s20, %s3987_s20   ;;  %s2898_s19 = sphi %s2972_s19, %s3986_s19   ;;  %s2894_s18 = sphi %s2970_s18, %s3985_s18   ;;  %s2890_s17 = sphi %s2968_s17, %s3984_s17  }
   0x4   : > { %p32_p0 = scmp.ge.s32.totalorder %s31_s22, 2  ;;  %p2409_p1 = scmp.ge.s32.totalorder %s2906_s21, 1 }
   0x5   : > { %p368_p2 = scmp.lt.s32.totalorder %s2906_s21, 5 }
   0x6   : > { %s3989_s22 = smov (%p32_p0, %s31_s22), 0  ;;  %s3991_s23 = smov (!%p32_p0, %s34_s23), %s2902_s20 }
   0x7   : > { %p369_p3 = pnand %p2409_p1, %p368_p2  ;;  %p36_p4 = scmp.ge.s32.totalorder %s3991_s23, 2 }
   0x8   : > { %s2410_s24 = sshll.u32 (!%p369_p3), %s2890_s17, 4  ;;  %p439_p5 = scmp.lt.s32.totalorder (!%p369_p3), %s2894_s18, 1  ;;  %v2692_v48 = vld [vmem:[%s3975_s3 + $0x4] ss:$8 sps:$4 sm:$0xff] (!%p369_p3)   ;;  %v2696_v50 = vld [vmem:[%s3975_s3] ss:$8 sps:$4 sm:$0xff] (!%p369_p3)  }
   0x9   : > { %s3993_s23 = smov (%p36_p4, %s3991_s23), 0  ;;  %372 = sbr.rel (%p369_p3) target bundleno = 652 (0x28c), region = 56 }
   0xa   : > { %p441_p6 = scmp.lt.s32.totalorder (!%p369_p3), %s2410_s24, 31  ;;  %v2694_v49 = vld [vmem:[%s3977_s5 + $0x4] ss:$8 sps:$4 sm:$0xff] (!%p369_p3)   ;;  %v2697_v51 = vld [vmem:[%s3977_s5] ss:$8 sps:$4 sm:$0xff] (!%p369_p3)   ;;  %1079 = vmatprep.subr.bf16.mxu0 (!%p369_p3), %v2692_v48 }
   0xb   : > { %v2698_v52 = vld [vmem:[%s3975_s3 + $0x14] ss:$8 sps:$4 sm:$0xff] (!%p369_p3)   ;;  %1396 = vmatprep.subr.bf16.mxu1 (!%p369_p3), %v2694_v49  ;;  %1080 = vmatpush1.bf16.msra.mxu0 (!%p369_p3), %v2696_v50  ;;  %v2702_v54 = vld [vmem:[%s3975_s3 + $0x10] ss:$8 sps:$4 sm:$0xff] (!%p369_p3)   ;;  %v2704_v56 = vld [vmem:[%s3975_s3 + $0x24] ss:$8 sps:$4 sm:$0xff] (!%p369_p3)  }
   0xc   : > { %v2700_v53 = vld [vmem:[%s3977_s5 + $0x14] ss:$8 sps:$4 sm:$0xff] (!%p369_p3)   ;;  %1397 = vmatpush1.bf16.msra.mxu1 (!%p369_p3), %v2697_v51  ;;  %v2703_v55 = vld [vmem:[%s3977_s5 + $0x10] ss:$8 sps:$4 sm:$0xff] (!%p369_p3)   ;;  %1081 = vmatprep.subr.bf16.mxu0 (!%p369_p3), %v2698_v52  ;;  %v2706_v57 = vld [vmem:[%s3977_s5 + $0x24] ss:$8 sps:$4 sm:$0xff] (!%p369_p3)  }
   0xd   : > { %1398 = vmatprep.subr.bf16.mxu1 (!%p369_p3), %v2700_v53  ;;  %v2708_v58 = vld [vmem:[%s3975_s3 + $0x20] ss:$8 sps:$4 sm:$0xff] (!%p369_p3)   ;;  %v2710_v60 = vld [vmem:[%s3975_s3 + $0x34] ss:$8 sps:$4 sm:$0xff] (!%p369_p3)   ;;  %v2714_v62 = vld [vmem:[%s3975_s3 + $0x30] ss:$8 sps:$4 sm:$0xff] (!%p369_p3)  }
   0xe   : > { %v2709_v59 = vld [vmem:[%s3977_s5 + $0x20] ss:$8 sps:$4 sm:$0xff] (!%p369_p3)   ;;  %v2712_v61 = vld [vmem:[%s3977_s5 + $0x34] ss:$8 sps:$4 sm:$0xff] (!%p369_p3)   ;;  %v2715_v63 = vld [vmem:[%s3977_s5 + $0x30] ss:$8 sps:$4 sm:$0xff] (!%p369_p3)  }
   0xf   : > { %1082 = vmatpush1.bf16.msra.mxu0 (!%p369_p3), %v2702_v54  ;;  %v2740_v48 = vld [vmem:[%s3975_s3 + $0x84] ss:$8 sps:$4 sm:$0xff] (!%p369_p3)   ;;  %v2744_v50 = vld [vmem:[%s3975_s3 + $0x80] ss:$8 sps:$4 sm:$0xff] (!%p369_p3)   ;;  %v2746_v52 = vld [vmem:[%s3975_s3 + $0x94] ss:$8 sps:$4 sm:$0xff] (!%p369_p3)  }
  0x10   : > { %s3995_s18 = smov (!%p439_p5, %s2894_s18), 1  ;;  %s3997_s24 = smov (!%p441_p6, %s2410_s24), 31  ;;  %1399 = vmatpush1.bf16.msra.mxu1 %v2703_v55  ;;  %1083 = vmatprep.subr.bf16.mxu0 %v2704_v56  ;;  %v2742_v49 = vld [vmem:[%s3977_s5 + $0x84] ss:$8 sps:$4 sm:$0xff]   ;;  %v2745_v51 = vld [vmem:[%s3977_s5 + $0x80] ss:$8 sps:$4 sm:$0xff]  }
  0x11   : > { %s2412_s25 = sshll.u32 %s3995_s18, 6  ;;  %s2411_s26 = sshll.u32 %s3997_s24, 1  ;;  %1400 = vmatprep.subr.bf16.mxu1 %v2706_v57  ;;  %v2748_v53 = vld [vmem:[%s3977_s5 + $0x94] ss:$8 sps:$4 sm:$0xff]  }
  0x12   : > { %s2998_s27 = sadd.s32 %s2412_s25, %s2411_s26 }
  0x13   : > { %s2413_s28 = sshll.u32 %s2998_s27, 3  ;;  %1084 = vmatpush1.bf16.msra.mxu0 %v2708_v58  ;;  %s3784_s18 = sshll.u32 %s2998_s27, 2 }
  0x14   : > { %s3004_s12 = scalar_lea.vmem %s3972_s0, %s2413_s28  ;;  %1401 = vmatpush1.bf16.msra.mxu1 %v2709_v59  ;;  %1085 = vmatprep.subr.bf16.mxu0 %v2710_v60  ;;  %s3794_s27 = scalar_lea.vmem %s3982_s10, %s3784_s18 }
  0x15   : > { %v3007_v0 = vld [vmem:[%s3004_s12] sm:$0xff]  ;;  %v3010_v1 = vld [vmem:[%s3004_s12 + $0x8] sm:$0xff]  ;;  %v3021_v5 = vld [vmem:[%s3004_s12 + $0x10] sm:$0xff]  ;;  %1402 = vmatprep.subr.bf16.mxu1 %v2712_v61  ;;  %s3804_s29 = scalar_lea.vmem %s3981_s9, %s3784_s18  ;;  %s3911_s15 = scalar_lea.vmem %s3983_s11, %s3784_s18 }
  0x16   : > { %v3013_v2 = vld [vmem:[%s3004_s12 + $0x20] sm:$0xff]  ;;  %v516_v3 = vadd.f32 %v3010_v1, %v3007_v0  ;;  %v3018_v4 = vld [vmem:[%s3004_s12 + $0x28] sm:$0xff]  ;;  %v3024_v6 = vld [vmem:[%s3004_s12 + $0x18] sm:$0xff] }
  0x17   : > { %v522_v7 = vadd.f32 %v3018_v4, %v3013_v2  ;;  %v3029_v8 = vld [vmem:[%s3004_s12 + $0x30] sm:$0xff]  ;;  %v3032_v9 = vld [vmem:[%s3004_s12 + $0x38] sm:$0xff]  ;;  %v519_v10 = vadd.f32 %v3024_v6, %v3021_v5  ;;  %v3039_v12 = vld [vmem:[%s3004_s12 + $0x40] sm:$0xff]  ;;  %1086 = vmatpush1.bf16.msra.mxu0 %v2714_v62 }
  0x18   : > { %517 = vadd.xlane.f32.xlu0 %v516_v3  ;;  %v525_v11 = vadd.f32 %v3032_v9, %v3029_v8  ;;  %v3042_v13 = vld [vmem:[%s3004_s12 + $0x48] sm:$0xff]  ;;  %v3045_v14 = vld [vmem:[%s3004_s12 + $0x50] sm:$0xff]  ;;  %v3048_v15 = vld [vmem:[%s3004_s12 + $0x58] sm:$0xff]  ;;  %1403 = vmatpush1.bf16.msra.mxu1 %v2715_v63 }
  0x19   : > { %523 = vadd.xlane.f32.xlu1 %v522_v7  ;;  %v528_v16 = vadd.f32 %v3042_v13, %v3039_v12  ;;  %v531_v17 = vadd.f32 %v3048_v15, %v3045_v14  ;;  %v3055_v18 = vld [vmem:[%s3004_s12 + $0x60] sm:$0xff]  ;;  %v3058_v19 = vld [vmem:[%s3004_s12 + $0x68] sm:$0xff]  ;;  %v3061_v20 = vld [vmem:[%s3004_s12 + $0x70] sm:$0xff] }
  0x1a   : > { %v3064_v21 = vld [vmem:[%s3004_s12 + $0x78] sm:$0xff]  ;;  %v3067_v22 = vld [vmem:[%s3004_s12 + $0x80] sm:$0xff]  ;;  %v3070_v23 = vld [vmem:[%s3004_s12 + $0x88] sm:$0xff]  ;;  %v534_v24 = vadd.f32 %v3058_v19, %v3055_v18 }
  0x1b   : > { %v3075_v25 = vld [vmem:[%s3004_s12 + $0x90] sm:$0xff]  ;;  %v3078_v26 = vld [vmem:[%s3004_s12 + $0x98] sm:$0xff]  ;;  %v537_v27 = vadd.f32 %v3064_v21, %v3061_v20  ;;  %v3083_v28 = vld [vmem:[%s3004_s12 + $0xa0] sm:$0xff]  ;;  %v540_v30 = vadd.f32 %v3070_v23, %v3067_v22 }
  0x1c   : > { %520 = vadd.xlane.f32.xlu0 %v519_v10  ;;  %v3086_v29 = vld [vmem:[%s3004_s12 + $0xa8] sm:$0xff]  ;;  %v3091_v31 = vld [vmem:[%s3004_s12 + $0xb0] sm:$0xff]  ;;  %v3094_v32 = vld [vmem:[%s3004_s12 + $0xb8] sm:$0xff]  ;;  %v543_v33 = vadd.f32 %v3078_v26, %v3075_v25 }
  0x1d   : > { %526 = vadd.xlane.f32.xlu1 %v525_v11  ;;  %v3099_v34 = vld [vmem:[%s3004_s12 + $0xc0] sm:$0xff]  ;;  %v3102_v35 = vld [vmem:[%s3004_s12 + $0xc8] sm:$0xff]  ;;  %v546_v36 = vadd.f32 %v3086_v29, %v3083_v28  ;;  %v3107_v37 = vld [vmem:[%s3004_s12 + $0xd0] sm:$0xff]  ;;  %v549_v39 = vadd.f32 %v3094_v32, %v3091_v31 }
  0x1e   : > { %v3110_v38 = vld [vmem:[%s3004_s12 + $0xd8] sm:$0xff]  ;;  %v3115_v40 = vld [vmem:[%s3004_s12 + $0xe0] sm:$0xff]  ;;  %v3118_v41 = vld [vmem:[%s3004_s12 + $0xe8] sm:$0xff]  ;;  %v552_v42 = vadd.f32 %v3102_v35, %v3099_v34 }
  0x1f   : > { %v3123_v43 = vld [vmem:[%s3004_s12 + $0xf0] sm:$0xff]  ;;  %v3126_v44 = vld [vmem:[%s3004_s12 + $0xf8] sm:$0xff]  ;;  %v555_v45 = vadd.f32 %v3110_v38, %v3107_v37  ;;  %v558_v46 = vadd.f32 %v3118_v41, %v3115_v40  ;;  %v2716_v3 = vld [vmem:[%s3975_s3 + $0x44] ss:$8 sps:$4 sm:$0xff]  }
  0x20   : > { %529 = vadd.xlane.f32.xlu0 %v528_v16  ;;  %v561_v47 = vadd.f32 %v3126_v44, %v3123_v43  ;;  %v2718_v7 = vld [vmem:[%s3977_s5 + $0x44] ss:$8 sps:$4 sm:$0xff]   ;;  %v2720_v10 = vld [vmem:[%s3975_s3 + $0x40] ss:$8 sps:$4 sm:$0xff]   ;;  %1087 = vmatprep.subr.bf16.mxu0 %v2716_v3  ;;  %v2722_v16 = vld [vmem:[%s3975_s3 + $0x54] ss:$8 sps:$4 sm:$0xff]  }
  0x21   : > { %532 = vadd.xlane.f32.xlu1 %v531_v17  ;;  %v2721_v11 = vld [vmem:[%s3977_s5 + $0x40] ss:$8 sps:$4 sm:$0xff]   ;;  %1404 = vmatprep.subr.bf16.mxu1 %v2718_v7  ;;  %v2724_v17 = vld [vmem:[%s3977_s5 + $0x54] ss:$8 sps:$4 sm:$0xff]  }
  0x22   : > { %1088 = vmatpush1.bf16.msra.mxu0 %v2720_v10  ;;  %1405 = vmatpush1.bf16.msra.mxu1 %v2721_v11 }
  0x23   : > { %1089 = vmatprep.subr.bf16.mxu0 %v2722_v16  ;;  %1406 = vmatprep.subr.bf16.mxu1 %v2724_v17 }
  0x24   : > { %535 = vadd.xlane.f32.xlu0 %v534_v24  ;;  %v2726_v24 = vld [vmem:[%s3975_s3 + $0x50] ss:$8 sps:$4 sm:$0xff]  }
  0x25   : > { %538 = vadd.xlane.f32.xlu1 %v537_v27  ;;  %v2727_v27 = vld [vmem:[%s3977_s5 + $0x50] ss:$8 sps:$4 sm:$0xff]  }
  0x26   : > { %1090 = vmatpush1.bf16.msra.mxu0 %v2726_v24  ;;  %1407 = vmatpush1.bf16.msra.mxu1 %v2727_v27 }
  0x28   : > { %541 = vadd.xlane.f32.xlu0 %v540_v30  ;;  %v2728_v30 = vld [vmem:[%s3975_s3 + $0x64] ss:$8 sps:$4 sm:$0xff]  }
  0x29   : > { %544 = vadd.xlane.f32.xlu1 %v543_v33  ;;  %v2730_v33 = vld [vmem:[%s3977_s5 + $0x64] ss:$8 sps:$4 sm:$0xff]   ;;  %1091 = vmatprep.subr.bf16.mxu0 %v2728_v30 }
  0x2a   : > { %1408 = vmatprep.subr.bf16.mxu1 %v2730_v33 }
  0x2c   : > { %547 = vadd.xlane.f32.xlu0 %v546_v36  ;;  %v2732_v36 = vld [vmem:[%s3975_s3 + $0x60] ss:$8 sps:$4 sm:$0xff]  }
  0x2d   : > { %550 = vadd.xlane.f32.xlu1 %v549_v39  ;;  %v2733_v39 = vld [vmem:[%s3977_s5 + $0x60] ss:$8 sps:$4 sm:$0xff]   ;;  %1092 = vmatpush1.bf16.msra.mxu0 %v2732_v36 }
  0x2e   : > { %1409 = vmatpush1.bf16.msra.mxu1 %v2733_v39 }
  0x30   : > { %553 = vadd.xlane.f32.xlu0 %v552_v42  ;;  %v2734_v42 = vld [vmem:[%s3975_s3 + $0x74] ss:$8 sps:$4 sm:$0xff]  }
  0x31   : > { %556 = vadd.xlane.f32.xlu1 %v555_v45  ;;  %v2736_v45 = vld [vmem:[%s3977_s5 + $0x74] ss:$8 sps:$4 sm:$0xff]   ;;  %1093 = vmatprep.subr.bf16.mxu0 %v2734_v42 }
  0x32   : > { %1410 = vmatprep.subr.bf16.mxu1 %v2736_v45 }
  0x34   : > { %559 = vadd.xlane.f32.xlu0 %v558_v46  ;;  %v2738_v46 = vld [vmem:[%s3975_s3 + $0x70] ss:$8 sps:$4 sm:$0xff]  }
  0x35   : > { %562 = vadd.xlane.f32.xlu1 %v561_v47  ;;  %v2739_v47 = vld [vmem:[%s3977_s5 + $0x70] ss:$8 sps:$4 sm:$0xff]   ;;  %1094 = vmatpush1.bf16.msra.mxu0 %v2738_v46 }
  0x36   : > { %1411 = vmatpush1.bf16.msra.mxu1 %v2739_v47  ;;  %1095 = vmatprep.subr.bf16.mxu0 %v2740_v48 }
  0x37   : > { %1412 = vmatprep.subr.bf16.mxu1 %v2742_v49 }
  0x39   : > { %1096 = vmatpush1.bf16.msra.mxu0 %v2744_v50 }
  0x3a   : > { %1413 = vmatpush1.bf16.msra.mxu1 %v2745_v51  ;;  %1097 = vmatprep.subr.bf16.mxu0 %v2746_v52 }
  0x3b   : > { %1414 = vmatprep.subr.bf16.mxu1 %v2748_v53 }
  0xa5   : > { %v518_v54 = vpop.xlane.xlu0 %517 }
  0xa6   : > { %v565_v55 = vmul.f32 0.00390625, %v518_v54  ;;  %v524_v56 = vpop.xlane.xlu1 %523 }
  0xa7   : > { %v567_v57 = vmul.f32 0.00390625, %v524_v56 }
  0xa8   : > { %v3249_v58 = vsub.f32 %v3007_v0, %v565_v55  ;;  %v3252_v59 = vsub.f32 %v3010_v1, %v565_v55 }
  0xa9   : > { %v3255_v60 = vsub.f32 %v3013_v2, %v567_v57  ;;  %v3258_v61 = vsub.f32 %v3018_v4, %v567_v57  ;;  %v521_v62 = vpop.xlane.xlu0 %520 }
  0xaa   : > { %v566_v63 = vmul.f32 0.00390625, %v521_v62  ;;  %v527_v3 = vpop.xlane.xlu1 %526  ;;  %v613_v7 = vmul.f32 %v3249_v58, %v3249_v58  ;;  %v614_v10 = vmul.f32 %v3252_v59, %v3252_v59 }
  0xab   : > { %v568_v0 = vmul.f32 0.00390625, %v527_v3  ;;  %v617_v1 = vmul.f32 %v3255_v60, %v3255_v60  ;;  %v618_v2 = vmul.f32 %v3258_v61, %v3258_v61 }
  0xac   : > { %v3269_v11 = vsub.f32 %v3021_v5, %v566_v63  ;;  %v3272_v4 = vsub.f32 %v3024_v6, %v566_v63  ;;  %v645_v16 = vadd.f32 %v614_v10, %v613_v7 }
  0xad   : > { %v3275_v17 = vsub.f32 %v3029_v8, %v568_v0  ;;  %v3278_v24 = vsub.f32 %v3032_v9, %v568_v0  ;;  %v530_v27 = vpop.xlane.xlu0 %529  ;;  %v651_v36 = vadd.f32 %v618_v2, %v617_v1 }
  0xae   : > { %v569_v30 = vmul.f32 0.00390625, %v530_v27  ;;  %646 = vadd.xlane.f32.xlu0 %v645_v16  ;;  %v533_v33 = vpop.xlane.xlu1 %532  ;;  %v615_v39 = vmul.f32 %v3269_v11, %v3269_v11  ;;  %v616_v5 = vmul.f32 %v3272_v4, %v3272_v4 }
  0xaf   : > { %v570_v6 = vmul.f32 0.00390625, %v533_v33  ;;  %v619_v42 = vmul.f32 %v3275_v17, %v3275_v17  ;;  %v620_v8 = vmul.f32 %v3278_v24, %v3278_v24 }
  0xb0   : > { %v3289_v9 = vsub.f32 %v3039_v12, %v569_v30  ;;  %v3292_v45 = vsub.f32 %v3042_v13, %v569_v30  ;;  %v648_v46 = vadd.f32 %v616_v5, %v615_v39 }
  0xb1   : > { %v3295_v47 = vsub.f32 %v3045_v14, %v570_v6  ;;  %v3298_v48 = vsub.f32 %v3048_v15, %v570_v6  ;;  %v536_v49 = vpop.xlane.xlu0 %535  ;;  %v654_v52 = vadd.f32 %v620_v8, %v619_v42  ;;  %v2750_v42 = vld [vmem:[%s3975_s3 + $0x90] ss:$8 sps:$4 sm:$0xff]  }
  0xb2   : > { %v571_v50 = vmul.f32 0.00390625, %v536_v49  ;;  %652 = vadd.xlane.f32.xlu0 %v651_v36  ;;  %649 = vadd.xlane.f32.xlu1 %v648_v46  ;;  %v539_v51 = vpop.xlane.xlu1 %538  ;;  %v621_v12 = vmul.f32 %v3289_v9, %v3289_v9  ;;  %v622_v13 = vmul.f32 %v3292_v45, %v3292_v45  ;;  %v2751_v8 = vld [vmem:[%s3977_s5 + $0x90] ss:$8 sps:$4 sm:$0xff]  }
  0xb3   : > { %v572_v53 = vmul.f32 0.00390625, %v539_v51  ;;  %v623_v14 = vmul.f32 %v3295_v47, %v3295_v47  ;;  %v624_v15 = vmul.f32 %v3298_v48, %v3298_v48  ;;  %1098 = vmatpush1.bf16.msra.mxu0 %v2750_v42  ;;  %1415 = vmatpush1.bf16.msra.mxu1 %v2751_v8  ;;  %v2763_v42 = vld [vmem:[%s3977_s5 + $0xb0] ss:$8 sps:$4 sm:$0xff]  }
  0xb4   : > { %v3309_v54 = vsub.f32 %v3055_v18, %v571_v50  ;;  %v3312_v55 = vsub.f32 %v3058_v19, %v571_v50  ;;  %v657_v56 = vadd.f32 %v622_v13, %v621_v12 }
  0xb5   : > { %v3315_v57 = vsub.f32 %v3061_v20, %v572_v53  ;;  %v3318_v62 = vsub.f32 %v3064_v21, %v572_v53  ;;  %v542_v63 = vpop.xlane.xlu0 %541  ;;  %v660_v10 = vadd.f32 %v624_v15, %v623_v14 }
  0xb6   : > { %v573_v3 = vmul.f32 0.00390625, %v542_v63  ;;  %655 = vadd.xlane.f32.xlu1 %v654_v52  ;;  %658 = vadd.xlane.f32.xlu0 %v657_v56  ;;  %v545_v7 = vpop.xlane.xlu1 %544  ;;  %v625_v18 = vmul.f32 %v3309_v54, %v3309_v54  ;;  %v626_v19 = vmul.f32 %v3312_v55, %v3312_v55 }
  0xb7   : > { %v574_v0 = vmul.f32 0.00390625, %v545_v7  ;;  %v627_v20 = vmul.f32 %v3315_v57, %v3315_v57  ;;  %v628_v21 = vmul.f32 %v3318_v62, %v3318_v62 }
  0xb8   : > { %v3329_v1 = vsub.f32 %v3067_v22, %v573_v3  ;;  %v3332_v2 = vsub.f32 %v3070_v23, %v573_v3  ;;  %v663_v16 = vadd.f32 %v626_v19, %v625_v18  ;;  %v2756_v18 = vld [vmem:[%s3975_s3 + $0xa0] ss:$8 sps:$4 sm:$0xff]  }
  0xb9   : > { %v3335_v27 = vsub.f32 %v3075_v25, %v574_v0  ;;  %v3338_v30 = vsub.f32 %v3078_v26, %v574_v0  ;;  %v548_v33 = vpop.xlane.xlu0 %547  ;;  %v666_v5 = vadd.f32 %v628_v21, %v627_v20  ;;  %v2757_v19 = vld [vmem:[%s3977_s5 + $0xa0] ss:$8 sps:$4 sm:$0xff]  }
  0xba   : > { %v575_v36 = vmul.f32 0.00390625, %v548_v33  ;;  %661 = vadd.xlane.f32.xlu1 %v660_v10  ;;  %664 = vadd.xlane.f32.xlu0 %v663_v16  ;;  %v551_v39 = vpop.xlane.xlu1 %550  ;;  %v629_v22 = vmul.f32 %v3329_v1, %v3329_v1  ;;  %v630_v23 = vmul.f32 %v3332_v2, %v3332_v2 }
  0xbb   : > { %v576_v6 = vmul.f32 0.00390625, %v551_v39  ;;  %v631_v25 = vmul.f32 %v3335_v27, %v3335_v27  ;;  %v632_v26 = vmul.f32 %v3338_v30, %v3338_v30 }
  0xbc   : > { %v3355_v46 = vsub.f32 %v3083_v28, %v575_v36  ;;  %v3358_v49 = vsub.f32 %v3086_v29, %v575_v36  ;;  %v669_v50 = vadd.f32 %v630_v23, %v629_v22  ;;  %v2760_v22 = vld [vmem:[%s3977_s5 + $0xb4] ss:$8 sps:$4 sm:$0xff]  }
  0xbd   : > { %v3361_v51 = vsub.f32 %v3091_v31, %v576_v6  ;;  %v3364_v52 = vsub.f32 %v3094_v32, %v576_v6  ;;  %v554_v12 = vpop.xlane.xlu0 %553  ;;  %v672_v14 = vadd.f32 %v632_v26, %v631_v25  ;;  %v2752_v31 = vld [vmem:[%s3975_s3 + $0xa4] ss:$8 sps:$4 sm:$0xff]   ;;  %v2762_v26 = vld [vmem:[%s3975_s3 + $0xb0] ss:$8 sps:$4 sm:$0xff]  }
  0xbe   : > { %v577_v13 = vmul.f32 0.00390625, %v554_v12  ;;  %667 = vadd.xlane.f32.xlu1 %v666_v5  ;;  %670 = vadd.xlane.f32.xlu0 %v669_v50  ;;  %v557_v53 = vpop.xlane.xlu1 %556  ;;  %v633_v28 = vmul.f32 %v3355_v46, %v3355_v46  ;;  %v634_v29 = vmul.f32 %v3358_v49, %v3358_v49  ;;  %v2754_v32 = vld [vmem:[%s3977_s5 + $0xa4] ss:$8 sps:$4 sm:$0xff]   ;;  %v2758_v5 = vld [vmem:[%s3975_s3 + $0xb4] ss:$8 sps:$4 sm:$0xff]  }
  0xbf   : > { %v578_v15 = vmul.f32 0.00390625, %v557_v53  ;;  %v635_v56 = vmul.f32 %v3361_v51, %v3361_v51  ;;  %v636_v63 = vmul.f32 %v3364_v52, %v3364_v52  ;;  %1099 = vmatprep.subr.bf16.mxu0 %v2752_v31  ;;  %1416 = vmatprep.subr.bf16.mxu1 %v2754_v32  ;;  %v2766_v53 = vld [vmem:[%s3977_s5 + $0xc4] ss:$8 sps:$4 sm:$0xff]   ;;  %v2770_v32 = vld [vmem:[%s3975_s3 + $0xd4] ss:$8 sps:$4 sm:$0xff]  }
  0xc0   : > { %v3381_v3 = vsub.f32 %v3099_v34, %v577_v13  ;;  %v3384_v7 = vsub.f32 %v3102_v35, %v577_v13  ;;  %v675_v10 = vadd.f32 %v634_v29, %v633_v28  ;;  %1100 = vmatpush1.bf16.msra.mxu0 %v2756_v18  ;;  %1417 = vmatpush1.bf16.msra.mxu1 %v2757_v19  ;;  %v2768_v28 = vld [vmem:[%s3975_s3 + $0xc0] ss:$8 sps:$4 sm:$0xff]   ;;  %v2778_v18 = vld [vmem:[%s3977_s5 + $0xe4] ss:$8 sps:$4 sm:$0xff]  }
  0xc1   : > { %v3393_v0 = vsub.f32 %v3107_v37, %v578_v15  ;;  %v3396_v34 = vsub.f32 %v3110_v38, %v578_v15  ;;  %v560_v20 = vpop.xlane.xlu0 %559  ;;  %v678_v16 = vadd.f32 %v636_v63, %v635_v56  ;;  %1101 = vmatprep.subr.bf16.mxu0 %v2758_v5  ;;  %1418 = vmatprep.subr.bf16.mxu1 %v2760_v22  ;;  %v2769_v29 = vld [vmem:[%s3977_s5 + $0xc0] ss:$8 sps:$4 sm:$0xff]   ;;  %v2772_v15 = vld [vmem:[%s3977_s5 + $0xd4] ss:$8 sps:$4 sm:$0xff]   ;;  %v2774_v56 = vld [vmem:[%s3975_s3 + $0xd0] ss:$8 sps:$4 sm:$0xff]  }
  0xc2   : > { %v579_v35 = vmul.f32 0.00390625, %v560_v20  ;;  %673 = vadd.xlane.f32.xlu1 %v672_v14  ;;  %676 = vadd.xlane.f32.xlu0 %v675_v10  ;;  %v563_v21 = vpop.xlane.xlu1 %562  ;;  %v637_v33 = vmul.f32 %v3381_v3, %v3381_v3  ;;  %v638_v36 = vmul.f32 %v3384_v7, %v3384_v7  ;;  %v2775_v63 = vld [vmem:[%s3977_s5 + $0xd0] ss:$8 sps:$4 sm:$0xff]   ;;  %v2776_v10 = vld [vmem:[%s3975_s3 + $0xe4] ss:$8 sps:$4 sm:$0xff]  }
  0xc3   : > { %v580_v39 = vmul.f32 0.00390625, %v563_v21  ;;  %v639_v37 = vmul.f32 %v3393_v0, %v3393_v0  ;;  %v640_v38 = vmul.f32 %v3396_v34, %v3396_v34  ;;  %v2780_v19 = vld [vmem:[%s3975_s3 + $0xe0] ss:$8 sps:$4 sm:$0xff]   ;;  %v2784_v21 = vld [vmem:[%s3977_s5 + $0xf4] ss:$8 sps:$4 sm:$0xff]  }
  0xc4   : > { %v3413_v23 = vsub.f32 %v3115_v40, %v579_v35  ;;  %v3416_v6 = vsub.f32 %v3118_v41, %v579_v35  ;;  %v681_v25 = vadd.f32 %v638_v36, %v637_v33  ;;  %1102 = vmatpush1.bf16.msra.mxu0 %v2762_v26  ;;  %1419 = vmatpush1.bf16.msra.mxu1 %v2763_v42  ;;  %v2781_v20 = vld [vmem:[%s3977_s5 + $0xe0] ss:$8 sps:$4 sm:$0xff]   ;;  %v2782_v35 = vld [vmem:[%s3975_s3 + $0xf4] ss:$8 sps:$4 sm:$0xff]   ;;  %v2787_v33 = vld [vmem:[%s3977_s5 + $0xf0] ss:$8 sps:$4 sm:$0xff]  }
  0xc5   : > { %v3425_v8 = vsub.f32 %v3123_v43, %v580_v39  ;;  %v3428_v50 = vsub.f32 %v3126_v44, %v580_v39  ;;  %v684_v40 = vadd.f32 %v640_v38, %v639_v37  ;;  %v2764_v44 = vld [vmem:[%s3975_s3 + $0xc4] ss:$8 sps:$4 sm:$0xff]   ;;  %1420 = vmatprep.subr.bf16.mxu1 %v2766_v53  ;;  %v774_v38 = vlaneseq }
  0xc6   : > { %679 = vadd.xlane.f32.xlu1 %v678_v16  ;;  %682 = vadd.xlane.f32.xlu0 %v681_v25  ;;  %v641_v41 = vmul.f32 %v3413_v23, %v3413_v23  ;;  %v642_v12 = vmul.f32 %v3416_v6, %v3416_v6  ;;  %v2786_v16 = vld [vmem:[%s3975_s3 + $0xf0] ss:$8 sps:$4 sm:$0xff]   ;;  %v2790_v36 = vld [vmem:[%s3979_s7 + $0x4] ss:$8 sps:$4 sm:$0xff]  }
  0xc7   : > { %v643_v13 = vmul.f32 %v3425_v8, %v3425_v8  ;;  %v644_v43 = vmul.f32 %v3428_v50, %v3428_v50  ;;  %1103 = vmatprep.subr.bf16.mxu0 %v2764_v44 }
  0xc8   : > { %v687_v14 = vadd.f32 %v642_v12, %v641_v41  ;;  %1104 = vmatpush1.bf16.msra.mxu0 %v2768_v28  ;;  %1421 = vmatpush1.bf16.msra.mxu1 %v2769_v29 }
  0xc9   : > { %v690_v31 = vadd.f32 %v644_v43, %v643_v13  ;;  %1105 = vmatprep.subr.bf16.mxu0 %v2770_v32  ;;  %1422 = vmatprep.subr.bf16.mxu1 %v2772_v15  ;;  %v514_v32 = vld [vmem:[%s3973_s1] sm:$0x3] }
  0xca   : > { %685 = vadd.xlane.f32.xlu1 %v684_v40  ;;  %688 = vadd.xlane.f32.xlu0 %v687_v14  ;;  %v775_v40 = vshrl.u32 %v774_v38, 7 }
  0xcc   : > { %1106 = vmatpush1.bf16.msra.mxu0 %v2774_v56  ;;  %1423 = vmatpush1.bf16.msra.mxu1 %v2775_v63  ;;  %v3489_v14 = vsub.s32 1, %v775_v40  ;;  %v3491_v28 = vsub.s32 0, %v775_v40 }
  0xcd   : > { %1107 = vmatprep.subr.bf16.mxu0 %v2776_v10  ;;  %1424 = vmatprep.subr.bf16.mxu1 %v2778_v18 }
  0xce   : > { %691 = vadd.xlane.f32.xlu1 %v690_v31  ;;  %v3497_v18 = vrot.slane %v514_v32, %v3489_v14 }
  0xd0   : > { %1108 = vmatpush1.bf16.msra.mxu0 %v2780_v19  ;;  %1425 = vmatpush1.bf16.msra.mxu1 %v2781_v20 }
  0xd1   : > { %1109 = vmatprep.subr.bf16.mxu0 %v2782_v35  ;;  %1426 = vmatprep.subr.bf16.mxu1 %v2784_v21  ;;  %v515_v35 = vld [vmem:[%s3974_s2] sm:$0x3]  ;;  %v3503_v21 = vrot.slane %v514_v32, %v3491_v28 }
  0xd2   : > { %v3513_v40 = vrot.slane %v515_v35, %v3491_v28 }
  0xd4   : > { %1110 = vmatpush1.bf16.msra.mxu0 %v2786_v16  ;;  %1427 = vmatpush1.bf16.msra.mxu1 %v2787_v33 }
  0xd5   : > { %1713 = vmatprep.subr.bf16.mxu0 %v2790_v36  ;;  %2620 = vmatprep.subr.bf16.mxu1 %v2790_v36 }
 0x13b   : > { %v647_v39 = vpop.xlane.xlu0 %646 }
 0x13c   : > { %v693_v37 = vmul.f32 0.00390625, %v647_v39 }
 0x13e   : > { %v709_v5 = vadd.f32 1e-05, %v693_v37 }
 0x13f   : > { %v650_v22 = vpop.xlane.xlu1 %649  ;;  %v653_v25 = vpop.xlane.xlu0 %652 }
 0x140   : > { %2836 = vrsqrt.f32 %v709_v5  ;;  %v694_v26 = vmul.f32 0.00390625, %v650_v22  ;;  %v695_v42 = vmul.f32 0.00390625, %v653_v25  ;;  %v3509_v22 = vrot.slane %v515_v35, %v3489_v14 }
 0x142   : > { %v710_v41 = vadd.f32 1e-05, %v694_v26  ;;  %v711_v12 = vadd.f32 1e-05, %v695_v42 }
 0x143   : > { %v656_v13 = vpop.xlane.xlu1 %655  ;;  %v659_v43 = vpop.xlane.xlu0 %658 }
 0x144   : > { %2838 = vrsqrt.f32 %v710_v41  ;;  %v696_v44 = vmul.f32 0.00390625, %v656_v13  ;;  %v697_v53 = vmul.f32 0.00390625, %v659_v43 }
 0x145   : > { %2840 = vrsqrt.f32 %v711_v12 }
 0x146   : > { %v712_v29 = vadd.f32 1e-05, %v696_v44  ;;  %v713_v31 = vadd.f32 1e-05, %v697_v53 }
 0x147   : > { %v662_v15 = vpop.xlane.xlu1 %661  ;;  %v665_v56 = vpop.xlane.xlu0 %664 }
 0x148   : > { %2842 = vrsqrt.f32 %v712_v29  ;;  %v698_v63 = vmul.f32 0.00390625, %v662_v15  ;;  %v699_v10 = vmul.f32 0.00390625, %v665_v56 }
 0x149   : > { %2844 = vrsqrt.f32 %v713_v31 }
 0x14a   : > { %v2837_v19 = vpop.eup %2836  ;;  %v714_v20 = vadd.f32 1e-05, %v698_v63  ;;  %v715_v37 = vadd.f32 1e-05, %v699_v10 }
 0x14b   : > { %v668_v16 = vpop.xlane.xlu1 %667  ;;  %v742_v33 = vmul.f32 %v2837_v19, %v3252_v59  ;;  %v741_v36 = vmul.f32 %v2837_v19, %v3249_v58  ;;  %v671_v38 = vpop.xlane.xlu0 %670 }
 0x14c   : > { %2846 = vrsqrt.f32 %v714_v20  ;;  %v700_v39 = vmul.f32 0.00390625, %v668_v16  ;;  %v701_v13 = vmul.f32 0.00390625, %v671_v38 }
 0x14d   : > { %v785_v5 = vmul.f32 %v3497_v18, %v742_v33  ;;  %v784_v42 = vmul.f32 %v3503_v21, %v741_v36  ;;  %v2788_v33 = vld [vmem:[%s3979_s7] ss:$8 sps:$4 sm:$0xff]  }
 0x14e   : > { %v2839_v25 = vpop.eup %2838  ;;  %v716_v26 = vadd.f32 1e-05, %v700_v39  ;;  %v717_v35 = vadd.f32 1e-05, %v701_v13  ;;  %v2791_v13 = vld [vmem:[%s3979_s7 + $0x10] ss:$8 sps:$4 sm:$0xff]  }
 0x14f   : > { %v2841_v41 = vpop.eup %2840  ;;  %v674_v59 = vpop.xlane.xlu1 %673  ;;  %v744_v58 = vmul.f32 %v2839_v25, %v3272_v4  ;;  %v743_v12 = vmul.f32 %v2839_v25, %v3269_v11  ;;  %v828_v29 = vadd.f32 %v3509_v22, %v785_v5  ;;  %v827_v56 = vadd.f32 %v3513_v40, %v784_v42 }
 0x150   : > { %2848 = vrsqrt.f32 %v716_v26  ;;  %v702_v43 = vmul.f32 0.00390625, %v674_v59  ;;  %v746_v44 = vmul.f32 %v2841_v41, %v3258_v61  ;;  %v745_v11 = vmul.f32 %v2841_v41, %v3255_v60  ;;  %v677_v38 = vpop.xlane.xlu0 %676 }
 0x151   : > { %2850 = vrsqrt.f32 %v715_v37  ;;  %v787_v53 = vmul.f32 %v3497_v18, %v744_v58  ;;  %v786_v31 = vmul.f32 %v3503_v21, %v743_v12  ;;  %v703_v58 = vmul.f32 0.00390625, %v677_v38 }
 0x152   : > { %v2843_v32 = vpop.eup %2842  ;;  %v718_v15 = vadd.f32 1e-05, %v702_v43  ;;  %v789_v4 = vmul.f32 %v3497_v18, %v746_v44  ;;  %v788_v5 = vmul.f32 %v3503_v21, %v745_v11 }
 0x153   : > { %v830_v63 = vadd.f32 %v3509_v22, %v787_v53  ;;  %v829_v10 = vadd.f32 %v3513_v40, %v786_v31  ;;  %v748_v61 = vmul.f32 %v2843_v32, %v3278_v24  ;;  %v747_v19 = vmul.f32 %v2843_v32, %v3275_v17  ;;  %v2845_v20 = vpop.eup %2844  ;;  %v680_v16 = vpop.xlane.xlu1 %679  ;;  %v2793_v17 = vld [vmem:[%s3979_s7 + $0x14] ss:$8 sps:$4 sm:$0xff]  }
 0x154   : > { %2852 = vrsqrt.f32 %v718_v15  ;;  %v832_v24 = vadd.f32 %v3509_v22, %v789_v4  ;;  %v704_v26 = vmul.f32 0.00390625, %v680_v16  ;;  %v750_v41 = vmul.f32 %v2845_v20, %v3292_v45  ;;  %v2796_v45 = vld [vmem:[%s3979_s7 + $0x24] ss:$8 sps:$4 sm:$0xff]  }
 0x155   : > { %v3531_v36 = vpack.c.bf16 %v830_v63, %v828_v29  ;;  %v3533_v39 = vpack.c.bf16 %v829_v10, %v827_v56  ;;  %v791_v60 = vmul.f32 %v3497_v18, %v748_v61  ;;  %v790_v25 = vmul.f32 %v3503_v21, %v747_v19  ;;  %v683_v56 = vpop.xlane.xlu0 %682  ;;  %v2794_v61 = vld [vmem:[%s3979_s7 + $0x20] ss:$8 sps:$4 sm:$0xff]  }
 0x156   : > { %v2847_v37 = vpop.eup %2846  ;;  %2854 = vrsqrt.f32 %v717_v35  ;;  %v720_v31 = vadd.f32 1e-05, %v704_v26  ;;  %v831_v32 = vadd.f32 %v3513_v40, %v788_v5  ;;  %v749_v63 = vmul.f32 %v2845_v20, %v3289_v9  ;;  %v2802_v5 = vld [vmem:[%s3979_s7 + $0x44] ss:$8 sps:$4 sm:$0xff]  }
 0x157   : > { %1111 = vmatprep.mubr.bf16.mxu0 %v3531_v36  ;;  %1428 = vmatprep.mubr.bf16.mxu1 %v3531_v36  ;;  %v834_v42 = vadd.f32 %v3509_v22, %v791_v60  ;;  %v752_v59 = vmul.f32 %v2847_v37, %v3298_v48  ;;  %v833_v43 = vadd.f32 %v3513_v40, %v790_v25  ;;  %v686_v4 = vpop.xlane.xlu1 %685  ;;  %v719_v10 = vadd.f32 1e-05, %v703_v58  ;;  %v2799_v60 = vld [vmem:[%s3979_s7 + $0x34] ss:$8 sps:$4 sm:$0xff]  }
 0x158   : > { %1112 = vmatmul.mubr.bf16.vlgmr.msra.gmra.mrb[0].mxu0 %v3533_v39  ;;  %1429 = vmatmul.mubr.bf16.vlgmr.msra.gmra.mrb[0].mxu1 %v3533_v39  ;;  %v793_v48 = vmul.f32 %v3497_v18, %v750_v41  ;;  %v751_v15 = vmul.f32 %v2847_v37, %v3295_v47  ;;  %2856 = vrsqrt.f32 %v720_v31  ;;  %v705_v9 = vmul.f32 0.00390625, %v683_v56 }
 0x159   : > { %1714 = vmatpush1.bf16.msra.mxu0 %v2788_v33  ;;  %2636 = vmatpush1.bf16.msra.mxu1 %v2788_v33  ;;  %v3549_v12 = vpack.c.bf16 %v834_v42, %v832_v24  ;;  %v795_v53 = vmul.f32 %v3497_v18, %v752_v59  ;;  %v3569_v19 = vpack.c.bf16 %v833_v43, %v831_v32  ;;  %v706_v20 = vmul.f32 0.00390625, %v686_v4 }
 0x15a   : > { %v2849_v44 = vpop.eup %2848  ;;  %1715 = vmatprep.subr.bf16.mxu0 %v2793_v17  ;;  %2621 = vmatprep.subr.bf16.mxu1 %v2793_v17  ;;  %v836_v47 = vadd.f32 %v3509_v22, %v793_v48  ;;  %v794_v16 = vmul.f32 %v3503_v21, %v751_v15  ;;  %v792_v38 = vmul.f32 %v3503_v21, %v749_v63  ;;  %2858 = vrsqrt.f32 %v719_v10  ;;  %v2803_v63 = vld [vmem:[%s3979_s7 + $0x50] ss:$8 sps:$4 sm:$0xff]  }
 0x15b   : > { %v2851_v29 = vpop.eup %2850  ;;  %1121 = vmatprep.mubr.bf16.mxu0 %v3549_v12  ;;  %1438 = vmatprep.mubr.bf16.mxu1 %v3549_v12  ;;  %v838_v11 = vadd.f32 %v3509_v22, %v795_v53  ;;  %v756_v35 = vmul.f32 %v2849_v44, %v3318_v62  ;;  %v755_v42 = vmul.f32 %v2849_v44, %v3315_v57  ;;  %v721_v41 = vadd.f32 1e-05, %v705_v9  ;;  %v692_v58 = vpop.xlane.xlu1 %691  ;;  %v2800_v53 = vld [vmem:[%s3979_s7 + $0x40] ss:$8 sps:$4 sm:$0xff]  }
 0x15c   : > { %v754_v33 = vmul.f32 %v2851_v29, %v3312_v55  ;;  %v2797_v55 = vld [vmem:[%s3979_s7 + $0x30] ss:$8 sps:$4 sm:$0xff]   ;;  %v837_v25 = vadd.f32 %v3513_v40, %v794_v16  ;;  %v722_v59 = vadd.f32 1e-05, %v706_v20  ;;  %v689_v44 = vpop.xlane.xlu0 %688 }
 0x15d   : > { %1716 = vmatpush1.bf16.msra.mxu0 %v2791_v13  ;;  %2637 = vmatpush1.bf16.msra.mxu1 %v2791_v13  ;;  %v3580_v62 = vpack.c.bf16 %v838_v11, %v836_v47  ;;  %v799_v24 = vmul.f32 %v3497_v18, %v756_v35  ;;  %v835_v13 = vadd.f32 %v3513_v40, %v792_v38  ;;  %v707_v11 = vmul.f32 0.00390625, %v689_v44  ;;  %v2812_v44 = vld [vmem:[%s3979_s7 + $0x80] ss:$8 sps:$4 sm:$0xff]  }
 0x15e   : > { %1717 = vmatprep.subr.bf16.mxu0 %v2796_v45  ;;  %2622 = vmatprep.subr.bf16.mxu1 %v2796_v45  ;;  %v2853_v37 = vpop.eup %2852  ;;  %v797_v26 = vmul.f32 %v3497_v18, %v754_v33  ;;  %v753_v45 = vmul.f32 %v2851_v29, %v3309_v54  ;;  %v798_v15 = vmul.f32 %v3503_v21, %v755_v42  ;;  %2860 = vrsqrt.f32 %v722_v59  ;;  %v2814_v59 = vld [vmem:[%s3979_s7 + $0x84] ss:$8 sps:$4 sm:$0xff]  }
 0x15f   : > { %v842_v43 = vadd.f32 %v3509_v22, %v799_v24  ;;  %v760_v48 = vmul.f32 %v2853_v37, %v3338_v30  ;;  %v3603_v31 = vpack.c.bf16 %v837_v25, %v835_v13  ;;  %v708_v54 = vmul.f32 0.00390625, %v692_v58  ;;  %v2805_v30 = vld [vmem:[%s3979_s7 + $0x54] ss:$8 sps:$4 sm:$0xff]  }
 0x160   : > { %1122 = vmatmul.mubr.bf16.gmra.mrb[4].mxu0 %v3569_v19  ;;  %1439 = vmatmul.mubr.bf16.gmra.mrb[4].mxu1 %v3569_v19  ;;  %v2855_v17 = vpop.eup %2854  ;;  %v840_v32 = vadd.f32 %v3509_v22, %v797_v26  ;;  %2862 = vrsqrt.f32 %v721_v41  ;;  %v796_v29 = vmul.f32 %v3503_v21, %v753_v45  ;;  %v841_v35 = vadd.f32 %v3513_v40, %v798_v15 }
 0x161   : > { %1718 = vmatpush1.bf16.msra.mxu0 %v2794_v61  ;;  %2638 = vmatpush1.bf16.msra.mxu1 %v2794_v61  ;;  %v758_v57 = vmul.f32 %v2855_v17, %v3332_v2  ;;  %v803_v56 = vmul.f32 %v3497_v18, %v760_v48  ;;  %v2808_v61 = vld [vmem:[%s3979_s7 + $0x64] ss:$8 sps:$4 sm:$0xff]   ;;  %v759_v47 = vmul.f32 %v2853_v37, %v3335_v27  ;;  %v724_v33 = vadd.f32 1e-05, %v708_v54 }
 0x162   : > { %1131 = vmatprep.mubr.bf16.mxu0 %v3580_v62  ;;  %1448 = vmatprep.mubr.bf16.mxu1 %v3580_v62  ;;  %v3612_v2 = vpack.c.bf16 %v842_v43, %v840_v32  ;;  %v2857_v4 = vpop.eup %2856  ;;  %v839_v9 = vadd.f32 %v3513_v40, %v796_v29  ;;  %v723_v24 = vadd.f32 1e-05, %v707_v11  ;;  %v2820_v11 = vld [vmem:[%s3979_s7 + $0xa4] ss:$8 sps:$4 sm:$0xff]  }
 0x163   : > { %1719 = vmatprep.subr.bf16.mxu0 %v2799_v60  ;;  %2623 = vmatprep.subr.bf16.mxu1 %v2799_v60  ;;  %v801_v10 = vmul.f32 %v3497_v18, %v758_v57  ;;  %v846_v20 = vadd.f32 %v3509_v22, %v803_v56  ;;  %v757_v60 = vmul.f32 %v2855_v17, %v3329_v1  ;;  %2864 = vrsqrt.f32 %v724_v33  ;;  %v2811_v1 = vld [vmem:[%s3979_s7 + $0x74] ss:$8 sps:$4 sm:$0xff]   ;;  %v2815_v56 = vld [vmem:[%s3979_s7 + $0x90] ss:$8 sps:$4 sm:$0xff]  }
 0x164   : > { %v2859_v16 = vpop.eup %2858  ;;  %v764_v38 = vmul.f32 %v2857_v4, %v3364_v52  ;;  %v3635_v37 = vpack.c.bf16 %v841_v35, %v839_v9  ;;  %2866 = vrsqrt.f32 %v723_v24  ;;  %v763_v43 = vmul.f32 %v2857_v4, %v3361_v51  ;;  %v2818_v9 = vld [vmem:[%s3979_s7 + $0xa0] ss:$8 sps:$4 sm:$0xff]  }
 0x165   : > { %1720 = vmatpush1.bf16.msra.mxu0 %v2797_v55  ;;  %2639 = vmatpush1.bf16.msra.mxu1 %v2797_v55  ;;  %v2806_v55 = vld [vmem:[%s3979_s7 + $0x60] ss:$8 sps:$4 sm:$0xff]   ;;  %v844_v27 = vadd.f32 %v3509_v22, %v801_v10  ;;  %v762_v25 = vmul.f32 %v2859_v16, %v3358_v49  ;;  %v800_v17 = vmul.f32 %v3503_v21, %v757_v60  ;;  %v2809_v49 = vld [vmem:[%s3979_s7 + $0x70] ss:$8 sps:$4 sm:$0xff]  }
 0x166   : > { %1721 = vmatprep.subr.bf16.mxu0 %v2802_v5  ;;  %2624 = vmatprep.subr.bf16.mxu1 %v2802_v5  ;;  %v802_v5 = vmul.f32 %v3503_v21, %v759_v47  ;;  %v807_v26 = vmul.f32 %v3497_v18, %v764_v38  ;;  %v806_v54 = vmul.f32 %v3503_v21, %v763_v43 }
 0x167   : > { %v3644_v52 = vpack.c.bf16 %v846_v20, %v844_v27  ;;  %v805_v13 = vmul.f32 %v3497_v18, %v762_v25  ;;  %v843_v45 = vadd.f32 %v3513_v40, %v800_v17  ;;  %v2826_v27 = vld [vmem:[%s3979_s7 + $0xc4] ss:$8 sps:$4 sm:$0xff]  }
 0x168   : > { %1132 = vmatmul.mubr.bf16.gmra.mrb[8].mxu0 %v3603_v31  ;;  %1449 = vmatmul.mubr.bf16.gmra.mrb[8].mxu1 %v3603_v31  ;;  %v2861_v42 = vpop.eup %2860  ;;  %v845_v58 = vadd.f32 %v3513_v40, %v802_v5  ;;  %v850_v48 = vadd.f32 %v3509_v22, %v807_v26 }
 0x169   : > { %1722 = vmatpush1.bf16.msra.mxu0 %v2800_v53  ;;  %2640 = vmatpush1.bf16.msra.mxu1 %v2800_v53  ;;  %v761_v53 = vmul.f32 %v2859_v16, %v3355_v46  ;;  %v768_v57 = vmul.f32 %v2861_v42, %v3396_v34  ;;  %v848_v15 = vadd.f32 %v3509_v22, %v805_v13  ;;  %v2817_v46 = vld [vmem:[%s3979_s7 + $0x94] ss:$8 sps:$4 sm:$0xff]   ;;  %v2827_v13 = vld [vmem:[%s3979_s7 + $0xd0] ss:$8 sps:$4 sm:$0xff]  }
 0x16a   : > { %1141 = vmatprep.mubr.bf16.mxu0 %v3612_v2  ;;  %1458 = vmatprep.mubr.bf16.mxu1 %v3612_v2  ;;  %v2863_v41 = vpop.eup %2862  ;;  %v3667_v51 = vpack.c.bf16 %v845_v58, %v843_v45  ;;  %v767_v10 = vmul.f32 %v2861_v42, %v3393_v0 }
 0x16b   : > { %1723 = vmatprep.subr.bf16.mxu0 %v2805_v30  ;;  %2625 = vmatprep.subr.bf16.mxu1 %v2805_v30  ;;  %v766_v32 = vmul.f32 %v2863_v41, %v3384_v7  ;;  %v3676_v34 = vpack.c.bf16 %v850_v48, %v848_v15  ;;  %v804_v7 = vmul.f32 %v3503_v21, %v761_v53  ;;  %v2835_v53 = vld [vmem:[%s3979_s7 + $0xf4] ss:$8 sps:$4 sm:$0xff]  }
 0x16c   : > { %v811_v30 = vmul.f32 %v3497_v18, %v768_v57  ;;  %v765_v16 = vmul.f32 %v2863_v41, %v3381_v3  ;;  %v810_v60 = vmul.f32 %v3503_v21, %v767_v10  ;;  %v2823_v3 = vld [vmem:[%s3979_s7 + $0xb4] ss:$8 sps:$4 sm:$0xff]  }
 0x16d   : > { %1724 = vmatpush1.bf16.msra.mxu0 %v2803_v63  ;;  %2641 = vmatpush1.bf16.msra.mxu1 %v2803_v63  ;;  %v2865_v29 = vpop.eup %2864  ;;  %v809_v4 = vmul.f32 %v3497_v18, %v766_v32  ;;  %v849_v63 = vadd.f32 %v3513_v40, %v806_v54  ;;  %v847_v35 = vadd.f32 %v3513_v40, %v804_v7 }
 0x16e   : > { %1725 = vmatprep.subr.bf16.mxu0 %v2808_v61  ;;  %2626 = vmatprep.subr.bf16.mxu1 %v2808_v61  ;;  %v2867_v61 = vpop.eup %2866  ;;  %v854_v47 = vadd.f32 %v3509_v22, %v811_v30  ;;  %v772_v33 = vmul.f32 %v2865_v29, %v3428_v50  ;;  %v808_v24 = vmul.f32 %v3503_v21, %v765_v16 }
 0x16f   : > { %v852_v20 = vadd.f32 %v3509_v22, %v809_v4  ;;  %v3699_v0 = vpack.c.bf16 %v849_v63, %v847_v35  ;;  %v770_v38 = vmul.f32 %v2867_v61, %v3416_v6  ;;  %v2821_v6 = vld [vmem:[%s3979_s7 + $0xb0] ss:$8 sps:$4 sm:$0xff]   ;;  %v853_v5 = vadd.f32 %v3513_v40, %v810_v60 }
 0x170   : > { %1142 = vmatmul.mubr.bf16.gmra.mrb[12].mxu0 %v3635_v37  ;;  %1459 = vmatmul.mubr.bf16.gmra.mrb[12].mxu1 %v3635_v37  ;;  %v851_v17 = vadd.f32 %v3513_v40, %v808_v24  ;;  %v769_v42 = vmul.f32 %v2867_v61, %v3413_v23 }
 0x171   : > { %1726 = vmatpush1.bf16.msra.mxu0 %v2806_v55  ;;  %2642 = vmatpush1.bf16.msra.mxu1 %v2806_v55  ;;  %v3708_v50 = vpack.c.bf16 %v854_v47, %v852_v20  ;;  %v815_v55 = vmul.f32 %v3497_v18, %v772_v33  ;;  %v813_v25 = vmul.f32 %v3497_v18, %v770_v38 }
 0x172   : > { %1151 = vmatprep.mubr.bf16.mxu0 %v3644_v52  ;;  %1468 = vmatprep.mubr.bf16.mxu1 %v3644_v52  ;;  %v871_v41 = vpack.c.bf16 %v853_v5, %v851_v17  ;;  %v812_v58 = vmul.f32 %v3503_v21, %v769_v42 }
 0x173   : > { %1727 = vmatprep.subr.bf16.mxu0 %v2811_v1  ;;  %2627 = vmatprep.subr.bf16.mxu1 %v2811_v1  ;;  %v771_v1 = vmul.f32 %v2865_v29, %v3425_v8  ;;  %v858_v26 = vadd.f32 %v3509_v22, %v815_v55  ;;  %v856_v18 = vadd.f32 %v3509_v22, %v813_v25  ;;  %v2832_v22 = vld [vmem:[%s3979_s7 + $0xe4] ss:$8 sps:$4 sm:$0xff]  }
 0x174   : > { %v855_v45 = vadd.f32 %v3513_v40, %v812_v58 }
 0x175   : > { %1728 = vmatpush1.bf16.msra.mxu0 %v2809_v49  ;;  %2643 = vmatpush1.bf16.msra.mxu1 %v2809_v49  ;;  %v2824_v49 = vld [vmem:[%s3979_s7 + $0xc0] ss:$8 sps:$4 sm:$0xff]   ;;  %v814_v8 = vmul.f32 %v3503_v21, %v771_v1  ;;  %v874_v23 = vpack.c.bf16 %v858_v26, %v856_v18 }
 0x176   : > { %1729 = vmatprep.subr.bf16.mxu0 %v2814_v59  ;;  %2628 = vmatprep.subr.bf16.mxu1 %v2814_v59  ;;  %v2829_v59 = vld [vmem:[%s3979_s7 + $0xd4] ss:$8 sps:$4 sm:$0xff]   ;;  %v2830_v21 = vld [vmem:[%s3979_s7 + $0xe0] ss:$8 sps:$4 sm:$0xff]  }
 0x177   : > { %v857_v43 = vadd.f32 %v3513_v40, %v814_v8  ;;  %v2833_v40 = vld [vmem:[%s3979_s7 + $0xf0] ss:$8 sps:$4 sm:$0xff]  }
 0x178   : > { %1152 = vmatmul.mubr.bf16.gmra.mrb[16].mxu0 %v3667_v51  ;;  %1469 = vmatmul.mubr.bf16.gmra.mrb[16].mxu1 %v3667_v51 }
 0x179   : > { %1730 = vmatpush1.bf16.msra.mxu0 %v2812_v44  ;;  %2644 = vmatpush1.bf16.msra.mxu1 %v2812_v44  ;;  %v873_v48 = vpack.c.bf16 %v857_v43, %v855_v45 }
 0x17a   : > { %1161 = vmatprep.mubr.bf16.mxu0 %v3676_v34  ;;  %1478 = vmatprep.mubr.bf16.mxu1 %v3676_v34 }
 0x17b   : > { %1731 = vmatprep.subr.bf16.mxu0 %v2817_v46  ;;  %2629 = vmatprep.subr.bf16.mxu1 %v2817_v46 }
 0x17d   : > { %1732 = vmatpush1.bf16.msra.mxu0 %v2815_v56  ;;  %2645 = vmatpush1.bf16.msra.mxu1 %v2815_v56 }
 0x17e   : > { %1733 = vmatprep.subr.bf16.mxu0 %v2820_v11  ;;  %2630 = vmatprep.subr.bf16.mxu1 %v2820_v11 }
 0x180   : > { %1162 = vmatmul.mubr.bf16.gmra.mrb[20].mxu0 %v3699_v0  ;;  %1479 = vmatmul.mubr.bf16.gmra.mrb[20].mxu1 %v3699_v0 }
 0x181   : > { %1734 = vmatpush1.bf16.msra.mxu0 %v2818_v9  ;;  %2646 = vmatpush1.bf16.msra.mxu1 %v2818_v9 }
 0x182   : > { %1171 = vmatprep.mubr.bf16.mxu0 %v3708_v50  ;;  %1488 = vmatprep.mubr.bf16.mxu1 %v3708_v50 }
 0x183   : > { %1735 = vmatprep.subr.bf16.mxu0 %v2823_v3  ;;  %2631 = vmatprep.subr.bf16.mxu1 %v2823_v3 }
 0x185   : > { %1736 = vmatpush1.bf16.msra.mxu0 %v2821_v6  ;;  %2647 = vmatpush1.bf16.msra.mxu1 %v2821_v6 }
 0x186   : > { %1737 = vmatprep.subr.bf16.mxu0 %v2826_v27  ;;  %2632 = vmatprep.subr.bf16.mxu1 %v2826_v27 }
 0x188   : > { %1172 = vmatmul.mubr.bf16.gmra.mrb[24].mxu0 %v871_v41  ;;  %1489 = vmatmul.mubr.bf16.gmra.mrb[24].mxu1 %v871_v41 }
 0x189   : > { %1738 = vmatpush1.bf16.msra.mxu0 %v2824_v49  ;;  %2648 = vmatpush1.bf16.msra.mxu1 %v2824_v49 }
 0x18a   : > { %1181 = vmatprep.mubr.bf16.mxu0 %v874_v23  ;;  %1498 = vmatprep.mubr.bf16.mxu1 %v874_v23 }
 0x18b   : > { %1739 = vmatprep.subr.bf16.mxu0 %v2829_v59  ;;  %2633 = vmatprep.subr.bf16.mxu1 %v2829_v59 }
 0x18d   : > { %1740 = vmatpush1.bf16.msra.mxu0 %v2827_v13  ;;  %2649 = vmatpush1.bf16.msra.mxu1 %v2827_v13 }
 0x18e   : > { %1741 = vmatprep.subr.bf16.mxu0 %v2832_v22  ;;  %2634 = vmatprep.subr.bf16.mxu1 %v2832_v22 }
 0x190   : > { %1182 = vmatmul.mubr.bf16.gmra.mrb[28].mxu0 %v873_v48  ;;  %1499 = vmatmul.mubr.bf16.gmra.mrb[28].mxu1 %v873_v48 }
 0x191   : > { %1742 = vmatpush1.bf16.msra.mxu0 %v2830_v21  ;;  %2650 = vmatpush1.bf16.msra.mxu1 %v2830_v21 }
 0x192   : > { %1745 = vmatprep.mubr.bf16.mxu0 %v3531_v36  ;;  %1785 = vmatprep.mubr.bf16.mxu1 %v3644_v52  ;;  %v907_v36 = vld [vmem:[%s3976_s4] sm:$0x3] }
 0x193   : > { %1743 = vmatprep.subr.bf16.mxu0 %v2835_v53  ;;  %2635 = vmatprep.subr.bf16.mxu1 %v2835_v53 }
 0x195   : > { %1744 = vmatpush1.bf16.msra.mxu0 %v2833_v40  ;;  %2651 = vmatpush1.bf16.msra.mxu1 %v2833_v40 }
 0x198   : > { %1746 = vmatmul.mubr.bf16.vlgmr.msra.gmra.mrb[32].mxu0 %v3533_v39  ;;  %1786 = vmatmul.mubr.bf16.vlgmr.msra.gmra.mrb[32].mxu1 %v3667_v51  ;;  %v1224_v39 = vld [vmem:[%s3978_s6] sm:$0x3] }
 0x199   : > { %1755 = vmatprep.mubr.bf16.mxu0 %v3549_v12  ;;  %1795 = vmatprep.mubr.bf16.mxu1 %v3676_v34  ;;  %v3772_v12 = vrot.slane %v907_v36, %v3491_v28 }
 0x1a0   : > { %1756 = vmatmul.mubr.bf16.gmra.mrb[36].mxu0 %v3569_v19  ;;  %1796 = vmatmul.mubr.bf16.gmra.mrb[36].mxu1 %v3699_v0  ;;  %v3775_v19 = vrot.slane %v1224_v39, %v3491_v28 }
 0x1a1   : > { %1765 = vmatprep.mubr.bf16.mxu0 %v3580_v62  ;;  %1805 = vmatprep.mubr.bf16.mxu1 %v3708_v50  ;;  %v3778_v62 = vrot.slane %v907_v36, %v3489_v14 }
 0x1a8   : > { %1766 = vmatmul.mubr.bf16.gmra.mrb[40].mxu0 %v3603_v31  ;;  %1806 = vmatmul.mubr.bf16.gmra.mrb[40].mxu1 %v871_v41  ;;  %v3781_v31 = vrot.slane %v1224_v39, %v3489_v14 }
 0x1a9   : > { %1775 = vmatprep.mubr.bf16.mxu0 %v3612_v2  ;;  %1815 = vmatprep.mubr.bf16.mxu1 %v874_v23 }
 0x1b0   : > { %1776 = vmatmul.mubr.bf16.gmra.mrb[44].mxu0 %v3635_v37  ;;  %1816 = vmatmul.mubr.bf16.gmra.mrb[44].mxu1 %v873_v48 }
 0x22b   : > { %v1113_v2 = vpop.f32.mrb[0].mxu0  ;;  %v1430_v37 = vpop.f32.mrb[0].mxu1 }
 0x22c   : > { %v1114_v52 = vadd.f32 %v1113_v2, %v3772_v12  ;;  %v1431_v57 = vadd.f32 %v1430_v37, %v3775_v19  ;;  %v1115_v44 = vpop.f32.mrb[1].mxu0  ;;  %v1432_v32 = vpop.f32.mrb[1].mxu1 }
 0x22d   : > { %v1116_v51 = vadd.f32 %v1115_v44, %v3778_v62  ;;  %v1433_v15 = vadd.f32 %v1432_v32, %v3781_v31  ;;  %v1117_v54 = vpop.f32.mrb[2].mxu0  ;;  %v1434_v46 = vpop.f32.mrb[2].mxu1 }
 0x22e   : > { %v1826_v34 = vmul.f32 0.088388346, %v1114_v52  ;;  %v1118_v7 = vadd.f32 %v1117_v54, %v3772_v12  ;;  %v1435_v30 = vadd.f32 %v1434_v46, %v3775_v19  ;;  %v1119_v29 = vpop.f32.mrb[3].mxu0  ;;  %v1436_v56 = vpop.f32.mrb[3].mxu1 }
 0x22f   : > { %v1827_v4 = vmul.f32 0.088388346, %v1116_v51  ;;  %v2588_v11 = vpack.c.bf16 %v1433_v15, %v1431_v57  ;;  %v1120_v63 = vadd.f32 %v1119_v29, %v3778_v62  ;;  %v1437_v10 = vadd.f32 %v1436_v56, %v3781_v31 }
 0x230   : > { %v1828_v61 = vmul.f32 0.088388346, %v1118_v7 }
 0x231   : > { %v2572_v35 = vpack.c.bf16 %v1827_v4, %v1826_v34  ;;  %2066 = vst [vmem:[%s3794_s27] sm:$0xff] %v2588_v11  ;;  %v1829_v47 = vmul.f32 0.088388346, %v1120_v63  ;;  %v2589_v16 = vpack.c.bf16 %v1437_v10, %v1435_v30 }
 0x233   : > { %1954 = vst [vmem:[%s3804_s29] sm:$0xff] %v2572_v35  ;;  %v2573_v33 = vpack.c.bf16 %v1829_v47, %v1828_v61  ;;  %2067 = vst [vmem:[%s3794_s27 + $0x8] sm:$0xff] %v2589_v16  ;;  %v1123_v9 = vpop.f32.mrb[4].mxu0  ;;  %v1440_v20 = vpop.f32.mrb[4].mxu1 }
 0x234   : > { %v1124_v0 = vadd.f32 %v1123_v9, %v3772_v12  ;;  %v1441_v60 = vadd.f32 %v1440_v20, %v3775_v19  ;;  %v1125_v38 = vpop.f32.mrb[5].mxu0  ;;  %v1442_v3 = vpop.f32.mrb[5].mxu1 }
 0x235   : > { %1955 = vst [vmem:[%s3804_s29 + $0x8] sm:$0xff] %v2573_v33  ;;  %v1126_v50 = vadd.f32 %v1125_v38, %v3778_v62  ;;  %v1443_v24 = vadd.f32 %v1442_v3, %v3781_v31  ;;  %v1127_v55 = vpop.f32.mrb[6].mxu0  ;;  %v1444_v6 = vpop.f32.mrb[6].mxu1 }
 0x236   : > { %v1830_v27 = vmul.f32 0.088388346, %v1124_v0  ;;  %v1128_v5 = vadd.f32 %v1127_v55, %v3772_v12  ;;  %v1445_v25 = vadd.f32 %v1444_v6, %v3775_v19  ;;  %v1129_v1 = vpop.f32.mrb[7].mxu0  ;;  %v1446_v17 = vpop.f32.mrb[7].mxu1 }
 0x237   : > { %v1831_v26 = vmul.f32 0.088388346, %v1126_v50  ;;  %v2590_v42 = vpack.c.bf16 %v1443_v24, %v1441_v60  ;;  %v1130_v49 = vadd.f32 %v1129_v1, %v3778_v62  ;;  %v1447_v41 = vadd.f32 %v1446_v17, %v3781_v31 }
 0x238   : > { %v1832_v18 = vmul.f32 0.088388346, %v1128_v5 }
 0x239   : > { %v2574_v8 = vpack.c.bf16 %v1831_v26, %v1830_v27  ;;  %2068 = vst [vmem:[%s3794_s27 + $0x10] sm:$0xff] %v2590_v42  ;;  %v1833_v59 = vmul.f32 0.088388346, %v1130_v49  ;;  %v2591_v23 = vpack.c.bf16 %v1447_v41, %v1445_v25 }
 0x23b   : > { %1956 = vst [vmem:[%s3804_s29 + $0x10] sm:$0xff] %v2574_v8  ;;  %v2575_v58 = vpack.c.bf16 %v1833_v59, %v1832_v18  ;;  %2069 = vst [vmem:[%s3794_s27 + $0x18] sm:$0xff] %v2591_v23  ;;  %v1133_v13 = vpop.f32.mrb[8].mxu0  ;;  %v1450_v22 = vpop.f32.mrb[8].mxu1 }
 0x23c   : > { %v1134_v43 = vadd.f32 %v1133_v13, %v3772_v12  ;;  %v1451_v45 = vadd.f32 %v1450_v22, %v3775_v19  ;;  %v1135_v21 = vpop.f32.mrb[9].mxu0  ;;  %v1452_v48 = vpop.f32.mrb[9].mxu1 }
 0x23d   : > { %1957 = vst [vmem:[%s3804_s29 + $0x18] sm:$0xff] %v2575_v58  ;;  %v1136_v53 = vadd.f32 %v1135_v21, %v3778_v62  ;;  %v1453_v40 = vadd.f32 %v1452_v48, %v3781_v31  ;;  %v1137_v36 = vpop.f32.mrb[10].mxu0  ;;  %v1454_v39 = vpop.f32.mrb[10].mxu1 }
 0x23e   : > { %v1834_v2 = vmul.f32 0.088388346, %v1134_v43  ;;  %v1138_v37 = vadd.f32 %v1137_v36, %v3772_v12  ;;  %v1455_v52 = vadd.f32 %v1454_v39, %v3775_v19  ;;  %v1139_v57 = vpop.f32.mrb[11].mxu0  ;;  %v1456_v44 = vpop.f32.mrb[11].mxu1 }
 0x23f   : > { %v1835_v32 = vmul.f32 0.088388346, %v1136_v53  ;;  %v2592_v51 = vpack.c.bf16 %v1453_v40, %v1451_v45  ;;  %v1140_v15 = vadd.f32 %v1139_v57, %v3778_v62  ;;  %v1457_v54 = vadd.f32 %v1456_v44, %v3781_v31 }
 0x240   : > { %v1836_v46 = vmul.f32 0.088388346, %v1138_v37 }
 0x241   : > { %v2576_v34 = vpack.c.bf16 %v1835_v32, %v1834_v2  ;;  %2070 = vst [vmem:[%s3794_s27 + $0x20] sm:$0xff] %v2592_v51  ;;  %v1837_v7 = vmul.f32 0.088388346, %v1140_v15  ;;  %v2593_v30 = vpack.c.bf16 %v1457_v54, %v1455_v52 }
 0x243   : > { %1958 = vst [vmem:[%s3804_s29 + $0x20] sm:$0xff] %v2576_v34  ;;  %v2577_v29 = vpack.c.bf16 %v1837_v7, %v1836_v46  ;;  %2071 = vst [vmem:[%s3794_s27 + $0x28] sm:$0xff] %v2593_v30  ;;  %v1143_v56 = vpop.f32.mrb[12].mxu0  ;;  %v1460_v4 = vpop.f32.mrb[12].mxu1 }
 0x244   : > { %v1144_v11 = vadd.f32 %v1143_v56, %v3772_v12  ;;  %v1461_v63 = vadd.f32 %v1460_v4, %v3775_v19  ;;  %v1145_v10 = vpop.f32.mrb[13].mxu0  ;;  %v1462_v61 = vpop.f32.mrb[13].mxu1 }
 0x245   : > { %1959 = vst [vmem:[%s3804_s29 + $0x28] sm:$0xff] %v2577_v29  ;;  %v1146_v35 = vadd.f32 %v1145_v10, %v3778_v62  ;;  %v1463_v47 = vadd.f32 %v1462_v61, %v3781_v31  ;;  %v1147_v16 = vpop.f32.mrb[14].mxu0  ;;  %v1464_v33 = vpop.f32.mrb[14].mxu1 }
 0x246   : > { %v1838_v9 = vmul.f32 0.088388346, %v1144_v11  ;;  %v1148_v20 = vadd.f32 %v1147_v16, %v3772_v12  ;;  %v1465_v0 = vadd.f32 %v1464_v33, %v3775_v19  ;;  %v1149_v60 = vpop.f32.mrb[15].mxu0  ;;  %v1466_v38 = vpop.f32.mrb[15].mxu1 }
 0x247   : > { %v1839_v3 = vmul.f32 0.088388346, %v1146_v35  ;;  %v2594_v50 = vpack.c.bf16 %v1463_v47, %v1461_v63  ;;  %v1150_v24 = vadd.f32 %v1149_v60, %v3778_v62  ;;  %v1467_v55 = vadd.f32 %v1466_v38, %v3781_v31 }
 0x248   : > { %v1840_v6 = vmul.f32 0.088388346, %v1148_v20 }
 0x249   : > { %v2578_v27 = vpack.c.bf16 %v1839_v3, %v1838_v9  ;;  %2072 = vst [vmem:[%s3794_s27 + $0x30] sm:$0xff] %v2594_v50  ;;  %v1841_v5 = vmul.f32 0.088388346, %v1150_v24  ;;  %v2595_v25 = vpack.c.bf16 %v1467_v55, %v1465_v0 }
 0x24b   : > { %1960 = vst [vmem:[%s3804_s29 + $0x30] sm:$0xff] %v2578_v27  ;;  %v2579_v1 = vpack.c.bf16 %v1841_v5, %v1840_v6  ;;  %2073 = vst [vmem:[%s3794_s27 + $0x38] sm:$0xff] %v2595_v25  ;;  %v1153_v17 = vpop.f32.mrb[16].mxu0  ;;  %v1470_v26 = vpop.f32.mrb[16].mxu1 }
 0x24c   : > { %v1154_v42 = vadd.f32 %v1153_v17, %v3772_v12  ;;  %v1471_v49 = vadd.f32 %v1470_v26, %v3775_v19  ;;  %v1155_v41 = vpop.f32.mrb[17].mxu0  ;;  %v1472_v18 = vpop.f32.mrb[17].mxu1 }
 0x24d   : > { %1961 = vst [vmem:[%s3804_s29 + $0x38] sm:$0xff] %v2579_v1  ;;  %v1156_v8 = vadd.f32 %v1155_v41, %v3778_v62  ;;  %v1473_v59 = vadd.f32 %v1472_v18, %v3781_v31  ;;  %v1157_v23 = vpop.f32.mrb[18].mxu0  ;;  %v1474_v58 = vpop.f32.mrb[18].mxu1 }
 0x24e   : > { %v1842_v13 = vmul.f32 0.088388346, %v1154_v42  ;;  %v1158_v22 = vadd.f32 %v1157_v23, %v3772_v12  ;;  %v1475_v43 = vadd.f32 %v1474_v58, %v3775_v19  ;;  %v1159_v45 = vpop.f32.mrb[19].mxu0  ;;  %v1476_v21 = vpop.f32.mrb[19].mxu1 }
 0x24f   : > { %v1843_v48 = vmul.f32 0.088388346, %v1156_v8  ;;  %v2596_v53 = vpack.c.bf16 %v1473_v59, %v1471_v49  ;;  %v1160_v40 = vadd.f32 %v1159_v45, %v3778_v62  ;;  %v1477_v36 = vadd.f32 %v1476_v21, %v3781_v31 }
 0x250   : > { %v1844_v39 = vmul.f32 0.088388346, %v1158_v22 }
 0x251   : > { %v2580_v2 = vpack.c.bf16 %v1843_v48, %v1842_v13  ;;  %2074 = vst [vmem:[%s3794_s27 + $0x40] sm:$0xff] %v2596_v53  ;;  %v1845_v37 = vmul.f32 0.088388346, %v1160_v40  ;;  %v2597_v52 = vpack.c.bf16 %v1477_v36, %v1475_v43 }
 0x253   : > { %1962 = vst [vmem:[%s3804_s29 + $0x40] sm:$0xff] %v2580_v2  ;;  %v2581_v57 = vpack.c.bf16 %v1845_v37, %v1844_v39  ;;  %2075 = vst [vmem:[%s3794_s27 + $0x48] sm:$0xff] %v2597_v52  ;;  %v1163_v44 = vpop.f32.mrb[20].mxu0  ;;  %v1480_v32 = vpop.f32.mrb[20].mxu1 }
 0x254   : > { %v1164_v51 = vadd.f32 %v1163_v44, %v3772_v12  ;;  %v1481_v15 = vadd.f32 %v1480_v32, %v3775_v19  ;;  %v1165_v54 = vpop.f32.mrb[21].mxu0  ;;  %v1482_v46 = vpop.f32.mrb[21].mxu1  ;;  %v1541_v44 = vld [vmem:[%s3980_s8] sm:$0x3] }
 0x255   : > { %1963 = vst [vmem:[%s3804_s29 + $0x48] sm:$0xff] %v2581_v57  ;;  %v1166_v34 = vadd.f32 %v1165_v54, %v3778_v62  ;;  %v1483_v7 = vadd.f32 %v1482_v46, %v3781_v31  ;;  %v1167_v30 = vpop.f32.mrb[22].mxu0  ;;  %v1484_v29 = vpop.f32.mrb[22].mxu1 }
 0x256   : > { %v1846_v56 = vmul.f32 0.088388346, %v1164_v51  ;;  %v1168_v4 = vadd.f32 %v1167_v30, %v3772_v12  ;;  %v1485_v11 = vadd.f32 %v1484_v29, %v3775_v19  ;;  %v1169_v63 = vpop.f32.mrb[23].mxu0  ;;  %v1486_v10 = vpop.f32.mrb[23].mxu1 }
 0x257   : > { %v1847_v61 = vmul.f32 0.088388346, %v1166_v34  ;;  %v2598_v35 = vpack.c.bf16 %v1483_v7, %v1481_v15  ;;  %v1170_v47 = vadd.f32 %v1169_v63, %v3778_v62  ;;  %v1487_v16 = vadd.f32 %v1486_v10, %v3781_v31 }
 0x258   : > { %v1848_v33 = vmul.f32 0.088388346, %v1168_v4  ;;  %v3894_v4 = vrot.slane %v1541_v44, %v3491_v28 }
 0x259   : > { %v2582_v9 = vpack.c.bf16 %v1847_v61, %v1846_v56  ;;  %2076 = vst [vmem:[%s3794_s27 + $0x50] sm:$0xff] %v2598_v35  ;;  %v1849_v20 = vmul.f32 0.088388346, %v1170_v47  ;;  %v2599_v0 = vpack.c.bf16 %v1487_v16, %v1485_v11 }
 0x25b   : > { %1964 = vst [vmem:[%s3804_s29 + $0x50] sm:$0xff] %v2582_v9  ;;  %v2583_v60 = vpack.c.bf16 %v1849_v20, %v1848_v33  ;;  %2077 = vst [vmem:[%s3794_s27 + $0x58] sm:$0xff] %v2599_v0  ;;  %v1173_v38 = vpop.f32.mrb[24].mxu0  ;;  %v1490_v3 = vpop.f32.mrb[24].mxu1 }
 0x25c   : > { %v1174_v50 = vadd.f32 %v1173_v38, %v3772_v12  ;;  %v1491_v24 = vadd.f32 %v1490_v3, %v3775_v19  ;;  %v1175_v55 = vpop.f32.mrb[25].mxu0  ;;  %v1492_v6 = vpop.f32.mrb[25].mxu1 }
 0x25d   : > { %1965 = vst [vmem:[%s3804_s29 + $0x58] sm:$0xff] %v2583_v60  ;;  %v1176_v27 = vadd.f32 %v1175_v55, %v3778_v62  ;;  %v1493_v5 = vadd.f32 %v1492_v6, %v3781_v31  ;;  %v1177_v25 = vpop.f32.mrb[26].mxu0  ;;  %v1494_v1 = vpop.f32.mrb[26].mxu1 }
 0x25e   : > { %v1850_v17 = vmul.f32 0.088388346, %v1174_v50  ;;  %v1178_v26 = vadd.f32 %v1177_v25, %v3772_v12  ;;  %v1495_v42 = vadd.f32 %v1494_v1, %v3775_v19  ;;  %v1179_v49 = vpop.f32.mrb[27].mxu0  ;;  %v1496_v41 = vpop.f32.mrb[27].mxu1 }
 0x25f   : > { %v1851_v18 = vmul.f32 0.088388346, %v1176_v27  ;;  %v2600_v8 = vpack.c.bf16 %v1493_v5, %v1491_v24  ;;  %v1180_v59 = vadd.f32 %v1179_v49, %v3778_v62  ;;  %v1497_v23 = vadd.f32 %v1496_v41, %v3781_v31 }
 0x260   : > { %v1852_v58 = vmul.f32 0.088388346, %v1178_v26 }
 0x261   : > { %v2584_v13 = vpack.c.bf16 %v1851_v18, %v1850_v17  ;;  %2078 = vst [vmem:[%s3794_s27 + $0x60] sm:$0xff] %v2600_v8  ;;  %v1853_v22 = vmul.f32 0.088388346, %v1180_v59  ;;  %v2601_v43 = vpack.c.bf16 %v1497_v23, %v1495_v42 }
 0x263   : > { %1966 = vst [vmem:[%s3804_s29 + $0x60] sm:$0xff] %v2584_v13  ;;  %v2585_v45 = vpack.c.bf16 %v1853_v22, %v1852_v58  ;;  %2079 = vst [vmem:[%s3794_s27 + $0x68] sm:$0xff] %v2601_v43  ;;  %v1183_v21 = vpop.f32.mrb[28].mxu0  ;;  %v1500_v48 = vpop.f32.mrb[28].mxu1 }
 0x264   : > { %v1184_v53 = vadd.f32 %v1183_v21, %v3772_v12  ;;  %v1501_v40 = vadd.f32 %v1500_v48, %v3775_v19  ;;  %v1185_v36 = vpop.f32.mrb[29].mxu0  ;;  %v1502_v39 = vpop.f32.mrb[29].mxu1 }
 0x265   : > { %1967 = vst [vmem:[%s3804_s29 + $0x68] sm:$0xff] %v2585_v45  ;;  %v1186_v2 = vadd.f32 %v1185_v36, %v3778_v62  ;;  %v1503_v37 = vadd.f32 %v1502_v39, %v3781_v31  ;;  %v1187_v52 = vpop.f32.mrb[30].mxu0  ;;  %v1504_v57 = vpop.f32.mrb[30].mxu1 }
 0x266   : > { %v1854_v32 = vmul.f32 0.088388346, %v1184_v53  ;;  %v1188_v51 = vadd.f32 %v1187_v52, %v3772_v12  ;;  %v1505_v15 = vadd.f32 %v1504_v57, %v3775_v19  ;;  %v1189_v54 = vpop.f32.mrb[31].mxu0  ;;  %v1506_v46 = vpop.f32.mrb[31].mxu1  ;;  %v3898_v19 = vrot.slane %v1541_v44, %v3489_v14 }
 0x267   : > { %v1855_v34 = vmul.f32 0.088388346, %v1186_v2  ;;  %v2602_v7 = vpack.c.bf16 %v1503_v37, %v1501_v40  ;;  %v1190_v30 = vadd.f32 %v1189_v54, %v3778_v62  ;;  %v1507_v29 = vadd.f32 %v1506_v46, %v3781_v31 }
 0x268   : > { %v1856_v56 = vmul.f32 0.088388346, %v1188_v51 }
 0x269   : > { %v2586_v11 = vpack.c.bf16 %v1855_v34, %v1854_v32  ;;  %2080 = vst [vmem:[%s3794_s27 + $0x70] sm:$0xff] %v2602_v7  ;;  %v1857_v63 = vmul.f32 0.088388346, %v1190_v30  ;;  %v2603_v12 = vpack.c.bf16 %v1507_v29, %v1505_v15 }
 0x26b   : > { %1968 = vst [vmem:[%s3804_s29 + $0x70] sm:$0xff] %v2586_v11  ;;  %v2587_v10 = vpack.c.bf16 %v1857_v63, %v1856_v56  ;;  %2081 = vst [vmem:[%s3794_s27 + $0x78] sm:$0xff] %v2603_v12  ;;  %v1747_v61 = vpop.f32.mrb[32].mxu0  ;;  %v1787_v62 = vpop.f32.mrb[32].mxu1 }
 0x26c   : > { %v1748_v31 = vadd.f32 %v1747_v61, %v3894_v4  ;;  %v1788_v35 = vadd.f32 %v1787_v62, %v3894_v4  ;;  %v1749_v47 = vpop.f32.mrb[33].mxu0  ;;  %v1789_v28 = vpop.f32.mrb[33].mxu1 }
 0x26d   : > { %1969 = vst [vmem:[%s3804_s29 + $0x78] sm:$0xff] %v2587_v10  ;;  %v1750_v16 = vadd.f32 %v1749_v47, %v3898_v19  ;;  %v1790_v33 = vadd.f32 %v1789_v28, %v3898_v19  ;;  %v1751_v9 = vpop.f32.mrb[34].mxu0  ;;  %v1791_v20 = vpop.f32.mrb[34].mxu1 }
 0x26e   : > { %v1752_v14 = vadd.f32 %v1751_v9, %v3894_v4  ;;  %v1792_v0 = vadd.f32 %v1791_v20, %v3894_v4  ;;  %v1753_v60 = vpop.f32.mrb[35].mxu0  ;;  %v1793_v38 = vpop.f32.mrb[35].mxu1 }
 0x26f   : > { %v2604_v3 = vpack.c.bf16 %v1750_v16, %v1748_v31  ;;  %v2612_v50 = vpack.c.bf16 %v1790_v33, %v1788_v35  ;;  %v1754_v24 = vadd.f32 %v1753_v60, %v3898_v19  ;;  %v1794_v55 = vadd.f32 %v1793_v38, %v3898_v19 }
 0x271   : > { %2178 = vst [vmem:[%s3911_s15] sm:$0xff] %v2604_v3  ;;  %2186 = vst [vmem:[%s3911_s15 + $0x40] sm:$0xff] %v2612_v50  ;;  %v2605_v6 = vpack.c.bf16 %v1754_v24, %v1752_v14  ;;  %v2613_v27 = vpack.c.bf16 %v1794_v55, %v1792_v0 }
 0x273   : > { %2179 = vst [vmem:[%s3911_s15 + $0x8] sm:$0xff] %v2605_v6  ;;  %2187 = vst [vmem:[%s3911_s15 + $0x48] sm:$0xff] %v2613_v27  ;;  %v1757_v5 = vpop.f32.mrb[36].mxu0  ;;  %v1797_v25 = vpop.f32.mrb[36].mxu1 }
 0x274   : > { %v1758_v1 = vadd.f32 %v1757_v5, %v3894_v4  ;;  %v1798_v17 = vadd.f32 %v1797_v25, %v3894_v4  ;;  %v1759_v26 = vpop.f32.mrb[37].mxu0  ;;  %v1799_v42 = vpop.f32.mrb[37].mxu1 }
 0x275   : > { %v1760_v49 = vadd.f32 %v1759_v26, %v3898_v19  ;;  %v1800_v41 = vadd.f32 %v1799_v42, %v3898_v19  ;;  %v1761_v18 = vpop.f32.mrb[38].mxu0  ;;  %v1801_v8 = vpop.f32.mrb[38].mxu1 }
 0x276   : > { %v1762_v59 = vadd.f32 %v1761_v18, %v3894_v4  ;;  %v1802_v23 = vadd.f32 %v1801_v8, %v3894_v4  ;;  %v1763_v58 = vpop.f32.mrb[39].mxu0  ;;  %v1803_v13 = vpop.f32.mrb[39].mxu1 }
 0x277   : > { %v2606_v22 = vpack.c.bf16 %v1760_v49, %v1758_v1  ;;  %v2614_v43 = vpack.c.bf16 %v1800_v41, %v1798_v17  ;;  %v1764_v45 = vadd.f32 %v1763_v58, %v3898_v19  ;;  %v1804_v21 = vadd.f32 %v1803_v13, %v3898_v19 }
 0x279   : > { %2180 = vst [vmem:[%s3911_s15 + $0x10] sm:$0xff] %v2606_v22  ;;  %2188 = vst [vmem:[%s3911_s15 + $0x50] sm:$0xff] %v2614_v43  ;;  %v2607_v48 = vpack.c.bf16 %v1764_v45, %v1762_v59  ;;  %v2615_v53 = vpack.c.bf16 %v1804_v21, %v1802_v23 }
 0x27b   : > { %2181 = vst [vmem:[%s3911_s15 + $0x18] sm:$0xff] %v2607_v48  ;;  %2189 = vst [vmem:[%s3911_s15 + $0x58] sm:$0xff] %v2615_v53  ;;  %v1767_v40 = vpop.f32.mrb[40].mxu0  ;;  %v1807_v36 = vpop.f32.mrb[40].mxu1 }
 0x27c   : > { %v1768_v39 = vadd.f32 %v1767_v40, %v3894_v4  ;;  %v1808_v2 = vadd.f32 %v1807_v36, %v3894_v4  ;;  %v1769_v37 = vpop.f32.mrb[41].mxu0  ;;  %v1809_v52 = vpop.f32.mrb[41].mxu1 }
 0x27d   : > { %v1770_v57 = vadd.f32 %v1769_v37, %v3898_v19  ;;  %v1810_v44 = vadd.f32 %v1809_v52, %v3898_v19  ;;  %v1771_v32 = vpop.f32.mrb[42].mxu0  ;;  %v1811_v51 = vpop.f32.mrb[42].mxu1 }
 0x27e   : > { %v1772_v15 = vadd.f32 %v1771_v32, %v3894_v4  ;;  %v1812_v54 = vadd.f32 %v1811_v51, %v3894_v4  ;;  %v1773_v46 = vpop.f32.mrb[43].mxu0  ;;  %v1813_v34 = vpop.f32.mrb[43].mxu1 }
 0x27f   : > { %v2608_v7 = vpack.c.bf16 %v1770_v57, %v1768_v39  ;;  %v2616_v30 = vpack.c.bf16 %v1810_v44, %v1808_v2  ;;  %v1774_v29 = vadd.f32 %v1773_v46, %v3898_v19  ;;  %v1814_v56 = vadd.f32 %v1813_v34, %v3898_v19 }
 0x281   : > { %2182 = vst [vmem:[%s3911_s15 + $0x20] sm:$0xff] %v2608_v7  ;;  %2190 = vst [vmem:[%s3911_s15 + $0x60] sm:$0xff] %v2616_v30  ;;  %v2609_v11 = vpack.c.bf16 %v1774_v29, %v1772_v15  ;;  %v2617_v63 = vpack.c.bf16 %v1814_v56, %v1812_v54 }
 0x283   : > { %2183 = vst [vmem:[%s3911_s15 + $0x28] sm:$0xff] %v2609_v11  ;;  %2191 = vst [vmem:[%s3911_s15 + $0x68] sm:$0xff] %v2617_v63  ;;  %v1777_v12 = vpop.f32.mrb[44].mxu0  ;;  %v1817_v10 = vpop.f32.mrb[44].mxu1 }
 0x284   : > { %v1778_v61 = vadd.f32 %v1777_v12, %v3894_v4  ;;  %v1818_v62 = vadd.f32 %v1817_v10, %v3894_v4  ;;  %v1779_v31 = vpop.f32.mrb[45].mxu0  ;;  %v1819_v35 = vpop.f32.mrb[45].mxu1 }
 0x285   : > { %v1780_v47 = vadd.f32 %v1779_v31, %v3898_v19  ;;  %v1820_v28 = vadd.f32 %v1819_v35, %v3898_v19  ;;  %v1781_v16 = vpop.f32.mrb[46].mxu0  ;;  %v1821_v33 = vpop.f32.mrb[46].mxu1 }
 0x286   : > { %v1782_v9 = vadd.f32 %v1781_v16, %v3894_v4  ;;  %v1822_v20 = vadd.f32 %v1821_v33, %v3894_v4  ;;  %v1783_v14 = vpop.f32.mrb[47].mxu0  ;;  %v1823_v0 = vpop.f32.mrb[47].mxu1 }
 0x287   : > { %v2610_v60 = vpack.c.bf16 %v1780_v47, %v1778_v61  ;;  %v2618_v38 = vpack.c.bf16 %v1820_v28, %v1818_v62  ;;  %v1784_v3 = vadd.f32 %v1783_v14, %v3898_v19  ;;  %v1824_v50 = vadd.f32 %v1823_v0, %v3898_v19 }
 0x289   : > { %2184 = vst [vmem:[%s3911_s15 + $0x30] sm:$0xff] %v2610_v60  ;;  %2192 = vst [vmem:[%s3911_s15 + $0x70] sm:$0xff] %v2618_v38  ;;  %v2611_v24 = vpack.c.bf16 %v1784_v3, %v1782_v9  ;;  %v2619_v55 = vpack.c.bf16 %v1824_v50, %v1822_v20 }
 0x28b   : > { %2185 = vst [vmem:[%s3911_s15 + $0x38] sm:$0xff] %v2611_v24  ;;  %2193 = vst [vmem:[%s3911_s15 + $0x78] sm:$0xff] %v2619_v55 }
 0x28c PF: > { %s22_s21 = sadd.s32 1, %s2906_s21   ;;  %s3984_s17 = smov %s2898_s19 }
 0x28d   : > { %p19_p7 = scmp.ge.s32.totalorder %s22_s21, 6   ;;  %s3985_s18 = smov %s2902_s20 }
 0x28e   : > { %s3986_s19 = smov %s3989_s22  ;;  %s3987_s20 = smov %s3993_s23 }
 0x28f   :  { %21 = sbr.rel (!%p19_p7) target bundleno = 3 (0x3), region = 110 }

// kernel: transformer_block.5
= control target key start
LH: loop header
LB: loop body
LE: loop exit
PB: predicated region body
PF: predicated region fallthrough
CT: control target
= control target key end

     0   :  { %s6329_s0 = inlined_call_operand.vmem [shape: bf16[2,256,256], index: 0, kind: input, shape index: {}]   ;;  %s6330_s1 = inlined_call_operand.vmem [shape: f32[2,256,256], index: 1, kind: input, shape index: {}]   ;;  %s6331_s2 = inlined_call_operand.vmem [shape: bf16[256,256], index: 2, kind: input, shape index: {}]   ;;  %s6332_s3 = inlined_call_operand.vmem [shape: f32[1,256], index: 3, kind: input, shape index: {}]   ;;  %s6333_s4 = inlined_call_operand.vmem [shape: f32[1,256], index: 4, kind: input, shape index: {}]   ;;  %s6334_s5 = inlined_call_operand.vmem [shape: f32[1,256], index: 5, kind: input, shape index: {}]   ;;  %s6335_s6 = inlined_call_operand.vmem [shape: f32[1,256], index: 6, kind: input, shape index: {}]   ;;  %s6336_s7 = inlined_call_operand.vmem [shape: f32[1,256], index: 7, kind: input, shape index: {}]   ;;  %s6337_s8 = inlined_call_operand.vmem [shape: bf16[256,1024], index: 8, kind: input, shape index: {}]   ;;  %s6338_s9 = inlined_call_operand.vmem [shape: f32[1,1024], index: 9, kind: input, shape index: {}]   ;;  %s6339_s10 = inlined_call_operand.vmem [shape: bf16[1024,256], index: 10, kind: input, shape index: {}]   ;;  %s6340_s11 = inlined_call_operand.vmem [shape: f32[1,256], index: 11, kind: input, shape index: {}]   ;;  %s6341_s12 = inlined_call_operand.hbm [shape: f32[2,256,256], index: 12, kind: output, shape index: {}]  }
   0x1   :  { %6353 = sst [smem:[#allocation20_spill]] %s6333_s4 }
   0x2   :  { %6354 = sst [smem:[#allocation21_spill]] %s6334_s5 }
   0x3   :  { %6355 = sst [smem:[#allocation22_spill]] %s6335_s6 }
   0x4   :  { %6356 = sst [smem:[#allocation23_spill]] %s6336_s7 }
   0x5   :  { %6357 = sst [smem:[#allocation24_spill]] %s6337_s8 }
   0x6   :  { %6358 = sst [smem:[#allocation25_spill]] %s6340_s11 }
   0x7   :  { %6359 = sst [smem:[#allocation26_spill]] %s6341_s12 }
   0x8   :  { %17 = vsyncpa [#allocation7], 0 }
   0x9   :  { %19 = vsyncpa [#allocation7 + $0x1], 0  ;;  %s4668_s21 = smov 0   ;;  %s4670_s22 = smov 0  }
   0xa   :  { %s4672_s23 = smov 0   ;;  %s4674_s24 = smov 0  }
   0xb   :  { %s4676_s25 = smov 0   ;;  %s4678_s26 = smov 0  }
   0xc   :  { %s4680_s27 = smov 0   ;;  %s4682_s28 = smov 0  }
   0xd   :  { %s4684_s29 = smov 0   ;;  %s4686_s30 = smov 0  }
   0xe   :  { %s4688_s13 = smov 0   ;;  %s4690_s14 = smov 0  }
   0xf LB: > { %6360 = sst [smem:[#allocation9_spill]] %s4561_s23  ;;  %s3763_s15 = sadd.s32 4294967295, %s4597_s14   ;;  %s4597_s14 = sphi %s4690_s14, %s25_s14   ;;  %s4593_s13 = sphi %s4688_s13, %s6393_s13   ;;  %s4589_s30 = sphi %s4686_s30, %s6392_s30   ;;  %s4585_s29 = sphi %s4684_s29, %s6391_s29   ;;  %s4581_s28 = sphi %s4682_s28, %s6390_s28   ;;  %s4577_s27 = sphi %s4680_s27, %s6389_s27   ;;  %s4573_s26 = sphi %s4678_s26, %s6388_s26   ;;  %s4569_s25 = sphi %s4676_s25, %s6387_s25   ;;  %s4565_s24 = sphi %s4674_s24, %s6386_s24   ;;  %s4561_s23 = sphi %s4672_s23, %s6396_s23   ;;  %s4557_s22 = sphi %s4670_s22, %s6395_s22   ;;  %s4553_s21 = sphi %s4668_s21, %s6394_s21  }
  0x10   : > { %6361 = sst [smem:[#allocation10_spill]] %s4569_s25  ;;  %s3764_s16 = sadd.s32 4294967294, %s4597_s14  }
  0x11   : > { %6362 = sst [smem:[#allocation11_spill]] %s4585_s29  ;;  %s37_s17 = sadd.s32 1, %s4585_s29 }
  0x12   : > { %6363 = sst [smem:[#allocation12_spill]] %s4589_s30  ;;  %p38_p0 = scmp.ge.s32.totalorder %s37_s17, 2 }
  0x13   : > { %6364 = sst [smem:[#allocation13_spill]] %s4593_s13  ;;  %s40_s18 = sadd.s32 1, %s4589_s30 }
  0x14   : > { %s44_s19 = sadd.s32 1, %s4593_s13  ;;  %p240_p1 = scmp.ne.s32.totalorder %s4569_s25, %s4565_s24 }
  0x15   : > { %s6398_s17 = smov (%p38_p0, %s37_s17), 0  ;;  %s6400_s18 = smov (!%p38_p0, %s40_s18), %s4589_s30 }
  0x16   : > { %6365 = sst [smem:[#allocation14_spill]] %s6398_s17  ;;  %s230_s20 = ssub.s32 %s4585_s29, %s6398_s17 }
  0x17   : > { %p241_p2 = scmp.eq.s32.totalorder %s4597_s14, 0  ;;  %p42_p3 = scmp.ge.s32.totalorder %s6400_s18, 2 }
  0x18   : > { %p231_p4 = scmp.eq.s32.totalorder %s230_s20, 0  ;;  %s233_s12 = sadd.s32 1, %s4569_s25 }
  0x19   : > { %p4742_p5 = por %p241_p2, %p240_p1  ;;  %s6402_s18 = smov (%p42_p3, %s6400_s18), 0 }
  0x1a   : > { %6367 = sst [smem:[#allocation15_spill]] %s6402_s18  ;;  %s6404_s19 = smov (!%p42_p3, %s44_s19), %s4593_s13 }
  0x1b   : > { %s4750_s7 = scalar_select %p231_p4, %s4569_s25, %s233_s12  }
  0x1c   : > { %p46_p6 = scmp.ge.s32.totalorder %s6404_s19, 2  ;;  %s330_s6 = ssub.s32 %s4589_s30, %s6402_s18 }
  0x1d   : > { %6368 = sst [smem:[#allocation16_spill]] %s4750_s7  ;;  %p344_p7 = scmp.ne.s32.totalorder %s4561_s23, %s4557_s22 }
  0x1e   : > { %p345_p8 = scmp.eq.s32.totalorder %s3763_s15, 7  ;;  %s6406_s19 = smov (%p46_p6, %s6404_s19), 0 }
  0x1f   : > { %6369 = sst [smem:[#allocation17_spill]] %s6406_s19  ;;  %p350_p10 = scmp.ne.s32.totalorder %s4557_s22, %s4553_s21 }
  0x20   : > { %p4758_p9 = por %p345_p8, %p344_p7  ;;  %s329_s17 = ssub.s32 %s4593_s13, %s6406_s19 }
  0x21   : > { %p351_p11 = scmp.eq.s32.totalorder %s3764_s16, 7  ;;  %s331_s5 = sor.u32 %s330_s6, %s329_s17 }
  0x22   : > { %s334_s4 = sadd.s32 1, %s4561_s23  ;;  %p332_p12 = scmp.eq.s32.totalorder %s331_s5, 0 }
  0x23   : > { %p4767_p13 = por %p351_p11, %p350_p10  ;;  %p3766_p0 = scmp.ge.s32.totalorder %s4597_s14, 8 }
  0x24   : > { %s4772_s18 = scalar_select %p332_p12, %s4561_s23, %s334_s4  }
  0x25   : > { %s6371_s12 = scalar_select %p4767_p13, 1, 0 }
  0x26   : > { %6373 = sst [smem:[#allocation19_spill]] %s4772_s18  ;;  %388 = sbr.rel (%p3766_p0) target bundleno = 87 (0x57), region = 44 }
  0x27   : > { %6372 = sst [smem:[#allocation18_spill]] %s6371_s12 }
  0x2d   : > { %419 = sbr.rel (!%p4742_p5) target bundleno = 87 (0x57), region = 56  ;;  %s421_s15 = sand.u32 (%p4742_p5), 1, %s4569_s25  }
  0x2e   : > { %s3970_s19 = sshll.u32 (%p4742_p5), %s4585_s29, 4  ;;  %s3767_s16 = sshll.u32 (%p4742_p5), %s421_s15, 9 }
  0x2f   : > { %s6374_s8 = sld [smem:[#allocation24_spill]] (%p4742_p5)  ;;  %s4787_s4 = scalar_lea.vmem (%p4742_p5), [#allocation5], %s3767_s16 }
  0x35   : > { %s4782_s5 = scalar_lea.vmem %s6374_s8, %s3970_s19 }
  0x36   : > { %v439_v0 = vld [vmem:[%s4782_s5] sm:$0xff]  ;;  %v441_v1 = vld [vmem:[%s4782_s5 + $0x8] sm:$0xff] }
  0x37   : > { %v443_v2 = vld [vmem:[%s4782_s5 + $0x20] sm:$0xff]  ;;  %440 = vst [vmem:[%s4787_s4] sm:$0xff] %v439_v0  ;;  %442 = vst [vmem:[%s4787_s4 + $0x8] sm:$0xff] %v441_v1  ;;  %v445_v3 = vld [vmem:[%s4782_s5 + $0x28] sm:$0xff] }
  0x38   : > { %444 = vst [vmem:[%s4787_s4 + $0x10] sm:$0xff] %v443_v2  ;;  %v447_v4 = vld [vmem:[%s4782_s5 + $0x40] sm:$0xff]  ;;  %v449_v5 = vld [vmem:[%s4782_s5 + $0x48] sm:$0xff]  ;;  %446 = vst [vmem:[%s4787_s4 + $0x18] sm:$0xff] %v445_v3 }
  0x39   : > { %448 = vst [vmem:[%s4787_s4 + $0x20] sm:$0xff] %v447_v4  ;;  %450 = vst [vmem:[%s4787_s4 + $0x28] sm:$0xff] %v449_v5  ;;  %v451_v6 = vld [vmem:[%s4782_s5 + $0x60] sm:$0xff]  ;;  %v453_v7 = vld [vmem:[%s4782_s5 + $0x68] sm:$0xff] }
  0x3a   : > { %v455_v8 = vld [vmem:[%s4782_s5 + $0x80] sm:$0xff]  ;;  %452 = vst [vmem:[%s4787_s4 + $0x30] sm:$0xff] %v451_v6  ;;  %454 = vst [vmem:[%s4787_s4 + $0x38] sm:$0xff] %v453_v7  ;;  %v457_v9 = vld [vmem:[%s4782_s5 + $0x88] sm:$0xff] }
  0x3b   : > { %456 = vst [vmem:[%s4787_s4 + $0x40] sm:$0xff] %v455_v8  ;;  %v459_v10 = vld [vmem:[%s4782_s5 + $0xa0] sm:$0xff]  ;;  %v461_v11 = vld [vmem:[%s4782_s5 + $0xa8] sm:$0xff]  ;;  %458 = vst [vmem:[%s4787_s4 + $0x48] sm:$0xff] %v457_v9 }
  0x3c   : > { %460 = vst [vmem:[%s4787_s4 + $0x50] sm:$0xff] %v459_v10  ;;  %462 = vst [vmem:[%s4787_s4 + $0x58] sm:$0xff] %v461_v11  ;;  %v463_v12 = vld [vmem:[%s4782_s5 + $0xc0] sm:$0xff]  ;;  %v465_v13 = vld [vmem:[%s4782_s5 + $0xc8] sm:$0xff] }
  0x3d   : > { %v467_v14 = vld [vmem:[%s4782_s5 + $0xe0] sm:$0xff]  ;;  %464 = vst [vmem:[%s4787_s4 + $0x60] sm:$0xff] %v463_v12  ;;  %466 = vst [vmem:[%s4787_s4 + $0x68] sm:$0xff] %v465_v13  ;;  %v469_v15 = vld [vmem:[%s4782_s5 + $0xe8] sm:$0xff] }
  0x3e   : > { %468 = vst [vmem:[%s4787_s4 + $0x70] sm:$0xff] %v467_v14  ;;  %v471_v16 = vld [vmem:[%s4782_s5 + $0x100] sm:$0xff]  ;;  %v473_v17 = vld [vmem:[%s4782_s5 + $0x108] sm:$0xff]  ;;  %470 = vst [vmem:[%s4787_s4 + $0x78] sm:$0xff] %v469_v15 }
  0x3f   : > { %472 = vst [vmem:[%s4787_s4 + $0x80] sm:$0xff] %v471_v16  ;;  %474 = vst [vmem:[%s4787_s4 + $0x88] sm:$0xff] %v473_v17  ;;  %v475_v18 = vld [vmem:[%s4782_s5 + $0x120] sm:$0xff]  ;;  %v477_v19 = vld [vmem:[%s4782_s5 + $0x128] sm:$0xff] }
  0x40   : > { %v479_v20 = vld [vmem:[%s4782_s5 + $0x140] sm:$0xff]  ;;  %476 = vst [vmem:[%s4787_s4 + $0x90] sm:$0xff] %v475_v18  ;;  %478 = vst [vmem:[%s4787_s4 + $0x98] sm:$0xff] %v477_v19  ;;  %v481_v21 = vld [vmem:[%s4782_s5 + $0x148] sm:$0xff] }
  0x41   : > { %480 = vst [vmem:[%s4787_s4 + $0xa0] sm:$0xff] %v479_v20  ;;  %v483_v22 = vld [vmem:[%s4782_s5 + $0x160] sm:$0xff]  ;;  %v485_v23 = vld [vmem:[%s4782_s5 + $0x168] sm:$0xff]  ;;  %482 = vst [vmem:[%s4787_s4 + $0xa8] sm:$0xff] %v481_v21 }
  0x42   : > { %484 = vst [vmem:[%s4787_s4 + $0xb0] sm:$0xff] %v483_v22  ;;  %486 = vst [vmem:[%s4787_s4 + $0xb8] sm:$0xff] %v485_v23  ;;  %v487_v24 = vld [vmem:[%s4782_s5 + $0x180] sm:$0xff]  ;;  %v489_v25 = vld [vmem:[%s4782_s5 + $0x188] sm:$0xff] }
  0x43   : > { %v491_v26 = vld [vmem:[%s4782_s5 + $0x1a0] sm:$0xff]  ;;  %488 = vst [vmem:[%s4787_s4 + $0xc0] sm:$0xff] %v487_v24  ;;  %490 = vst [vmem:[%s4787_s4 + $0xc8] sm:$0xff] %v489_v25  ;;  %v493_v27 = vld [vmem:[%s4782_s5 + $0x1a8] sm:$0xff] }
  0x44   : > { %492 = vst [vmem:[%s4787_s4 + $0xd0] sm:$0xff] %v491_v26  ;;  %v495_v28 = vld [vmem:[%s4782_s5 + $0x1c0] sm:$0xff]  ;;  %v497_v29 = vld [vmem:[%s4782_s5 + $0x1c8] sm:$0xff]  ;;  %494 = vst [vmem:[%s4787_s4 + $0xd8] sm:$0xff] %v493_v27 }
  0x45   : > { %496 = vst [vmem:[%s4787_s4 + $0xe0] sm:$0xff] %v495_v28  ;;  %498 = vst [vmem:[%s4787_s4 + $0xe8] sm:$0xff] %v497_v29  ;;  %v499_v30 = vld [vmem:[%s4782_s5 + $0x1e0] sm:$0xff]  ;;  %v501_v31 = vld [vmem:[%s4782_s5 + $0x1e8] sm:$0xff] }
  0x46   : > { %v503_v32 = vld [vmem:[%s4782_s5 + $0x200] sm:$0xff]  ;;  %500 = vst [vmem:[%s4787_s4 + $0xf0] sm:$0xff] %v499_v30  ;;  %502 = vst [vmem:[%s4787_s4 + $0xf8] sm:$0xff] %v501_v31  ;;  %v505_v33 = vld [vmem:[%s4782_s5 + $0x208] sm:$0xff] }
  0x47   : > { %504 = vst [vmem:[%s4787_s4 + $0x100] sm:$0xff] %v503_v32  ;;  %v507_v34 = vld [vmem:[%s4782_s5 + $0x220] sm:$0xff]  ;;  %v509_v35 = vld [vmem:[%s4782_s5 + $0x228] sm:$0xff]  ;;  %506 = vst [vmem:[%s4787_s4 + $0x108] sm:$0xff] %v505_v33 }
  0x48   : > { %508 = vst [vmem:[%s4787_s4 + $0x110] sm:$0xff] %v507_v34  ;;  %510 = vst [vmem:[%s4787_s4 + $0x118] sm:$0xff] %v509_v35  ;;  %v511_v36 = vld [vmem:[%s4782_s5 + $0x240] sm:$0xff]  ;;  %v513_v37 = vld [vmem:[%s4782_s5 + $0x248] sm:$0xff] }
  0x49   : > { %v515_v38 = vld [vmem:[%s4782_s5 + $0x260] sm:$0xff]  ;;  %512 = vst [vmem:[%s4787_s4 + $0x120] sm:$0xff] %v511_v36  ;;  %514 = vst [vmem:[%s4787_s4 + $0x128] sm:$0xff] %v513_v37  ;;  %v517_v39 = vld [vmem:[%s4782_s5 + $0x268] sm:$0xff] }
  0x4a   : > { %516 = vst [vmem:[%s4787_s4 + $0x130] sm:$0xff] %v515_v38  ;;  %v519_v40 = vld [vmem:[%s4782_s5 + $0x280] sm:$0xff]  ;;  %v521_v41 = vld [vmem:[%s4782_s5 + $0x288] sm:$0xff]  ;;  %518 = vst [vmem:[%s4787_s4 + $0x138] sm:$0xff] %v517_v39 }
  0x4b   : > { %520 = vst [vmem:[%s4787_s4 + $0x140] sm:$0xff] %v519_v40  ;;  %522 = vst [vmem:[%s4787_s4 + $0x148] sm:$0xff] %v521_v41  ;;  %v523_v42 = vld [vmem:[%s4782_s5 + $0x2a0] sm:$0xff]  ;;  %v525_v43 = vld [vmem:[%s4782_s5 + $0x2a8] sm:$0xff] }
  0x4c   : > { %v527_v44 = vld [vmem:[%s4782_s5 + $0x2c0] sm:$0xff]  ;;  %524 = vst [vmem:[%s4787_s4 + $0x150] sm:$0xff] %v523_v42  ;;  %526 = vst [vmem:[%s4787_s4 + $0x158] sm:$0xff] %v525_v43  ;;  %v529_v45 = vld [vmem:[%s4782_s5 + $0x2c8] sm:$0xff] }
  0x4d   : > { %528 = vst [vmem:[%s4787_s4 + $0x160] sm:$0xff] %v527_v44  ;;  %v531_v46 = vld [vmem:[%s4782_s5 + $0x2e0] sm:$0xff]  ;;  %v533_v47 = vld [vmem:[%s4782_s5 + $0x2e8] sm:$0xff]  ;;  %530 = vst [vmem:[%s4787_s4 + $0x168] sm:$0xff] %v529_v45 }
  0x4e   : > { %532 = vst [vmem:[%s4787_s4 + $0x170] sm:$0xff] %v531_v46  ;;  %534 = vst [vmem:[%s4787_s4 + $0x178] sm:$0xff] %v533_v47  ;;  %v535_v48 = vld [vmem:[%s4782_s5 + $0x300] sm:$0xff]  ;;  %v537_v49 = vld [vmem:[%s4782_s5 + $0x308] sm:$0xff] }
  0x4f   : > { %v539_v50 = vld [vmem:[%s4782_s5 + $0x320] sm:$0xff]  ;;  %536 = vst [vmem:[%s4787_s4 + $0x180] sm:$0xff] %v535_v48  ;;  %538 = vst [vmem:[%s4787_s4 + $0x188] sm:$0xff] %v537_v49  ;;  %v541_v51 = vld [vmem:[%s4782_s5 + $0x328] sm:$0xff] }
  0x50   : > { %540 = vst [vmem:[%s4787_s4 + $0x190] sm:$0xff] %v539_v50  ;;  %v543_v52 = vld [vmem:[%s4782_s5 + $0x340] sm:$0xff]  ;;  %v545_v53 = vld [vmem:[%s4782_s5 + $0x348] sm:$0xff]  ;;  %542 = vst [vmem:[%s4787_s4 + $0x198] sm:$0xff] %v541_v51 }
  0x51   : > { %544 = vst [vmem:[%s4787_s4 + $0x1a0] sm:$0xff] %v543_v52  ;;  %546 = vst [vmem:[%s4787_s4 + $0x1a8] sm:$0xff] %v545_v53  ;;  %v547_v54 = vld [vmem:[%s4782_s5 + $0x360] sm:$0xff]  ;;  %v549_v55 = vld [vmem:[%s4782_s5 + $0x368] sm:$0xff] }
  0x52   : > { %v551_v56 = vld [vmem:[%s4782_s5 + $0x380] sm:$0xff]  ;;  %548 = vst [vmem:[%s4787_s4 + $0x1b0] sm:$0xff] %v547_v54  ;;  %550 = vst [vmem:[%s4787_s4 + $0x1b8] sm:$0xff] %v549_v55  ;;  %v553_v57 = vld [vmem:[%s4782_s5 + $0x388] sm:$0xff] }
  0x53   : > { %552 = vst [vmem:[%s4787_s4 + $0x1c0] sm:$0xff] %v551_v56  ;;  %v555_v58 = vld [vmem:[%s4782_s5 + $0x3a0] sm:$0xff]  ;;  %v557_v59 = vld [vmem:[%s4782_s5 + $0x3a8] sm:$0xff]  ;;  %554 = vst [vmem:[%s4787_s4 + $0x1c8] sm:$0xff] %v553_v57 }
  0x54   : > { %556 = vst [vmem:[%s4787_s4 + $0x1d0] sm:$0xff] %v555_v58  ;;  %558 = vst [vmem:[%s4787_s4 + $0x1d8] sm:$0xff] %v557_v59  ;;  %v559_v60 = vld [vmem:[%s4782_s5 + $0x3c0] sm:$0xff]  ;;  %v561_v61 = vld [vmem:[%s4782_s5 + $0x3c8] sm:$0xff] }
  0x55   : > { %v563_v62 = vld [vmem:[%s4782_s5 + $0x3e0] sm:$0xff]  ;;  %560 = vst [vmem:[%s4787_s4 + $0x1e0] sm:$0xff] %v559_v60  ;;  %562 = vst [vmem:[%s4787_s4 + $0x1e8] sm:$0xff] %v561_v61  ;;  %v565_v63 = vld [vmem:[%s4782_s5 + $0x3e8] sm:$0xff] }
  0x56   : > { %564 = vst [vmem:[%s4787_s4 + $0x1f0] sm:$0xff] %v563_v62  ;;  %566 = vst [vmem:[%s4787_s4 + $0x1f8] sm:$0xff] %v565_v63 }
  0x57 PF: > { %p3770_p1 = scmp.ge.s32.totalorder %s4597_s14, 1  ;;  %p589_p2 = scmp.lt.s32.totalorder %s4597_s14, 9 }
  0x59   : > { %p590_p3 = pnand %p3770_p1, %p589_p2 }
  0x5a   : > { %s596_s11 = sand.u32 (!%p590_p3), 1, %s4565_s24   ;;  %s6350_s19 = sand.u32 (!%p590_p3), 1, %s4557_s22  }
  0x5b   : > { %593 = sbr.rel (%p590_p3) target bundleno = 1728 (0x6c0), region = 87  ;;  %s3771_s15 = sshll.u32 (!%p590_p3), %s596_s11, 9 }
  0x5c   : > { %s3772_s16 = sshll.u32 (!%p590_p3), %s6350_s19, 8  ;;  %s3773_s6 = sshll.u32 (!%p590_p3), %s4577_s27, 4 }
  0x5d   : > { %p668_p4 = scmp.lt.s32.totalorder (!%p590_p3), %s4581_s28, 1  ;;  %p670_p5 = scmp.lt.s32.totalorder (!%p590_p3), %s3773_s6, 31 }
  0x5e   : > { %s3781_s17 = sshll.u32 (!%p590_p3), %s4573_s26, 2  ;;  %s3782_s13 = sshll.u32 (!%p590_p3), %s4573_s26, 6 }
  0x5f   : > { %p691_p6 = scmp.lt.s32.totalorder (!%p590_p3), %s3781_s17, 7  ;;  %p696_p7 = scmp.lt.s32.totalorder (!%p590_p3), %s3782_s13, 127 }
  0x60   : > { %s4948_s24 = scalar_lea.vmem (!%p590_p3), [#allocation6], %s3772_s16  ;;  %p3785_p8 = scmp.ne.s32.totalorder (!%p590_p3), %s4573_s26, 0 }
  0x62   : > { %s669_s5 = scalar_select %p668_p4, %s4581_s28, 1 }
  0x63   : > { %s6408_s6 = smov (!%p670_p5, %s3773_s6), 31  ;;  %s6410_s17 = smov (!%p691_p6, %s3781_s17), 7 }
  0x64   : > { %s3775_s4 = sshll.u32 %s669_s5, 6  ;;  %s3774_s8 = sshll.u32 %s6408_s6, 1  ;;  %v4143_v0 = vld [vmem:[%s6331_s2 + $0x4] ss:$8 sps:$4 sm:$0xff] (!%p3785_p8)   ;;  %v4145_v1 = vld [vmem:[%s6331_s2] ss:$8 sps:$4 sm:$0xff] (!%p3785_p8)   ;;  %v757_v48 = vlaneseq (!%p3785_p8) }
  0x65   : > { %s674_s30 = sadd.s32 %s3775_s4, %s3774_s8  ;;  %s6412_s13 = smov (!%p696_p7, %s3782_s13), 127  ;;  %1007 = vmatprep.subr.bf16.mxu0 (!%p3785_p8), %v4143_v0  ;;  %3973 = vmatprep.subr.bf16.mxu1 (!%p3785_p8), %v4143_v0  ;;  %v4146_v2 = vld [vmem:[%s6331_s2 + $0x14] ss:$8 sps:$4 sm:$0xff] (!%p3785_p8)   ;;  %v4148_v3 = vld [vmem:[%s6331_s2 + $0x10] ss:$8 sps:$4 sm:$0xff] (!%p3785_p8)  }
  0x66   : > { %s3776_s29 = sshll.u32 %s674_s30, 2  ;;  %s3780_s7 = sshll.u32 %s674_s30, 3  ;;  %1008 = vmatpush1.bf16.msra.mxu0 (!%p3785_p8), %v4145_v1  ;;  %3989 = vmatpush1.bf16.msra.mxu1 (!%p3785_p8), %v4145_v1  ;;  %v4149_v4 = vld [vmem:[%s6331_s2 + $0x24] ss:$8 sps:$4 sm:$0xff] (!%p3785_p8)   ;;  %v4151_v5 = vld [vmem:[%s6331_s2 + $0x20] ss:$8 sps:$4 sm:$0xff] (!%p3785_p8)  }
  0x67   : > { %s4928_s11 = scalar_lea.vmem %s6329_s0, %s3776_s29  ;;  %s4933_s23 = scalar_lea.vmem %s6330_s1, %s3780_s7  ;;  %1009 = vmatprep.subr.bf16.mxu0 (!%p3785_p8), %v4146_v2  ;;  %3974 = vmatprep.subr.bf16.mxu1 (!%p3785_p8), %v4146_v2  ;;  %v4152_v6 = vld [vmem:[%s6331_s2 + $0x34] ss:$8 sps:$4 sm:$0xff] (!%p3785_p8)   ;;  %v4154_v7 = vld [vmem:[%s6331_s2 + $0x30] ss:$8 sps:$4 sm:$0xff] (!%p3785_p8)   ;;  %v4155_v8 = vld [vmem:[%s6331_s2 + $0x44] ss:$8 sps:$4 sm:$0xff] (!%p3785_p8)  }
  0x68   : > { %s693_s8 = scalar_lea.vmem %s6338_s9, %s6410_s17  ;;  %s3971_s4 = sshll.u32 %s6412_s13, 3  ;;  %v4157_v9 = vld [vmem:[%s6331_s2 + $0x40] ss:$8 sps:$4 sm:$0xff] (!%p3785_p8)   ;;  %v4158_v10 = vld [vmem:[%s6331_s2 + $0x54] ss:$8 sps:$4 sm:$0xff] (!%p3785_p8)   ;;  %v758_v49 = vshrl.u32 (!%p3785_p8), %v757_v48, 7 }
  0x69   : > { %s4944_s25 = scalar_lea.vmem %s6339_s10, %s3971_s4  ;;  %s4946_s29 = scalar_lea.vmem [#allocation5], %s3771_s15  ;;  %v4160_v11 = vld [vmem:[%s6331_s2 + $0x50] ss:$8 sps:$4 sm:$0xff] (!%p3785_p8)   ;;  %v4161_v12 = vld [vmem:[%s6331_s2 + $0x64] ss:$8 sps:$4 sm:$0xff] (!%p3785_p8)  }
  0x6a   : > { %706 = sbr.rel (%p3785_p8) target bundleno = 1062 (0x426), region = 95  ;;  %1010 = vmatpush1.bf16.msra.mxu0 (!%p3785_p8), %v4148_v3  ;;  %3990 = vmatpush1.bf16.msra.mxu1 (!%p3785_p8), %v4148_v3  ;;  %v4193_v13 = vld [vmem:[%s4928_s11 + $0x4] ss:$8 sps:$4 sm:$0xff] (!%p3785_p8)   ;;  %v4163_v14 = vld [vmem:[%s6331_s2 + $0x60] ss:$8 sps:$4 sm:$0xff] (!%p3785_p8)   ;;  %v5063_v50 = vsub.s32 (!%p3785_p8), 0, %v758_v49 }
  0x6b   : > { %1011 = vmatprep.subr.bf16.mxu0 (!%p3785_p8), %v4149_v4  ;;  %3975 = vmatprep.subr.bf16.mxu1 (!%p3785_p8), %v4149_v4  ;;  %v4196_v15 = vld [vmem:[%s4928_s11 + $0x44] ss:$8 sps:$4 sm:$0xff] (!%p3785_p8)   ;;  %v4164_v16 = vld [vmem:[%s6331_s2 + $0x74] ss:$8 sps:$4 sm:$0xff] (!%p3785_p8)   ;;  %v4166_v17 = vld [vmem:[%s6331_s2 + $0x70] ss:$8 sps:$4 sm:$0xff] (!%p3785_p8)  }
  0x6c   : > { %1039 = vmatprep.mubr.bf16.mxu0 (!%p3785_p8), %v4193_v13  ;;  %1079 = vmatprep.mubr.bf16.mxu1 (!%p3785_p8), %v4196_v15  ;;  %v4167_v18 = vld [vmem:[%s6331_s2 + $0x84] ss:$8 sps:$4 sm:$0xff] (!%p3785_p8)   ;;  %v4169_v19 = vld [vmem:[%s6331_s2 + $0x80] ss:$8 sps:$4 sm:$0xff] (!%p3785_p8)   ;;  %v4170_v20 = vld [vmem:[%s6331_s2 + $0x94] ss:$8 sps:$4 sm:$0xff] (!%p3785_p8)  }
  0x6d   : > { %v4172_v21 = vld [vmem:[%s6331_s2 + $0x90] ss:$8 sps:$4 sm:$0xff] (!%p3785_p8)   ;;  %v4173_v22 = vld [vmem:[%s6331_s2 + $0xa4] ss:$8 sps:$4 sm:$0xff] (!%p3785_p8)   ;;  %v4175_v23 = vld [vmem:[%s6331_s2 + $0xa0] ss:$8 sps:$4 sm:$0xff] (!%p3785_p8)  }
  0x6e   : > { %1012 = vmatpush1.bf16.msra.mxu0 (!%p3785_p8), %v4151_v5  ;;  %3991 = vmatpush1.bf16.msra.mxu1 (!%p3785_p8), %v4151_v5  ;;  %v4176_v24 = vld [vmem:[%s6331_s2 + $0xb4] ss:$8 sps:$4 sm:$0xff] (!%p3785_p8)   ;;  %v4178_v25 = vld [vmem:[%s6331_s2 + $0xb0] ss:$8 sps:$4 sm:$0xff] (!%p3785_p8)   ;;  %v4179_v26 = vld [vmem:[%s6331_s2 + $0xc4] ss:$8 sps:$4 sm:$0xff] (!%p3785_p8)  }
  0x6f   : > { %1013 = vmatprep.subr.bf16.mxu0 (!%p3785_p8), %v4152_v6  ;;  %3976 = vmatprep.subr.bf16.mxu1 (!%p3785_p8), %v4152_v6  ;;  %v4181_v27 = vld [vmem:[%s6331_s2 + $0xc0] ss:$8 sps:$4 sm:$0xff] (!%p3785_p8)   ;;  %v4182_v28 = vld [vmem:[%s6331_s2 + $0xd4] ss:$8 sps:$4 sm:$0xff] (!%p3785_p8)   ;;  %v4184_v29 = vld [vmem:[%s6331_s2 + $0xd0] ss:$8 sps:$4 sm:$0xff] (!%p3785_p8)  }
  0x70   : > { %v4185_v30 = vld [vmem:[%s6331_s2 + $0xe4] ss:$8 sps:$4 sm:$0xff] (!%p3785_p8)   ;;  %v4187_v31 = vld [vmem:[%s6331_s2 + $0xe0] ss:$8 sps:$4 sm:$0xff] (!%p3785_p8)   ;;  %v4188_v32 = vld [vmem:[%s6331_s2 + $0xf4] ss:$8 sps:$4 sm:$0xff] (!%p3785_p8)  }
  0x71   : > { %v4190_v33 = vld [vmem:[%s6331_s2 + $0xf0] ss:$8 sps:$4 sm:$0xff]   ;;  %v4191_v34 = vld [vmem:[%s4928_s11] ss:$8 sps:$4 sm:$0xff]   ;;  %v4197_v36 = vld [vmem:[%s4928_s11 + $0x14] ss:$8 sps:$4 sm:$0xff]  }
  0x72   : > { %1014 = vmatpush1.bf16.msra.mxu0 %v4154_v7  ;;  %3992 = vmatpush1.bf16.msra.mxu1 %v4154_v7  ;;  %v4194_v35 = vld [vmem:[%s4928_s11 + $0x40] ss:$8 sps:$4 sm:$0xff]   ;;  %v4200_v37 = vld [vmem:[%s4928_s11 + $0x54] ss:$8 sps:$4 sm:$0xff]   ;;  %v4199_v38 = vld [vmem:[%s4928_s11 + $0x10] ss:$8 sps:$4 sm:$0xff]  }
  0x73   : > { %1015 = vmatprep.subr.bf16.mxu0 %v4155_v8  ;;  %3977 = vmatprep.subr.bf16.mxu1 %v4155_v8  ;;  %v4202_v39 = vld [vmem:[%s4928_s11 + $0x50] ss:$8 sps:$4 sm:$0xff]   ;;  %v4203_v40 = vld [vmem:[%s4928_s11 + $0x24] ss:$8 sps:$4 sm:$0xff]   ;;  %v4205_v42 = vld [vmem:[%s4928_s11 + $0x20] ss:$8 sps:$4 sm:$0xff]  }
  0x74   : > { %v4206_v41 = vld [vmem:[%s4928_s11 + $0x64] ss:$8 sps:$4 sm:$0xff]   ;;  %v4208_v43 = vld [vmem:[%s4928_s11 + $0x60] ss:$8 sps:$4 sm:$0xff]   ;;  %v4209_v44 = vld [vmem:[%s4928_s11 + $0x34] ss:$8 sps:$4 sm:$0xff]  }
  0x75   : > { %v4212_v45 = vld [vmem:[%s4928_s11 + $0x74] ss:$8 sps:$4 sm:$0xff]   ;;  %v4211_v46 = vld [vmem:[%s4928_s11 + $0x30] ss:$8 sps:$4 sm:$0xff]   ;;  %v755_v51 = vld [vmem:[%s6332_s3] sm:$0x3] }
  0x76   : > { %1016 = vmatpush1.bf16.msra.mxu0 %v4157_v9  ;;  %3993 = vmatpush1.bf16.msra.mxu1 %v4157_v9  ;;  %v4214_v47 = vld [vmem:[%s4928_s11 + $0x70] ss:$8 sps:$4 sm:$0xff]   ;;  %v5068_v52 = vsub.s32 1, %v758_v49  ;;  %v5071_v53 = vrot.slane %v755_v51, %v5063_v50  ;;  %s6375_s18 = sld [smem:[#allocation20_spill]]  ;;  %s6376_s13 = sld [smem:[#allocation21_spill]] }
  0x77   : > { %1017 = vmatprep.subr.bf16.mxu0 %v4158_v10  ;;  %3978 = vmatprep.subr.bf16.mxu1 %v4158_v10  ;;  %s6377_s15 = sld [smem:[#allocation22_spill]]  ;;  %s6378_s4 = sld [smem:[#allocation23_spill]] }
  0x78   : > { %v5074_v54 = vrot.slane %v755_v51, %v5068_v52 }
  0x7a   : > { %1018 = vmatpush1.bf16.msra.mxu0 %v4160_v11  ;;  %3994 = vmatpush1.bf16.msra.mxu1 %v4160_v11 }
  0x7b   : > { %1019 = vmatprep.subr.bf16.mxu0 %v4161_v12  ;;  %3979 = vmatprep.subr.bf16.mxu1 %v4161_v12 }
  0x7e   : > { %1020 = vmatpush1.bf16.msra.mxu0 %v4163_v14  ;;  %3995 = vmatpush1.bf16.msra.mxu1 %v4163_v14 }
  0x7f   : > { %1021 = vmatprep.subr.bf16.mxu0 %v4164_v16  ;;  %3980 = vmatprep.subr.bf16.mxu1 %v4164_v16 }
  0x82   : > { %1022 = vmatpush1.bf16.msra.mxu0 %v4166_v17  ;;  %3996 = vmatpush1.bf16.msra.mxu1 %v4166_v17 }
  0x83   : > { %1023 = vmatprep.subr.bf16.mxu0 %v4167_v18  ;;  %3981 = vmatprep.subr.bf16.mxu1 %v4167_v18 }
  0x86   : > { %1024 = vmatpush1.bf16.msra.mxu0 %v4169_v19  ;;  %3997 = vmatpush1.bf16.msra.mxu1 %v4169_v19 }
  0x87   : > { %1025 = vmatprep.subr.bf16.mxu0 %v4170_v20  ;;  %3982 = vmatprep.subr.bf16.mxu1 %v4170_v20 }
  0x8a   : > { %1026 = vmatpush1.bf16.msra.mxu0 %v4172_v21  ;;  %3998 = vmatpush1.bf16.msra.mxu1 %v4172_v21 }
  0x8b   : > { %1027 = vmatprep.subr.bf16.mxu0 %v4173_v22  ;;  %3983 = vmatprep.subr.bf16.mxu1 %v4173_v22 }
  0x8e   : > { %1028 = vmatpush1.bf16.msra.mxu0 %v4175_v23  ;;  %3999 = vmatpush1.bf16.msra.mxu1 %v4175_v23 }
  0x8f   : > { %1029 = vmatprep.subr.bf16.mxu0 %v4176_v24  ;;  %3984 = vmatprep.subr.bf16.mxu1 %v4176_v24 }
  0x92   : > { %1030 = vmatpush1.bf16.msra.mxu0 %v4178_v25  ;;  %4000 = vmatpush1.bf16.msra.mxu1 %v4178_v25 }
  0x93   : > { %1031 = vmatprep.subr.bf16.mxu0 %v4179_v26  ;;  %3985 = vmatprep.subr.bf16.mxu1 %v4179_v26 }
  0x96   : > { %1032 = vmatpush1.bf16.msra.mxu0 %v4181_v27  ;;  %4001 = vmatpush1.bf16.msra.mxu1 %v4181_v27 }
  0x97   : > { %1033 = vmatprep.subr.bf16.mxu0 %v4182_v28  ;;  %3986 = vmatprep.subr.bf16.mxu1 %v4182_v28 }
  0x9a   : > { %1034 = vmatpush1.bf16.msra.mxu0 %v4184_v29  ;;  %4002 = vmatpush1.bf16.msra.mxu1 %v4184_v29 }
  0x9b   : > { %1035 = vmatprep.subr.bf16.mxu0 %v4185_v30  ;;  %3987 = vmatprep.subr.bf16.mxu1 %v4185_v30 }
  0x9e   : > { %1036 = vmatpush1.bf16.msra.mxu0 %v4187_v31  ;;  %4003 = vmatpush1.bf16.msra.mxu1 %v4187_v31 }
  0x9f   : > { %1037 = vmatprep.subr.bf16.mxu0 %v4188_v32  ;;  %3988 = vmatprep.subr.bf16.mxu1 %v4188_v32 }
  0xa2   : > { %1038 = vmatpush1.bf16.msra.mxu0 %v4190_v33  ;;  %4004 = vmatpush1.bf16.msra.mxu1 %v4190_v33 }
  0xa5   : > { %1040 = vmatmul.mubr.bf16.vlgmr.msra.gmra.mrb[0].mxu0 %v4191_v34  ;;  %1080 = vmatmul.mubr.bf16.vlgmr.msra.gmra.mrb[0].mxu1 %v4194_v35 }
  0xa6   : > { %1049 = vmatprep.mubr.bf16.mxu0 %v4197_v36  ;;  %1089 = vmatprep.mubr.bf16.mxu1 %v4200_v37 }
  0xad   : > { %1050 = vmatmul.mubr.bf16.gmra.mrb[4].mxu0 %v4199_v38  ;;  %1090 = vmatmul.mubr.bf16.gmra.mrb[4].mxu1 %v4202_v39 }
  0xae   : > { %1059 = vmatprep.mubr.bf16.mxu0 %v4203_v40  ;;  %1099 = vmatprep.mubr.bf16.mxu1 %v4206_v41 }
  0xb5   : > { %1060 = vmatmul.mubr.bf16.gmra.mrb[8].mxu0 %v4205_v42  ;;  %1100 = vmatmul.mubr.bf16.gmra.mrb[8].mxu1 %v4208_v43 }
  0xb6   : > { %1069 = vmatprep.mubr.bf16.mxu0 %v4209_v44  ;;  %1109 = vmatprep.mubr.bf16.mxu1 %v4212_v45 }
  0xbd   : > { %1070 = vmatmul.mubr.bf16.gmra.mrb[12].mxu0 %v4211_v46  ;;  %1110 = vmatmul.mubr.bf16.gmra.mrb[12].mxu1 %v4214_v47 }
 0x178   : > { %v1041_v55 = vpop.f32.mrb[0].mxu0  ;;  %v1081_v56 = vpop.f32.mrb[0].mxu1 }
 0x179   : > { %v5077_v57 = vadd.f32 %v1041_v55, %v5071_v53  ;;  %v1043_v58 = vpop.f32.mrb[1].mxu0  ;;  %v1083_v59 = vpop.f32.mrb[1].mxu1  ;;  %v5080_v60 = vadd.f32 %v1081_v56, %v5071_v53 }
 0x17a   : > { %v5083_v61 = vadd.f32 %v1043_v58, %v5074_v54  ;;  %v5086_v62 = vadd.f32 %v1083_v59, %v5074_v54  ;;  %v1045_v63 = vpop.f32.mrb[2].mxu0  ;;  %v1085_v0 = vpop.f32.mrb[2].mxu1 }
 0x17b   : > { %v5089_v1 = vadd.f32 %v1085_v0, %v5071_v53  ;;  %v1047_v2 = vpop.f32.mrb[3].mxu0  ;;  %v1087_v3 = vpop.f32.mrb[3].mxu1  ;;  %v5101_v8 = vadd.f32 %v1045_v63, %v5071_v53 }
 0x17c   : > { %v5092_v4 = vadd.f32 %v1087_v3, %v5074_v54  ;;  %v1122_v5 = vadd.f32 %v5083_v61, %v5077_v57  ;;  %v1146_v7 = vadd.f32 %v5086_v62, %v5080_v60  ;;  %v5104_v9 = vadd.f32 %v1047_v2, %v5074_v54 }
 0x17e   : > { %1123 = vadd.xlane.f32.xlu0 %v1122_v5  ;;  %v1149_v6 = vadd.f32 %v5092_v4, %v5089_v1  ;;  %v1125_v25 = vadd.f32 %v5104_v9, %v5101_v8 }
 0x180   : > { %1150 = vadd.xlane.f32.xlu1 %v1149_v6  ;;  %v1051_v10 = vpop.f32.mrb[4].mxu0  ;;  %v1091_v11 = vpop.f32.mrb[4].mxu1 }
 0x181   : > { %v5107_v12 = vadd.f32 %v1051_v10, %v5071_v53  ;;  %v1053_v13 = vpop.f32.mrb[5].mxu0  ;;  %v1093_v14 = vpop.f32.mrb[5].mxu1  ;;  %v5113_v17 = vadd.f32 %v1091_v11, %v5071_v53 }
 0x182   : > { %v5110_v15 = vadd.f32 %v1053_v13, %v5074_v54  ;;  %1147 = vadd.xlane.f32.xlu0 %v1146_v7  ;;  %v1055_v16 = vpop.f32.mrb[6].mxu0  ;;  %v5116_v18 = vadd.f32 %v1093_v14, %v5074_v54  ;;  %v1095_v19 = vpop.f32.mrb[6].mxu1 }
 0x183   : > { %v5119_v20 = vadd.f32 %v1055_v16, %v5071_v53  ;;  %v1057_v21 = vpop.f32.mrb[7].mxu0  ;;  %v1097_v22 = vpop.f32.mrb[7].mxu1  ;;  %v5129_v26 = vadd.f32 %v1095_v19, %v5071_v53 }
 0x184   : > { %v5122_v23 = vadd.f32 %v1057_v21, %v5074_v54  ;;  %v1128_v24 = vadd.f32 %v5110_v15, %v5107_v12  ;;  %v5132_v27 = vadd.f32 %v1097_v22, %v5074_v54  ;;  %v1152_v29 = vadd.f32 %v5116_v18, %v5113_v17 }
 0x186   : > { %1129 = vadd.xlane.f32.xlu1 %v1128_v24  ;;  %1126 = vadd.xlane.f32.xlu0 %v1125_v25  ;;  %v1131_v28 = vadd.f32 %v5122_v23, %v5119_v20  ;;  %v1155_v35 = vadd.f32 %v5132_v27, %v5129_v26 }
 0x188   : > { %v1061_v30 = vpop.f32.mrb[8].mxu0  ;;  %v1101_v31 = vpop.f32.mrb[8].mxu1 }
 0x189   : > { %v5139_v32 = vadd.f32 %v1061_v30, %v5071_v53  ;;  %v1063_v33 = vpop.f32.mrb[9].mxu0  ;;  %v1103_v34 = vpop.f32.mrb[9].mxu1  ;;  %v5147_v38 = vadd.f32 %v1101_v31, %v5071_v53 }
 0x18a   : > { %v5144_v36 = vadd.f32 %v1063_v33, %v5074_v54  ;;  %1132 = vadd.xlane.f32.xlu1 %v1131_v28  ;;  %1153 = vadd.xlane.f32.xlu0 %v1152_v29  ;;  %v1065_v37 = vpop.f32.mrb[10].mxu0  ;;  %v5150_v39 = vadd.f32 %v1103_v34, %v5074_v54  ;;  %v1105_v40 = vpop.f32.mrb[10].mxu1 }
 0x18b   : > { %v5153_v41 = vadd.f32 %v1065_v37, %v5071_v53  ;;  %v1067_v42 = vpop.f32.mrb[11].mxu0  ;;  %v1107_v43 = vpop.f32.mrb[11].mxu1  ;;  %v5161_v46 = vadd.f32 %v1105_v40, %v5071_v53 }
 0x18c   : > { %v5156_v44 = vadd.f32 %v1067_v42, %v5074_v54  ;;  %v1134_v45 = vadd.f32 %v5144_v36, %v5139_v32  ;;  %v5164_v47 = vadd.f32 %v1107_v43, %v5074_v54  ;;  %v1158_v49 = vadd.f32 %v5150_v39, %v5147_v38 }
 0x18e   : > { %1156 = vadd.xlane.f32.xlu1 %v1155_v35  ;;  %1135 = vadd.xlane.f32.xlu0 %v1134_v45  ;;  %v1137_v48 = vadd.f32 %v5156_v44, %v5153_v41  ;;  %v1161_v63 = vadd.f32 %v5164_v47, %v5161_v46 }
 0x190   : > { %v1071_v51 = vpop.f32.mrb[12].mxu0  ;;  %v1111_v55 = vpop.f32.mrb[12].mxu1 }
 0x191   : > { %v5171_v56 = vadd.f32 %v1071_v51, %v5071_v53  ;;  %v1073_v58 = vpop.f32.mrb[13].mxu0  ;;  %v1113_v59 = vpop.f32.mrb[13].mxu1  ;;  %v5179_v3 = vadd.f32 %v1111_v55, %v5071_v53 }
 0x192   : > { %v5176_v0 = vadd.f32 %v1073_v58, %v5074_v54  ;;  %1138 = vadd.xlane.f32.xlu1 %v1137_v48  ;;  %1159 = vadd.xlane.f32.xlu0 %v1158_v49  ;;  %v1075_v2 = vpop.f32.mrb[14].mxu0  ;;  %v5182_v5 = vadd.f32 %v1113_v59, %v5074_v54  ;;  %v1115_v6 = vpop.f32.mrb[14].mxu1 }
 0x193   : > { %v5185_v7 = vadd.f32 %v1075_v2, %v5071_v53  ;;  %v1077_v10 = vpop.f32.mrb[15].mxu0  ;;  %v1117_v11 = vpop.f32.mrb[15].mxu1  ;;  %v5193_v16 = vadd.f32 %v1115_v6, %v5071_v53 }
 0x194   : > { %v5188_v13 = vadd.f32 %v1077_v10, %v5074_v54  ;;  %v1140_v14 = vadd.f32 %v5176_v0, %v5171_v56  ;;  %v5196_v19 = vadd.f32 %v1117_v11, %v5074_v54  ;;  %v1164_v22 = vadd.f32 %v5182_v5, %v5179_v3 }
 0x196   : > { %1162 = vadd.xlane.f32.xlu1 %v1161_v63  ;;  %1141 = vadd.xlane.f32.xlu0 %v1140_v14  ;;  %v1143_v21 = vadd.f32 %v5188_v13, %v5185_v7  ;;  %v1167_v24 = vadd.f32 %v5196_v19, %v5193_v16 }
 0x19a   : > { %1144 = vadd.xlane.f32.xlu1 %v1143_v21  ;;  %1165 = vadd.xlane.f32.xlu0 %v1164_v22 }
 0x19e   : > { %1168 = vadd.xlane.f32.xlu1 %v1167_v24 }
 0x20b   : > { %v1124_v25 = vpop.xlane.xlu0 %1123 }
 0x20c   : > { %v1171_v53 = vmul.f32 0.00390625, %v1124_v25 }
 0x20d   : > { %v1151_v29 = vpop.xlane.xlu1 %1150 }
 0x20e   : > { %v5205_v28 = vsub.f32 %v5077_v57, %v1171_v53  ;;  %v5208_v54 = vsub.f32 %v5083_v61, %v1171_v53  ;;  %v1180_v57 = vmul.f32 0.00390625, %v1151_v29 }
 0x20f   : > { %v1148_v30 = vpop.xlane.xlu0 %1147 }
 0x210   : > { %v1179_v31 = vmul.f32 0.00390625, %v1148_v30  ;;  %v1219_v33 = vmul.f32 %v5205_v28, %v5205_v28  ;;  %v1220_v34 = vmul.f32 %v5208_v54, %v5208_v54  ;;  %v5237_v58 = vsub.f32 %v5089_v1, %v1180_v57 }
 0x211   : > { %v5240_v59 = vsub.f32 %v5092_v4, %v1180_v57 }
 0x212   : > { %v5215_v35 = vsub.f32 %v5080_v60, %v1179_v31  ;;  %v5218_v37 = vsub.f32 %v5086_v62, %v1179_v31  ;;  %v1251_v61 = vadd.f32 %v1220_v34, %v1219_v33  ;;  %v1237_v29 = vmul.f32 %v5237_v58, %v5237_v58 }
 0x213   : > { %v1130_v40 = vpop.xlane.xlu1 %1129  ;;  %v1127_v42 = vpop.xlane.xlu0 %1126 }
 0x214   : > { %v1173_v43 = vmul.f32 0.00390625, %v1130_v40  ;;  %v1172_v45 = vmul.f32 0.00390625, %v1127_v42  ;;  %v1235_v48 = vmul.f32 %v5215_v35, %v5215_v35  ;;  %v1236_v49 = vmul.f32 %v5218_v37, %v5218_v37  ;;  %1252 = vadd.xlane.f32.xlu0 %v1251_v61 }
 0x216   : > { %v5225_v51 = vsub.f32 %v5107_v12, %v1173_v43  ;;  %v5228_v60 = vsub.f32 %v5110_v15, %v1173_v43  ;;  %v5231_v62 = vsub.f32 %v5101_v8, %v1172_v45  ;;  %v5234_v55 = vsub.f32 %v5104_v9, %v1172_v45 }
 0x217   : > { %v1133_v63 = vpop.xlane.xlu1 %1132  ;;  %v1154_v2 = vpop.xlane.xlu0 %1153  ;;  %v1275_v6 = vadd.f32 %v1236_v49, %v1235_v48 }
 0x218   : > { %v1174_v12 = vmul.f32 0.00390625, %v1133_v63  ;;  %v1181_v10 = vmul.f32 0.00390625, %v1154_v2  ;;  %v1223_v15 = vmul.f32 %v5225_v51, %v5225_v51  ;;  %v1224_v8 = vmul.f32 %v5228_v60, %v5228_v60 }
 0x219   : > { %1276 = vadd.xlane.f32.xlu0 %v1275_v6  ;;  %v1221_v9 = vmul.f32 %v5231_v62, %v5231_v62  ;;  %v1222_v1 = vmul.f32 %v5234_v55, %v5234_v55 }
 0x21a   : > { %v5251_v4 = vsub.f32 %v5119_v20, %v1174_v12  ;;  %v5254_v11 = vsub.f32 %v5122_v23, %v1174_v12  ;;  %v5257_v14 = vsub.f32 %v5113_v17, %v1181_v10  ;;  %v5260_v21 = vsub.f32 %v5116_v18, %v1181_v10 }
 0x21b   : > { %v1157_v22 = vpop.xlane.xlu1 %1156  ;;  %v1136_v24 = vpop.xlane.xlu0 %1135  ;;  %v1257_v25 = vadd.f32 %v1224_v8, %v1223_v15  ;;  %v1254_v53 = vadd.f32 %v1222_v1, %v1221_v9  ;;  %v1238_v20 = vmul.f32 %v5240_v59, %v5240_v59 }
 0x21c   : > { %v1182_v30 = vmul.f32 0.00390625, %v1157_v22  ;;  %v1175_v31 = vmul.f32 0.00390625, %v1136_v24  ;;  %v1239_v23 = vmul.f32 %v5257_v14, %v5257_v14  ;;  %v1240_v17 = vmul.f32 %v5260_v21, %v5260_v21 }
 0x21d   : > { %1258 = vadd.xlane.f32.xlu0 %v1257_v25  ;;  %1255 = vadd.xlane.f32.xlu1 %v1254_v53  ;;  %v1225_v18 = vmul.f32 %v5251_v4, %v5251_v4  ;;  %v1226_v40 = vmul.f32 %v5254_v11, %v5254_v11  ;;  %v1278_v45 = vadd.f32 %v1238_v20, %v1237_v29 }
 0x21e   : > { %v5273_v33 = vsub.f32 %v5129_v26, %v1182_v30  ;;  %v5276_v34 = vsub.f32 %v5139_v32, %v1175_v31  ;;  %v5279_v57 = vsub.f32 %v5144_v36, %v1175_v31  ;;  %v5284_v42 = vsub.f32 %v5132_v27, %v1182_v30 }
 0x21f   : > { %v1139_v61 = vpop.xlane.xlu1 %1138  ;;  %v1160_v43 = vpop.xlane.xlu0 %1159  ;;  %v1281_v48 = vadd.f32 %v1240_v17, %v1239_v23  ;;  %v1260_v2 = vadd.f32 %v1226_v40, %v1225_v18 }
 0x220   : > { %v1176_v49 = vmul.f32 0.00390625, %v1139_v61  ;;  %v1183_v63 = vmul.f32 0.00390625, %v1160_v43  ;;  %v1227_v26 = vmul.f32 %v5276_v34, %v5276_v34  ;;  %v1228_v32 = vmul.f32 %v5279_v57, %v5279_v57 }
 0x221   : > { %1279 = vadd.xlane.f32.xlu1 %v1278_v45  ;;  %1282 = vadd.xlane.f32.xlu0 %v1281_v48  ;;  %v1241_v6 = vmul.f32 %v5273_v33, %v5273_v33 }
 0x222   : > { %v5291_v36 = vsub.f32 %v5147_v38, %v1183_v63  ;;  %v5294_v27 = vsub.f32 %v5150_v39, %v1183_v63  ;;  %v5299_v12 = vsub.f32 %v5153_v41, %v1176_v49  ;;  %v5302_v10 = vsub.f32 %v5156_v44, %v1176_v49 }
 0x223   : > { %v1163_v15 = vpop.xlane.xlu1 %1162  ;;  %v1142_v8 = vpop.xlane.xlu0 %1141  ;;  %v1263_v9 = vadd.f32 %v1228_v32, %v1227_v26  ;;  %v1242_v38 = vmul.f32 %v5284_v42, %v5284_v42 }
 0x224   : > { %v1184_v1 = vmul.f32 0.00390625, %v1163_v15  ;;  %v1177_v22 = vmul.f32 0.00390625, %v1142_v8  ;;  %v1243_v39 = vmul.f32 %v5291_v36, %v5291_v36  ;;  %v1244_v24 = vmul.f32 %v5294_v27, %v5294_v27 }
 0x225   : > { %1261 = vadd.xlane.f32.xlu1 %v1260_v2  ;;  %1264 = vadd.xlane.f32.xlu0 %v1263_v9  ;;  %v1284_v30 = vadd.f32 %v1242_v38, %v1241_v6  ;;  %v1229_v23 = vmul.f32 %v5299_v12, %v5299_v12 }
 0x226   : > { %v5311_v41 = vsub.f32 %v5161_v46, %v1184_v1  ;;  %v5314_v44 = vsub.f32 %v5164_v47, %v1184_v1  ;;  %v5317_v25 = vsub.f32 %v5171_v56, %v1177_v22  ;;  %v5320_v53 = vsub.f32 %v5176_v0, %v1177_v22 }
 0x227   : > { %v1145_v29 = vpop.xlane.xlu1 %1144  ;;  %v1166_v20 = vpop.xlane.xlu0 %1165  ;;  %v1287_v31 = vadd.f32 %v1244_v24, %v1243_v39  ;;  %v1230_v46 = vmul.f32 %v5302_v10, %v5302_v10 }
 0x228   : > { %v1178_v17 = vmul.f32 0.00390625, %v1145_v29  ;;  %v1185_v18 = vmul.f32 0.00390625, %v1166_v20  ;;  %v1231_v47 = vmul.f32 %v5317_v25, %v5317_v25  ;;  %v1232_v56 = vmul.f32 %v5320_v53, %v5320_v53 }
 0x229   : > { %1285 = vadd.xlane.f32.xlu1 %v1284_v30  ;;  %1288 = vadd.xlane.f32.xlu0 %v1287_v31  ;;  %v1245_v61 = vmul.f32 %v5311_v41, %v5311_v41  ;;  %v1246_v43 = vmul.f32 %v5314_v44, %v5314_v44  ;;  %v1266_v63 = vadd.f32 %v1230_v46, %v1229_v23 }
 0x22a   : > { %v5331_v0 = vsub.f32 %v5179_v3, %v1185_v18  ;;  %v5334_v40 = vsub.f32 %v5182_v5, %v1185_v18  ;;  %v5341_v45 = vsub.f32 %v5185_v7, %v1178_v17  ;;  %v5344_v48 = vsub.f32 %v5188_v13, %v1178_v17 }
 0x22b   : > { %v1169_v49 = vpop.xlane.xlu1 %1168  ;;  %v1269_v26 = vadd.f32 %v1232_v56, %v1231_v47  ;;  %v1290_v2 = vadd.f32 %v1246_v43, %v1245_v61  ;;  %v1120_v47 = vld [vmem:[%s6375_s18] sm:$0x3] }
 0x22c   : > { %v1186_v3 = vmul.f32 0.00390625, %v1169_v49  ;;  %v1247_v5 = vmul.f32 %v5331_v0, %v5331_v0  ;;  %v1248_v32 = vmul.f32 %v5334_v40, %v5334_v40  ;;  %v1233_v15 = vmul.f32 %v5341_v45, %v5341_v45 }
 0x22d   : > { %1267 = vadd.xlane.f32.xlu1 %v1266_v63  ;;  %1270 = vadd.xlane.f32.xlu0 %v1269_v26  ;;  %v1234_v8 = vmul.f32 %v5344_v48, %v5344_v48  ;;  %v1121_v63 = vld [vmem:[%s6376_s13] sm:$0x3]  ;;  %v5371_v26 = vrot.slane %v1120_v47, %v5063_v50 }
 0x22e   : > { %v1293_v6 = vadd.f32 %v1248_v32, %v1247_v5  ;;  %v5351_v7 = vsub.f32 %v5193_v16, %v1186_v3  ;;  %v5354_v13 = vsub.f32 %v5196_v19, %v1186_v3  ;;  %v5374_v3 = vrot.slane %v1120_v47, %v5068_v52 }
 0x22f   : > { %v1272_v9 = vadd.f32 %v1234_v8, %v1233_v15 }
 0x230   : > { %v1249_v38 = vmul.f32 %v5351_v7, %v5351_v7  ;;  %v1250_v1 = vmul.f32 %v5354_v13, %v5354_v13 }
 0x231   : > { %1291 = vadd.xlane.f32.xlu1 %v1290_v2  ;;  %1294 = vadd.xlane.f32.xlu0 %v1293_v6 }
 0x232   : > { %v1296_v16 = vadd.f32 %v1250_v1, %v1249_v38  ;;  %v5379_v38 = vrot.slane %v1121_v63, %v5063_v50  ;;  %v5382_v1 = vrot.slane %v1121_v63, %v5068_v52 }
 0x235   : > { %1273 = vadd.xlane.f32.xlu1 %v1272_v9 }
 0x239   : > { %1297 = vadd.xlane.f32.xlu1 %v1296_v16 }
 0x2a1   : > { %v1253_v19 = vpop.xlane.xlu0 %1252 }
 0x2a2   : > { %v1299_v22 = vmul.f32 0.00390625, %v1253_v19 }
 0x2a4   : > { %v1315_v39 = vadd.f32 1e-05, %v1299_v22 }
 0x2a6   : > { %v1277_v24 = vpop.xlane.xlu0 %1276  ;;  %4215 = vrsqrt.f32 %v1315_v39 }
 0x2a7   : > { %v1307_v29 = vmul.f32 0.00390625, %v1277_v24 }
 0x2a9   : > { %v1323_v20 = vadd.f32 1e-05, %v1307_v29 }
 0x2aa   : > { %v1256_v30 = vpop.xlane.xlu1 %1255  ;;  %v1259_v31 = vpop.xlane.xlu0 %1258 }
 0x2ab   : > { %4217 = vrsqrt.f32 %v1323_v20  ;;  %v1300_v23 = vmul.f32 0.00390625, %v1256_v30  ;;  %v1301_v46 = vmul.f32 0.00390625, %v1259_v31  ;;  %v1466_v30 = vld [vmem:[%s4933_s23 + $0x8] sm:$0xff] }
 0x2ad   : > { %v1316_v17 = vadd.f32 1e-05, %v1300_v23  ;;  %v1317_v18 = vadd.f32 1e-05, %v1301_v46 }
 0x2ae   : > { %v1280_v56 = vpop.xlane.xlu1 %1279  ;;  %v1283_v61 = vpop.xlane.xlu0 %1282 }
 0x2af   : > { %4219 = vrsqrt.f32 %v1316_v17  ;;  %v1308_v43 = vmul.f32 0.00390625, %v1280_v56  ;;  %v1309_v49 = vmul.f32 0.00390625, %v1283_v61 }
 0x2b0   : > { %4221 = vrsqrt.f32 %v1317_v18  ;;  %v4216_v5 = vpop.eup %4215 }
 0x2b1   : > { %v1324_v32 = vadd.f32 1e-05, %v1308_v43  ;;  %v1325_v2 = vadd.f32 1e-05, %v1309_v49  ;;  %v1347_v8 = vmul.f32 %v4216_v5, %v5205_v28  ;;  %v1348_v9 = vmul.f32 %v4216_v5, %v5208_v54  ;;  %v1465_v28 = vld [vmem:[%s4933_s23] sm:$0xff] }
 0x2b2   : > { %v1262_v6 = vpop.xlane.xlu1 %1261  ;;  %v1265_v15 = vpop.xlane.xlu0 %1264 }
 0x2b3   : > { %4223 = vrsqrt.f32 %v1324_v32  ;;  %v1302_v16 = vmul.f32 0.00390625, %v1262_v6  ;;  %v1303_v19 = vmul.f32 0.00390625, %v1265_v15  ;;  %v1390_v22 = vmul.f32 %v5371_v26, %v1347_v8  ;;  %v1481_v6 = vld [vmem:[%s4933_s23 + $0x80] sm:$0xff] }
 0x2b4   : > { %v1391_v39 = vmul.f32 %v5374_v3, %v1348_v9  ;;  %4225 = vrsqrt.f32 %v1325_v2 }
 0x2b5   : > { %v4218_v24 = vpop.eup %4217  ;;  %v1318_v29 = vadd.f32 1e-05, %v1302_v16  ;;  %v1319_v20 = vadd.f32 1e-05, %v1303_v19  ;;  %v1433_v23 = vadd.f32 %v5379_v38, %v1390_v22  ;;  %v1482_v16 = vld [vmem:[%s4933_s23 + $0x88] sm:$0xff] }
 0x2b6   : > { %v1286_v54 = vpop.xlane.xlu1 %1285  ;;  %v1289_v31 = vpop.xlane.xlu0 %1288  ;;  %v1434_v46 = vadd.f32 %v5382_v1, %v1391_v39  ;;  %v1363_v17 = vmul.f32 %v4218_v24, %v5215_v35  ;;  %v1364_v18 = vmul.f32 %v4218_v24, %v5218_v37 }
 0x2b7   : > { %v1310_v47 = vmul.f32 0.00390625, %v1286_v54  ;;  %v1311_v56 = vmul.f32 0.00390625, %v1289_v31  ;;  %4227 = vrsqrt.f32 %v1318_v29  ;;  %v5392_v61 = vadd.f32 %v1465_v28, %v1433_v23 }
 0x2b8   : > { %v5394_v43 = vadd.f32 %v1466_v30, %v1434_v46  ;;  %v1406_v49 = vmul.f32 %v5371_v26, %v1363_v17  ;;  %4229 = vrsqrt.f32 %v1319_v20  ;;  %v1407_v2 = vmul.f32 %v5374_v3, %v1364_v18  ;;  %v1467_v46 = vld [vmem:[%s4933_s23 + $0x10] sm:$0xff] }
 0x2b9   : > { %v4220_v63 = vpop.eup %4219  ;;  %v1326_v5 = vadd.f32 1e-05, %v1310_v47  ;;  %v1327_v32 = vadd.f32 1e-05, %v1311_v56  ;;  %1529 = vst [vmem:[#allocation2] sm:$0xff] %v5392_v61 }
 0x2ba   : > { %v4222_v35 = vpop.eup %4221  ;;  %v1268_v15 = vpop.xlane.xlu1 %1267  ;;  %1530 = vst [vmem:[#allocation2 + $0x8] sm:$0xff] %v5394_v43  ;;  %v1563_v8 = vadd.f32 %v5394_v43, %v5392_v61  ;;  %v1449_v9 = vadd.f32 %v5379_v38, %v1406_v49  ;;  %v1349_v19 = vmul.f32 %v4220_v63, %v5231_v62  ;;  %v1350_v22 = vmul.f32 %v4220_v63, %v5234_v55  ;;  %v1468_v55 = vld [vmem:[%s4933_s23 + $0x18] sm:$0xff] }
 0x2bb   : > { %v1271_v37 = vpop.xlane.xlu0 %1270  ;;  %4231 = vrsqrt.f32 %v1326_v5  ;;  %v1304_v39 = vmul.f32 0.00390625, %v1268_v15  ;;  %v1450_v29 = vadd.f32 %v5382_v1, %v1407_v2  ;;  %v1351_v17 = vmul.f32 %v4222_v35, %v5225_v51 }
 0x2bc   : > { %v1305_v24 = vmul.f32 0.00390625, %v1271_v37  ;;  %4233 = vrsqrt.f32 %v1327_v32  ;;  %1564 = vadd.xlane.f32.xlu0 %v1563_v8  ;;  %v5408_v20 = vadd.f32 %v1481_v6, %v1449_v9  ;;  %v1392_v28 = vmul.f32 %v5371_v26, %v1349_v19  ;;  %v1469_v9 = vld [vmem:[%s4933_s23 + $0x20] sm:$0xff] }
 0x2bd   : > { %v1393_v30 = vmul.f32 %v5374_v3, %v1350_v22  ;;  %v4224_v54 = vpop.eup %4223  ;;  %v1320_v31 = vadd.f32 1e-05, %v1304_v39  ;;  %v5412_v62 = vadd.f32 %v1482_v16, %v1450_v29  ;;  %v1352_v63 = vmul.f32 %v4222_v35, %v5228_v60  ;;  %v1470_v29 = vld [vmem:[%s4933_s23 + $0x28] sm:$0xff] }
 0x2be   : > { %v1321_v23 = vadd.f32 1e-05, %v1305_v24  ;;  %v1292_v18 = vpop.xlane.xlu1 %1291  ;;  %1545 = vst [vmem:[#allocation2 + $0x80] sm:$0xff] %v5408_v20  ;;  %v1435_v56 = vadd.f32 %v5379_v38, %v1392_v28  ;;  %v1365_v5 = vmul.f32 %v4224_v54, %v5237_v58  ;;  %v4226_v32 = vpop.eup %4225  ;;  %v1394_v60 = vmul.f32 %v5371_v26, %v1351_v17 }
 0x2bf   : > { %v1295_v47 = vpop.xlane.xlu0 %1294  ;;  %v1436_v49 = vadd.f32 %v5382_v1, %v1393_v30  ;;  %4235 = vrsqrt.f32 %v1320_v31  ;;  %v1312_v2 = vmul.f32 0.00390625, %v1292_v18  ;;  %1546 = vst [vmem:[#allocation2 + $0x88] sm:$0xff] %v5412_v62  ;;  %v1587_v51 = vadd.f32 %v5412_v62, %v5408_v20  ;;  %v1484_v18 = vld [vmem:[%s4933_s23 + $0x98] sm:$0xff] }
 0x2c0   : > { %v1313_v6 = vmul.f32 0.00390625, %v1295_v47  ;;  %4237 = vrsqrt.f32 %v1321_v23  ;;  %v5425_v15 = vadd.f32 %v1467_v46, %v1435_v56  ;;  %v1395_v58 = vmul.f32 %v5374_v3, %v1352_v63  ;;  %v1483_v46 = vld [vmem:[%s4933_s23 + $0x90] sm:$0xff] }
 0x2c1   : > { %v5427_v37 = vadd.f32 %v1468_v55, %v1436_v49  ;;  %v1328_v35 = vadd.f32 1e-05, %v1312_v2  ;;  %1588 = vadd.xlane.f32.xlu0 %v1587_v51  ;;  %v1366_v16 = vmul.f32 %v4224_v54, %v5240_v59  ;;  %v4228_v19 = vpop.eup %4227  ;;  %v1437_v24 = vadd.f32 %v5379_v38, %v1394_v60 }
 0x2c2   : > { %v1329_v8 = vadd.f32 1e-05, %v1313_v6  ;;  %v1274_v22 = vpop.xlane.xlu1 %1273  ;;  %1531 = vst [vmem:[#allocation2 + $0x10] sm:$0xff] %v5425_v15  ;;  %v1408_v28 = vmul.f32 %v5371_v26, %v1365_v5  ;;  %v1367_v30 = vmul.f32 %v4226_v32, %v5257_v14  ;;  %v4230_v31 = vpop.eup %4229  ;;  %v1438_v54 = vadd.f32 %v5382_v1, %v1395_v58 }
 0x2c3   : > { %1532 = vst [vmem:[#allocation2 + $0x18] sm:$0xff] %v5427_v37  ;;  %v1566_v39 = vadd.f32 %v5427_v37, %v5425_v15  ;;  %4239 = vrsqrt.f32 %v1328_v35  ;;  %v1306_v59 = vmul.f32 0.00390625, %v1274_v22  ;;  %v1409_v23 = vmul.f32 %v5374_v3, %v1366_v16  ;;  %v1486_v16 = vld [vmem:[%s4933_s23 + $0xa8] sm:$0xff] }
 0x2c4   : > { %4241 = vrsqrt.f32 %v1329_v8  ;;  %v5444_v55 = vadd.f32 %v1469_v9, %v1437_v24  ;;  %v1451_v17 = vadd.f32 %v5379_v38, %v1408_v28  ;;  %v1368_v47 = vmul.f32 %v4226_v32, %v5260_v21  ;;  %v1485_v9 = vld [vmem:[%s4933_s23 + $0xa0] sm:$0xff]  ;;  %v1471_v28 = vld [vmem:[%s4933_s23 + $0x30] sm:$0xff] }
 0x2c5   : > { %1567 = vadd.xlane.f32.xlu1 %v1566_v39  ;;  %v4232_v56 = vpop.eup %4231  ;;  %v1322_v49 = vadd.f32 1e-05, %v1306_v59  ;;  %v5449_v14 = vadd.f32 %v1470_v29, %v1438_v54  ;;  %v1452_v63 = vadd.f32 %v5382_v1, %v1409_v23  ;;  %v1410_v5 = vmul.f32 %v5371_v26, %v1367_v30  ;;  %v1472_v30 = vld [vmem:[%s4933_s23 + $0x38] sm:$0xff] }
 0x2c6   : > { %v4234_v2 = vpop.eup %4233  ;;  %1533 = vst [vmem:[#allocation2 + $0x20] sm:$0xff] %v5444_v55  ;;  %v1298_v6 = vpop.xlane.xlu1 %1297  ;;  %v5454_v51 = vadd.f32 %v1483_v46, %v1451_v17  ;;  %v1411_v60 = vmul.f32 %v5374_v3, %v1368_v47  ;;  %v1353_v21 = vmul.f32 %v4228_v19, %v5251_v4  ;;  %v1354_v32 = vmul.f32 %v4228_v19, %v5254_v11 }
 0x2c7   : > { %4243 = vrsqrt.f32 %v1322_v49  ;;  %1534 = vst [vmem:[#allocation2 + $0x28] sm:$0xff] %v5449_v14  ;;  %v1569_v35 = vadd.f32 %v5449_v14, %v5444_v55  ;;  %v1314_v8 = vmul.f32 0.00390625, %v1298_v6  ;;  %v5462_v58 = vadd.f32 %v1484_v18, %v1452_v63  ;;  %v1473_v6 = vld [vmem:[%s4933_s23 + $0x40] sm:$0xff] }
 0x2c8   : > { %1547 = vst [vmem:[#allocation2 + $0x90] sm:$0xff] %v5454_v51  ;;  %v1453_v22 = vadd.f32 %v5379_v38, %v1410_v5  ;;  %v1454_v4 = vadd.f32 %v5382_v1, %v1411_v60  ;;  %v1396_v11 = vmul.f32 %v5371_v26, %v1353_v21  ;;  %v1397_v19 = vmul.f32 %v5374_v3, %v1354_v32  ;;  %v1474_v60 = vld [vmem:[%s4933_s23 + $0x48] sm:$0xff] }
 0x2c9   : > { %v4236_v39 = vpop.eup %4235  ;;  %1570 = vadd.xlane.f32.xlu0 %v1569_v35  ;;  %v1330_v24 = vadd.f32 1e-05, %v1314_v8  ;;  %1548 = vst [vmem:[#allocation2 + $0x98] sm:$0xff] %v5462_v58  ;;  %v1590_v29 = vadd.f32 %v5462_v58, %v5454_v51  ;;  %v1355_v59 = vmul.f32 %v4230_v31, %v5276_v34  ;;  %v1356_v54 = vmul.f32 %v4230_v31, %v5279_v57 }
 0x2ca   : > { %v4238_v23 = vpop.eup %4237  ;;  %v5478_v46 = vadd.f32 %v1485_v9, %v1453_v22  ;;  %v5480_v17 = vadd.f32 %v1486_v16, %v1454_v4  ;;  %v1439_v18 = vadd.f32 %v5379_v38, %v1396_v11  ;;  %v1440_v47 = vadd.f32 %v5382_v1, %v1397_v19 }
 0x2cb   : > { %4245 = vrsqrt.f32 %v1330_v24  ;;  %1591 = vadd.xlane.f32.xlu1 %v1590_v29  ;;  %v1398_v49 = vmul.f32 %v5371_v26, %v1355_v59  ;;  %v1399_v63 = vmul.f32 %v5374_v3, %v1356_v54  ;;  %v1369_v34 = vmul.f32 %v4232_v56, %v5273_v33  ;;  %v1488_v29 = vld [vmem:[%s4933_s23 + $0xb8] sm:$0xff]  ;;  %v1489_v54 = vld [vmem:[%s4933_s23 + $0xc0] sm:$0xff] }
 0x2cc   : > { %1550 = vst [vmem:[#allocation2 + $0xa8] sm:$0xff] %v5480_v17  ;;  %v1593_v57 = vadd.f32 %v5480_v17, %v5478_v46  ;;  %1549 = vst [vmem:[#allocation2 + $0xa0] sm:$0xff] %v5478_v46  ;;  %v5491_v31 = vadd.f32 %v1471_v28, %v1439_v18  ;;  %v5493_v5 = vadd.f32 %v1472_v30, %v1440_v47 }
 0x2cd   : > { %v1370_v21 = vmul.f32 %v4232_v56, %v5284_v42  ;;  %v4240_v32 = vpop.eup %4239  ;;  %v1441_v35 = vadd.f32 %v5379_v38, %v1398_v49  ;;  %v1442_v33 = vadd.f32 %v5382_v1, %v1399_v63  ;;  %v1412_v8 = vmul.f32 %v5371_v26, %v1369_v34  ;;  %v1487_v56 = vld [vmem:[%s4933_s23 + $0xb0] sm:$0xff]  ;;  %v1490_v63 = vld [vmem:[%s4933_s23 + $0xc8] sm:$0xff] }
 0x2ce   : > { %v1371_v9 = vmul.f32 %v4234_v2, %v5291_v36  ;;  %v4242_v16 = vpop.eup %4241  ;;  %1594 = vadd.xlane.f32.xlu0 %v1593_v57  ;;  %1536 = vst [vmem:[#allocation2 + $0x38] sm:$0xff] %v5493_v5  ;;  %v1572_v22 = vadd.f32 %v5493_v5, %v5491_v31  ;;  %1535 = vst [vmem:[#allocation2 + $0x30] sm:$0xff] %v5491_v31  ;;  %v1372_v4 = vmul.f32 %v4234_v2, %v5294_v27  ;;  %v1475_v34 = vld [vmem:[%s4933_s23 + $0x50] sm:$0xff] }
 0x2cf   : > { %v1413_v42 = vmul.f32 %v5374_v3, %v1370_v21  ;;  %v1357_v11 = vmul.f32 %v4236_v39, %v5299_v12  ;;  %v5510_v19 = vadd.f32 %v1473_v6, %v1441_v35  ;;  %v5512_v36 = vadd.f32 %v1474_v60, %v1442_v33  ;;  %v1476_v35 = vld [vmem:[%s4933_s23 + $0x58] sm:$0xff] }
 0x2d0   : > { %v1455_v24 = vadd.f32 %v5379_v38, %v1412_v8  ;;  %v1414_v28 = vmul.f32 %v5371_v26, %v1371_v9  ;;  %1573 = vadd.xlane.f32.xlu1 %v1572_v22  ;;  %v1415_v59 = vmul.f32 %v5374_v3, %v1372_v4  ;;  %v1358_v27 = vmul.f32 %v4236_v39, %v5302_v10  ;;  %v1477_v4 = vld [vmem:[%s4933_s23 + $0x60] sm:$0xff] }
 0x2d1   : > { %v1456_v30 = vadd.f32 %v5382_v1, %v1413_v42  ;;  %v1400_v12 = vmul.f32 %v5371_v26, %v1357_v11  ;;  %v4244_v2 = vpop.eup %4243  ;;  %1538 = vst [vmem:[#allocation2 + $0x48] sm:$0xff] %v5512_v36  ;;  %v1575_v18 = vadd.f32 %v5512_v36, %v5510_v19  ;;  %1537 = vst [vmem:[#allocation2 + $0x40] sm:$0xff] %v5510_v19 }
 0x2d2   : > { %v5526_v47 = vadd.f32 %v1487_v56, %v1455_v24  ;;  %v1457_v49 = vadd.f32 %v5379_v38, %v1414_v28  ;;  %v1359_v57 = vmul.f32 %v4238_v23, %v5317_v25  ;;  %v1458_v39 = vadd.f32 %v5382_v1, %v1415_v59  ;;  %v1491_v59 = vld [vmem:[%s4933_s23 + $0xd0] sm:$0xff] }
 0x2d3   : > { %v5532_v10 = vadd.f32 %v1488_v29, %v1456_v30  ;;  %v1401_v6 = vmul.f32 %v5374_v3, %v1358_v27  ;;  %v1443_v60 = vadd.f32 %v5379_v38, %v1400_v12  ;;  %1576 = vadd.xlane.f32.xlu0 %v1575_v18  ;;  %v1360_v33 = vmul.f32 %v4238_v23, %v5320_v53  ;;  %v1478_v30 = vld [vmem:[%s4933_s23 + $0x68] sm:$0xff] }
 0x2d4   : > { %1551 = vst [vmem:[#allocation2 + $0xb0] sm:$0xff] %v5526_v47  ;;  %v5538_v21 = vadd.f32 %v1489_v54, %v1457_v49  ;;  %v1402_v8 = vmul.f32 %v5371_v26, %v1359_v57  ;;  %v1373_v25 = vmul.f32 %v4240_v32, %v5311_v41  ;;  %v5547_v22 = vadd.f32 %v1490_v63, %v1458_v39  ;;  %v1492_v63 = vld [vmem:[%s4933_s23 + $0xd8] sm:$0xff] }
 0x2d5   : > { %1552 = vst [vmem:[#allocation2 + $0xb8] sm:$0xff] %v5532_v10  ;;  %v1596_v9 = vadd.f32 %v5532_v10, %v5526_v47  ;;  %v1444_v42 = vadd.f32 %v5382_v1, %v1401_v6  ;;  %v5550_v56 = vadd.f32 %v1475_v34, %v1443_v60  ;;  %v4246_v11 = vpop.eup %4245  ;;  %v1403_v53 = vmul.f32 %v5374_v3, %v1360_v33  ;;  %v1493_v6 = vld [vmem:[%s4933_s23 + $0xe0] sm:$0xff]  ;;  %v1494_v60 = vld [vmem:[%s4933_s23 + $0xe8] sm:$0xff] }
 0x2d6   : > { %1553 = vst [vmem:[#allocation2 + $0xc0] sm:$0xff] %v5538_v21  ;;  %v1445_v41 = vadd.f32 %v5379_v38, %v1402_v8  ;;  %v1374_v23 = vmul.f32 %v4240_v32, %v5314_v44  ;;  %v1416_v24 = vmul.f32 %v5371_v26, %v1373_v25  ;;  %1554 = vst [vmem:[#allocation2 + $0xc8] sm:$0xff] %v5547_v22 }
 0x2d7   : > { %1597 = vadd.xlane.f32.xlu1 %v1596_v9  ;;  %v1599_v29 = vadd.f32 %v5547_v22, %v5538_v21  ;;  %v5561_v28 = vadd.f32 %v1476_v35, %v1444_v42  ;;  %1539 = vst [vmem:[#allocation2 + $0x50] sm:$0xff] %v5550_v56  ;;  %v1375_v54 = vmul.f32 %v4242_v16, %v5331_v0 }
 0x2d8   : > { %v1376_v27 = vmul.f32 %v4242_v16, %v5334_v40  ;;  %v1446_v44 = vadd.f32 %v5382_v1, %v1403_v53  ;;  %v5569_v32 = vadd.f32 %v1477_v4, %v1445_v41  ;;  %v1417_v12 = vmul.f32 %v5374_v3, %v1374_v23  ;;  %v1480_v23 = vld [vmem:[%s4933_s23 + $0x78] sm:$0xff] }
 0x2d9   : > { %v1459_v18 = vadd.f32 %v5379_v38, %v1416_v24  ;;  %1600 = vadd.xlane.f32.xlu0 %v1599_v29  ;;  %1540 = vst [vmem:[#allocation2 + $0x58] sm:$0xff] %v5561_v28  ;;  %v1578_v49 = vadd.f32 %v5561_v28, %v5550_v56  ;;  %v1418_v0 = vmul.f32 %v5371_v26, %v1375_v54 }
 0x2da   : > { %v1419_v40 = vmul.f32 %v5374_v3, %v1376_v27  ;;  %v1361_v16 = vmul.f32 %v4244_v2, %v5341_v45  ;;  %v5580_v34 = vadd.f32 %v1478_v30, %v1446_v44  ;;  %1541 = vst [vmem:[#allocation2 + $0x60] sm:$0xff] %v5569_v32  ;;  %v1460_v57 = vadd.f32 %v5382_v1, %v1417_v12  ;;  %v1496_v27 = vld [vmem:[%s4933_s23 + $0xf8] sm:$0xff] }
 0x2db   : > { %v5584_v39 = vadd.f32 %v1491_v59, %v1459_v18  ;;  %v1362_v35 = vmul.f32 %v4244_v2, %v5344_v48  ;;  %1579 = vadd.xlane.f32.xlu1 %v1578_v49  ;;  %v1461_v33 = vadd.f32 %v5379_v38, %v1418_v0  ;;  %v1377_v25 = vmul.f32 %v4246_v11, %v5351_v7  ;;  %v1479_v2 = vld [vmem:[%s4933_s23 + $0x70] sm:$0xff] }
 0x2dc   : > { %v1462_v8 = vadd.f32 %v5382_v1, %v1419_v40  ;;  %v1404_v45 = vmul.f32 %v5371_v26, %v1361_v16  ;;  %1542 = vst [vmem:[#allocation2 + $0x68] sm:$0xff] %v5580_v34  ;;  %v1581_v9 = vadd.f32 %v5580_v34, %v5569_v32  ;;  %v5596_v42 = vadd.f32 %v1492_v63, %v1460_v57 }
 0x2dd   : > { %1555 = vst [vmem:[#allocation2 + $0xd0] sm:$0xff] %v5584_v39  ;;  %v1405_v48 = vmul.f32 %v5374_v3, %v1362_v35  ;;  %v1378_v4 = vmul.f32 %v4246_v11, %v5354_v13  ;;  %v5602_v53 = vadd.f32 %v1493_v6, %v1461_v33  ;;  %v1420_v24 = vmul.f32 %v5371_v26, %v1377_v25  ;;  %v1495_v11 = vld [vmem:[%s4933_s23 + $0xf0] sm:$0xff] }
 0x2de   : > { %v5604_v41 = vadd.f32 %v1494_v60, %v1462_v8  ;;  %v1447_v7 = vadd.f32 %v5379_v38, %v1404_v45  ;;  %1582 = vadd.xlane.f32.xlu0 %v1581_v9  ;;  %1556 = vst [vmem:[#allocation2 + $0xd8] sm:$0xff] %v5596_v42  ;;  %v1602_v29 = vadd.f32 %v5596_v42, %v5584_v39 }
 0x2df   : > { %v1448_v30 = vadd.f32 %v5382_v1, %v1405_v48  ;;  %v1421_v13 = vmul.f32 %v5374_v3, %v1378_v4  ;;  %1557 = vst [vmem:[#allocation2 + $0xe0] sm:$0xff] %v5602_v53  ;;  %v1463_v26 = vadd.f32 %v5379_v38, %v1420_v24 }
 0x2e0   : > { %1558 = vst [vmem:[#allocation2 + $0xe8] sm:$0xff] %v5604_v41  ;;  %v1605_v59 = vadd.f32 %v5604_v41, %v5602_v53  ;;  %v5619_v54 = vadd.f32 %v1479_v2, %v1447_v7  ;;  %1603 = vadd.xlane.f32.xlu1 %v1602_v29 }
 0x2e1   : > { %v5623_v44 = vadd.f32 %v1480_v23, %v1448_v30  ;;  %v1464_v12 = vadd.f32 %v5382_v1, %v1421_v13  ;;  %v5627_v3 = vadd.f32 %v1495_v11, %v1463_v26 }
 0x2e2   : > { %1543 = vst [vmem:[#allocation2 + $0x70] sm:$0xff] %v5619_v54  ;;  %1606 = vadd.xlane.f32.xlu0 %v1605_v59 }
 0x2e3   : > { %1544 = vst [vmem:[#allocation2 + $0x78] sm:$0xff] %v5623_v44  ;;  %v1584_v18 = vadd.f32 %v5623_v44, %v5619_v54  ;;  %v5632_v49 = vadd.f32 %v1496_v27, %v1464_v12  ;;  %1559 = vst [vmem:[#allocation2 + $0xf0] sm:$0xff] %v5627_v3 }
 0x2e5   : > { %1585 = vadd.xlane.f32.xlu1 %v1584_v18  ;;  %1560 = vst [vmem:[#allocation2 + $0xf8] sm:$0xff] %v5632_v49  ;;  %v1608_v38 = vadd.f32 %v5632_v49, %v5627_v3 }
 0x2e9   : > { %1609 = vadd.xlane.f32.xlu1 %v1608_v38 }
 0x349   : > { %v1565_v1 = vpop.xlane.xlu0 %1564 }
 0x34a   : > { %v1611_v63 = vmul.f32 0.00390625, %v1565_v1 }
 0x34c   : > { %v5639_v0 = vsub.f32 %v5392_v61, %v1611_v63  ;;  %v5642_v40 = vsub.f32 %v5394_v43, %v1611_v63 }
 0x34e   : > { %v1589_v16 = vpop.xlane.xlu0 %1588  ;;  %v1659_v57 = vmul.f32 %v5639_v0, %v5639_v0  ;;  %v1660_v6 = vmul.f32 %v5642_v40, %v5642_v40 }
 0x34f   : > { %v1619_v60 = vmul.f32 0.00390625, %v1589_v16 }
 0x350   : > { %v1691_v35 = vadd.f32 %v1660_v6, %v1659_v57 }
 0x351   : > { %v5649_v33 = vsub.f32 %v5408_v20, %v1619_v60  ;;  %v5652_v8 = vsub.f32 %v5412_v62, %v1619_v60 }
 0x352   : > { %v1568_v61 = vpop.xlane.xlu1 %1567  ;;  %1692 = vadd.xlane.f32.xlu0 %v1691_v35 }
 0x353   : > { %v1612_v45 = vmul.f32 0.00390625, %v1568_v61  ;;  %v1675_v43 = vmul.f32 %v5649_v33, %v5649_v33  ;;  %v1676_v25 = vmul.f32 %v5652_v8, %v5652_v8 }
 0x355   : > { %v5659_v9 = vsub.f32 %v5425_v15, %v1612_v45  ;;  %v5662_v48 = vsub.f32 %v5427_v37, %v1612_v45  ;;  %v1715_v20 = vadd.f32 %v1676_v25, %v1675_v43 }
 0x356   : > { %v1571_v2 = vpop.xlane.xlu0 %1570 }
 0x357   : > { %v1661_v62 = vmul.f32 %v5659_v9, %v5659_v9  ;;  %v1662_v4 = vmul.f32 %v5662_v48, %v5662_v48  ;;  %v1613_v7 = vmul.f32 0.00390625, %v1571_v2  ;;  %1716 = vadd.xlane.f32.xlu0 %v1715_v20 }
 0x358   : > { %v1592_v23 = vpop.xlane.xlu1 %1591 }
 0x359   : > { %v1694_v24 = vadd.f32 %v1662_v4, %v1661_v62  ;;  %v5669_v29 = vsub.f32 %v5444_v55, %v1613_v7  ;;  %v5672_v15 = vsub.f32 %v5449_v14, %v1613_v7  ;;  %v1620_v37 = vmul.f32 0.00390625, %v1592_v23 }
 0x35b   : > { %1695 = vadd.xlane.f32.xlu1 %v1694_v24  ;;  %v5675_v30 = vsub.f32 %v5454_v51, %v1620_v37  ;;  %v5678_v13 = vsub.f32 %v5462_v58, %v1620_v37  ;;  %v1595_v11 = vpop.xlane.xlu0 %1594  ;;  %v1663_v59 = vmul.f32 %v5669_v29, %v5669_v29  ;;  %v1664_v26 = vmul.f32 %v5672_v15, %v5672_v15 }
 0x35c   : > { %v1621_v55 = vmul.f32 0.00390625, %v1595_v11 }
 0x35d   : > { %v1574_v27 = vpop.xlane.xlu1 %1573  ;;  %v1697_v12 = vadd.f32 %v1664_v26, %v1663_v59  ;;  %v1677_v14 = vmul.f32 %v5675_v30, %v5675_v30  ;;  %v1678_v51 = vmul.f32 %v5678_v13, %v5678_v13 }
 0x35e   : > { %v5689_v18 = vsub.f32 %v5478_v46, %v1621_v55  ;;  %v5692_v58 = vsub.f32 %v5480_v17, %v1621_v55  ;;  %v1614_v38 = vmul.f32 0.00390625, %v1574_v27 }
 0x35f   : > { %1698 = vadd.xlane.f32.xlu0 %v1697_v12  ;;  %v1718_v1 = vadd.f32 %v1678_v51, %v1677_v14 }
 0x360   : > { %v5695_v63 = vsub.f32 %v5491_v31, %v1614_v38  ;;  %v5698_v16 = vsub.f32 %v5493_v5, %v1614_v38  ;;  %v1577_v57 = vpop.xlane.xlu0 %1576  ;;  %v1679_v6 = vmul.f32 %v5689_v18, %v5689_v18  ;;  %v1680_v46 = vmul.f32 %v5692_v58, %v5692_v58 }
 0x361   : > { %v1615_v60 = vmul.f32 0.00390625, %v1577_v57  ;;  %1719 = vadd.xlane.f32.xlu1 %v1718_v1 }
 0x362   : > { %v1721_v17 = vadd.f32 %v1680_v46, %v1679_v6  ;;  %v1665_v35 = vmul.f32 %v5695_v63, %v5695_v63  ;;  %v1666_v31 = vmul.f32 %v5698_v16, %v5698_v16 }
 0x363   : > { %v5709_v61 = vsub.f32 %v5510_v19, %v1615_v60  ;;  %v5712_v5 = vsub.f32 %v5512_v36, %v1615_v60 }
 0x364   : > { %v1598_v45 = vpop.xlane.xlu1 %1597  ;;  %1722 = vadd.xlane.f32.xlu0 %v1721_v17  ;;  %v1700_v25 = vadd.f32 %v1666_v31, %v1665_v35 }
 0x365   : > { %v1622_v43 = vmul.f32 0.00390625, %v1598_v45  ;;  %v1667_v2 = vmul.f32 %v5709_v61, %v5709_v61  ;;  %v1668_v62 = vmul.f32 %v5712_v5, %v5712_v5 }
 0x366   : > { %v1601_v20 = vpop.xlane.xlu0 %1600  ;;  %1701 = vadd.xlane.f32.xlu1 %v1700_v25 }
 0x367   : > { %v5719_v4 = vsub.f32 %v5526_v47, %v1622_v43  ;;  %v5722_v19 = vsub.f32 %v5532_v10, %v1622_v43  ;;  %v1623_v7 = vmul.f32 0.00390625, %v1601_v20  ;;  %v1703_v23 = vadd.f32 %v1668_v62, %v1667_v2 }
 0x368   : > { %v1580_v36 = vpop.xlane.xlu1 %1579 }
 0x369   : > { %v5725_v24 = vsub.f32 %v5538_v21, %v1623_v7  ;;  %v5728_v37 = vsub.f32 %v5547_v22, %v1623_v7  ;;  %v1616_v11 = vmul.f32 0.00390625, %v1580_v36  ;;  %v1681_v59 = vmul.f32 %v5719_v4, %v5719_v4  ;;  %1704 = vadd.xlane.f32.xlu0 %v1703_v23 }
 0x36a   : > { %v1682_v47 = vmul.f32 %v5722_v19, %v5722_v19 }
 0x36b   : > { %v5735_v10 = vsub.f32 %v5550_v56, %v1616_v11  ;;  %v5738_v26 = vsub.f32 %v5561_v28, %v1616_v11  ;;  %v1583_v55 = vpop.xlane.xlu0 %1582  ;;  %v1683_v21 = vmul.f32 %v5725_v24, %v5725_v24  ;;  %v1684_v22 = vmul.f32 %v5728_v37, %v5728_v37 }
 0x36c   : > { %v1617_v27 = vmul.f32 0.00390625, %v1583_v55  ;;  %v1724_v12 = vadd.f32 %v1682_v47, %v1681_v59 }
 0x36d   : > { %v1604_v14 = vpop.xlane.xlu1 %1603  ;;  %v1727_v51 = vadd.f32 %v1684_v22, %v1683_v21  ;;  %v1669_v38 = vmul.f32 %v5735_v10, %v5735_v10  ;;  %v1670_v56 = vmul.f32 %v5738_v26, %v5738_v26 }
 0x36e   : > { %v5749_v28 = vsub.f32 %v5569_v32, %v1617_v27  ;;  %v5752_v1 = vsub.f32 %v5580_v34, %v1617_v27  ;;  %v1624_v57 = vmul.f32 0.00390625, %v1604_v14  ;;  %1725 = vadd.xlane.f32.xlu1 %v1724_v12  ;;  %v4599_v12 = vmov 0.0  }
 0x36f   : > { %v1607_v6 = vpop.xlane.xlu0 %1606  ;;  %1728 = vadd.xlane.f32.xlu0 %v1727_v51  ;;  %v1706_v46 = vadd.f32 %v1670_v56, %v1669_v38  ;;  %1937 = vst [vmem:[#allocation4] sm:$0xff] %v4599_v12  ;;  %1938 = vst [vmem:[#allocation4 + $0x8] sm:$0xff] %v4599_v12 }
 0x370   : > { %v5755_v60 = vsub.f32 %v5584_v39, %v1624_v57  ;;  %v5758_v17 = vsub.f32 %v5596_v42, %v1624_v57  ;;  %v1625_v35 = vmul.f32 0.00390625, %v1607_v6  ;;  %v1671_v31 = vmul.f32 %v5749_v28, %v5749_v28  ;;  %1939 = vst [vmem:[#allocation4 + $0x10] sm:$0xff] %v4599_v12  ;;  %1940 = vst [vmem:[#allocation4 + $0x18] sm:$0xff] %v4599_v12 }
 0x371   : > { %v1672_v34 = vmul.f32 %v5752_v1, %v5752_v1  ;;  %1941 = vst [vmem:[#allocation4 + $0x20] sm:$0xff] %v4599_v12  ;;  %1942 = vst [vmem:[#allocation4 + $0x28] sm:$0xff] %v4599_v12 }
 0x372   : > { %v1586_v32 = vpop.xlane.xlu1 %1585  ;;  %v5765_v45 = vsub.f32 %v5602_v53, %v1625_v35  ;;  %v5768_v43 = vsub.f32 %v5604_v41, %v1625_v35  ;;  %1707 = vadd.xlane.f32.xlu1 %v1706_v46  ;;  %v1685_v39 = vmul.f32 %v5755_v60, %v5755_v60  ;;  %v1686_v20 = vmul.f32 %v5758_v17, %v5758_v17 }
 0x373   : > { %v1618_v25 = vmul.f32 0.00390625, %v1586_v32  ;;  %v1709_v42 = vadd.f32 %v1672_v34, %v1671_v31  ;;  %1943 = vst [vmem:[#allocation4 + $0x30] sm:$0xff] %v4599_v12  ;;  %1944 = vst [vmem:[#allocation4 + $0x38] sm:$0xff] %v4599_v12 }
 0x374   : > { %v1687_v53 = vmul.f32 %v5765_v45, %v5765_v45  ;;  %v1688_v41 = vmul.f32 %v5768_v43, %v5768_v43  ;;  %v1730_v36 = vadd.f32 %v1686_v20, %v1685_v39  ;;  %1945 = vst [vmem:[#allocation4 + $0x40] sm:$0xff] %v4599_v12  ;;  %1946 = vst [vmem:[#allocation4 + $0x48] sm:$0xff] %v4599_v12 }
 0x375   : > { %v5775_v2 = vsub.f32 %v5619_v54, %v1618_v25  ;;  %v5778_v62 = vsub.f32 %v5623_v44, %v1618_v25  ;;  %1710 = vadd.xlane.f32.xlu0 %v1709_v42  ;;  %1947 = vst [vmem:[#allocation4 + $0x50] sm:$0xff] %v4599_v12  ;;  %1948 = vst [vmem:[#allocation4 + $0x58] sm:$0xff] %v4599_v12  ;;  %v1561_v25 = vld [vmem:[%s6377_s15] sm:$0x3] }
 0x376   : > { %v1610_v7 = vpop.xlane.xlu1 %1609  ;;  %v1733_v11 = vadd.f32 %v1688_v41, %v1687_v53  ;;  %1731 = vadd.xlane.f32.xlu1 %v1730_v36  ;;  %1949 = vst [vmem:[#allocation4 + $0x60] sm:$0xff] %v4599_v12  ;;  %1950 = vst [vmem:[#allocation4 + $0x68] sm:$0xff] %v4599_v12  ;;  %v1562_v41 = vld [vmem:[%s6378_s4] sm:$0x3] }
 0x377   : > { %v1626_v23 = vmul.f32 0.00390625, %v1610_v7  ;;  %v1673_v59 = vmul.f32 %v5775_v2, %v5775_v2  ;;  %v1674_v54 = vmul.f32 %v5778_v62, %v5778_v62  ;;  %1951 = vst [vmem:[#allocation4 + $0x70] sm:$0xff] %v4599_v12  ;;  %1952 = vst [vmem:[#allocation4 + $0x78] sm:$0xff] %v4599_v12  ;;  %v5805_v7 = vrot.slane %v1561_v25, %v5063_v50 }
 0x378   : > { %1953 = vst [vmem:[#allocation4 + $0x80] sm:$0xff] %v4599_v12  ;;  %1954 = vst [vmem:[#allocation4 + $0x88] sm:$0xff] %v4599_v12 }
 0x379   : > { %v5789_v44 = vsub.f32 %v5627_v3, %v1626_v23  ;;  %v5792_v47 = vsub.f32 %v5632_v49, %v1626_v23  ;;  %v1712_v55 = vadd.f32 %v1674_v54, %v1673_v59  ;;  %1734 = vadd.xlane.f32.xlu0 %v1733_v11  ;;  %1955 = vst [vmem:[#allocation4 + $0x90] sm:$0xff] %v4599_v12  ;;  %1956 = vst [vmem:[#allocation4 + $0x98] sm:$0xff] %v4599_v12 }
 0x37a   : > { %1957 = vst [vmem:[#allocation4 + $0xa0] sm:$0xff] %v4599_v12  ;;  %1958 = vst [vmem:[#allocation4 + $0xa8] sm:$0xff] %v4599_v12  ;;  %v5809_v11 = vrot.slane %v1561_v25, %v5068_v52 }
 0x37b   : > { %v1689_v21 = vmul.f32 %v5789_v44, %v5789_v44  ;;  %v1690_v22 = vmul.f32 %v5792_v47, %v5792_v47  ;;  %1713 = vadd.xlane.f32.xlu1 %v1712_v55  ;;  %1959 = vst [vmem:[#allocation4 + $0xb0] sm:$0xff] %v4599_v12  ;;  %1960 = vst [vmem:[#allocation4 + $0xb8] sm:$0xff] %v4599_v12 }
 0x37c   : > { %1961 = vst [vmem:[#allocation4 + $0xc0] sm:$0xff] %v4599_v12  ;;  %1962 = vst [vmem:[#allocation4 + $0xc8] sm:$0xff] %v4599_v12 }
 0x37d   : > { %v1736_v27 = vadd.f32 %v1690_v22, %v1689_v21  ;;  %1963 = vst [vmem:[#allocation4 + $0xd0] sm:$0xff] %v4599_v12  ;;  %1964 = vst [vmem:[#allocation4 + $0xd8] sm:$0xff] %v4599_v12 }
 0x37e   : > { %1965 = vst [vmem:[#allocation4 + $0xe0] sm:$0xff] %v4599_v12  ;;  %1966 = vst [vmem:[#allocation4 + $0xe8] sm:$0xff] %v4599_v12 }
 0x37f   : > { %1737 = vadd.xlane.f32.xlu1 %v1736_v27  ;;  %1967 = vst [vmem:[#allocation4 + $0xf0] sm:$0xff] %v4599_v12  ;;  %1968 = vst [vmem:[#allocation4 + $0xf8] sm:$0xff] %v4599_v12  ;;  %v5813_v27 = vrot.slane %v1562_v41, %v5063_v50 }
 0x3df   : > { %v1693_v3 = vpop.xlane.xlu0 %1692 }
 0x3e0   : > { %v1739_v49 = vmul.f32 0.00390625, %v1693_v3  ;;  %v5816_v3 = vrot.slane %v1562_v41, %v5068_v52 }
 0x3e2   : > { %v1755_v14 = vadd.f32 1e-05, %v1739_v49 }
 0x3e4   : > { %v1717_v51 = vpop.xlane.xlu0 %1716  ;;  %4247 = vrsqrt.f32 %v1755_v14 }
 0x3e5   : > { %v1747_v38 = vmul.f32 0.00390625, %v1717_v51 }
 0x3e7   : > { %v1763_v56 = vadd.f32 1e-05, %v1747_v38 }
 0x3e8   : > { %v1696_v57 = vpop.xlane.xlu1 %1695 }
 0x3e9   : > { %v1740_v6 = vmul.f32 0.00390625, %v1696_v57  ;;  %4249 = vrsqrt.f32 %v1763_v56 }
 0x3eb   : > { %v1756_v46 = vadd.f32 1e-05, %v1740_v6 }
 0x3ec   : > { %v1699_v35 = vpop.xlane.xlu0 %1698 }
 0x3ed   : > { %4251 = vrsqrt.f32 %v1756_v46  ;;  %v1741_v31 = vmul.f32 0.00390625, %v1699_v35 }
 0x3ee   : > { %v1720_v32 = vpop.xlane.xlu1 %1719  ;;  %v4248_v34 = vpop.eup %4247 }
 0x3ef   : > { %v1757_v39 = vadd.f32 1e-05, %v1741_v31  ;;  %v1748_v42 = vmul.f32 0.00390625, %v1720_v32  ;;  %v1787_v36 = vmul.f32 %v4248_v34, %v5639_v0  ;;  %v1788_v59 = vmul.f32 %v4248_v34, %v5642_v40 }
 0x3f1   : > { %4253 = vrsqrt.f32 %v1757_v39  ;;  %v1764_v20 = vadd.f32 1e-05, %v1748_v42  ;;  %v1723_v53 = vpop.xlane.xlu0 %1722  ;;  %v1830_v0 = vmul.f32 %v5805_v7, %v1787_v36  ;;  %v1831_v51 = vmul.f32 %v5809_v11, %v1788_v59 }
 0x3f2   : > { %v1749_v23 = vmul.f32 0.00390625, %v1723_v53 }
 0x3f3   : > { %4255 = vrsqrt.f32 %v1764_v20  ;;  %v1702_v54 = vpop.xlane.xlu1 %1701  ;;  %v4250_v22 = vpop.eup %4249  ;;  %v1873_v35 = vadd.f32 %v5813_v27, %v1830_v0  ;;  %v1874_v34 = vadd.f32 %v5816_v3, %v1831_v51 }
 0x3f4   : > { %v1765_v55 = vadd.f32 1e-05, %v1749_v23  ;;  %v1742_v21 = vmul.f32 0.00390625, %v1702_v54  ;;  %v1803_v57 = vmul.f32 %v4250_v22, %v5649_v33  ;;  %v1804_v50 = vmul.f32 %v4250_v22, %v5652_v8 }
 0x3f6   : > { %4257 = vrsqrt.f32 %v1765_v55  ;;  %v1758_v49 = vadd.f32 1e-05, %v1742_v21  ;;  %v1705_v14 = vpop.xlane.xlu0 %1704  ;;  %v1846_v8 = vmul.f32 %v5805_v7, %v1803_v57  ;;  %v1847_v39 = vmul.f32 %v5809_v11, %v1804_v50 }
 0x3f7   : > { %v4252_v12 = vpop.eup %4251  ;;  %v1743_v56 = vmul.f32 0.00390625, %v1705_v14 }
 0x3f8   : > { %v1789_v40 = vmul.f32 %v4252_v12, %v5659_v9  ;;  %v1790_v38 = vmul.f32 %v4252_v12, %v5662_v48  ;;  %4259 = vrsqrt.f32 %v1758_v49  ;;  %v1890_v51 = vadd.f32 %v5816_v3, %v1847_v39 }
 0x3f9   : > { %v1759_v46 = vadd.f32 1e-05, %v1743_v56 }
 0x3fa   : > { %v1832_v52 = vmul.f32 %v5805_v7, %v1789_v40  ;;  %v1833_v6 = vmul.f32 %v5809_v11, %v1790_v38 }
 0x3fb   : > { %v1726_v31 = vpop.xlane.xlu1 %1725  ;;  %v4254_v32 = vpop.eup %4253  ;;  %4261 = vrsqrt.f32 %v1759_v46 }
 0x3fc   : > { %v1875_v9 = vadd.f32 %v5813_v27, %v1832_v52  ;;  %v1876_v48 = vadd.f32 %v5816_v3, %v1833_v6  ;;  %v1750_v25 = vmul.f32 0.00390625, %v1726_v31  ;;  %v1729_v33 = vpop.xlane.xlu0 %1728  ;;  %v1791_v36 = vmul.f32 %v4254_v32, %v5669_v29 }
 0x3fd   : > { %v1751_v42 = vmul.f32 0.00390625, %v1729_v33  ;;  %v4256_v20 = vpop.eup %4255  ;;  %v1792_v59 = vmul.f32 %v4254_v32, %v5672_v15  ;;  %v1889_v29 = vadd.f32 %v5813_v27, %v1846_v8 }
 0x3fe   : > { %v1905_v53 = vpack.c.bf16 %v1875_v9, %v1873_v35  ;;  %v1906_v41 = vpack.c.bf16 %v1876_v48, %v1874_v34  ;;  %v1766_v23 = vadd.f32 1e-05, %v1750_v25  ;;  %v1805_v54 = vmul.f32 %v4256_v20, %v5675_v30 }
 0x3ff   : > { %v1806_v55 = vmul.f32 %v4256_v20, %v5678_v13  ;;  %v1708_v21 = vpop.xlane.xlu1 %1707  ;;  %v1767_v22 = vadd.f32 1e-05, %v1751_v42  ;;  %v1834_v15 = vmul.f32 %v5805_v7, %v1791_v36  ;;  %v1835_v38 = vmul.f32 %v5809_v11, %v1792_v59 }
 0x400   : > { %1921 = vst [vmem:[#allocation3] sm:$0xff] %v1905_v53  ;;  %1922 = vst [vmem:[#allocation3 + $0x8] sm:$0xff] %v1906_v41  ;;  %4263 = vrsqrt.f32 %v1766_v23  ;;  %v1744_v12 = vmul.f32 0.00390625, %v1708_v21  ;;  %v4258_v0 = vpop.eup %4257  ;;  %v1848_v49 = vmul.f32 %v5805_v7, %v1805_v54 }
 0x401   : > { %v1849_v14 = vmul.f32 %v5809_v11, %v1806_v55  ;;  %v1807_v52 = vmul.f32 %v4258_v0, %v5689_v18  ;;  %4265 = vrsqrt.f32 %v1767_v22  ;;  %v1808_v34 = vmul.f32 %v4258_v0, %v5692_v58 }
 0x402   : > { %v1760_v30 = vadd.f32 1e-05, %v1744_v12  ;;  %v1711_v40 = vpop.xlane.xlu0 %1710  ;;  %v4260_v13 = vpop.eup %4259  ;;  %v1891_v56 = vadd.f32 %v5813_v27, %v1848_v49  ;;  %v1877_v18 = vadd.f32 %v5813_v27, %v1834_v15 }
 0x403   : > { %v1892_v57 = vadd.f32 %v5816_v3, %v1849_v14  ;;  %v1745_v50 = vmul.f32 0.00390625, %v1711_v40  ;;  %v1793_v6 = vmul.f32 %v4260_v13, %v5695_v63  ;;  %v1794_v46 = vmul.f32 %v4260_v13, %v5698_v16  ;;  %v1732_v35 = vpop.xlane.xlu1 %1731 }
 0x404   : > { %v1913_v31 = vpack.c.bf16 %v1891_v56, %v1889_v29  ;;  %4267 = vrsqrt.f32 %v1760_v30  ;;  %v1752_v63 = vmul.f32 0.00390625, %v1732_v35  ;;  %v1878_v16 = vadd.f32 %v5816_v3, %v1835_v38 }
 0x405   : > { %v1914_v32 = vpack.c.bf16 %v1892_v57, %v1890_v51  ;;  %v1836_v9 = vmul.f32 %v5805_v7, %v1793_v6  ;;  %v1837_v48 = vmul.f32 %v5809_v11, %v1794_v46  ;;  %v1761_v25 = vadd.f32 1e-05, %v1745_v50  ;;  %v4262_v8 = vpop.eup %4261 }
 0x406   : > { %v1735_v33 = vpop.xlane.xlu0 %1734  ;;  %1929 = vst [vmem:[#allocation3 + $0x40] sm:$0xff] %v1913_v31  ;;  %v1850_v53 = vmul.f32 %v5805_v7, %v1807_v52  ;;  %v1851_v41 = vmul.f32 %v5809_v11, %v1808_v34  ;;  %v1768_v36 = vadd.f32 1e-05, %v1752_v63  ;;  %v1795_v22 = vmul.f32 %v4262_v8, %v5709_v61 }
 0x407   : > { %1930 = vst [vmem:[#allocation3 + $0x48] sm:$0xff] %v1914_v32  ;;  %v1879_v39 = vadd.f32 %v5813_v27, %v1836_v9  ;;  %v1880_v42 = vadd.f32 %v5816_v3, %v1837_v48  ;;  %v1753_v58 = vmul.f32 0.00390625, %v1735_v33  ;;  %4269 = vrsqrt.f32 %v1761_v25 }
 0x408   : > { %v1714_v20 = vpop.xlane.xlu1 %1713  ;;  %v1796_v12 = vmul.f32 %v4262_v8, %v5712_v5  ;;  %4271 = vrsqrt.f32 %v1768_v36  ;;  %v1893_v40 = vadd.f32 %v5813_v27, %v1850_v53  ;;  %v1894_v61 = vadd.f32 %v5816_v3, %v1851_v41 }
 0x409   : > { %v1746_v23 = vmul.f32 0.00390625, %v1714_v20  ;;  %v1907_v54 = vpack.c.bf16 %v1879_v39, %v1877_v18  ;;  %v1908_v55 = vpack.c.bf16 %v1880_v42, %v1878_v16  ;;  %v1769_v21 = vadd.f32 1e-05, %v1753_v58 }
 0x40a   : > { %v4264_v59 = vpop.eup %4263 }
 0x40b   : > { %v1809_v0 = vmul.f32 %v4264_v59, %v5719_v4  ;;  %v1810_v49 = vmul.f32 %v4264_v59, %v5722_v19  ;;  %1923 = vst [vmem:[#allocation3 + $0x10] sm:$0xff] %v1907_v54  ;;  %1924 = vst [vmem:[#allocation3 + $0x18] sm:$0xff] %v1908_v55  ;;  %v1762_v14 = vadd.f32 1e-05, %v1746_v23  ;;  %v4266_v30 = vpop.eup %4265  ;;  %4273 = vrsqrt.f32 %v1769_v21 }
 0x40c   : > { %v1738_v29 = vpop.xlane.xlu1 %1737  ;;  %v1838_v4 = vmul.f32 %v5805_v7, %v1795_v22  ;;  %v1839_v19 = vmul.f32 %v5809_v11, %v1796_v12  ;;  %v1811_v35 = vmul.f32 %v4266_v30, %v5725_v24  ;;  %v1812_v31 = vmul.f32 %v4266_v30, %v5728_v37 }
 0x40d   : > { %v1852_v51 = vmul.f32 %v5805_v7, %v1809_v0  ;;  %v1853_v15 = vmul.f32 %v5809_v11, %v1810_v49  ;;  %v1754_v5 = vmul.f32 0.00390625, %v1738_v29  ;;  %4275 = vrsqrt.f32 %v1762_v14 }
 0x40e   : > { %v4268_v13 = vpop.eup %4267  ;;  %v1854_v24 = vmul.f32 %v5805_v7, %v1811_v35  ;;  %v1855_v37 = vmul.f32 %v5809_v11, %v1812_v31 }
 0x40f   : > { %v1895_v38 = vadd.f32 %v5813_v27, %v1852_v51  ;;  %v1896_v56 = vadd.f32 %v5816_v3, %v1853_v15  ;;  %v1797_v57 = vmul.f32 %v4268_v13, %v5735_v10  ;;  %v1798_v50 = vmul.f32 %v4268_v13, %v5738_v26 }
 0x410   : > { %v1770_v52 = vadd.f32 1e-05, %v1754_v5  ;;  %v1881_v10 = vadd.f32 %v5813_v27, %v1838_v4  ;;  %v1882_v26 = vadd.f32 %v5816_v3, %v1839_v19 }
 0x411   : > { %v1915_v6 = vpack.c.bf16 %v1895_v38, %v1893_v40  ;;  %v1916_v46 = vpack.c.bf16 %v1896_v56, %v1894_v61  ;;  %v1840_v32 = vmul.f32 %v5805_v7, %v1797_v57  ;;  %v1841_v34 = vmul.f32 %v5809_v11, %v1798_v50  ;;  %v4270_v9 = vpop.eup %4269 }
 0x412   : > { %4277 = vrsqrt.f32 %v1770_v52  ;;  %v4272_v33 = vpop.eup %4271  ;;  %v1799_v63 = vmul.f32 %v4270_v9, %v5749_v28  ;;  %v1800_v16 = vmul.f32 %v4270_v9, %v5752_v1  ;;  %v1897_v28 = vadd.f32 %v5813_v27, %v1854_v24 }
 0x413   : > { %1931 = vst [vmem:[#allocation3 + $0x50] sm:$0xff] %v1915_v6  ;;  %1932 = vst [vmem:[#allocation3 + $0x58] sm:$0xff] %v1916_v46  ;;  %v1883_v48 = vadd.f32 %v5813_v27, %v1840_v32  ;;  %v1884_v25 = vadd.f32 %v5816_v3, %v1841_v34  ;;  %v1813_v39 = vmul.f32 %v4272_v33, %v5755_v60 }
 0x414   : > { %v1814_v42 = vmul.f32 %v4272_v33, %v5758_v17  ;;  %v1898_v1 = vadd.f32 %v5816_v3, %v1855_v37  ;;  %v1842_v60 = vmul.f32 %v5805_v7, %v1799_v63  ;;  %v1843_v17 = vmul.f32 %v5809_v11, %v1800_v16 }
 0x415   : > { %v1909_v8 = vpack.c.bf16 %v1883_v48, %v1881_v10  ;;  %v1910_v18 = vpack.c.bf16 %v1884_v25, %v1882_v26  ;;  %v4274_v58 = vpop.eup %4273  ;;  %v1856_v20 = vmul.f32 %v5805_v7, %v1813_v39 }
 0x416   : > { %v1857_v53 = vmul.f32 %v5809_v11, %v1814_v42  ;;  %v1815_v41 = vmul.f32 %v4274_v58, %v5765_v45  ;;  %v1816_v36 = vmul.f32 %v4274_v58, %v5768_v43  ;;  %v1885_v15 = vadd.f32 %v5813_v27, %v1842_v60 }
 0x417   : > { %1925 = vst [vmem:[#allocation3 + $0x20] sm:$0xff] %v1909_v8  ;;  %1926 = vst [vmem:[#allocation3 + $0x28] sm:$0xff] %v1910_v18  ;;  %v4276_v23 = vpop.eup %4275  ;;  %v1899_v59 = vadd.f32 %v5813_v27, %v1856_v20 }
 0x418   : > { %v1900_v54 = vadd.f32 %v5816_v3, %v1857_v53  ;;  %v1801_v55 = vmul.f32 %v4276_v23, %v5775_v2  ;;  %v1802_v21 = vmul.f32 %v4276_v23, %v5778_v62  ;;  %v1858_v12 = vmul.f32 %v5805_v7, %v1815_v41 }
 0x419   : > { %v1917_v22 = vpack.c.bf16 %v1899_v59, %v1897_v28  ;;  %v1859_v0 = vmul.f32 %v5809_v11, %v1816_v36  ;;  %v1886_v2 = vadd.f32 %v5816_v3, %v1843_v17 }
 0x41a   : > { %v1918_v43 = vpack.c.bf16 %v1900_v54, %v1898_v1  ;;  %v1844_v49 = vmul.f32 %v5805_v7, %v1801_v55  ;;  %v1845_v14 = vmul.f32 %v5809_v11, %v1802_v21  ;;  %v1901_v5 = vadd.f32 %v5813_v27, %v1858_v12 }
 0x41b   : > { %1933 = vst [vmem:[#allocation3 + $0x60] sm:$0xff] %v1917_v22 }
 0x41c   : > { %v4278_v45 = vpop.eup %4277  ;;  %1934 = vst [vmem:[#allocation3 + $0x68] sm:$0xff] %v1918_v43  ;;  %v1887_v62 = vadd.f32 %v5813_v27, %v1844_v49  ;;  %v1888_v30 = vadd.f32 %v5816_v3, %v1845_v14 }
 0x41d   : > { %v1817_v29 = vmul.f32 %v4278_v45, %v5789_v44  ;;  %v1818_v51 = vmul.f32 %v4278_v45, %v5792_v47  ;;  %v1902_v44 = vadd.f32 %v5816_v3, %v1859_v0 }
 0x41e   : > { %v1911_v13 = vpack.c.bf16 %v1887_v62, %v1885_v15  ;;  %v1912_v47 = vpack.c.bf16 %v1888_v30, %v1886_v2 }
 0x41f   : > { %v1860_v40 = vmul.f32 %v5805_v7, %v1817_v29  ;;  %v1861_v61 = vmul.f32 %v5809_v11, %v1818_v51 }
 0x420   : > { %1927 = vst [vmem:[#allocation3 + $0x30] sm:$0xff] %v1911_v13  ;;  %1928 = vst [vmem:[#allocation3 + $0x38] sm:$0xff] %v1912_v47 }
 0x421   : > { %v1903_v4 = vadd.f32 %v5813_v27, %v1860_v40  ;;  %v1904_v19 = vadd.f32 %v5816_v3, %v1861_v61 }
 0x423   : > { %v1919_v38 = vpack.c.bf16 %v1903_v4, %v1901_v5  ;;  %v1920_v56 = vpack.c.bf16 %v1904_v19, %v1902_v44 }
 0x425   : > { %1935 = vst [vmem:[#allocation3 + $0x70] sm:$0xff] %v1919_v38  ;;  %1936 = vst [vmem:[#allocation3 + $0x78] sm:$0xff] %v1920_v56 }
 0x426 PF: > { %v4279_v7 = vld [vmem:[%s4946_s29 + $0x4] ss:$16 sps:$4 sm:$0xff]   ;;  %v4281_v11 = vld [vmem:[%s4946_s29] ss:$16 sps:$4 sm:$0xff]   ;;  %v5925_v9 = vld [vmem:[#allocation3 + $0x8] sm:$0xff]  ;;  %p3962_p10 = scmp.ne.s32.totalorder %s4573_s26, 1 }
 0x427   : > { %2391 = vmatprep.subr.bf16.mxu1 %v4279_v7  ;;  %v4282_v27 = vld [vmem:[%s4946_s29 + $0x24] ss:$16 sps:$4 sm:$0xff]   ;;  %v4284_v3 = vld [vmem:[%s4946_s29 + $0x20] ss:$16 sps:$4 sm:$0xff]   ;;  %2423 = vmatprep.mubr.bf16.mxu1 %v5925_v9  ;;  %v4329_v17 = vld [vmem:[%s4946_s29 + $0xc] ss:$16 sps:$4 sm:$0xff]  }
 0x428   : > { %2392 = vmatpush1.bf16.msra.mxu1 %v4281_v11  ;;  %v4285_v57 = vld [vmem:[%s4946_s29 + $0x44] ss:$16 sps:$4 sm:$0xff]   ;;  %v4287_v50 = vld [vmem:[%s4946_s29 + $0x40] ss:$16 sps:$4 sm:$0xff]   ;;  %v4327_v21 = vld [vmem:[%s4946_s29 + $0x8] ss:$16 sps:$4 sm:$0xff]  }
 0x429   : > { %2393 = vmatprep.subr.bf16.mxu1 %v4282_v27  ;;  %v4288_v52 = vld [vmem:[%s4946_s29 + $0x64] ss:$16 sps:$4 sm:$0xff]   ;;  %v4290_v6 = vld [vmem:[%s4946_s29 + $0x60] ss:$16 sps:$4 sm:$0xff]   ;;  %v4332_v45 = vld [vmem:[%s4946_s29 + $0x2c] ss:$16 sps:$4 sm:$0xff]  }
 0x42a   : > { %v4291_v46 = vld [vmem:[%s4946_s29 + $0x84] ss:$16 sps:$4 sm:$0xff]   ;;  %v4293_v35 = vld [vmem:[%s4946_s29 + $0x80] ss:$16 sps:$4 sm:$0xff]   ;;  %v5957_v22 = vld [vmem:[#allocation3 + $0x18] sm:$0xff] }
 0x42b   : > { %v4294_v31 = vld [vmem:[%s4946_s29 + $0xa4] ss:$16 sps:$4 sm:$0xff]   ;;  %v4296_v32 = vld [vmem:[%s4946_s29 + $0xa0] ss:$16 sps:$4 sm:$0xff]   ;;  %v4330_v12 = vld [vmem:[%s4946_s29 + $0x28] ss:$16 sps:$4 sm:$0xff]  }
 0x42c   : > { %2394 = vmatpush1.bf16.msra.mxu1 %v4284_v3  ;;  %v4297_v34 = vld [vmem:[%s4946_s29 + $0xc4] ss:$16 sps:$4 sm:$0xff]   ;;  %v4299_v10 = vld [vmem:[%s4946_s29 + $0xc0] ss:$16 sps:$4 sm:$0xff]   ;;  %v4335_v0 = vld [vmem:[%s4946_s29 + $0x4c] ss:$16 sps:$4 sm:$0xff]  }
 0x42d   : > { %2395 = vmatprep.subr.bf16.mxu1 %v4285_v57  ;;  %v4300_v26 = vld [vmem:[%s4946_s29 + $0xe4] ss:$16 sps:$4 sm:$0xff]   ;;  %v4302_v48 = vld [vmem:[%s4946_s29 + $0xe0] ss:$16 sps:$4 sm:$0xff]   ;;  %v4333_v15 = vld [vmem:[%s4946_s29 + $0x48] ss:$16 sps:$4 sm:$0xff]  }
 0x42e   : > { %v4303_v25 = vld [vmem:[%s4946_s29 + $0x104] ss:$16 sps:$4 sm:$0xff]   ;;  %v4305_v33 = vld [vmem:[%s4946_s29 + $0x100] ss:$16 sps:$4 sm:$0xff]   ;;  %v4338_v2 = vld [vmem:[%s4946_s29 + $0x6c] ss:$16 sps:$4 sm:$0xff]  }
 0x42f   : > { %v4306_v24 = vld [vmem:[%s4946_s29 + $0x124] ss:$16 sps:$4 sm:$0xff]   ;;  %v4308_v37 = vld [vmem:[%s4946_s29 + $0x120] ss:$16 sps:$4 sm:$0xff]   ;;  %v5971_v62 = vld [vmem:[#allocation3 + $0x28] sm:$0xff] }
 0x430   : > { %2396 = vmatpush1.bf16.msra.mxu1 %v4287_v50  ;;  %v4309_v8 = vld [vmem:[%s4946_s29 + $0x144] ss:$16 sps:$4 sm:$0xff]   ;;  %v4311_v18 = vld [vmem:[%s4946_s29 + $0x140] ss:$16 sps:$4 sm:$0xff]   ;;  %v4336_v61 = vld [vmem:[%s4946_s29 + $0x68] ss:$16 sps:$4 sm:$0xff]  }
 0x431   : > { %2397 = vmatprep.subr.bf16.mxu1 %v4288_v52  ;;  %v4312_v63 = vld [vmem:[%s4946_s29 + $0x164] ss:$16 sps:$4 sm:$0xff]   ;;  %v4314_v16 = vld [vmem:[%s4946_s29 + $0x160] ss:$16 sps:$4 sm:$0xff]   ;;  %v4341_v5 = vld [vmem:[%s4946_s29 + $0x8c] ss:$16 sps:$4 sm:$0xff]  }
 0x432   : > { %v4315_v39 = vld [vmem:[%s4946_s29 + $0x184] ss:$16 sps:$4 sm:$0xff]   ;;  %v4317_v42 = vld [vmem:[%s4946_s29 + $0x180] ss:$16 sps:$4 sm:$0xff]   ;;  %v4339_v4 = vld [vmem:[%s4946_s29 + $0x88] ss:$16 sps:$4 sm:$0xff]  }
 0x433   : > { %v4318_v58 = vld [vmem:[%s4946_s29 + $0x1a4] ss:$16 sps:$4 sm:$0xff]   ;;  %v4320_v20 = vld [vmem:[%s4946_s29 + $0x1a0] ss:$16 sps:$4 sm:$0xff]   ;;  %v4344_v19 = vld [vmem:[%s4946_s29 + $0xac] ss:$16 sps:$4 sm:$0xff]  }
 0x434   : > { %2398 = vmatpush1.bf16.msra.mxu1 %v4290_v6  ;;  %v4321_v53 = vld [vmem:[%s4946_s29 + $0x1c4] ss:$16 sps:$4 sm:$0xff]   ;;  %v4323_v41 = vld [vmem:[%s4946_s29 + $0x1c0] ss:$16 sps:$4 sm:$0xff]   ;;  %v5985_v38 = vld [vmem:[#allocation3 + $0x38] sm:$0xff] }
 0x435   : > { %2399 = vmatprep.subr.bf16.mxu1 %v4291_v46  ;;  %v4324_v36 = vld [vmem:[%s4946_s29 + $0x1e4] ss:$16 sps:$4 sm:$0xff]   ;;  %v4377_v28 = vld [vmem:[%s4944_s25] ss:$8 sps:$4 sm:$0xff]   ;;  %v4380_v59 = vld [vmem:[%s4944_s25 + $0x10] ss:$8 sps:$4 sm:$0xff]  }
 0x436   : > { %v4375_v23 = vld [vmem:[%s4944_s25 + $0x4] ss:$8 sps:$4 sm:$0xff]   ;;  %v4378_v1 = vld [vmem:[%s4944_s25 + $0x14] ss:$8 sps:$4 sm:$0xff]   ;;  %v4326_v60 = vld [vmem:[%s4946_s29 + $0x1e0] ss:$16 sps:$4 sm:$0xff]  }
 0x437   : > { %3129 = vmatprep.subr.bf16.mxu0 %v4375_v23  ;;  %v4381_v54 = vld [vmem:[%s4944_s25 + $0x24] ss:$8 sps:$4 sm:$0xff]   ;;  %v4383_v43 = vld [vmem:[%s4944_s25 + $0x20] ss:$8 sps:$4 sm:$0xff]   ;;  %v4384_v49 = vld [vmem:[%s4944_s25 + $0x34] ss:$8 sps:$4 sm:$0xff]  }
 0x438   : > { %2400 = vmatpush1.bf16.msra.mxu1 %v4293_v35  ;;  %3130 = vmatpush1.bf16.msra.mxu0 %v4377_v28  ;;  %v5953_v55 = vld [vmem:[#allocation3] sm:$0xff]  ;;  %v4386_v14 = vld [vmem:[%s4944_s25 + $0x30] ss:$8 sps:$4 sm:$0xff]   ;;  %v4390_v40 = vld [vmem:[%s4944_s25 + $0x54] ss:$8 sps:$4 sm:$0xff]  }
 0x439   : > { %2401 = vmatprep.subr.bf16.mxu1 %v4294_v31  ;;  %3131 = vmatprep.subr.bf16.mxu0 %v4378_v1  ;;  %v4387_v29 = vld [vmem:[%s4944_s25 + $0x44] ss:$8 sps:$4 sm:$0xff]   ;;  %v5967_v51 = vld [vmem:[#allocation3 + $0x10] sm:$0xff]  ;;  %v4389_v30 = vld [vmem:[%s4944_s25 + $0x40] ss:$8 sps:$4 sm:$0xff]  }
 0x43a   : > { %v4392_v44 = vld [vmem:[%s4944_s25 + $0x50] ss:$8 sps:$4 sm:$0xff]   ;;  %v4393_v13 = vld [vmem:[%s4944_s25 + $0x64] ss:$8 sps:$4 sm:$0xff]   ;;  %v4395_v56 = vld [vmem:[%s4944_s25 + $0x60] ss:$8 sps:$4 sm:$0xff]  }
 0x43b   : > { %v5981_v47 = vld [vmem:[#allocation3 + $0x20] sm:$0xff]  ;;  %v4396_v7 = vld [vmem:[%s4944_s25 + $0x74] ss:$8 sps:$4 sm:$0xff]   ;;  %v4342_v11 = vld [vmem:[%s4946_s29 + $0xa8] ss:$16 sps:$4 sm:$0xff]  }
 0x43c   : > { %2402 = vmatpush1.bf16.msra.mxu1 %v4296_v32  ;;  %3132 = vmatpush1.bf16.msra.mxu0 %v4380_v59  ;;  %v4347_v27 = vld [vmem:[%s4946_s29 + $0xcc] ss:$16 sps:$4 sm:$0xff]   ;;  %v4398_v3 = vld [vmem:[%s4944_s25 + $0x70] ss:$8 sps:$4 sm:$0xff]   ;;  %v4401_v35 = vld [vmem:[%s4944_s25 + $0x80] ss:$8 sps:$4 sm:$0xff]  }
 0x43d   : > { %2403 = vmatprep.subr.bf16.mxu1 %v4297_v34  ;;  %3133 = vmatprep.subr.bf16.mxu0 %v4381_v54  ;;  %v4399_v57 = vld [vmem:[%s4944_s25 + $0x84] ss:$8 sps:$4 sm:$0xff]   ;;  %v5995_v50 = vld [vmem:[#allocation3 + $0x30] sm:$0xff]  ;;  %v4345_v52 = vld [vmem:[%s4946_s29 + $0xc8] ss:$16 sps:$4 sm:$0xff]  }
 0x43e   : > { %v4350_v6 = vld [vmem:[%s4946_s29 + $0xec] ss:$16 sps:$4 sm:$0xff]   ;;  %v4348_v32 = vld [vmem:[%s4946_s29 + $0xe8] ss:$16 sps:$4 sm:$0xff]   ;;  %v1981_v1 = vld [vmem:[#allocation3 + $0x60] sm:$0xff] }
 0x43f   : > { %v5999_v46 = vld [vmem:[#allocation3 + $0x48] sm:$0xff]  ;;  %v4402_v31 = vld [vmem:[%s4944_s25 + $0x94] ss:$8 sps:$4 sm:$0xff]  }
 0x440   : > { %2404 = vmatpush1.bf16.msra.mxu1 %v4299_v10  ;;  %3134 = vmatpush1.bf16.msra.mxu0 %v4383_v43  ;;  %v4353_v34 = vld [vmem:[%s4946_s29 + $0x10c] ss:$16 sps:$4 sm:$0xff]   ;;  %v4404_v10 = vld [vmem:[%s4944_s25 + $0x90] ss:$8 sps:$4 sm:$0xff]  }
 0x441   : > { %2405 = vmatprep.subr.bf16.mxu1 %v4300_v26  ;;  %3135 = vmatprep.subr.bf16.mxu0 %v4384_v49  ;;  %v4405_v26 = vld [vmem:[%s4944_s25 + $0xa4] ss:$8 sps:$4 sm:$0xff]   ;;  %v4360_v23 = vld [vmem:[%s4946_s29 + $0x168] ss:$16 sps:$4 sm:$0xff]  }
 0x442   : > { %v4365_v28 = vld [vmem:[%s4946_s29 + $0x18c] ss:$16 sps:$4 sm:$0xff]   ;;  %v4366_v54 = vld [vmem:[%s4946_s29 + $0x1a8] ss:$16 sps:$4 sm:$0xff]  }
 0x443   : > { %v1984_v59 = vld [vmem:[#allocation3 + $0x78] sm:$0xff] }
 0x444   : > { %2406 = vmatpush1.bf16.msra.mxu1 %v4302_v48  ;;  %3136 = vmatpush1.bf16.msra.mxu0 %v4386_v14  ;;  %v6009_v48 = vld [vmem:[#allocation3 + $0x40] sm:$0xff]  ;;  %v4369_v43 = vld [vmem:[%s4946_s29 + $0x1c8] ss:$16 sps:$4 sm:$0xff]  }
 0x445   : > { %2407 = vmatprep.subr.bf16.mxu1 %v4303_v25  ;;  %3137 = vmatprep.subr.bf16.mxu0 %v4387_v29  ;;  %v4351_v25 = vld [vmem:[%s4946_s29 + $0x108] ss:$16 sps:$4 sm:$0xff]   ;;  %v4425_v29 = vld [vmem:[%s4944_s25 + $0x104] ss:$8 sps:$4 sm:$0xff]  }
 0x446   : > { %v4416_v49 = vld [vmem:[%s4944_s25 + $0xd0] ss:$8 sps:$4 sm:$0xff]   ;;  %v4419_v14 = vld [vmem:[%s4944_s25 + $0xe0] ss:$8 sps:$4 sm:$0xff]  }
 0x448   : > { %2408 = vmatpush1.bf16.msra.mxu1 %v4305_v33  ;;  %3138 = vmatpush1.bf16.msra.mxu0 %v4389_v30  ;;  %v4356_v33 = vld [vmem:[%s4946_s29 + $0x12c] ss:$16 sps:$4 sm:$0xff]  }
 0x449   : > { %2409 = vmatprep.subr.bf16.mxu1 %v4306_v24  ;;  %3139 = vmatprep.subr.bf16.mxu0 %v4390_v40  ;;  %v6013_v24 = vld [vmem:[#allocation3 + $0x58] sm:$0xff] }
 0x44c   : > { %2410 = vmatpush1.bf16.msra.mxu1 %v4308_v37  ;;  %3140 = vmatpush1.bf16.msra.mxu0 %v4392_v44  ;;  %v4407_v37 = vld [vmem:[%s4944_s25 + $0xa0] ss:$8 sps:$4 sm:$0xff]  }
 0x44d   : > { %2411 = vmatprep.subr.bf16.mxu1 %v4309_v8  ;;  %3141 = vmatprep.subr.bf16.mxu0 %v4393_v13  ;;  %v4408_v8 = vld [vmem:[%s4944_s25 + $0xb4] ss:$8 sps:$4 sm:$0xff]  }
 0x450   : > { %2412 = vmatpush1.bf16.msra.mxu1 %v4311_v18  ;;  %3142 = vmatpush1.bf16.msra.mxu0 %v4395_v56  ;;  %v4354_v18 = vld [vmem:[%s4946_s29 + $0x128] ss:$16 sps:$4 sm:$0xff]  }
 0x451   : > { %2413 = vmatprep.subr.bf16.mxu1 %v4312_v63  ;;  %3143 = vmatprep.subr.bf16.mxu0 %v4396_v7  ;;  %v4359_v63 = vld [vmem:[%s4946_s29 + $0x14c] ss:$16 sps:$4 sm:$0xff]  }
 0x454   : > { %2414 = vmatpush1.bf16.msra.mxu1 %v4314_v16  ;;  %3144 = vmatpush1.bf16.msra.mxu0 %v4398_v3  ;;  %v4410_v16 = vld [vmem:[%s4944_s25 + $0xb0] ss:$8 sps:$4 sm:$0xff]  }
 0x455   : > { %2415 = vmatprep.subr.bf16.mxu1 %v4315_v39  ;;  %3145 = vmatprep.subr.bf16.mxu0 %v4399_v57  ;;  %v4411_v39 = vld [vmem:[%s4944_s25 + $0xc4] ss:$8 sps:$4 sm:$0xff]  }
 0x458   : > { %2416 = vmatpush1.bf16.msra.mxu1 %v4317_v42  ;;  %3146 = vmatpush1.bf16.msra.mxu0 %v4401_v35  ;;  %v1979_v42 = vld [vmem:[#allocation3 + $0x50] sm:$0xff] }
 0x459   : > { %2417 = vmatprep.subr.bf16.mxu1 %v4318_v58  ;;  %3147 = vmatprep.subr.bf16.mxu0 %v4402_v31  ;;  %v4357_v58 = vld [vmem:[%s4946_s29 + $0x148] ss:$16 sps:$4 sm:$0xff]   ;;  %v4428_v31 = vld [vmem:[%s4944_s25 + $0x114] ss:$8 sps:$4 sm:$0xff]  }
 0x45c   : > { %2418 = vmatpush1.bf16.msra.mxu1 %v4320_v20  ;;  %3148 = vmatpush1.bf16.msra.mxu0 %v4404_v10  ;;  %v4362_v20 = vld [vmem:[%s4946_s29 + $0x16c] ss:$16 sps:$4 sm:$0xff]  }
 0x45d   : > { %2419 = vmatprep.subr.bf16.mxu1 %v4321_v53  ;;  %3149 = vmatprep.subr.bf16.mxu0 %v4405_v26  ;;  %v1982_v53 = vld [vmem:[#allocation3 + $0x68] sm:$0xff] }
 0x460   : > { %2420 = vmatpush1.bf16.msra.mxu1 %v4323_v41  ;;  %3150 = vmatpush1.bf16.msra.mxu0 %v4407_v37  ;;  %v4413_v41 = vld [vmem:[%s4944_s25 + $0xc0] ss:$8 sps:$4 sm:$0xff]   ;;  %v4431_v37 = vld [vmem:[%s4944_s25 + $0x124] ss:$8 sps:$4 sm:$0xff]  }
 0x461   : > { %2421 = vmatprep.subr.bf16.mxu1 %v4324_v36  ;;  %3151 = vmatprep.subr.bf16.mxu0 %v4408_v8  ;;  %v4414_v36 = vld [vmem:[%s4944_s25 + $0xd4] ss:$8 sps:$4 sm:$0xff]  }
 0x464   : > { %2422 = vmatpush1.bf16.msra.mxu1 %v4326_v60  ;;  %3152 = vmatpush1.bf16.msra.mxu0 %v4410_v16  ;;  %v4363_v60 = vld [vmem:[%s4946_s29 + $0x188] ss:$16 sps:$4 sm:$0xff]  }
 0x465   : > { %2504 = vmatprep.subr.bf16.mxu1 %v4329_v17  ;;  %3153 = vmatprep.subr.bf16.mxu0 %v4411_v39  ;;  %v4368_v17 = vld [vmem:[%s4946_s29 + $0x1ac] ss:$16 sps:$4 sm:$0xff]  }
 0x467   : > { %2424 = vmatmul.mubr.bf16.vlgmr.msra.gmra.mrb[0].mxu1 %v5953_v55 }
 0x468   : > { %2505 = vmatpush1.bf16.msra.mxu1 %v4327_v21  ;;  %2433 = vmatprep.mubr.bf16.mxu1 %v5957_v22  ;;  %v4371_v21 = vld [vmem:[%s4946_s29 + $0x1cc] ss:$16 sps:$4 sm:$0xff]  }
 0x469   : > { %2506 = vmatprep.subr.bf16.mxu1 %v4332_v45  ;;  %3154 = vmatpush1.bf16.msra.mxu0 %v4413_v41  ;;  %v1983_v45 = vld [vmem:[#allocation3 + $0x70] sm:$0xff] }
 0x46a   : > { %3155 = vmatprep.subr.bf16.mxu0 %v4414_v36 }
 0x46c   : > { %2507 = vmatpush1.bf16.msra.mxu1 %v4330_v12  ;;  %v4374_v12 = vld [vmem:[%s4946_s29 + $0x1ec] ss:$16 sps:$4 sm:$0xff]  }
 0x46d   : > { %2508 = vmatprep.subr.bf16.mxu1 %v4335_v0  ;;  %v4372_v0 = vld [vmem:[%s4946_s29 + $0x1e8] ss:$16 sps:$4 sm:$0xff]   ;;  %3156 = vmatpush1.bf16.msra.mxu0 %v4416_v49 }
 0x46e   : > { %v4435_v49 = vld [vmem:[%s4944_s25 + $0x140] ss:$8 sps:$4 sm:$0xff]  }
 0x46f   : > { %2434 = vmatmul.mubr.bf16.gmra.mrb[4].mxu1 %v5967_v51 }
 0x470   : > { %2509 = vmatpush1.bf16.msra.mxu1 %v4333_v15  ;;  %2443 = vmatprep.mubr.bf16.mxu1 %v5971_v62 }
 0x471   : > { %2510 = vmatprep.subr.bf16.mxu1 %v4338_v2 }
 0x474   : > { %2511 = vmatpush1.bf16.msra.mxu1 %v4336_v61 }
 0x475   : > { %2512 = vmatprep.subr.bf16.mxu1 %v4341_v5 }
 0x477   : > { %2444 = vmatmul.mubr.bf16.gmra.mrb[8].mxu1 %v5981_v47 }
 0x478   : > { %2513 = vmatpush1.bf16.msra.mxu1 %v4339_v4  ;;  %2453 = vmatprep.mubr.bf16.mxu1 %v5985_v38 }
 0x479   : > { %2514 = vmatprep.subr.bf16.mxu1 %v4344_v19 }
 0x47c   : > { %2515 = vmatpush1.bf16.msra.mxu1 %v4342_v11 }
 0x47d   : > { %2516 = vmatprep.subr.bf16.mxu1 %v4347_v27 }
 0x47f   : > { %2454 = vmatmul.mubr.bf16.gmra.mrb[12].mxu1 %v5995_v50 }
 0x480   : > { %2517 = vmatpush1.bf16.msra.mxu1 %v4345_v52  ;;  %2463 = vmatprep.mubr.bf16.mxu1 %v5999_v46 }
 0x481   : > { %2518 = vmatprep.subr.bf16.mxu1 %v4350_v6  ;;  %v4423_v6 = vld [vmem:[%s4944_s25 + $0x100] ss:$8 sps:$4 sm:$0xff]  }
 0x484   : > { %2519 = vmatpush1.bf16.msra.mxu1 %v4348_v32 }
 0x485   : > { %2520 = vmatprep.subr.bf16.mxu1 %v4353_v34 }
 0x487   : > { %2464 = vmatmul.mubr.bf16.gmra.mrb[16].mxu1 %v6009_v48 }
 0x488   : > { %2521 = vmatpush1.bf16.msra.mxu1 %v4351_v25  ;;  %2473 = vmatprep.mubr.bf16.mxu1 %v6013_v24  ;;  %v4426_v25 = vld [vmem:[%s4944_s25 + $0x110] ss:$8 sps:$4 sm:$0xff]  }
 0x489   : > { %2522 = vmatprep.subr.bf16.mxu1 %v4356_v33 }
 0x48c   : > { %2523 = vmatpush1.bf16.msra.mxu1 %v4354_v18 }
 0x48d   : > { %2524 = vmatprep.subr.bf16.mxu1 %v4359_v63 }
 0x48f   : > { %2474 = vmatmul.mubr.bf16.gmra.mrb[20].mxu1 %v1979_v42 }
 0x490   : > { %2525 = vmatpush1.bf16.msra.mxu1 %v4357_v58  ;;  %2483 = vmatprep.mubr.bf16.mxu1 %v1982_v53 }
 0x491   : > { %2526 = vmatprep.subr.bf16.mxu1 %v4362_v20 }
 0x494   : > { %2527 = vmatpush1.bf16.msra.mxu1 %v4360_v23 }
 0x495   : > { %2528 = vmatprep.subr.bf16.mxu1 %v4365_v28 }
 0x497   : > { %2484 = vmatmul.mubr.bf16.gmra.mrb[24].mxu1 %v1981_v1 }
 0x498   : > { %2529 = vmatpush1.bf16.msra.mxu1 %v4363_v60  ;;  %2493 = vmatprep.mubr.bf16.mxu1 %v1984_v59  ;;  %v4432_v60 = vld [vmem:[%s4944_s25 + $0x130] ss:$8 sps:$4 sm:$0xff]  }
 0x499   : > { %2530 = vmatprep.subr.bf16.mxu1 %v4368_v17 }
 0x49c   : > { %2531 = vmatpush1.bf16.msra.mxu1 %v4366_v54  ;;  %v4437_v54 = vld [vmem:[%s4944_s25 + $0x144] ss:$8 sps:$4 sm:$0xff]  }
 0x49d   : > { %2532 = vmatprep.subr.bf16.mxu1 %v4371_v21 }
 0x49f   : > { %2494 = vmatmul.mubr.bf16.gmra.mrb[28].mxu1 %v1983_v45 }
 0x4a0   : > { %2533 = vmatpush1.bf16.msra.mxu1 %v4369_v43  ;;  %2536 = vmatprep.mubr.bf16.mxu1 %v5925_v9  ;;  %v4417_v9 = vld [vmem:[%s4944_s25 + $0xe4] ss:$8 sps:$4 sm:$0xff]  }
 0x4a1   : > { %2534 = vmatprep.subr.bf16.mxu1 %v4374_v12  ;;  %3157 = vmatprep.subr.bf16.mxu0 %v4417_v9 }
 0x4a2   : > { %3158 = vmatpush1.bf16.msra.mxu0 %v4419_v14 }
 0x4a4   : > { %2535 = vmatpush1.bf16.msra.mxu1 %v4372_v0 }
 0x4a7   : > { %2537 = vmatmul.mubr.bf16.vlgmr.msra.gmra.mrb[32].mxu1 %v5953_v55  ;;  %v4420_v55 = vld [vmem:[%s4944_s25 + $0xf4] ss:$8 sps:$4 sm:$0xff]  }
 0x4a8   : > { %2546 = vmatprep.mubr.bf16.mxu1 %v5957_v22  ;;  %v4422_v22 = vld [vmem:[%s4944_s25 + $0xf0] ss:$8 sps:$4 sm:$0xff]   ;;  %3159 = vmatprep.subr.bf16.mxu0 %v4420_v55  ;;  %v4440_v55 = vld [vmem:[%s4944_s25 + $0x154] ss:$8 sps:$4 sm:$0xff]  }
 0x4a9   : > { %3160 = vmatpush1.bf16.msra.mxu0 %v4422_v22 }
 0x4aa   : > { %3242 = vmatprep.subr.bf16.mxu0 %v4425_v29 }
 0x4af   : > { %2547 = vmatmul.mubr.bf16.gmra.mrb[36].mxu1 %v5967_v51  ;;  %v2051_v51 = vlaneseq }
 0x4b0   : > { %2556 = vmatprep.mubr.bf16.mxu1 %v5971_v62  ;;  %v6061_v62 = vld [vmem:[%s693_s8] sm:$0xf] }
 0x4b1   : > { %v6053_v15 = vshrl.u32 %v2051_v51, 7 }
 0x4b3   : > { %v2053_v2 = vsub.s32 0, %v6053_v15  ;;  %v2057_v30 = vsub.s32 1, %v6053_v15 }
 0x4b5   : > { %v6067_v40 = vrot.slane %v6061_v62, %v2053_v2  ;;  %v6072_v61 = vrot.slane %v6061_v62, %v2057_v30 }
 0x4b7   : > { %2557 = vmatmul.mubr.bf16.gmra.mrb[40].mxu1 %v5981_v47 }
 0x4b8   : > { %2566 = vmatprep.mubr.bf16.mxu1 %v5985_v38 }
 0x4bf   : > { %2567 = vmatmul.mubr.bf16.gmra.mrb[44].mxu1 %v5995_v50 }
 0x4c0   : > { %2576 = vmatprep.mubr.bf16.mxu1 %v5999_v46 }
 0x4c7   : > { %2577 = vmatmul.mubr.bf16.gmra.mrb[48].mxu1 %v6009_v48 }
 0x4c8   : > { %2586 = vmatprep.mubr.bf16.mxu1 %v6013_v24 }
 0x4cf   : > { %2587 = vmatmul.mubr.bf16.gmra.mrb[52].mxu1 %v1979_v42  ;;  %v4429_v42 = vld [vmem:[%s4944_s25 + $0x120] ss:$8 sps:$4 sm:$0xff]  }
 0x4d0   : > { %2596 = vmatprep.mubr.bf16.mxu1 %v1982_v53  ;;  %v4434_v53 = vld [vmem:[%s4944_s25 + $0x134] ss:$8 sps:$4 sm:$0xff]  }
 0x4d7   : > { %2597 = vmatmul.mubr.bf16.gmra.mrb[56].mxu1 %v1981_v1 }
 0x4d8   : > { %2606 = vmatprep.mubr.bf16.mxu1 %v1984_v59 }
 0x4df   : > { %2607 = vmatmul.mubr.bf16.gmra.mrb[60].mxu1 %v1983_v45 }
 0x53a   : > { %v2425_v5 = vpop.f32.mrb[0].mxu1 }
 0x53b   : > { %v2426_v44 = vadd.f32 %v2425_v5, %v6067_v40  ;;  %v2427_v13 = vpop.f32.mrb[1].mxu1 }
 0x53c   : > { %v2428_v47 = vadd.f32 %v2427_v13, %v6072_v61  ;;  %v2429_v4 = vpop.f32.mrb[2].mxu1  ;;  %v4438_v13 = vld [vmem:[%s4944_s25 + $0x150] ss:$8 sps:$4 sm:$0xff]  }
 0x53d   : > { %v2430_v19 = vadd.f32 %v2429_v4, %v6067_v40  ;;  %v2431_v38 = vpop.f32.mrb[3].mxu1  ;;  %v2617_v7 = vmax.f32 %v2426_v44, 0.0 }
 0x53e   : > { %v2432_v56 = vadd.f32 %v2431_v38, %v6072_v61  ;;  %v2618_v27 = vmax.f32 %v2428_v47, 0.0 }
 0x53f   : > { %v2621_v11 = vmax.f32 %v2430_v19, 0.0  ;;  %v4443_v19 = vld [vmem:[%s4944_s25 + $0x164] ss:$8 sps:$4 sm:$0xff]  }
 0x540   : > { %v2622_v3 = vmax.f32 %v2432_v56, 0.0 }
 0x541   : > { %v2681_v57 = vpack.c.bf16 %v2621_v11, %v2617_v7 }
 0x542   : > { %v2435_v50 = vpop.f32.mrb[4].mxu1  ;;  %v2682_v52 = vpack.c.bf16 %v2622_v3, %v2618_v27  ;;  %v4441_v3 = vld [vmem:[%s4944_s25 + $0x160] ss:$8 sps:$4 sm:$0xff]  }
 0x543   : > { %v2436_v46 = vadd.f32 %v2435_v50, %v6067_v40  ;;  %v2437_v35 = vpop.f32.mrb[5].mxu1 }
 0x544   : > { %v2438_v32 = vadd.f32 %v2437_v35, %v6072_v61  ;;  %v2439_v34 = vpop.f32.mrb[6].mxu1  ;;  %3161 = vmatprep.mubr.bf16.mxu0 %v2682_v52  ;;  %v4446_v52 = vld [vmem:[%s4944_s25 + $0x174] ss:$8 sps:$4 sm:$0xff]  }
 0x545   : > { %v2440_v10 = vadd.f32 %v2439_v34, %v6067_v40  ;;  %v2441_v26 = vpop.f32.mrb[7].mxu1  ;;  %3162 = vmatmul.mubr.bf16.vlgmr.msra.gmra.mrb[0].mxu0 %v2681_v57  ;;  %v2625_v33 = vmax.f32 %v2436_v46, 0.0  ;;  %v4444_v34 = vld [vmem:[%s4944_s25 + $0x170] ss:$8 sps:$4 sm:$0xff]  }
 0x546   : > { %v2442_v48 = vadd.f32 %v2441_v26, %v6072_v61  ;;  %3243 = vmatpush1.bf16.msra.mxu0 %v4423_v6  ;;  %v2626_v8 = vmax.f32 %v2438_v32, 0.0 }
 0x547   : > { %v2629_v24 = vmax.f32 %v2440_v10, 0.0  ;;  %3244 = vmatprep.subr.bf16.mxu0 %v4428_v31 }
 0x548   : > { %v2630_v18 = vmax.f32 %v2442_v48, 0.0  ;;  %v4449_v48 = vld [vmem:[%s4944_s25 + $0x184] ss:$8 sps:$4 sm:$0xff]  }
 0x549   : > { %v2685_v63 = vpack.c.bf16 %v2629_v24, %v2625_v33 }
 0x54a   : > { %v2686_v16 = vpack.c.bf16 %v2630_v18, %v2626_v8  ;;  %v2445_v39 = vpop.f32.mrb[8].mxu1  ;;  %3245 = vmatpush1.bf16.msra.mxu0 %v4426_v25  ;;  %v4447_v18 = vld [vmem:[%s4944_s25 + $0x180] ss:$8 sps:$4 sm:$0xff]  }
 0x54b   : > { %v2446_v58 = vadd.f32 %v2445_v39, %v6067_v40  ;;  %v2447_v20 = vpop.f32.mrb[9].mxu1  ;;  %3246 = vmatprep.subr.bf16.mxu0 %v4431_v37  ;;  %v4452_v39 = vld [vmem:[%s4944_s25 + $0x194] ss:$8 sps:$4 sm:$0xff]  }
 0x54c   : > { %v2448_v41 = vadd.f32 %v2447_v20, %v6072_v61  ;;  %v2449_v36 = vpop.f32.mrb[10].mxu1  ;;  %3171 = vmatprep.mubr.bf16.mxu0 %v2686_v16 }
 0x54d   : > { %v2450_v23 = vadd.f32 %v2449_v36, %v6067_v40  ;;  %v2451_v28 = vpop.f32.mrb[11].mxu1  ;;  %3172 = vmatmul.mubr.bf16.gmra.mrb[4].mxu0 %v2685_v63  ;;  %v2633_v17 = vmax.f32 %v2446_v58, 0.0  ;;  %v4450_v36 = vld [vmem:[%s4944_s25 + $0x190] ss:$8 sps:$4 sm:$0xff]  }
 0x54e   : > { %v2452_v1 = vadd.f32 %v2451_v28, %v6072_v61  ;;  %3247 = vmatpush1.bf16.msra.mxu0 %v4429_v42  ;;  %v2634_v21 = vmax.f32 %v2448_v41, 0.0 }
 0x54f   : > { %v2637_v59 = vmax.f32 %v2450_v23, 0.0  ;;  %3248 = vmatprep.subr.bf16.mxu0 %v4434_v53 }
 0x550   : > { %v2638_v45 = vmax.f32 %v2452_v1, 0.0  ;;  %v4455_v1 = vld [vmem:[%s4944_s25 + $0x1a4] ss:$8 sps:$4 sm:$0xff]  }
 0x551   : > { %v2689_v43 = vpack.c.bf16 %v2637_v59, %v2633_v17 }
 0x552   : > { %v2690_v12 = vpack.c.bf16 %v2638_v45, %v2634_v21  ;;  %v2455_v0 = vpop.f32.mrb[12].mxu1  ;;  %3249 = vmatpush1.bf16.msra.mxu0 %v4432_v60  ;;  %v4453_v45 = vld [vmem:[%s4944_s25 + $0x1a0] ss:$8 sps:$4 sm:$0xff]  }
 0x553   : > { %v2456_v9 = vadd.f32 %v2455_v0, %v6067_v40  ;;  %v2457_v14 = vpop.f32.mrb[13].mxu1  ;;  %3250 = vmatprep.subr.bf16.mxu0 %v4437_v54  ;;  %v4458_v0 = vld [vmem:[%s4944_s25 + $0x1b4] ss:$8 sps:$4 sm:$0xff]  }
 0x554   : > { %v2458_v22 = vadd.f32 %v2457_v14, %v6072_v61  ;;  %v2459_v29 = vpop.f32.mrb[14].mxu1  ;;  %3181 = vmatprep.mubr.bf16.mxu0 %v2690_v12 }
 0x555   : > { %v2460_v51 = vadd.f32 %v2459_v29, %v6067_v40  ;;  %v2461_v5 = vpop.f32.mrb[15].mxu1  ;;  %3182 = vmatmul.mubr.bf16.gmra.mrb[8].mxu0 %v2689_v43  ;;  %v2641_v47 = vmax.f32 %v2456_v9, 0.0  ;;  %v4456_v29 = vld [vmem:[%s4944_s25 + $0x1b0] ss:$8 sps:$4 sm:$0xff]  }
 0x556   : > { %v2462_v44 = vadd.f32 %v2461_v5, %v6072_v61  ;;  %3251 = vmatpush1.bf16.msra.mxu0 %v4435_v49  ;;  %v2642_v38 = vmax.f32 %v2458_v22, 0.0 }
 0x557   : > { %v2645_v4 = vmax.f32 %v2460_v51, 0.0  ;;  %3252 = vmatprep.subr.bf16.mxu0 %v4440_v55 }
 0x558   : > { %v2646_v56 = vmax.f32 %v2462_v44, 0.0  ;;  %v4461_v44 = vld [vmem:[%s4944_s25 + $0x1c4] ss:$8 sps:$4 sm:$0xff]  }
 0x559   : > { %v2693_v7 = vpack.c.bf16 %v2645_v4, %v2641_v47 }
 0x55a   : > { %v2694_v11 = vpack.c.bf16 %v2646_v56, %v2642_v38  ;;  %v2465_v27 = vpop.f32.mrb[16].mxu1  ;;  %3253 = vmatpush1.bf16.msra.mxu0 %v4438_v13  ;;  %v4459_v56 = vld [vmem:[%s4944_s25 + $0x1c0] ss:$8 sps:$4 sm:$0xff]  }
 0x55b   : > { %v2466_v57 = vadd.f32 %v2465_v27, %v6067_v40  ;;  %v2467_v50 = vpop.f32.mrb[17].mxu1  ;;  %3254 = vmatprep.subr.bf16.mxu0 %v4443_v19  ;;  %v4464_v27 = vld [vmem:[%s4944_s25 + $0x1d4] ss:$8 sps:$4 sm:$0xff]  }
 0x55c   : > { %v2468_v6 = vadd.f32 %v2467_v50, %v6072_v61  ;;  %v2469_v46 = vpop.f32.mrb[18].mxu1  ;;  %3191 = vmatprep.mubr.bf16.mxu0 %v2694_v11 }
 0x55d   : > { %v2470_v35 = vadd.f32 %v2469_v46, %v6067_v40  ;;  %v2471_v31 = vpop.f32.mrb[19].mxu1  ;;  %3192 = vmatmul.mubr.bf16.gmra.mrb[12].mxu0 %v2693_v7  ;;  %v2649_v10 = vmax.f32 %v2466_v57, 0.0 }
 0x55e   : > { %v2472_v32 = vadd.f32 %v2471_v31, %v6072_v61  ;;  %3255 = vmatpush1.bf16.msra.mxu0 %v4441_v3  ;;  %v2650_v25 = vmax.f32 %v2468_v6, 0.0  ;;  %v2061_v3 = vsub.s32 2, %v6053_v15  ;;  %v4462_v31 = vld [vmem:[%s4944_s25 + $0x1d0] ss:$8 sps:$4 sm:$0xff]  }
 0x55f   : > { %v2653_v26 = vmax.f32 %v2470_v35, 0.0  ;;  %3256 = vmatprep.subr.bf16.mxu0 %v4446_v52  ;;  %v2065_v52 = vsub.s32 3, %v6053_v15 }
 0x560   : > { %v2654_v33 = vmax.f32 %v2472_v32, 0.0 }
 0x561   : > { %v2697_v24 = vpack.c.bf16 %v2653_v26, %v2649_v10  ;;  %v6136_v10 = vrot.slane %v6061_v62, %v2061_v3  ;;  %v4467_v26 = vld [vmem:[%s4944_s25 + $0x1e4] ss:$8 sps:$4 sm:$0xff]  }
 0x562   : > { %v2698_v37 = vpack.c.bf16 %v2654_v33, %v2650_v25  ;;  %v2475_v8 = vpop.f32.mrb[20].mxu1  ;;  %3257 = vmatpush1.bf16.msra.mxu0 %v4444_v34  ;;  %v6140_v33 = vrot.slane %v6061_v62, %v2065_v52 }
 0x563   : > { %v2476_v63 = vadd.f32 %v2475_v8, %v6067_v40  ;;  %v2477_v16 = vpop.f32.mrb[21].mxu1  ;;  %3258 = vmatprep.subr.bf16.mxu0 %v4449_v48 }
 0x564   : > { %v2478_v42 = vadd.f32 %v2477_v16, %v6072_v61  ;;  %v2479_v58 = vpop.f32.mrb[22].mxu1  ;;  %3201 = vmatprep.mubr.bf16.mxu0 %v2698_v37 }
 0x565   : > { %v2480_v20 = vadd.f32 %v2479_v58, %v6067_v40  ;;  %v2481_v53 = vpop.f32.mrb[23].mxu1  ;;  %3202 = vmatmul.mubr.bf16.gmra.mrb[16].mxu0 %v2697_v24  ;;  %v2657_v23 = vmax.f32 %v2476_v63, 0.0  ;;  %v4470_v63 = vld [vmem:[%s4944_s25 + $0x1f4] ss:$8 sps:$4 sm:$0xff]  }
 0x566   : > { %v2482_v41 = vadd.f32 %v2481_v53, %v6072_v61  ;;  %3259 = vmatpush1.bf16.msra.mxu0 %v4447_v18  ;;  %v2658_v60 = vmax.f32 %v2478_v42, 0.0 }
 0x567   : > { %v2661_v28 = vmax.f32 %v2480_v20, 0.0  ;;  %3260 = vmatprep.subr.bf16.mxu0 %v4452_v39  ;;  %v4468_v20 = vld [vmem:[%s4944_s25 + $0x1f0] ss:$8 sps:$4 sm:$0xff]  }
 0x568   : > { %v2662_v17 = vmax.f32 %v2482_v41, 0.0 }
 0x569   : > { %v2701_v59 = vpack.c.bf16 %v2661_v28, %v2657_v23 }
 0x56a   : > { %v2702_v54 = vpack.c.bf16 %v2662_v17, %v2658_v60  ;;  %v2485_v21 = vpop.f32.mrb[24].mxu1  ;;  %3261 = vmatpush1.bf16.msra.mxu0 %v4450_v36 }
 0x56b   : > { %v2486_v43 = vadd.f32 %v2485_v21, %v6067_v40  ;;  %v2487_v12 = vpop.f32.mrb[25].mxu1  ;;  %3262 = vmatprep.subr.bf16.mxu0 %v4455_v1 }
 0x56c   : > { %v2488_v49 = vadd.f32 %v2487_v12, %v6072_v61  ;;  %v2489_v9 = vpop.f32.mrb[26].mxu1  ;;  %3211 = vmatprep.mubr.bf16.mxu0 %v2702_v54 }
 0x56d   : > { %v2490_v14 = vadd.f32 %v2489_v9, %v6067_v40  ;;  %v2491_v55 = vpop.f32.mrb[27].mxu1  ;;  %3212 = vmatmul.mubr.bf16.gmra.mrb[20].mxu0 %v2701_v59  ;;  %v2665_v51 = vmax.f32 %v2486_v43, 0.0 }
 0x56e   : > { %v2492_v22 = vadd.f32 %v2491_v55, %v6072_v61  ;;  %3263 = vmatpush1.bf16.msra.mxu0 %v4453_v45  ;;  %v2666_v13 = vmax.f32 %v2488_v49, 0.0 }
 0x56f   : > { %v2669_v5 = vmax.f32 %v2490_v14, 0.0  ;;  %3264 = vmatprep.subr.bf16.mxu0 %v4458_v0 }
 0x570   : > { %v2670_v47 = vmax.f32 %v2492_v22, 0.0 }
 0x571   : > { %v2705_v4 = vpack.c.bf16 %v2669_v5, %v2665_v51 }
 0x572   : > { %v2706_v19 = vpack.c.bf16 %v2670_v47, %v2666_v13  ;;  %v2495_v38 = vpop.f32.mrb[28].mxu1  ;;  %3265 = vmatpush1.bf16.msra.mxu0 %v4456_v29 }
 0x573   : > { %v2496_v7 = vadd.f32 %v2495_v38, %v6067_v40  ;;  %v2497_v11 = vpop.f32.mrb[29].mxu1  ;;  %3266 = vmatprep.subr.bf16.mxu0 %v4461_v44 }
 0x574   : > { %v2498_v57 = vadd.f32 %v2497_v11, %v6072_v61  ;;  %v2499_v50 = vpop.f32.mrb[30].mxu1  ;;  %3221 = vmatprep.mubr.bf16.mxu0 %v2706_v19 }
 0x575   : > { %v2500_v6 = vadd.f32 %v2499_v50, %v6067_v40  ;;  %v2501_v46 = vpop.f32.mrb[31].mxu1  ;;  %3222 = vmatmul.mubr.bf16.gmra.mrb[24].mxu0 %v2705_v4  ;;  %v2673_v32 = vmax.f32 %v2496_v7, 0.0 }
 0x576   : > { %v2502_v35 = vadd.f32 %v2501_v46, %v6072_v61  ;;  %3267 = vmatpush1.bf16.msra.mxu0 %v4459_v56  ;;  %v2674_v48 = vmax.f32 %v2498_v57, 0.0  ;;  %v4465_v61 = vld [vmem:[%s4944_s25 + $0x1e0] ss:$8 sps:$4 sm:$0xff]   ;;  %s6379_s25 = sld [smem:[#allocation25_spill]] (!%p3962_p10) }
 0x577   : > { %v2677_v34 = vmax.f32 %v2500_v6, 0.0  ;;  %3268 = vmatprep.subr.bf16.mxu0 %v4464_v27 }
 0x578   : > { %v2678_v25 = vmax.f32 %v2502_v35, 0.0 }
 0x579   : > { %v2709_v40 = vpack.c.bf16 %v2677_v34, %v2673_v32 }
 0x57a   : > { %v2710_v24 = vpack.c.bf16 %v2678_v25, %v2674_v48  ;;  %v2538_v37 = vpop.f32.mrb[32].mxu1  ;;  %3269 = vmatpush1.bf16.msra.mxu0 %v4462_v31 }
 0x57b   : > { %v2539_v8 = vadd.f32 %v2538_v37, %v6136_v10  ;;  %v2540_v18 = vpop.f32.mrb[33].mxu1  ;;  %3270 = vmatprep.subr.bf16.mxu0 %v4467_v26 }
 0x57c   : > { %v2541_v16 = vadd.f32 %v2540_v18, %v6140_v33  ;;  %v2542_v39 = vpop.f32.mrb[34].mxu1  ;;  %3231 = vmatprep.mubr.bf16.mxu0 %v2710_v24 }
 0x57d   : > { %v2543_v42 = vadd.f32 %v2542_v39, %v6136_v10  ;;  %v2544_v58 = vpop.f32.mrb[35].mxu1  ;;  %3232 = vmatmul.mubr.bf16.gmra.mrb[28].mxu0 %v2709_v40  ;;  %v2619_v53 = vmax.f32 %v2539_v8, 0.0 }
 0x57e   : > { %v2545_v62 = vadd.f32 %v2544_v58, %v6140_v33  ;;  %3271 = vmatpush1.bf16.msra.mxu0 %v4465_v61  ;;  %v2620_v36 = vmax.f32 %v2541_v16, 0.0 }
 0x57f   : > { %v2623_v41 = vmax.f32 %v2543_v42, 0.0  ;;  %3272 = vmatprep.subr.bf16.mxu0 %v4470_v63 }
 0x580   : > { %v2624_v23 = vmax.f32 %v2545_v62, 0.0 }
 0x581   : > { %v2683_v28 = vpack.c.bf16 %v2623_v41, %v2619_v53 }
 0x582   : > { %v2684_v1 = vpack.c.bf16 %v2624_v23, %v2620_v36  ;;  %v2548_v60 = vpop.f32.mrb[36].mxu1  ;;  %3273 = vmatpush1.bf16.msra.mxu0 %v4468_v20 }
 0x583   : > { %v2549_v17 = vadd.f32 %v2548_v60, %v6136_v10  ;;  %v2550_v59 = vpop.f32.mrb[37].mxu1 }
 0x584   : > { %v2551_v54 = vadd.f32 %v2550_v59, %v6140_v33  ;;  %v2552_v21 = vpop.f32.mrb[38].mxu1  ;;  %3274 = vmatprep.mubr.bf16.mxu0 %v2684_v1 }
 0x585   : > { %v2553_v45 = vadd.f32 %v2552_v21, %v6136_v10  ;;  %v2554_v43 = vpop.f32.mrb[39].mxu1  ;;  %3275 = vmatmul.mubr.bf16.vlgmr.msra.gmra.mrb[0].mxu0 %v2683_v28  ;;  %v2627_v0 = vmax.f32 %v2549_v17, 0.0 }
 0x586   : > { %v2555_v12 = vadd.f32 %v2554_v43, %v6140_v33  ;;  %v2628_v9 = vmax.f32 %v2551_v54, 0.0 }
 0x587   : > { %v2631_v49 = vmax.f32 %v2553_v45, 0.0 }
 0x588   : > { %v2632_v14 = vmax.f32 %v2555_v12, 0.0 }
 0x589   : > { %v2687_v55 = vpack.c.bf16 %v2631_v49, %v2627_v0 }
 0x58a   : > { %v2688_v22 = vpack.c.bf16 %v2632_v14, %v2628_v9  ;;  %v2558_v29 = vpop.f32.mrb[40].mxu1 }
 0x58b   : > { %v2559_v51 = vadd.f32 %v2558_v29, %v6136_v10  ;;  %v2560_v5 = vpop.f32.mrb[41].mxu1 }
 0x58c   : > { %v2561_v44 = vadd.f32 %v2560_v5, %v6140_v33  ;;  %v2562_v13 = vpop.f32.mrb[42].mxu1  ;;  %3284 = vmatprep.mubr.bf16.mxu0 %v2688_v22 }
 0x58d   : > { %v2563_v47 = vadd.f32 %v2562_v13, %v6136_v10  ;;  %v2564_v4 = vpop.f32.mrb[43].mxu1  ;;  %3285 = vmatmul.mubr.bf16.gmra.mrb[4].mxu0 %v2687_v55  ;;  %v2635_v38 = vmax.f32 %v2559_v51, 0.0 }
 0x58e   : > { %v2565_v19 = vadd.f32 %v2564_v4, %v6140_v33  ;;  %v2636_v7 = vmax.f32 %v2561_v44, 0.0 }
 0x58f   : > { %v2639_v56 = vmax.f32 %v2563_v47, 0.0 }
 0x590   : > { %v2640_v11 = vmax.f32 %v2565_v19, 0.0 }
 0x591   : > { %v2691_v27 = vpack.c.bf16 %v2639_v56, %v2635_v38 }
 0x592   : > { %v2692_v3 = vpack.c.bf16 %v2640_v11, %v2636_v7  ;;  %v2568_v57 = vpop.f32.mrb[44].mxu1 }
 0x593   : > { %v2569_v50 = vadd.f32 %v2568_v57, %v6136_v10  ;;  %v2570_v52 = vpop.f32.mrb[45].mxu1 }
 0x594   : > { %v2571_v6 = vadd.f32 %v2570_v52, %v6140_v33  ;;  %v2572_v46 = vpop.f32.mrb[46].mxu1  ;;  %3294 = vmatprep.mubr.bf16.mxu0 %v2692_v3 }
 0x595   : > { %v2573_v35 = vadd.f32 %v2572_v46, %v6136_v10  ;;  %v2574_v31 = vpop.f32.mrb[47].mxu1  ;;  %3295 = vmatmul.mubr.bf16.gmra.mrb[8].mxu0 %v2691_v27  ;;  %v2643_v34 = vmax.f32 %v2569_v50, 0.0 }
 0x596   : > { %v2575_v32 = vadd.f32 %v2574_v31, %v6140_v33  ;;  %v2644_v48 = vmax.f32 %v2571_v6, 0.0 }
 0x597   : > { %v2647_v26 = vmax.f32 %v2573_v35, 0.0 }
 0x598   : > { %v2648_v25 = vmax.f32 %v2575_v32, 0.0 }
 0x599   : > { %v2695_v40 = vpack.c.bf16 %v2647_v26, %v2643_v34 }
 0x59a   : > { %v2696_v24 = vpack.c.bf16 %v2648_v25, %v2644_v48  ;;  %v2578_v37 = vpop.f32.mrb[48].mxu1  ;;  %v2713_v25 = vld [vmem:[#allocation4] sm:$0xff] }
 0x59b   : > { %v2579_v61 = vadd.f32 %v2578_v37, %v6136_v10  ;;  %v2580_v8 = vpop.f32.mrb[49].mxu1  ;;  %v2715_v37 = vld [vmem:[#allocation4 + $0x10] sm:$0xff] }
 0x59c   : > { %v2581_v18 = vadd.f32 %v2580_v8, %v6140_v33  ;;  %v2582_v63 = vpop.f32.mrb[50].mxu1  ;;  %3304 = vmatprep.mubr.bf16.mxu0 %v2696_v24 }
 0x59d   : > { %v2583_v16 = vadd.f32 %v2582_v63, %v6136_v10  ;;  %v2584_v39 = vpop.f32.mrb[51].mxu1  ;;  %3305 = vmatmul.mubr.bf16.gmra.mrb[12].mxu0 %v2695_v40  ;;  %v2651_v58 = vmax.f32 %v2579_v61, 0.0  ;;  %v2714_v40 = vld [vmem:[#allocation4 + $0x8] sm:$0xff] }
 0x59e   : > { %v2585_v42 = vadd.f32 %v2584_v39, %v6140_v33  ;;  %v2652_v20 = vmax.f32 %v2581_v18, 0.0  ;;  %v2716_v18 = vld [vmem:[#allocation4 + $0x18] sm:$0xff] }
 0x59f   : > { %v2655_v62 = vmax.f32 %v2583_v16, 0.0 }
 0x5a0   : > { %v2656_v53 = vmax.f32 %v2585_v42, 0.0  ;;  %v2717_v42 = vld [vmem:[#allocation4 + $0x20] sm:$0xff] }
 0x5a1   : > { %v2699_v41 = vpack.c.bf16 %v2655_v62, %v2651_v58  ;;  %v2718_v58 = vld [vmem:[#allocation4 + $0x28] sm:$0xff] }
 0x5a2   : > { %v2700_v36 = vpack.c.bf16 %v2656_v53, %v2652_v20  ;;  %v2588_v23 = vpop.f32.mrb[52].mxu1  ;;  %v2719_v20 = vld [vmem:[#allocation4 + $0x30] sm:$0xff] }
 0x5a3   : > { %v2589_v28 = vadd.f32 %v2588_v23, %v6136_v10  ;;  %v2590_v1 = vpop.f32.mrb[53].mxu1 }
 0x5a4   : > { %v2591_v60 = vadd.f32 %v2590_v1, %v6140_v33  ;;  %v2592_v17 = vpop.f32.mrb[54].mxu1  ;;  %3314 = vmatprep.mubr.bf16.mxu0 %v2700_v36  ;;  %v2720_v36 = vld [vmem:[#allocation4 + $0x38] sm:$0xff] }
 0x5a5   : > { %v2593_v59 = vadd.f32 %v2592_v17, %v6136_v10  ;;  %v2594_v54 = vpop.f32.mrb[55].mxu1  ;;  %3315 = vmatmul.mubr.bf16.gmra.mrb[16].mxu0 %v2699_v41  ;;  %v2659_v45 = vmax.f32 %v2589_v28, 0.0 }
 0x5a6   : > { %v2595_v21 = vadd.f32 %v2594_v54, %v6140_v33  ;;  %v2660_v12 = vmax.f32 %v2591_v60, 0.0  ;;  %v2722_v54 = vld [vmem:[#allocation4 + $0x48] sm:$0xff] }
 0x5a7   : > { %v2663_v43 = vmax.f32 %v2593_v59, 0.0  ;;  %v2721_v59 = vld [vmem:[#allocation4 + $0x40] sm:$0xff] }
 0x5a8   : > { %v2664_v0 = vmax.f32 %v2595_v21, 0.0 }
 0x5a9   : > { %v2703_v49 = vpack.c.bf16 %v2663_v43, %v2659_v45  ;;  %v2723_v45 = vld [vmem:[#allocation4 + $0x50] sm:$0xff] }
 0x5aa   : > { %v2704_v9 = vpack.c.bf16 %v2664_v0, %v2660_v12  ;;  %v2598_v14 = vpop.f32.mrb[56].mxu1  ;;  %v2724_v0 = vld [vmem:[#allocation4 + $0x58] sm:$0xff] }
 0x5ab   : > { %v2599_v55 = vadd.f32 %v2598_v14, %v6136_v10  ;;  %v2600_v22 = vpop.f32.mrb[57].mxu1 }
 0x5ac   : > { %v2601_v29 = vadd.f32 %v2600_v22, %v6140_v33  ;;  %v2602_v51 = vpop.f32.mrb[58].mxu1  ;;  %3324 = vmatprep.mubr.bf16.mxu0 %v2704_v9 }
 0x5ad   : > { %v2603_v5 = vadd.f32 %v2602_v51, %v6136_v10  ;;  %v2604_v44 = vpop.f32.mrb[59].mxu1  ;;  %3325 = vmatmul.mubr.bf16.gmra.mrb[20].mxu0 %v2703_v49  ;;  %v2667_v47 = vmax.f32 %v2599_v55, 0.0  ;;  %v2726_v51 = vld [vmem:[#allocation4 + $0x68] sm:$0xff] }
 0x5ae   : > { %v2605_v13 = vadd.f32 %v2604_v44, %v6140_v33  ;;  %v2668_v19 = vmax.f32 %v2601_v29, 0.0  ;;  %v2725_v29 = vld [vmem:[#allocation4 + $0x60] sm:$0xff]  ;;  %v2727_v44 = vld [vmem:[#allocation4 + $0x70] sm:$0xff] }
 0x5af   : > { %v2671_v4 = vmax.f32 %v2603_v5, 0.0 }
 0x5b0   : > { %v2672_v38 = vmax.f32 %v2605_v13, 0.0 }
 0x5b1   : > { %v2707_v56 = vpack.c.bf16 %v2671_v4, %v2667_v47  ;;  %v2728_v4 = vld [vmem:[#allocation4 + $0x78] sm:$0xff] }
 0x5b2   : > { %v2708_v7 = vpack.c.bf16 %v2672_v38, %v2668_v19  ;;  %v2608_v11 = vpop.f32.mrb[60].mxu1 }
 0x5b3   : > { %v2609_v27 = vadd.f32 %v2608_v11, %v6136_v10  ;;  %v2610_v3 = vpop.f32.mrb[61].mxu1 }
 0x5b4   : > { %v2611_v57 = vadd.f32 %v2610_v3, %v6140_v33  ;;  %v2612_v50 = vpop.f32.mrb[62].mxu1  ;;  %3334 = vmatprep.mubr.bf16.mxu0 %v2708_v7  ;;  %v2730_v3 = vld [vmem:[#allocation4 + $0x88] sm:$0xff] }
 0x5b5   : > { %v2613_v52 = vadd.f32 %v2612_v50, %v6136_v10  ;;  %v2614_v6 = vpop.f32.mrb[63].mxu1  ;;  %3335 = vmatmul.mubr.bf16.gmra.mrb[24].mxu0 %v2707_v56  ;;  %v2675_v35 = vmax.f32 %v2609_v27, 0.0  ;;  %v2729_v27 = vld [vmem:[#allocation4 + $0x80] sm:$0xff]  ;;  %v2731_v50 = vld [vmem:[#allocation4 + $0x90] sm:$0xff] }
 0x5b6   : > { %v2615_v46 = vadd.f32 %v2614_v6, %v6140_v33  ;;  %v2676_v32 = vmax.f32 %v2611_v57, 0.0 }
 0x5b7   : > { %v2679_v31 = vmax.f32 %v2613_v52, 0.0 }
 0x5b8   : > { %v2680_v34 = vmax.f32 %v2615_v46, 0.0  ;;  %v2732_v46 = vld [vmem:[#allocation4 + $0x98] sm:$0xff] }
 0x5b9   : > { %v2711_v26 = vpack.c.bf16 %v2679_v31, %v2675_v35 }
 0x5ba   : > { %v2712_v48 = vpack.c.bf16 %v2680_v34, %v2676_v32 }
 0x5bc   : > { %3344 = vmatprep.mubr.bf16.mxu0 %v2712_v48  ;;  %v2733_v48 = vld [vmem:[#allocation4 + $0xa0] sm:$0xff] }
 0x5bd   : > { %3345 = vmatmul.mubr.bf16.gmra.mrb[28].mxu0 %v2711_v26 }
 0x658   : > { %v3276_v24 = vpop.f32.mrb[0].mxu0 }
 0x659   : > { %v3355_v61 = vadd.f32 %v3276_v24, %v2713_v25  ;;  %v3278_v8 = vpop.f32.mrb[1].mxu0  ;;  %v2734_v25 = vld [vmem:[#allocation4 + $0xa8] sm:$0xff]  ;;  %v2735_v24 = vld [vmem:[#allocation4 + $0xb0] sm:$0xff] }
 0x65a   : > { %v3356_v10 = vadd.f32 %v3278_v8, %v2714_v40  ;;  %v3280_v63 = vpop.f32.mrb[2].mxu0  ;;  %v2736_v8 = vld [vmem:[#allocation4 + $0xb8] sm:$0xff] }
 0x65b   : > { %3387 = vst [vmem:[#allocation4] sm:$0xff] %v3355_v61  ;;  %v3357_v16 = vadd.f32 %v3280_v63, %v2715_v37  ;;  %v3282_v33 = vpop.f32.mrb[3].mxu0 }
 0x65c   : > { %3388 = vst [vmem:[#allocation4 + $0x8] sm:$0xff] %v3356_v10  ;;  %v3358_v39 = vadd.f32 %v3282_v33, %v2716_v18 }
 0x65d   : > { %3389 = vst [vmem:[#allocation4 + $0x10] sm:$0xff] %v3357_v16 }
 0x65e   : > { %3390 = vst [vmem:[#allocation4 + $0x18] sm:$0xff] %v3358_v39  ;;  %v2737_v39 = vld [vmem:[#allocation4 + $0xc0] sm:$0xff] }
 0x660   : > { %v3286_v62 = vpop.f32.mrb[4].mxu0 }
 0x661   : > { %v3359_v53 = vadd.f32 %v3286_v62, %v2717_v42  ;;  %v3288_v41 = vpop.f32.mrb[5].mxu0  ;;  %v2738_v42 = vld [vmem:[#allocation4 + $0xc8] sm:$0xff]  ;;  %v2739_v62 = vld [vmem:[#allocation4 + $0xd0] sm:$0xff] }
 0x662   : > { %v3360_v23 = vadd.f32 %v3288_v41, %v2718_v58  ;;  %v3290_v28 = vpop.f32.mrb[6].mxu0  ;;  %v2740_v41 = vld [vmem:[#allocation4 + $0xd8] sm:$0xff] }
 0x663   : > { %3391 = vst [vmem:[#allocation4 + $0x20] sm:$0xff] %v3359_v53  ;;  %v3361_v1 = vadd.f32 %v3290_v28, %v2719_v20  ;;  %v3292_v60 = vpop.f32.mrb[7].mxu0 }
 0x664   : > { %3392 = vst [vmem:[#allocation4 + $0x28] sm:$0xff] %v3360_v23  ;;  %v3362_v17 = vadd.f32 %v3292_v60, %v2720_v36 }
 0x665   : > { %3393 = vst [vmem:[#allocation4 + $0x30] sm:$0xff] %v3361_v1 }
 0x666   : > { %3394 = vst [vmem:[#allocation4 + $0x38] sm:$0xff] %v3362_v17  ;;  %v2741_v17 = vld [vmem:[#allocation4 + $0xe0] sm:$0xff] }
 0x668   : > { %v3296_v21 = vpop.f32.mrb[8].mxu0 }
 0x669   : > { %v3363_v43 = vadd.f32 %v3296_v21, %v2721_v59  ;;  %v3298_v12 = vpop.f32.mrb[9].mxu0  ;;  %v2742_v59 = vld [vmem:[#allocation4 + $0xe8] sm:$0xff]  ;;  %v2743_v21 = vld [vmem:[#allocation4 + $0xf0] sm:$0xff] }
 0x66a   : > { %v3364_v49 = vadd.f32 %v3298_v12, %v2722_v54  ;;  %v3300_v9 = vpop.f32.mrb[10].mxu0  ;;  %v2744_v12 = vld [vmem:[#allocation4 + $0xf8] sm:$0xff] }
 0x66b   : > { %3395 = vst [vmem:[#allocation4 + $0x40] sm:$0xff] %v3363_v43  ;;  %v3365_v14 = vadd.f32 %v3300_v9, %v2723_v45  ;;  %v3302_v55 = vpop.f32.mrb[11].mxu0 }
 0x66c   : > { %3396 = vst [vmem:[#allocation4 + $0x48] sm:$0xff] %v3364_v49  ;;  %v3366_v22 = vadd.f32 %v3302_v55, %v2724_v0 }
 0x66d   : > { %3397 = vst [vmem:[#allocation4 + $0x50] sm:$0xff] %v3365_v14 }
 0x66e   : > { %3398 = vst [vmem:[#allocation4 + $0x58] sm:$0xff] %v3366_v22  ;;  %v3423_v22 = vld [vmem:[#allocation4] sm:$0xff] (!%p3962_p10) }
 0x670   : > { %v3306_v5 = vpop.f32.mrb[12].mxu0 }
 0x671   : > { %v3367_v13 = vadd.f32 %v3306_v5, %v2725_v29  ;;  %v3308_v47 = vpop.f32.mrb[13].mxu0  ;;  %v3455_v29 = vld [vmem:[%s6379_s25] sm:$0x3] (!%p3962_p10) }
 0x672   : > { %v3368_v19 = vadd.f32 %v3308_v47, %v2726_v51  ;;  %v3310_v38 = vpop.f32.mrb[14].mxu0  ;;  %v3499_v51 = vld [vmem:[#allocation2] sm:$0xff] (!%p3962_p10)  ;;  %v6183_v5 = vrot.slane (!%p3962_p10), %v3455_v29, %v2053_v2  ;;  %v3500_v47 = vld [vmem:[#allocation2 + $0x8] sm:$0xff] (!%p3962_p10) }
 0x673   : > { %3399 = vst [vmem:[#allocation4 + $0x60] sm:$0xff] %v3367_v13  ;;  %v3369_v56 = vadd.f32 %v3310_v38, %v2727_v44  ;;  %v3312_v7 = vpop.f32.mrb[15].mxu0  ;;  %v3424_v44 = vld [vmem:[#allocation4 + $0x8] sm:$0xff] (!%p3962_p10)  ;;  %v6187_v13 = vrot.slane (!%p3962_p10), %v3455_v29, %v2057_v30  ;;  %v3426_v38 = vld [vmem:[#allocation4 + $0x18] sm:$0xff] (!%p3962_p10)  ;;  %v3427_v2 = vld [vmem:[#allocation4 + $0x20] sm:$0xff] (!%p3962_p10) }
 0x674   : > { %3400 = vst [vmem:[#allocation4 + $0x68] sm:$0xff] %v3368_v19  ;;  %v3370_v11 = vadd.f32 %v3312_v7, %v2728_v4  ;;  %v3425_v4 = vld [vmem:[#allocation4 + $0x10] sm:$0xff] (!%p3962_p10)  ;;  %v3467_v7 = vadd.f32 (!%p3962_p10), %v6183_v5, %v3423_v22  ;;  %v3471_v15 = vadd.f32 (!%p3962_p10), %v6183_v5, %v3427_v2  ;;  %v3515_v29 = vld [vmem:[#allocation2 + $0x80] sm:$0xff] (!%p3962_p10)  ;;  %v3518_v2 = vld [vmem:[#allocation2 + $0x98] sm:$0xff] (!%p3962_p10) }
 0x675   : > { %3401 = vst [vmem:[#allocation4 + $0x70] sm:$0xff] %v3369_v56  ;;  %v3501_v19 = vld [vmem:[#allocation2 + $0x10] sm:$0xff] (!%p3962_p10)  ;;  %v3502_v56 = vld [vmem:[#allocation2 + $0x18] sm:$0xff] (!%p3962_p10) }
 0x676   : > { %3402 = vst [vmem:[#allocation4 + $0x78] sm:$0xff] %v3370_v11  ;;  %v3468_v11 = vadd.f32 (!%p3962_p10), %v6187_v13, %v3424_v44 }
 0x678   : > { %v3316_v57 = vpop.f32.mrb[16].mxu0 }
 0x679   : > { %v3371_v52 = vadd.f32 %v3316_v57, %v2729_v27  ;;  %v3318_v6 = vpop.f32.mrb[17].mxu0  ;;  %v3469_v27 = vadd.f32 (!%p3962_p10), %v6183_v5, %v3425_v4  ;;  %v3503_v57 = vld [vmem:[#allocation2 + $0x20] sm:$0xff] (!%p3962_p10) }
 0x67a   : > { %v3372_v35 = vadd.f32 %v3318_v6, %v2730_v3  ;;  %v3320_v31 = vpop.f32.mrb[18].mxu0  ;;  %v3470_v3 = vadd.f32 (!%p3962_p10), %v6187_v13, %v3426_v38  ;;  %v3429_v6 = vld [vmem:[#allocation4 + $0x30] sm:$0xff] (!%p3962_p10)  ;;  %v3516_v38 = vld [vmem:[#allocation2 + $0x88] sm:$0xff] (!%p3962_p10) }
 0x67b   : > { %3403 = vst [vmem:[#allocation4 + $0x80] sm:$0xff] %v3371_v52  ;;  %v3373_v32 = vadd.f32 %v3320_v31, %v2731_v50  ;;  %v3322_v34 = vpop.f32.mrb[19].mxu0  ;;  %v3428_v50 = vld [vmem:[#allocation4 + $0x28] sm:$0xff] (!%p3962_p10)  ;;  %v3532_v31 = vadd.f32 (!%p3962_p10), %v3500_v47, %v3468_v11 }
 0x67c   : > { %3404 = vst [vmem:[#allocation4 + $0x88] sm:$0xff] %v3372_v35  ;;  %v3374_v26 = vadd.f32 %v3322_v34, %v2732_v46  ;;  %v3472_v30 = vadd.f32 (!%p3962_p10), %v6187_v13, %v3428_v50  ;;  %v3504_v52 = vld [vmem:[#allocation2 + $0x28] sm:$0xff] (!%p3962_p10)  ;;  %v3505_v46 = vld [vmem:[#allocation2 + $0x30] sm:$0xff] (!%p3962_p10)  ;;  %v3531_v35 = vadd.f32 (!%p3962_p10), %v3499_v51, %v3467_v7  ;;  %v3534_v34 = vadd.f32 (!%p3962_p10), %v3502_v56, %v3470_v3 }
 0x67d   : > { %3405 = vst [vmem:[#allocation4 + $0x90] sm:$0xff] %v3373_v32  ;;  %v3533_v32 = vadd.f32 (!%p3962_p10), %v3501_v19, %v3469_v27  ;;  %3564 = vst [vmem:[%s4948_s24 + $0x8] sm:$0xff] (!%p3962_p10), %v3532_v31  ;;  %v3517_v7 = vld [vmem:[#allocation2 + $0x90] sm:$0xff] (!%p3962_p10) }
 0x67e   : > { %3406 = vst [vmem:[#allocation4 + $0x98] sm:$0xff] %v3374_v26  ;;  %v3430_v26 = vld [vmem:[#allocation4 + $0x38] sm:$0xff] (!%p3962_p10)  ;;  %3563 = vst [vmem:[%s4948_s24] sm:$0xff] (!%p3962_p10), %v3531_v35  ;;  %v3520_v35 = vld [vmem:[#allocation2 + $0xa8] sm:$0xff] (!%p3962_p10) }
 0x67f   : > { %3565 = vst [vmem:[%s4948_s24 + $0x10] sm:$0xff] (!%p3962_p10), %v3533_v32  ;;  %3566 = vst [vmem:[%s4948_s24 + $0x18] sm:$0xff] (!%p3962_p10), %v3534_v34 }
 0x680   : > { %v3326_v40 = vpop.f32.mrb[20].mxu0 }
 0x681   : > { %v3375_v37 = vadd.f32 %v3326_v40, %v2733_v48  ;;  %v3328_v61 = vpop.f32.mrb[21].mxu0  ;;  %v3506_v48 = vld [vmem:[#allocation2 + $0x38] sm:$0xff] (!%p3962_p10)  ;;  %v3535_v40 = vadd.f32 (!%p3962_p10), %v3503_v57, %v3471_v15 }
 0x682   : > { %v3376_v18 = vadd.f32 %v3328_v61, %v2734_v25  ;;  %v3330_v10 = vpop.f32.mrb[22].mxu0  ;;  %v3431_v25 = vld [vmem:[#allocation4 + $0x40] sm:$0xff] (!%p3962_p10)  ;;  %v3474_v61 = vadd.f32 (!%p3962_p10), %v6187_v13, %v3430_v26  ;;  %v3521_v26 = vld [vmem:[#allocation2 + $0xb0] sm:$0xff] (!%p3962_p10) }
 0x683   : > { %3407 = vst [vmem:[#allocation4 + $0xa0] sm:$0xff] %v3375_v37  ;;  %v3377_v63 = vadd.f32 %v3330_v10, %v2735_v24  ;;  %v3332_v16 = vpop.f32.mrb[23].mxu0  ;;  %v3536_v24 = vadd.f32 (!%p3962_p10), %v3504_v52, %v3472_v30  ;;  %v3473_v37 = vadd.f32 (!%p3962_p10), %v6183_v5, %v3429_v6  ;;  %v3508_v10 = vld [vmem:[#allocation2 + $0x48] sm:$0xff] (!%p3962_p10)  ;;  %3567 = vst [vmem:[%s4948_s24 + $0x20] sm:$0xff] (!%p3962_p10), %v3535_v40  ;;  %v3439_v22 = vld [vmem:[#allocation4 + $0x80] sm:$0xff] (!%p3962_p10) }
 0x684   : > { %3408 = vst [vmem:[#allocation4 + $0xa8] sm:$0xff] %v3376_v18  ;;  %v3378_v33 = vadd.f32 %v3332_v16, %v2736_v8  ;;  %v3507_v8 = vld [vmem:[#allocation2 + $0x40] sm:$0xff] (!%p3962_p10)  ;;  %v3432_v18 = vld [vmem:[#allocation4 + $0x48] sm:$0xff] (!%p3962_p10)  ;;  %v3483_v4 = vadd.f32 (!%p3962_p10), %v6183_v5, %v3439_v22  ;;  %v3441_v56 = vld [vmem:[#allocation4 + $0x90] sm:$0xff] (!%p3962_p10) }
 0x685   : > { %3409 = vst [vmem:[#allocation4 + $0xb0] sm:$0xff] %v3377_v63  ;;  %v3475_v63 = vadd.f32 (!%p3962_p10), %v6183_v5, %v3431_v25  ;;  %v3476_v16 = vadd.f32 (!%p3962_p10), %v6187_v13, %v3432_v18  ;;  %3568 = vst [vmem:[%s4948_s24 + $0x28] sm:$0xff] (!%p3962_p10), %v3536_v24  ;;  %v3440_v51 = vld [vmem:[#allocation4 + $0x88] sm:$0xff] (!%p3962_p10)  ;;  %v3485_v27 = vadd.f32 (!%p3962_p10), %v6183_v5, %v3441_v56  ;;  %v3442_v3 = vld [vmem:[#allocation4 + $0x98] sm:$0xff] (!%p3962_p10) }
 0x686   : > { %3410 = vst [vmem:[#allocation4 + $0xb8] sm:$0xff] %v3378_v33  ;;  %v3433_v33 = vld [vmem:[#allocation4 + $0x50] sm:$0xff] (!%p3962_p10)  ;;  %v3484_v19 = vadd.f32 (!%p3962_p10), %v6187_v13, %v3440_v51  ;;  %v3547_v50 = vadd.f32 (!%p3962_p10), %v3515_v29, %v3483_v4  ;;  %v3486_v30 = vadd.f32 (!%p3962_p10), %v6187_v13, %v3442_v3  ;;  %v3519_v6 = vld [vmem:[#allocation2 + $0xa0] sm:$0xff] (!%p3962_p10) }
 0x687   : > { %v3549_v31 = vadd.f32 (!%p3962_p10), %v3517_v7, %v3485_v27  ;;  %v3523_v18 = vld [vmem:[#allocation2 + $0xc0] sm:$0xff] (!%p3962_p10) }
 0x688   : > { %v3336_v58 = vpop.f32.mrb[24].mxu0  ;;  %v3548_v15 = vadd.f32 (!%p3962_p10), %v3516_v38, %v3484_v19  ;;  %3579 = vst [vmem:[%s4948_s24 + $0x80] sm:$0xff] (!%p3962_p10), %v3547_v50  ;;  %v3550_v25 = vadd.f32 (!%p3962_p10), %v3518_v2, %v3486_v30 }
 0x689   : > { %v3379_v20 = vadd.f32 %v3336_v58, %v2737_v39  ;;  %v3338_v53 = vpop.f32.mrb[25].mxu0  ;;  %v3509_v39 = vld [vmem:[#allocation2 + $0x50] sm:$0xff] (!%p3962_p10)  ;;  %v3537_v58 = vadd.f32 (!%p3962_p10), %v3505_v46, %v3473_v37  ;;  %3581 = vst [vmem:[%s4948_s24 + $0x90] sm:$0xff] (!%p3962_p10), %v3549_v31 }
 0x68a   : > { %v3380_v36 = vadd.f32 %v3338_v53, %v2738_v42  ;;  %v3340_v23 = vpop.f32.mrb[26].mxu0  ;;  %v3434_v42 = vld [vmem:[#allocation4 + $0x58] sm:$0xff] (!%p3962_p10)  ;;  %v3443_v57 = vld [vmem:[#allocation4 + $0xa0] sm:$0xff] (!%p3962_p10)  ;;  %3580 = vst [vmem:[%s4948_s24 + $0x88] sm:$0xff] (!%p3962_p10), %v3548_v15  ;;  %3582 = vst [vmem:[%s4948_s24 + $0x98] sm:$0xff] (!%p3962_p10), %v3550_v25 }
 0x68b   : > { %3411 = vst [vmem:[#allocation4 + $0xc0] sm:$0xff] %v3379_v20  ;;  %v3381_v28 = vadd.f32 %v3340_v23, %v2739_v62  ;;  %v3342_v1 = vpop.f32.mrb[27].mxu0  ;;  %v3538_v62 = vadd.f32 (!%p3962_p10), %v3506_v48, %v3474_v61  ;;  %v3477_v20 = vadd.f32 (!%p3962_p10), %v6183_v5, %v3433_v33  ;;  %v3478_v53 = vadd.f32 (!%p3962_p10), %v6187_v13, %v3434_v42  ;;  %v3511_v23 = vld [vmem:[#allocation2 + $0x60] sm:$0xff] (!%p3962_p10)  ;;  %v3444_v46 = vld [vmem:[#allocation4 + $0xa8] sm:$0xff] (!%p3962_p10)  ;;  %v3522_v61 = vld [vmem:[#allocation2 + $0xb8] sm:$0xff] (!%p3962_p10) }
 0x68c   : > { %3412 = vst [vmem:[#allocation4 + $0xc8] sm:$0xff] %v3380_v36  ;;  %v3382_v60 = vadd.f32 %v3342_v1, %v2740_v41  ;;  %v3510_v41 = vld [vmem:[#allocation2 + $0x58] sm:$0xff] (!%p3962_p10)  ;;  %v3435_v36 = vld [vmem:[#allocation4 + $0x60] sm:$0xff] (!%p3962_p10)  ;;  %v3540_v1 = vadd.f32 (!%p3962_p10), %v3508_v10, %v3476_v16  ;;  %3569 = vst [vmem:[%s4948_s24 + $0x30] sm:$0xff] (!%p3962_p10), %v3537_v58  ;;  %v3487_v52 = vadd.f32 (!%p3962_p10), %v6183_v5, %v3443_v57 }
 0x68d   : > { %3413 = vst [vmem:[#allocation4 + $0xd0] sm:$0xff] %v3381_v28  ;;  %v3539_v28 = vadd.f32 (!%p3962_p10), %v3507_v8, %v3475_v63  ;;  %3570 = vst [vmem:[%s4948_s24 + $0x38] sm:$0xff] (!%p3962_p10), %v3538_v62  ;;  %v3488_v32 = vadd.f32 (!%p3962_p10), %v6187_v13, %v3444_v46  ;;  %v3445_v34 = vld [vmem:[#allocation4 + $0xb0] sm:$0xff] (!%p3962_p10)  ;;  %v3446_v48 = vld [vmem:[#allocation4 + $0xb8] sm:$0xff] (!%p3962_p10) }
 0x68e   : > { %3414 = vst [vmem:[#allocation4 + $0xd8] sm:$0xff] %v3382_v60  ;;  %v3479_v60 = vadd.f32 (!%p3962_p10), %v6183_v5, %v3435_v36  ;;  %3572 = vst [vmem:[%s4948_s24 + $0x48] sm:$0xff] (!%p3962_p10), %v3540_v1  ;;  %v3551_v40 = vadd.f32 (!%p3962_p10), %v3519_v6, %v3487_v52  ;;  %v3489_v24 = vadd.f32 (!%p3962_p10), %v6183_v5, %v3445_v34  ;;  %v3524_v33 = vld [vmem:[#allocation2 + $0xc8] sm:$0xff] (!%p3962_p10)  ;;  %v3526_v36 = vld [vmem:[#allocation2 + $0xd8] sm:$0xff] (!%p3962_p10) }
 0x68f   : > { %3571 = vst [vmem:[%s4948_s24 + $0x40] sm:$0xff] (!%p3962_p10), %v3539_v28  ;;  %v3490_v37 = vadd.f32 (!%p3962_p10), %v6187_v13, %v3446_v48  ;;  %v3552_v10 = vadd.f32 (!%p3962_p10), %v3520_v35, %v3488_v32 }
 0x690   : > { %v3346_v54 = vpop.f32.mrb[28].mxu0  ;;  %3422 = sbr.rel (%p3962_p10) target bundleno = 1699 (0x6a3), region = 99  ;;  %3583 = vst [vmem:[%s4948_s24 + $0xa0] sm:$0xff] (!%p3962_p10), %v3551_v40  ;;  %v3553_v42 = vadd.f32 (!%p3962_p10), %v3521_v26, %v3489_v24 }
 0x691   : > { %v3383_v45 = vadd.f32 %v3346_v54, %v2741_v17  ;;  %v3348_v43 = vpop.f32.mrb[29].mxu0  ;;  %v3436_v17 = vld [vmem:[#allocation4 + $0x68] sm:$0xff] (!%p3962_p10)  ;;  %v3437_v54 = vld [vmem:[#allocation4 + $0x70] sm:$0xff] (!%p3962_p10)  ;;  %v3554_v58 = vadd.f32 (!%p3962_p10), %v3522_v61, %v3490_v37  ;;  %3584 = vst [vmem:[%s4948_s24 + $0xa8] sm:$0xff] (!%p3962_p10), %v3552_v10 }
 0x692   : > { %v3384_v0 = vadd.f32 %v3348_v43, %v2742_v59  ;;  %v3350_v49 = vpop.f32.mrb[30].mxu0  ;;  %v3512_v59 = vld [vmem:[#allocation2 + $0x68] sm:$0xff] (!%p3962_p10)  ;;  %v3480_v43 = vadd.f32 (!%p3962_p10), %v6187_v13, %v3436_v17  ;;  %v3447_v8 = vld [vmem:[#allocation4 + $0xc0] sm:$0xff] (!%p3962_p10)  ;;  %3585 = vst [vmem:[%s4948_s24 + $0xb0] sm:$0xff] (!%p3962_p10), %v3553_v42 }
 0x693   : > { %3415 = vst [vmem:[#allocation4 + $0xe0] sm:$0xff] %v3383_v45  ;;  %v3385_v9 = vadd.f32 %v3350_v49, %v2743_v21  ;;  %v3352_v14 = vpop.f32.mrb[31].mxu0  ;;  %v3541_v21 = vadd.f32 (!%p3962_p10), %v3509_v39, %v3477_v20  ;;  %v3542_v45 = vadd.f32 (!%p3962_p10), %v3510_v41, %v3478_v53  ;;  %v3438_v49 = vld [vmem:[#allocation4 + $0x78] sm:$0xff] (!%p3962_p10)  ;;  %v3491_v63 = vadd.f32 (!%p3962_p10), %v6183_v5, %v3447_v8  ;;  %v3448_v16 = vld [vmem:[#allocation4 + $0xc8] sm:$0xff] (!%p3962_p10)  ;;  %v3525_v53 = vld [vmem:[#allocation2 + $0xd0] sm:$0xff] (!%p3962_p10) }
 0x694   : > { %3416 = vst [vmem:[#allocation4 + $0xe8] sm:$0xff] %v3384_v0  ;;  %v3386_v55 = vadd.f32 %v3352_v14, %v2744_v12  ;;  %v3481_v12 = vadd.f32 (!%p3962_p10), %v6183_v5, %v3437_v54  ;;  %v3513_v0 = vld [vmem:[#allocation2 + $0x70] sm:$0xff] (!%p3962_p10)  ;;  %v3543_v14 = vadd.f32 (!%p3962_p10), %v3511_v23, %v3479_v60  ;;  %v3544_v44 = vadd.f32 (!%p3962_p10), %v3512_v59, %v3480_v43  ;;  %v3527_v60 = vld [vmem:[#allocation2 + $0xe0] sm:$0xff] (!%p3962_p10)  ;;  %v3528_v43 = vld [vmem:[#allocation2 + $0xe8] sm:$0xff] (!%p3962_p10) }
 0x695   : > { %3417 = vst [vmem:[#allocation4 + $0xf0] sm:$0xff] %v3385_v9  ;;  %v3514_v9 = vld [vmem:[#allocation2 + $0x78] sm:$0xff] (!%p3962_p10)  ;;  %3573 = vst [vmem:[%s4948_s24 + $0x50] sm:$0xff] (!%p3962_p10), %v3541_v21  ;;  %v3449_v39 = vld [vmem:[#allocation4 + $0xd0] sm:$0xff] (!%p3962_p10)  ;;  %v3492_v62 = vadd.f32 (!%p3962_p10), %v6187_v13, %v3448_v16  ;;  %v3555_v23 = vadd.f32 (!%p3962_p10), %v3523_v18, %v3491_v63 }
 0x696   : > { %3418 = vst [vmem:[#allocation4 + $0xf8] sm:$0xff] %v3386_v55  ;;  %v3482_v55 = vadd.f32 (!%p3962_p10), %v6187_v13, %v3438_v49  ;;  %3574 = vst [vmem:[%s4948_s24 + $0x58] sm:$0xff] (!%p3962_p10), %v3542_v45  ;;  %v3545_v47 = vadd.f32 (!%p3962_p10), %v3513_v0, %v3481_v12  ;;  %v3493_v20 = vadd.f32 (!%p3962_p10), %v6183_v5, %v3449_v39  ;;  %v3450_v41 = vld [vmem:[#allocation4 + $0xd8] sm:$0xff] (!%p3962_p10)  ;;  %v3529_v0 = vld [vmem:[#allocation2 + $0xf0] sm:$0xff] (!%p3962_p10) }
 0x697   : > { %3575 = vst [vmem:[%s4948_s24 + $0x60] sm:$0xff] %v3543_v14  ;;  %3576 = vst [vmem:[%s4948_s24 + $0x68] sm:$0xff] %v3544_v44  ;;  %v3494_v28 = vadd.f32 %v6187_v13, %v3450_v41  ;;  %v3556_v59 = vadd.f32 %v3524_v33, %v3492_v62 }
 0x698   : > { %v3546_v11 = vadd.f32 %v3514_v9, %v3482_v55  ;;  %3577 = vst [vmem:[%s4948_s24 + $0x70] sm:$0xff] %v3545_v47  ;;  %3586 = vst [vmem:[%s4948_s24 + $0xb8] sm:$0xff] %v3554_v58  ;;  %v3557_v54 = vadd.f32 %v3525_v53, %v3493_v20  ;;  %v3530_v55 = vld [vmem:[#allocation2 + $0xf8] sm:$0xff] }
 0x699   : > { %3587 = vst [vmem:[%s4948_s24 + $0xc0] sm:$0xff] %v3555_v23  ;;  %v3558_v49 = vadd.f32 %v3526_v36, %v3494_v28  ;;  %3588 = vst [vmem:[%s4948_s24 + $0xc8] sm:$0xff] %v3556_v59 }
 0x69a   : > { %3578 = vst [vmem:[%s4948_s24 + $0x78] sm:$0xff] %v3546_v11  ;;  %v3451_v1 = vld [vmem:[#allocation4 + $0xe0] sm:$0xff]  ;;  %3589 = vst [vmem:[%s4948_s24 + $0xd0] sm:$0xff] %v3557_v54 }
 0x69b   : > { %v3452_v17 = vld [vmem:[#allocation4 + $0xe8] sm:$0xff]  ;;  %v3495_v21 = vadd.f32 %v6183_v5, %v3451_v1  ;;  %3590 = vst [vmem:[%s4948_s24 + $0xd8] sm:$0xff] %v3558_v49 }
 0x69c   : > { %v3496_v45 = vadd.f32 %v6187_v13, %v3452_v17  ;;  %v3453_v12 = vld [vmem:[#allocation4 + $0xf0] sm:$0xff] }
 0x69d   : > { %v3497_v9 = vadd.f32 %v6183_v5, %v3453_v12  ;;  %v3454_v14 = vld [vmem:[#allocation4 + $0xf8] sm:$0xff]  ;;  %v3559_v22 = vadd.f32 %v3527_v60, %v3495_v21 }
 0x69e   : > { %v3560_v29 = vadd.f32 %v3528_v43, %v3496_v45  ;;  %v3498_v51 = vadd.f32 %v6187_v13, %v3454_v14 }
 0x69f   : > { %v3561_v44 = vadd.f32 %v3529_v0, %v3497_v9  ;;  %3591 = vst [vmem:[%s4948_s24 + $0xe0] sm:$0xff] %v3559_v22 }
 0x6a0   : > { %3592 = vst [vmem:[%s4948_s24 + $0xe8] sm:$0xff] %v3560_v29  ;;  %v3562_v47 = vadd.f32 %v3530_v55, %v3498_v51 }
 0x6a1   : > { %3593 = vst [vmem:[%s4948_s24 + $0xf0] sm:$0xff] %v3561_v44 }
 0x6a2   : > { %3594 = vst [vmem:[%s4948_s24 + $0xf8] sm:$0xff] %v3562_v47 }
 0x6a3 PF: > { %s3972_s26 = sshll.u32 %s4577_s27, 5  ;;  %s3966_s11 = sshll.u32 %s4581_s28, 6 }
 0x6a4   : > { %s3612_s7 = sshll.u32 %s4948_s24, 4  ;;  %s3609_s18 = sadd.s32 %s3972_s26, %s3966_s11  ;;  %s6256_s7 = int_to_ptr.vmem [resolvable:$true] %s3612_s7 }
 0x6a5   : > { %s3967_s19 = sshll.u32 %s3609_s18, 7  ;;  %s6380_s23 = sld [smem:[#allocation26_spill]] }
 0x6a6   : > { %s6382_s16 = sand.u32 1, %s4557_s22   ;;  %s4471_s4 = scalar_lea.vmem %s6256_s7, 4096 }
 0x6a7   : > { %s6265_s5 = scalar_lea.sflag [#allocation7], %s6382_s16  ;;  %p4472_p11 = scmp.ne.s32.totalorder %s6256_s7, %s4471_s4 }
 0x6a8   : > { %s4600_s27 = smov [#allocation6]  }
 0x6a9   : > { %p4473_p12 = pnand %p4472_p11, %p4758_p9  ;;  %s4475_s28 = sshll.u32 %s4600_s27, 4  ;;  %s4476_s28 = int_to_ptr.vmem [resolvable:$false] %s4475_s28 }
 0x6aa   : > { %s4477_s24 = scalar_lea.vmem %s4476_s28, 8192  ;;  %p4478_p1 = scmp.lt.s32.totalorder %s6256_s7, %s4476_s28 }
 0x6ab   : > { %s6381_s12 = smov %s6380_s23  ;;  %s6261_s15 = scalar_lea.hbm %s6380_s23, %s3967_s19 }
 0x6ac   : > { %p4474_p0 = pneg %p4473_p12  ;;  %p4479_p2 = scmp.lt.s32.totalorder %s4477_s24, %s4471_s4 }
 0x6ae   : > { %p4480_p3 = por %p4479_p2, %p4478_p1 }
 0x6b0   : > { %p4481_p4 = pnand %p4480_p3, %p4474_p0 }
 0x6b2   : > { %4484 = shalt.err (!%p4481_p4)
}
 0x6b3   : > { %s4485_s29 = scalar_lea.hbm %s6261_s15, 4096  ;;  %s4489_s8 = scalar_lea.hbm %s6381_s12, 16384 }
 0x6b4   : > { %p4486_p5 = scmp.ne.s32.totalorder %s6261_s15, %s4485_s29  ;;  %p4490_p8 = scmp.lt.u32.totalorder %s6261_s15, %s6381_s12 }
 0x6b5   : > { %p4491_p10 = scmp.lt.u32.totalorder %s4489_s8, %s4485_s29  ;;  %p4493_p12 = scmp.lt.u32.totalorder %s4485_s29, %s6261_s15 }
 0x6b6   : > { %p4487_p6 = pnand %p4486_p5, %p4758_p9 }
 0x6b7   : > { %p4492_p11 = por %p4491_p10, %p4490_p8 }
 0x6b8   : > { %p4488_p7 = pneg %p4487_p6 }
 0x6b9   : > { %p4494_p0 = por %p4493_p12, %p4492_p11 }
 0x6bb   : > { %p4495_p1 = pnand %p4494_p0, %p4488_p7 }
 0x6bd   : > { %4498 = shalt.err (!%p4495_p1)
}
 0x6be   : > { %s4601_s11 = smov 256   ;;  %s4602_s18 = smov 16  }
 0x6bf   : > { %4037 = dma.vmem_to_hbm [thread:$0]  (%p4758_p9), %s6256_s7, 4096, %s6261_s15, %s6265_s5, %s4601_s11, %s4601_s11, %s4602_s18  }
 0x6c0 PF: > { %p4043_p2 = scmp.ge.s32.totalorder %s4597_s14, 2  ;;  %s3627_s6 = sand.u32 1, %s4553_s21  }
 0x6c1   : > { %s3628_s13 = scalar_lea.sflag [#allocation7], %s3627_s6 }
 0x6c2   : > { %p4040_p3 = pnand %p4043_p2, %p4767_p13 }
 0x6c4   : > { %4548 = dma.done.wait (!%p4040_p3), %s3628_s13, 4096  }
 0x6c5   : > { %4550 = vsyncadd (!%p4040_p3), %s3628_s13, 4294963200  ;;  %s25_s14 = sadd.s32 1, %s4597_s14   ;;  %s6384_s23 = sld [smem:[#allocation9_spill]] }
 0x6c6   : > { %p22_p4 = scmp.ge.s32.totalorder %s25_s14, 10   ;;  %s6385_s16 = sld [smem:[#allocation19_spill]] }
 0x6c7   : > { %s6386_s24 = sld [smem:[#allocation10_spill]]  ;;  %s6387_s25 = sld [smem:[#allocation16_spill]] }
 0x6c8   : > { %s6388_s26 = sld [smem:[#allocation11_spill]]  ;;  %s6389_s27 = sld [smem:[#allocation12_spill]] }
 0x6c9   : > { %s6390_s28 = sld [smem:[#allocation13_spill]]  ;;  %s6391_s29 = sld [smem:[#allocation14_spill]] }
 0x6ca   : > { %s6392_s30 = sld [smem:[#allocation15_spill]]  ;;  %s6393_s13 = sld [smem:[#allocation17_spill]] }
 0x6cb   : > { %s6394_s21 = smov %s4557_s22  ;;  %s6395_s22 = smov %s6384_s23 }
 0x6cc   : > { %s6396_s23 = smov %s6385_s16  ;;  %24 = sbr.rel (!%p22_p4) target bundleno = 15 (0xf), region = 151 }
 0x6d3   :  { %3633 = vsyncpa [#allocation7], 1 }
 0x6d4   :  { %3635 = vsyncpa [#allocation7 + $0x1], 1 }

</bundles_post_ra>
